<compile_context>
chip_gen: v7x
topology: tpu7x:2x2x1
jax: 0.10.0
libtpu: 0.0.40
codegen_flags: <defaults>
</compile_context>

<pallas_src>
import math
import functools

import jax
import jax.numpy as jnp
from jax import lax
from jax.experimental import pallas as pl
from jax.experimental.pallas import tpu as pltpu


# ----------------------------- shared math helpers -----------------------------

def _gelu_tanh(v):
    # TODO(synk): torch nn.GELU defaults to exact erf; tanh approximation used here
    # (difference < ~1e-3).  The pure-JAX reference below uses the same form.
    c = math.sqrt(2.0 / math.pi)
    return 0.5 * v * (1.0 + jnp.tanh(c * (v + 0.044715 * v * v * v)))


def _layernorm(v, g, b, eps=1e-5):
    mu = jnp.mean(v, axis=-1, keepdims=True)
    d = v - mu
    var = jnp.mean(d * d, axis=-1, keepdims=True)
    return d * lax.rsqrt(var + eps) * g + b


def _softmax_lastaxis(s):
    # exact f32 normalization (review: rows should sum to 1, no approx reciprocal)
    m = jnp.max(s, axis=-1, keepdims=True)
    e = jnp.exp(s - m)
    return e / jnp.sum(e, axis=-1, keepdims=True)


# vector-table row indices (all (1, C) rows stacked into one array)
(_V_N1G, _V_N1B, _V_LEPEB, _V_CONVB, _V_PROJB, _V_N2G, _V_N2B, _V_M1B2,
 _V_N3G, _V_N3B, _V_TEMP, _V_CAPB, _V_N4G, _V_N4B, _V_M2B2) = range(15)

# (C, C) square weight stack indices
(_W_LEPE, _W_PROJ, _W_CAPROJ) = range(3)
# (C, 3C) fused-QKV weight stack indices
(_W_SQKV, _W_CAQKV) = range(2)


# --------------------------------- Pallas kernel --------------------------------

def _dual_block_kernel(N, num_heads, conv_offsets,
                       x_ref, vc_ref, vh_ref, wsq_ref, wqkv_ref,
                       wfc1_ref, wfc2_ref, fold_ref, hmask_ref, camask_ref,
                       out_ref):
    bb = x_ref.shape[0]                    # batch items in this grid step
    rows = bb * N
    x = x_ref[...].reshape(rows, -1)       # (rows, C) f32, batch stacked on sublanes
    C = x.shape[-1]
    f32 = jnp.float32
    bf16 = jnp.bfloat16

    def vec(r):                            # (1, C) f32 bias/gamma/beta row
        return vc_ref[r:r + 1, :]

    def mm(a_bf, w_bf):                    # bf16 MXU matmul, f32 accumulate
        return jnp.dot(a_bf, w_bf, preferred_element_type=f32)

    hm = hmask_ref[...]                    # (heads, 1, C) f32 0/1 head mask
    hm_bf = hm.astype(bf16)

    # ---------------- norm1 ----------------
    norm1 = _layernorm(x, vec(_V_N1G), vec(_V_N1B))
    norm1_bf = norm1.astype(bf16)          # hoisted: single bf16 cast of norm1

    # ------- lepe: Linear + depthwise 3x3 conv as 9 sublane rolls + accumulate ----
    lep = mm(norm1_bf, wsq_ref[_W_LEPE]) + vec(_V_LEPEB)           # (rows, C) f32
    lepe = None
    for t, off in enumerate(conv_offsets):
        # want shifted[i] = lep[i + off]; pltpu.roll follows jnp.roll semantics
        shifted = lep if off == 0 else pltpu.roll(lep, (rows - off) % rows, 0)
        term = shifted * fold_ref[t]       # validity mask * per-channel tap weight
        lepe = term if lepe is None else lepe + term
    lepe = lepe + vec(_V_CONVB)

    # ---------------- spatial multi-head attention (sr_ratio == 1) --------------
    # fused q|k|v: ONE (rows,C)x(C,3C) matmul; attention scale folded into q weight
    qkv = mm(norm1_bf, wqkv_ref[_W_SQKV])                          # (rows, 3C) f32
    q_bf = qkv[:, :C].astype(bf16)
    k_bf = qkv[:, C:2 * C].astype(bf16)
    v_bf = qkv[:, 2 * C:].astype(bf16)

    o_parts = []
    for b in range(bb):                    # short unrolled per-batch loop (bb <= 2)
        sl = slice(b * N, (b + 1) * N)
        q_b, k_b, v_b = q_bf[sl], k_bf[sl], v_bf[sl]
        # heads batched along sublanes: row h*N+n keeps only head-h channels of q
        q_bd = (q_b[None, :, :] * hm_bf).reshape(num_heads * N, C)
        s = lax.dot_general(q_bd, k_b, (((1,), (1,)), ((), ())),
                            preferred_element_type=f32)            # (heads*N, N)
        p = _softmax_lastaxis(s)
        r = jnp.dot(p.astype(bf16), v_b, preferred_element_type=f32)  # (heads*N, C)
        o_parts.append(jnp.sum(r.reshape(num_heads, N, C) * hm, axis=0))
    o_sp = o_parts[0] if bb == 1 else jnp.concatenate(o_parts, axis=0)

    attn_out = mm((o_sp + lepe).astype(bf16), wsq_ref[_W_PROJ]) + vec(_V_PROJB)
    add1 = x + attn_out

    # ---------------- norm2 + MLP_FFN 1 ----------------
    norm2 = _layernorm(add1, vec(_V_N2G), vec(_V_N2B))
    h1 = _gelu_tanh(mm(norm2.astype(bf16), wfc1_ref[0]) + vh_ref[0:1, :])
    mlp1 = mm(h1.astype(bf16), wfc2_ref[0]) + vec(_V_M1B2)
    add2 = add1 + mlp1

    # ---------------- norm3 + ChannelAttention (block-diagonal form) ------------
    norm3 = _layernorm(add2, vec(_V_N3G), vec(_V_N3B))
    norm3_bf = norm3.astype(bf16)          # hoisted: single bf16 cast of norm3
    cqkv = mm(norm3_bf, wqkv_ref[_W_CAQKV])                        # (rows, 3C) f32
    cq, ck, cv = cqkv[:, :C], cqkv[:, C:2 * C], cqkv[:, 2 * C:]
    camask = camask_ref[...]               # f32 additive -1e30 off-block mask
    temp = vec(_V_TEMP)                    # per-head temperature, lane-broadcast
    ca_parts = []
    for b in range(bb):
        sl = slice(b * N, (b + 1) * N)
        cq_b, ck_b, cv_b = cq[sl], ck[sl], cv[sl]
        # F.normalize over the token axis (per channel column); eps matches torch.
        qn = cq_b * lax.rsqrt(jnp.maximum(jnp.sum(cq_b * cq_b, 0, keepdims=True), 1e-24))
        kn = ck_b * lax.rsqrt(jnp.maximum(jnp.sum(ck_b * ck_b, 0, keepdims=True), 1e-24))
        qn = qn * temp
        a = lax.dot_general(qn.astype(bf16), kn.astype(bf16),
                            (((0,), (0,)), ((), ())),
                            preferred_element_type=f32)            # (C, C)
        pa = _softmax_lastaxis(a + camask)
        ca_parts.append(lax.dot_general(cv_b.astype(bf16), pa.astype(bf16),
                                        (((1,), (1,)), ((), ())),
                                        preferred_element_type=f32))  # (N, C)
    ca = ca_parts[0] if bb == 1 else jnp.concatenate(ca_parts, axis=0)
    ca_out = mm(ca.astype(bf16), wsq_ref[_W_CAPROJ]) + vec(_V_CAPB)
    add3 = add2 + ca_out

    # ---------------- norm4 + MLP_FFN 2 ----------------
    norm4 = _layernorm(add3, vec(_V_N4G), vec(_V_N4B))
    h2 = _gelu_tanh(mm(norm4.astype(bf16), wfc1_ref[1]) + vh_ref[1:2, :])
    mlp2 = mm(h2.astype(bf16), wfc2_ref[1]) + vec(_V_M2B2)

    out_ref[...] = (add3 + mlp2).reshape(bb, N, C)


# --------------------------------- wrapper ---------------------------------

def _grid_blocks(B):
    """2-way grid only on chips exposing 2 TensorCores to the megacore scheduler
    (v7x); single-TC chips (v5e/v6e) fold the whole batch into one grid step."""
    try:
        kind = jax.devices()[0].device_kind.lower()
    except Exception:
        kind = ""
    if B % 2 == 0 and ("v7" in kind or "7x" in kind):
        return 2
    return 1


def dual_transformer_block(x, params, H, W, num_heads):
    B, N, C = x.shape
    assert N == H * W and C % num_heads == 0

    blocks = _grid_blocks(B)
    bb = B // blocks
    packed, conv_offsets = pack_params(params, H, W, C, num_heads, bb)

    kernel = functools.partial(_dual_block_kernel, N, num_heads, tuple(conv_offsets))

    order = ['vc', 'vh', 'wsq', 'wqkv', 'wfc1', 'wfc2', 'fold', 'hmask', 'camask']
    in_specs = [pl.BlockSpec((bb, N, C), lambda g: (g, 0, 0))]
    args = [x]
    for name in order:
        a = packed[name]
        in_specs.append(pl.BlockSpec(a.shape, lambda g, _nd=a.ndim: (0,) * _nd))
        args.append(a)

    # TODO(synk): at larger H*W set vmem_limit_bytes and tile KV/scores flash-style;
    # at N=64 everything is comfortably VMEM-resident.
    return pl.pallas_call(
        kernel,
        out_shape=jax.ShapeDtypeStruct((B, N, C), jnp.float32),
        grid=(blocks,),
        in_specs=in_specs,
        out_specs=pl.BlockSpec((bb, N, C), lambda g: (g, 0, 0)),
        compiler_params=pltpu.CompilerParams(
            dimension_semantics=("parallel",)),
    )(*args)


# ---------------------------- parameter construction ----------------------------

def init_params(key, C, num_heads, hidden):
    ks = list(jax.random.split(key, 16))
    ki = iter(ks)

    def xavier(k, fin, fout):
        a = math.sqrt(6.0 / (fin + fout))
        # stored as (in, out) so the kernel computes x @ W directly (== torch x @ W.T)
        return jax.random.uniform(k, (fin, fout), jnp.float32, -a, a)

    p = {}
    p['n1_g'] = jnp.ones((1, C), jnp.float32)
    p['n1_b'] = jnp.zeros((1, C), jnp.float32)
    p['lepe_w'] = xavier(next(ki), C, C)
    p['lepe_b'] = jnp.zeros((1, C), jnp.float32)
    conv_w = jax.random.normal(next(ki), (C, 1, 3, 3), jnp.float32) * math.sqrt(2.0 / 9.0)
    p['conv_w_torch'] = conv_w                       # (C, 1, 3, 3), reference only
    p['conv_w9'] = conv_w.reshape(C, 9).T            # (9, C): row t = ki*3 + kj
    p['conv_b'] = jnp.zeros((1, C), jnp.float32)
    p['q_w'] = xavier(next(ki), C, C)                # qkv_bias=False
    p['kv_w'] = xavier(next(ki), C, 2 * C)
    p['proj_w'] = xavier(next(ki), C, C)
    p['proj_b'] = jnp.zeros((1, C), jnp.float32)
    p['n2_g'] = jnp.ones((1, C), jnp.float32)
    p['n2_b'] = jnp.zeros((1, C), jnp.float32)
    p['m1_w1'] = xavier(next(ki), C, hidden)
    p['m1_b1'] = jnp.zeros((1, hidden), jnp.float32)
    p['m1_w2'] = xavier(next(ki), hidden, C)
    p['m1_b2'] = jnp.zeros((1, C), jnp.float32)
    p['n3_g'] = jnp.ones((1, C), jnp.float32)
    p['n3_b'] = jnp.zeros((1, C), jnp.float32)
    p['temp'] = jnp.ones((1, num_heads), jnp.float32)   # ChannelAttention temperature
    p['ca_qkv_w'] = xavier(next(ki), C, 3 * C)
    p['ca_proj_w'] = xavier(next(ki), C, C)
    p['ca_proj_b'] = jnp.zeros((1, C), jnp.float32)
    p['n4_g'] = jnp.ones((1, C), jnp.float32)
    p['n4_b'] = jnp.zeros((1, C), jnp.float32)
    p['m2_w1'] = xavier(next(ki), C, hidden)
    p['m2_b1'] = jnp.zeros((1, hidden), jnp.float32)
    p['m2_w2'] = xavier(next(ki), hidden, C)
    p['m2_b2'] = jnp.zeros((1, C), jnp.float32)
    return p


def _build_conv_fold(H, W, bb, conv_w9):
    """(9, bb*N, C) per-tap slab = zero-pad validity mask x depthwise tap weight,
    tiled over the batch items stacked in one grid step.  Also returns the token
    offsets (di*W + dj) used for the in-kernel rolls; tap t = (di+1)*3 + (dj+1)."""
    N = H * W
    n = jnp.arange(N)
    h, w = n // W, n % W
    folds, offsets = [], []
    for di in (-1, 0, 1):
        for dj in (-1, 0, 1):
            valid = ((h + di >= 0) & (h + di < H) & (w + dj >= 0) & (w + dj < W))
            t = (di + 1) * 3 + (dj + 1)
            folds.append(valid.astype(jnp.float32)[:, None] * conv_w9[t][None, :])
            offsets.append(di * W + dj)
    fold = jnp.tile(jnp.stack(folds), (1, bb, 1))       # (9, bb*N, C)
    return fold, offsets


def pack_params(p, H, W, C, num_heads, bb):
    """Consolidate the many tiny parameters into a few stacked tables (1 DMA each)."""
    dh = C // num_heads
    scale = dh ** (-0.5)
    temp_lane = jnp.repeat(p['temp'], dh, axis=1)                          # (1, C)

    vc = jnp.concatenate([
        p['n1_g'], p['n1_b'], p['lepe_b'], p['conv_b'], p['proj_b'],
        p['n2_g'], p['n2_b'], p['m1_b2'], p['n3_g'], p['n3_b'],
        temp_lane, p['ca_proj_b'], p['n4_g'], p['n4_b'], p['m2_b2'],
    ], axis=0).astype(jnp.float32)                                         # (15, C)
    vh = jnp.concatenate([p['m1_b1'], p['m2_b1']], axis=0).astype(jnp.float32)

    # fused spatial q|k|v with the attention scale folded into the q columns
    w_sqkv = jnp.concatenate([p['q_w'] * scale, p['kv_w']], axis=1)        # (C, 3C)
    wqkv = jnp.stack([w_sqkv, p['ca_qkv_w']]).astype(jnp.bfloat16)         # (2, C, 3C)
    wsq = jnp.stack([p['lepe_w'], p['proj_w'], p['ca_proj_w']]).astype(jnp.bfloat16)
    wfc1 = jnp.stack([p['m1_w1'], p['m2_w1']]).astype(jnp.bfloat16)
    wfc2 = jnp.stack([p['m1_w2'], p['m2_w2']]).astype(jnp.bfloat16)

    fold, offsets = _build_conv_fold(H, W, bb, p['conv_w9'])

    head_of_c = jnp.arange(C) // dh
    hmask = (head_of_c[None, :] == jnp.arange(num_heads)[:, None]
             ).astype(jnp.float32)[:, None, :]                             # (heads, 1, C)
    # stays f32 on purpose: a bf16 downcast would saturate -1e30 to -inf
    camask = jnp.where(head_of_c[:, None] == head_of_c[None, :],
                       0.0, -1e30).astype(jnp.float32)                     # (C, C)

    packed = dict(vc=vc, vh=vh, wsq=wsq, wqkv=wqkv, wfc1=wfc1, wfc2=wfc2,
                  fold=fold, hmask=hmask, camask=camask)
    return packed, offsets


# ------------------------------- pure-JAX reference ------------------------------

def reference_forward(x, p, H, W, num_heads):
    B, N, C = x.shape
    dh = C // num_heads

    def ln(v, g, b):
        mu = jnp.mean(v, -1, keepdims=True)
        var = jnp.mean((v - mu) ** 2, -1, keepdims=True)
        return (v - mu) / jnp.sqrt(var + 1e-5) * g + b

    norm1 = ln(x, p['n1_g'], p['n1_b'])

    # lepe (Linear + depthwise conv, NCHW just like torch)
    lep = norm1 @ p['lepe_w'] + p['lepe_b']
    img = jnp.transpose(lep, (0, 2, 1)).reshape(B, C, H, W)
    conv = lax.conv_general_dilated(
        img, p['conv_w_torch'], window_strides=(1, 1), padding=((1, 1), (1, 1)),
        feature_group_count=C, dimension_numbers=('NCHW', 'OIHW', 'NCHW'))
    conv = conv + p['conv_b'].reshape(1, C, 1, 1)
    lepe = jnp.transpose(conv.reshape(B, C, N), (0, 2, 1))

    # spatial attention
    scale = dh ** (-0.5)
    q = norm1 @ p['q_w']
    kv = norm1 @ p['kv_w']
    k, v = kv[..., :C], kv[..., C:]

    def heads(t):
        return t.reshape(B, N, num_heads, dh).transpose(0, 2, 1, 3)

    qh, kh, vh = heads(q), heads(k), heads(v)
    s = jnp.einsum('bhnd,bhmd->bhnm', qh, kh) * scale
    a = jax.nn.softmax(s, -1)
    o = jnp.einsum('bhnm,bhmd->bhnd', a, vh).transpose(0, 2, 1, 3).reshape(B, N, C)
    attn = (o + lepe) @ p['proj_w'] + p['proj_b']
    add1 = x + attn

    norm2 = ln(add1, p['n2_g'], p['n2_b'])
    mlp1 = _gelu_tanh(norm2 @ p['m1_w1'] + p['m1_b1']) @ p['m1_w2'] + p['m1_b2']
    add2 = add1 + mlp1

    norm3 = ln(add2, p['n3_g'], p['n3_b'])
    qkv = (norm3 @ p['ca_qkv_w']).reshape(B, N, 3, num_heads, dh).transpose(2, 0, 3, 1, 4)
    q2, k2, v2 = qkv[0], qkv[1], qkv[2]                 # (B, heads, N, dh)
    q2 = q2.transpose(0, 1, 3, 2)                       # (B, heads, dh, N)
    k2 = k2.transpose(0, 1, 3, 2)
    v2 = v2.transpose(0, 1, 3, 2)
    q2 = q2 / jnp.maximum(jnp.linalg.norm(q2, axis=-1, keepdims=True), 1e-12)
    k2 = k2 / jnp.maximum(jnp.linalg.norm(k2, axis=-1, keepdims=True), 1e-12)
    att = jnp.einsum('bhdn,bhen->bhde', q2, k2) * p['temp'].reshape(1, num_heads, 1, 1)
    att = jax.nn.softmax(att, -1)
    oc = jnp.einsum('bhde,bhen->bhdn', att, v2).transpose(0, 3, 1, 2).reshape(B, N, C)
    ca = oc @ p['ca_proj_w'] + p['ca_proj_b']
    add3 = add2 + ca

    norm4 = ln(add3, p['n4_g'], p['n4_b'])
    mlp2 = _gelu_tanh(norm4 @ p['m2_w1'] + p['m2_b1']) @ p['m2_w2'] + p['m2_b2']
    return add3 + mlp2


# ------------------------------------ main ------------------------------------

if __name__ == "__main__":
    B, H, W, C, num_heads = 2, 8, 8, 64, 8
    N = H * W
    hidden = int(C * 4)

    key = jax.random.PRNGKey(0)
    kx, kp = jax.random.split(key)
    x = jax.random.normal(kx, (B, N, C), jnp.float32)
    params = init_params(kp, C, num_heads, hidden)

    out = dual_transformer_block(x, params, H, W, num_heads)
    out = jax.block_until_ready(out)

    ref = reference_forward(x, params, H, W, num_heads)
    assert out.shape == (B, N, C)
    # Softmax normalization is now exact f32 (review note), but the MXU matmuls keep
    # bf16 operands (f32 accumulate); tolerance guards the long bf16 residual chain.
    if not bool(jnp.allclose(out, ref, atol=1e-1, rtol=1e-1)):
        raise AssertionError("Pallas kernel output does not match JAX reference")

    print("KERNEL_OK")
</pallas_src>

<mosaic_0001>
module attributes {stable_mosaic.version = 11 : i64} {
  func.func @_dual_block_kernel(%arg0: i32, %arg1: memref<2x64x64xf32, #tpu.memory_space<vmem>>, %arg2: memref<15x64xf32, #tpu.memory_space<vmem>>, %arg3: memref<2x256xf32, #tpu.memory_space<vmem>>, %arg4: memref<3x64x64xbf16, #tpu.memory_space<vmem>>, %arg5: memref<2x64x192xbf16, #tpu.memory_space<vmem>>, %arg6: memref<2x64x256xbf16, #tpu.memory_space<vmem>>, %arg7: memref<2x256x64xbf16, #tpu.memory_space<vmem>>, %arg8: memref<9x128x64xf32, #tpu.memory_space<vmem>>, %arg9: memref<8x1x64xf32, #tpu.memory_space<vmem>>, %arg10: memref<64x64xf32, #tpu.memory_space<vmem>>, %arg11: memref<2x64x64xf32, #tpu.memory_space<vmem>>) attributes {dimension_semantics = [#tpu.dimension_semantics<parallel>], iteration_bounds = array<i64: 1>, scalar_prefetch = 0 : i64, scratch_operands = 0 : i64, tpu.core_type = #tpu.core_type<tc>, window_params = [{transform_indices = @transform_0, window_bounds = array<i64: 2, 64, 64>}, {pipeline_mode = #tpu.pipeline_mode<synchronous>, transform_indices = @transform_1, window_bounds = array<i64: 15, 64>}, {pipeline_mode = #tpu.pipeline_mode<synchronous>, transform_indices = @transform_2, window_bounds = array<i64: 2, 256>}, {pipeline_mode = #tpu.pipeline_mode<synchronous>, transform_indices = @transform_3, window_bounds = array<i64: 3, 64, 64>}, {pipeline_mode = #tpu.pipeline_mode<synchronous>, transform_indices = @transform_4, window_bounds = array<i64: 2, 64, 192>}, {pipeline_mode = #tpu.pipeline_mode<synchronous>, transform_indices = @transform_5, window_bounds = array<i64: 2, 64, 256>}, {pipeline_mode = #tpu.pipeline_mode<synchronous>, transform_indices = @transform_6, window_bounds = array<i64: 2, 256, 64>}, {pipeline_mode = #tpu.pipeline_mode<synchronous>, transform_indices = @transform_7, window_bounds = array<i64: 9, 128, 64>}, {pipeline_mode = #tpu.pipeline_mode<synchronous>, transform_indices = @transform_8, window_bounds = array<i64: 8, 1, 64>}, {pipeline_mode = #tpu.pipeline_mode<synchronous>, transform_indices = @transform_9, window_bounds = array<i64: 64, 64>}, {transform_indices = @transform_10, window_bounds = array<i64: 2, 64, 64>}]} {
    %c0 = arith.constant 0 : index
    %c0_0 = arith.constant 0 : index
    %c0_1 = arith.constant 0 : index
    %0 = vector.load %arg1[%c0, %c0_0, %c0_1] : memref<2x64x64xf32, #tpu.memory_space<vmem>>, vector<2x64x64xf32>
    %1 = vector.shape_cast %0 : vector<2x64x64xf32> to vector<128x64xf32>
    %c0_2 = arith.constant 0 : index
    %c0_3 = arith.constant 0 : index
    %c0_4 = arith.constant 0 : index
    %2 = vector.load %arg9[%c0_2, %c0_3, %c0_4] : memref<8x1x64xf32, #tpu.memory_space<vmem>>, vector<8x1x64xf32>
    %3 = arith.truncf %2 : vector<8x1x64xf32> to vector<8x1x64xbf16>
    %c0_5 = arith.constant 0 : index
    %c0_6 = arith.constant 0 : index
    %4 = vector.load %arg2[%c0_5, %c0_6] : memref<15x64xf32, #tpu.memory_space<vmem>>, vector<1x64xf32>
    %c1 = arith.constant 1 : index
    %c0_7 = arith.constant 0 : index
    %5 = vector.load %arg2[%c1, %c0_7] : memref<15x64xf32, #tpu.memory_space<vmem>>, vector<1x64xf32>
    %cst = arith.constant dense<0.000000e+00> : vector<128xf32>
    %6 = vector.multi_reduction <add>, %1, %cst [1] : vector<128x64xf32> to vector<128xf32>
    %7 = vector.shape_cast %6 : vector<128xf32> to vector<128x1xf32>
    %cst_8 = arith.constant 6.400000e+01 : f32
    %8 = vector.broadcast %cst_8 : f32 to vector<128x1xf32>
    %9 = arith.divf %7, %8 : vector<128x1xf32>
    %10 = vector.broadcast %9 : vector<128x1xf32> to vector<128x64xf32>
    %11 = arith.subf %1, %10 : vector<128x64xf32>
    %12 = arith.mulf %11, %11 : vector<128x64xf32>
    %cst_9 = arith.constant dense<0.000000e+00> : vector<128xf32>
    %13 = vector.multi_reduction <add>, %12, %cst_9 [1] : vector<128x64xf32> to vector<128xf32>
    %14 = vector.shape_cast %13 : vector<128xf32> to vector<128x1xf32>
    %cst_10 = arith.constant 6.400000e+01 : f32
    %15 = vector.broadcast %cst_10 : f32 to vector<128x1xf32>
    %16 = arith.divf %14, %15 : vector<128x1xf32>
    %cst_11 = arith.constant 9.99999974E-6 : f32
    %17 = vector.broadcast %cst_11 : f32 to vector<128x1xf32>
    %18 = arith.addf %16, %17 : vector<128x1xf32>
    %19 = math.rsqrt %18 : vector<128x1xf32>
    %20 = vector.broadcast %19 : vector<128x1xf32> to vector<128x64xf32>
    %21 = arith.mulf %11, %20 : vector<128x64xf32>
    %22 = vector.broadcast %4 : vector<1x64xf32> to vector<128x64xf32>
    %23 = arith.mulf %21, %22 : vector<128x64xf32>
    %24 = vector.broadcast %5 : vector<1x64xf32> to vector<128x64xf32>
    %25 = arith.addf %23, %24 : vector<128x64xf32>
    %26 = arith.truncf %25 : vector<128x64xf32> to vector<128x64xbf16>
    %c0_12 = arith.constant 0 : index
    %c0_13 = arith.constant 0 : index
    %c0_14 = arith.constant 0 : index
    %27 = vector.load %arg4[%c0_12, %c0_13, %c0_14] : memref<3x64x64xbf16, #tpu.memory_space<vmem>>, vector<1x64x64xbf16>
    %28 = vector.shape_cast %27 : vector<1x64x64xbf16> to vector<64x64xbf16>
    %cst_15 = arith.constant dense<0.000000e+00> : vector<128x64xf32>
    %29 = tpu.matmul %26, %28, %cst_15 {dimension_numbers = #tpu.dot_dimension_numbers<[1], [0], [0], [1], [0, 0, 1, 1], [], []>} : vector<128x64xbf16>, vector<64x64xbf16>, vector<128x64xf32> -> vector<128x64xf32>
    %c2 = arith.constant 2 : index
    %c0_16 = arith.constant 0 : index
    %30 = vector.load %arg2[%c2, %c0_16] : memref<15x64xf32, #tpu.memory_space<vmem>>, vector<1x64xf32>
    %31 = vector.broadcast %30 : vector<1x64xf32> to vector<128x64xf32>
    %32 = arith.addf %29, %31 : vector<128x64xf32>
    %c9_i32 = arith.constant 9 : i32
    %33 = tpu.dynamic_rotate %32 by %c9_i32 dim 0 : vector<128x64xf32>, i32 -> vector<128x64xf32>
    %c0_17 = arith.constant 0 : index
    %c0_18 = arith.constant 0 : index
    %c0_19 = arith.constant 0 : index
    %34 = vector.load %arg8[%c0_17, %c0_18, %c0_19] : memref<9x128x64xf32, #tpu.memory_space<vmem>>, vector<1x128x64xf32>
    %35 = vector.shape_cast %34 : vector<1x128x64xf32> to vector<128x64xf32>
    %36 = arith.mulf %33, %35 : vector<128x64xf32>
    %c8_i32 = arith.constant 8 : i32
    %37 = tpu.dynamic_rotate %32 by %c8_i32 dim 0 : vector<128x64xf32>, i32 -> vector<128x64xf32>
    %c1_20 = arith.constant 1 : index
    %c0_21 = arith.constant 0 : index
    %c0_22 = arith.constant 0 : index
    %38 = vector.load %arg8[%c1_20, %c0_21, %c0_22] : memref<9x128x64xf32, #tpu.memory_space<vmem>>, vector<1x128x64xf32>
    %39 = vector.shape_cast %38 : vector<1x128x64xf32> to vector<128x64xf32>
    %40 = arith.mulf %37, %39 : vector<128x64xf32>
    %41 = arith.addf %36, %40 : vector<128x64xf32>
    %c7_i32 = arith.constant 7 : i32
    %42 = tpu.dynamic_rotate %32 by %c7_i32 dim 0 : vector<128x64xf32>, i32 -> vector<128x64xf32>
    %c2_23 = arith.constant 2 : index
    %c0_24 = arith.constant 0 : index
    %c0_25 = arith.constant 0 : index
    %43 = vector.load %arg8[%c2_23, %c0_24, %c0_25] : memref<9x128x64xf32, #tpu.memory_space<vmem>>, vector<1x128x64xf32>
    %44 = vector.shape_cast %43 : vector<1x128x64xf32> to vector<128x64xf32>
    %45 = arith.mulf %42, %44 : vector<128x64xf32>
    %46 = arith.addf %41, %45 : vector<128x64xf32>
    %c1_i32 = arith.constant 1 : i32
    %47 = tpu.dynamic_rotate %32 by %c1_i32 dim 0 : vector<128x64xf32>, i32 -> vector<128x64xf32>
    %c3 = arith.constant 3 : index
    %c0_26 = arith.constant 0 : index
    %c0_27 = arith.constant 0 : index
    %48 = vector.load %arg8[%c3, %c0_26, %c0_27] : memref<9x128x64xf32, #tpu.memory_space<vmem>>, vector<1x128x64xf32>
    %49 = vector.shape_cast %48 : vector<1x128x64xf32> to vector<128x64xf32>
    %50 = arith.mulf %47, %49 : vector<128x64xf32>
    %51 = arith.addf %46, %50 : vector<128x64xf32>
    %c4 = arith.constant 4 : index
    %c0_28 = arith.constant 0 : index
    %c0_29 = arith.constant 0 : index
    %52 = vector.load %arg8[%c4, %c0_28, %c0_29] : memref<9x128x64xf32, #tpu.memory_space<vmem>>, vector<1x128x64xf32>
    %53 = vector.shape_cast %52 : vector<1x128x64xf32> to vector<128x64xf32>
    %54 = arith.mulf %32, %53 : vector<128x64xf32>
    %55 = arith.addf %51, %54 : vector<128x64xf32>
    %c127_i32 = arith.constant 127 : i32
    %56 = tpu.dynamic_rotate %32 by %c127_i32 dim 0 : vector<128x64xf32>, i32 -> vector<128x64xf32>
    %c5 = arith.constant 5 : index
    %c0_30 = arith.constant 0 : index
    %c0_31 = arith.constant 0 : index
    %57 = vector.load %arg8[%c5, %c0_30, %c0_31] : memref<9x128x64xf32, #tpu.memory_space<vmem>>, vector<1x128x64xf32>
    %58 = vector.shape_cast %57 : vector<1x128x64xf32> to vector<128x64xf32>
    %59 = arith.mulf %56, %58 : vector<128x64xf32>
    %60 = arith.addf %55, %59 : vector<128x64xf32>
    %c121_i32 = arith.constant 121 : i32
    %61 = tpu.dynamic_rotate %32 by %c121_i32 dim 0 : vector<128x64xf32>, i32 -> vector<128x64xf32>
    %c6 = arith.constant 6 : index
    %c0_32 = arith.constant 0 : index
    %c0_33 = arith.constant 0 : index
    %62 = vector.load %arg8[%c6, %c0_32, %c0_33] : memref<9x128x64xf32, #tpu.memory_space<vmem>>, vector<1x128x64xf32>
    %63 = vector.shape_cast %62 : vector<1x128x64xf32> to vector<128x64xf32>
    %64 = arith.mulf %61, %63 : vector<128x64xf32>
    %65 = arith.addf %60, %64 : vector<128x64xf32>
    %c120_i32 = arith.constant 120 : i32
    %66 = tpu.dynamic_rotate %32 by %c120_i32 dim 0 : vector<128x64xf32>, i32 -> vector<128x64xf32>
    %c7 = arith.constant 7 : index
    %c0_34 = arith.constant 0 : index
    %c0_35 = arith.constant 0 : index
    %67 = vector.load %arg8[%c7, %c0_34, %c0_35] : memref<9x128x64xf32, #tpu.memory_space<vmem>>, vector<1x128x64xf32>
    %68 = vector.shape_cast %67 : vector<1x128x64xf32> to vector<128x64xf32>
    %69 = arith.mulf %66, %68 : vector<128x64xf32>
    %70 = arith.addf %65, %69 : vector<128x64xf32>
    %c119_i32 = arith.constant 119 : i32
    %71 = tpu.dynamic_rotate %32 by %c119_i32 dim 0 : vector<128x64xf32>, i32 -> vector<128x64xf32>
    %c8 = arith.constant 8 : index
    %c0_36 = arith.constant 0 : index
    %c0_37 = arith.constant 0 : index
    %72 = vector.load %arg8[%c8, %c0_36, %c0_37] : memref<9x128x64xf32, #tpu.memory_space<vmem>>, vector<1x128x64xf32>
    %73 = vector.shape_cast %72 : vector<1x128x64xf32> to vector<128x64xf32>
    %74 = arith.mulf %71, %73 : vector<128x64xf32>
    %75 = arith.addf %70, %74 : vector<128x64xf32>
    %c3_38 = arith.constant 3 : index
    %c0_39 = arith.constant 0 : index
    %76 = vector.load %arg2[%c3_38, %c0_39] : memref<15x64xf32, #tpu.memory_space<vmem>>, vector<1x64xf32>
    %77 = vector.broadcast %76 : vector<1x64xf32> to vector<128x64xf32>
    %78 = arith.addf %75, %77 : vector<128x64xf32>
    %c0_40 = arith.constant 0 : index
    %c0_41 = arith.constant 0 : index
    %c0_42 = arith.constant 0 : index
    %79 = vector.load %arg5[%c0_40, %c0_41, %c0_42] : memref<2x64x192xbf16, #tpu.memory_space<vmem>>, vector<1x64x192xbf16>
    %80 = vector.shape_cast %79 : vector<1x64x192xbf16> to vector<64x192xbf16>
    %cst_43 = arith.constant dense<0.000000e+00> : vector<128x192xf32>
    %81 = tpu.matmul %26, %80, %cst_43 {dimension_numbers = #tpu.dot_dimension_numbers<[1], [0], [0], [1], [0, 0, 1, 1], [], []>} : vector<128x64xbf16>, vector<64x192xbf16>, vector<128x192xf32> -> vector<128x192xf32>
    %82 = vector.extract_strided_slice %81 {offsets = [0, 0], sizes = [128, 64], strides = [1, 1]} : vector<128x192xf32> to vector<128x64xf32>
    %83 = arith.truncf %82 : vector<128x64xf32> to vector<128x64xbf16>
    %84 = vector.extract_strided_slice %81 {offsets = [0, 64], sizes = [128, 64], strides = [1, 1]} : vector<128x192xf32> to vector<128x64xf32>
    %85 = arith.truncf %84 : vector<128x64xf32> to vector<128x64xbf16>
    %86 = vector.extract_strided_slice %81 {offsets = [0, 128], sizes = [128, 64], strides = [1, 1]} : vector<128x192xf32> to vector<128x64xf32>
    %87 = arith.truncf %86 : vector<128x64xf32> to vector<128x64xbf16>
    %88 = vector.extract_strided_slice %83 {offsets = [0, 0], sizes = [64, 64], strides = [1, 1]} : vector<128x64xbf16> to vector<64x64xbf16>
    %89 = vector.extract_strided_slice %85 {offsets = [0, 0], sizes = [64, 64], strides = [1, 1]} : vector<128x64xbf16> to vector<64x64xbf16>
    %90 = vector.extract_strided_slice %87 {offsets = [0, 0], sizes = [64, 64], strides = [1, 1]} : vector<128x64xbf16> to vector<64x64xbf16>
    %91 = vector.shape_cast %88 : vector<64x64xbf16> to vector<1x64x64xbf16>
    %92 = vector.broadcast %91 : vector<1x64x64xbf16> to vector<8x64x64xbf16>
    %93 = vector.broadcast %3 : vector<8x1x64xbf16> to vector<8x64x64xbf16>
    %94 = arith.mulf %92, %93 : vector<8x64x64xbf16>
    %95 = vector.shape_cast %94 : vector<8x64x64xbf16> to vector<512x64xbf16>
    %cst_44 = arith.constant dense<0.000000e+00> : vector<512x64xf32>
    %96 = tpu.matmul %95, %89, %cst_44 {dimension_numbers = #tpu.dot_dimension_numbers<[1], [1], [0], [0], [0, 0, 1, 0], [], []>} : vector<512x64xbf16>, vector<64x64xbf16>, vector<512x64xf32> -> vector<512x64xf32>
    %cst_45 = arith.constant dense<0xFF800000> : vector<512xf32>
    %97 = vector.multi_reduction <maximumf>, %96, %cst_45 [1] : vector<512x64xf32> to vector<512xf32>
    %98 = vector.shape_cast %97 : vector<512xf32> to vector<512x1xf32>
    %99 = vector.broadcast %98 : vector<512x1xf32> to vector<512x64xf32>
    %100 = arith.subf %96, %99 : vector<512x64xf32>
    %101 = math.exp %100 : vector<512x64xf32>
    %cst_46 = arith.constant dense<0.000000e+00> : vector<512xf32>
    %102 = vector.multi_reduction <add>, %101, %cst_46 [1] : vector<512x64xf32> to vector<512xf32>
    %103 = vector.shape_cast %102 : vector<512xf32> to vector<512x1xf32>
    %104 = vector.broadcast %103 : vector<512x1xf32> to vector<512x64xf32>
    %105 = arith.divf %101, %104 : vector<512x64xf32>
    %106 = arith.truncf %105 : vector<512x64xf32> to vector<512x64xbf16>
    %cst_47 = arith.constant dense<0.000000e+00> : vector<512x64xf32>
    %107 = tpu.matmul %106, %90, %cst_47 {dimension_numbers = #tpu.dot_dimension_numbers<[1], [0], [0], [1], [0, 0, 1, 1], [], []>} : vector<512x64xbf16>, vector<64x64xbf16>, vector<512x64xf32> -> vector<512x64xf32>
    %108 = vector.shape_cast %107 : vector<512x64xf32> to vector<8x64x64xf32>
    %109 = vector.broadcast %2 : vector<8x1x64xf32> to vector<8x64x64xf32>
    %110 = arith.mulf %108, %109 : vector<8x64x64xf32>
    %cst_48 = arith.constant dense<0.000000e+00> : vector<64x64xf32>
    %111 = vector.multi_reduction <add>, %110, %cst_48 [0] : vector<8x64x64xf32> to vector<64x64xf32>
    %112 = vector.extract_strided_slice %83 {offsets = [64, 0], sizes = [64, 64], strides = [1, 1]} : vector<128x64xbf16> to vector<64x64xbf16>
    %113 = vector.extract_strided_slice %85 {offsets = [64, 0], sizes = [64, 64], strides = [1, 1]} : vector<128x64xbf16> to vector<64x64xbf16>
    %114 = vector.extract_strided_slice %87 {offsets = [64, 0], sizes = [64, 64], strides = [1, 1]} : vector<128x64xbf16> to vector<64x64xbf16>
    %115 = vector.shape_cast %112 : vector<64x64xbf16> to vector<1x64x64xbf16>
    %116 = vector.broadcast %115 : vector<1x64x64xbf16> to vector<8x64x64xbf16>
    %117 = vector.broadcast %3 : vector<8x1x64xbf16> to vector<8x64x64xbf16>
    %118 = arith.mulf %116, %117 : vector<8x64x64xbf16>
    %119 = vector.shape_cast %118 : vector<8x64x64xbf16> to vector<512x64xbf16>
    %cst_49 = arith.constant dense<0.000000e+00> : vector<512x64xf32>
    %120 = tpu.matmul %119, %113, %cst_49 {dimension_numbers = #tpu.dot_dimension_numbers<[1], [1], [0], [0], [0, 0, 1, 0], [], []>} : vector<512x64xbf16>, vector<64x64xbf16>, vector<512x64xf32> -> vector<512x64xf32>
    %cst_50 = arith.constant dense<0xFF800000> : vector<512xf32>
    %121 = vector.multi_reduction <maximumf>, %120, %cst_50 [1] : vector<512x64xf32> to vector<512xf32>
    %122 = vector.shape_cast %121 : vector<512xf32> to vector<512x1xf32>
    %123 = vector.broadcast %122 : vector<512x1xf32> to vector<512x64xf32>
    %124 = arith.subf %120, %123 : vector<512x64xf32>
    %125 = math.exp %124 : vector<512x64xf32>
    %cst_51 = arith.constant dense<0.000000e+00> : vector<512xf32>
    %126 = vector.multi_reduction <add>, %125, %cst_51 [1] : vector<512x64xf32> to vector<512xf32>
    %127 = vector.shape_cast %126 : vector<512xf32> to vector<512x1xf32>
    %128 = vector.broadcast %127 : vector<512x1xf32> to vector<512x64xf32>
    %129 = arith.divf %125, %128 : vector<512x64xf32>
    %130 = arith.truncf %129 : vector<512x64xf32> to vector<512x64xbf16>
    %cst_52 = arith.constant dense<0.000000e+00> : vector<512x64xf32>
    %131 = tpu.matmul %130, %114, %cst_52 {dimension_numbers = #tpu.dot_dimension_numbers<[1], [0], [0], [1], [0, 0, 1, 1], [], []>} : vector<512x64xbf16>, vector<64x64xbf16>, vector<512x64xf32> -> vector<512x64xf32>
    %132 = vector.shape_cast %131 : vector<512x64xf32> to vector<8x64x64xf32>
    %133 = vector.broadcast %2 : vector<8x1x64xf32> to vector<8x64x64xf32>
    %134 = arith.mulf %132, %133 : vector<8x64x64xf32>
    %cst_53 = arith.constant dense<0.000000e+00> : vector<64x64xf32>
    %135 = vector.multi_reduction <add>, %134, %cst_53 [0] : vector<8x64x64xf32> to vector<64x64xf32>
    %136 = tpu.concatenate %111, %135 in 0 : vector<64x64xf32>, vector<64x64xf32> -> vector<128x64xf32>
    %137 = arith.addf %136, %78 : vector<128x64xf32>
    %138 = arith.truncf %137 : vector<128x64xf32> to vector<128x64xbf16>
    %c1_54 = arith.constant 1 : index
    %c0_55 = arith.constant 0 : index
    %c0_56 = arith.constant 0 : index
    %139 = vector.load %arg4[%c1_54, %c0_55, %c0_56] : memref<3x64x64xbf16, #tpu.memory_space<vmem>>, vector<1x64x64xbf16>
    %140 = vector.shape_cast %139 : vector<1x64x64xbf16> to vector<64x64xbf16>
    %cst_57 = arith.constant dense<0.000000e+00> : vector<128x64xf32>
    %141 = tpu.matmul %138, %140, %cst_57 {dimension_numbers = #tpu.dot_dimension_numbers<[1], [0], [0], [1], [0, 0, 1, 1], [], []>} : vector<128x64xbf16>, vector<64x64xbf16>, vector<128x64xf32> -> vector<128x64xf32>
    %c4_58 = arith.constant 4 : index
    %c0_59 = arith.constant 0 : index
    %142 = vector.load %arg2[%c4_58, %c0_59] : memref<15x64xf32, #tpu.memory_space<vmem>>, vector<1x64xf32>
    %143 = vector.broadcast %142 : vector<1x64xf32> to vector<128x64xf32>
    %144 = arith.addf %141, %143 : vector<128x64xf32>
    %145 = arith.addf %1, %144 : vector<128x64xf32>
    %c5_60 = arith.constant 5 : index
    %c0_61 = arith.constant 0 : index
    %146 = vector.load %arg2[%c5_60, %c0_61] : memref<15x64xf32, #tpu.memory_space<vmem>>, vector<1x64xf32>
    %c6_62 = arith.constant 6 : index
    %c0_63 = arith.constant 0 : index
    %147 = vector.load %arg2[%c6_62, %c0_63] : memref<15x64xf32, #tpu.memory_space<vmem>>, vector<1x64xf32>
    %cst_64 = arith.constant dense<0.000000e+00> : vector<128xf32>
    %148 = vector.multi_reduction <add>, %145, %cst_64 [1] : vector<128x64xf32> to vector<128xf32>
    %149 = vector.shape_cast %148 : vector<128xf32> to vector<128x1xf32>
    %cst_65 = arith.constant 6.400000e+01 : f32
    %150 = vector.broadcast %cst_65 : f32 to vector<128x1xf32>
    %151 = arith.divf %149, %150 : vector<128x1xf32>
    %152 = vector.broadcast %151 : vector<128x1xf32> to vector<128x64xf32>
    %153 = arith.subf %145, %152 : vector<128x64xf32>
    %154 = arith.mulf %153, %153 : vector<128x64xf32>
    %cst_66 = arith.constant dense<0.000000e+00> : vector<128xf32>
    %155 = vector.multi_reduction <add>, %154, %cst_66 [1] : vector<128x64xf32> to vector<128xf32>
    %156 = vector.shape_cast %155 : vector<128xf32> to vector<128x1xf32>
    %cst_67 = arith.constant 6.400000e+01 : f32
    %157 = vector.broadcast %cst_67 : f32 to vector<128x1xf32>
    %158 = arith.divf %156, %157 : vector<128x1xf32>
    %cst_68 = arith.constant 9.99999974E-6 : f32
    %159 = vector.broadcast %cst_68 : f32 to vector<128x1xf32>
    %160 = arith.addf %158, %159 : vector<128x1xf32>
    %161 = math.rsqrt %160 : vector<128x1xf32>
    %162 = vector.broadcast %161 : vector<128x1xf32> to vector<128x64xf32>
    %163 = arith.mulf %153, %162 : vector<128x64xf32>
    %164 = vector.broadcast %146 : vector<1x64xf32> to vector<128x64xf32>
    %165 = arith.mulf %163, %164 : vector<128x64xf32>
    %166 = vector.broadcast %147 : vector<1x64xf32> to vector<128x64xf32>
    %167 = arith.addf %165, %166 : vector<128x64xf32>
    %168 = arith.truncf %167 : vector<128x64xf32> to vector<128x64xbf16>
    %c0_69 = arith.constant 0 : index
    %c0_70 = arith.constant 0 : index
    %c0_71 = arith.constant 0 : index
    %169 = vector.load %arg6[%c0_69, %c0_70, %c0_71] : memref<2x64x256xbf16, #tpu.memory_space<vmem>>, vector<1x64x256xbf16>
    %170 = vector.shape_cast %169 : vector<1x64x256xbf16> to vector<64x256xbf16>
    %cst_72 = arith.constant dense<0.000000e+00> : vector<128x256xf32>
    %171 = tpu.matmul %168, %170, %cst_72 {dimension_numbers = #tpu.dot_dimension_numbers<[1], [0], [0], [1], [0, 0, 1, 1], [], []>} : vector<128x64xbf16>, vector<64x256xbf16>, vector<128x256xf32> -> vector<128x256xf32>
    %c0_73 = arith.constant 0 : index
    %c0_74 = arith.constant 0 : index
    %172 = vector.load %arg3[%c0_73, %c0_74] : memref<2x256xf32, #tpu.memory_space<vmem>>, vector<1x256xf32>
    %173 = vector.broadcast %172 : vector<1x256xf32> to vector<128x256xf32>
    %174 = arith.addf %171, %173 : vector<128x256xf32>
    %cst_75 = arith.constant 5.000000e-01 : f32
    %175 = vector.broadcast %cst_75 : f32 to vector<128x256xf32>
    %176 = arith.mulf %175, %174 : vector<128x256xf32>
    %cst_76 = arith.constant 4.471500e-02 : f32
    %177 = vector.broadcast %cst_76 : f32 to vector<128x256xf32>
    %178 = arith.mulf %177, %174 : vector<128x256xf32>
    %179 = arith.mulf %178, %174 : vector<128x256xf32>
    %180 = arith.mulf %179, %174 : vector<128x256xf32>
    %181 = arith.addf %174, %180 : vector<128x256xf32>
    %cst_77 = arith.constant 0.797884583 : f32
    %182 = vector.broadcast %cst_77 : f32 to vector<128x256xf32>
    %183 = arith.mulf %182, %181 : vector<128x256xf32>
    %184 = math.tanh %183 : vector<128x256xf32>
    %cst_78 = arith.constant 1.000000e+00 : f32
    %185 = vector.broadcast %cst_78 : f32 to vector<128x256xf32>
    %186 = arith.addf %185, %184 : vector<128x256xf32>
    %187 = arith.mulf %176, %186 : vector<128x256xf32>
    %188 = arith.truncf %187 : vector<128x256xf32> to vector<128x256xbf16>
    %c0_79 = arith.constant 0 : index
    %c0_80 = arith.constant 0 : index
    %c0_81 = arith.constant 0 : index
    %189 = vector.load %arg7[%c0_79, %c0_80, %c0_81] : memref<2x256x64xbf16, #tpu.memory_space<vmem>>, vector<1x256x64xbf16>
    %190 = vector.shape_cast %189 : vector<1x256x64xbf16> to vector<256x64xbf16>
    %cst_82 = arith.constant dense<0.000000e+00> : vector<128x64xf32>
    %191 = tpu.matmul %188, %190, %cst_82 {dimension_numbers = #tpu.dot_dimension_numbers<[1], [0], [0], [1], [0, 0, 1, 1], [], []>} : vector<128x256xbf16>, vector<256x64xbf16>, vector<128x64xf32> -> vector<128x64xf32>
    %c7_83 = arith.constant 7 : index
    %c0_84 = arith.constant 0 : index
    %192 = vector.load %arg2[%c7_83, %c0_84] : memref<15x64xf32, #tpu.memory_space<vmem>>, vector<1x64xf32>
    %193 = vector.broadcast %192 : vector<1x64xf32> to vector<128x64xf32>
    %194 = arith.addf %191, %193 : vector<128x64xf32>
    %195 = arith.addf %145, %194 : vector<128x64xf32>
    %c8_85 = arith.constant 8 : index
    %c0_86 = arith.constant 0 : index
    %196 = vector.load %arg2[%c8_85, %c0_86] : memref<15x64xf32, #tpu.memory_space<vmem>>, vector<1x64xf32>
    %c9 = arith.constant 9 : index
    %c0_87 = arith.constant 0 : index
    %197 = vector.load %arg2[%c9, %c0_87] : memref<15x64xf32, #tpu.memory_space<vmem>>, vector<1x64xf32>
    %cst_88 = arith.constant dense<0.000000e+00> : vector<128xf32>
    %198 = vector.multi_reduction <add>, %195, %cst_88 [1] : vector<128x64xf32> to vector<128xf32>
    %199 = vector.shape_cast %198 : vector<128xf32> to vector<128x1xf32>
    %cst_89 = arith.constant 6.400000e+01 : f32
    %200 = vector.broadcast %cst_89 : f32 to vector<128x1xf32>
    %201 = arith.divf %199, %200 : vector<128x1xf32>
    %202 = vector.broadcast %201 : vector<128x1xf32> to vector<128x64xf32>
    %203 = arith.subf %195, %202 : vector<128x64xf32>
    %204 = arith.mulf %203, %203 : vector<128x64xf32>
    %cst_90 = arith.constant dense<0.000000e+00> : vector<128xf32>
    %205 = vector.multi_reduction <add>, %204, %cst_90 [1] : vector<128x64xf32> to vector<128xf32>
    %206 = vector.shape_cast %205 : vector<128xf32> to vector<128x1xf32>
    %cst_91 = arith.constant 6.400000e+01 : f32
    %207 = vector.broadcast %cst_91 : f32 to vector<128x1xf32>
    %208 = arith.divf %206, %207 : vector<128x1xf32>
    %cst_92 = arith.constant 9.99999974E-6 : f32
    %209 = vector.broadcast %cst_92 : f32 to vector<128x1xf32>
    %210 = arith.addf %208, %209 : vector<128x1xf32>
    %211 = math.rsqrt %210 : vector<128x1xf32>
    %212 = vector.broadcast %211 : vector<128x1xf32> to vector<128x64xf32>
    %213 = arith.mulf %203, %212 : vector<128x64xf32>
    %214 = vector.broadcast %196 : vector<1x64xf32> to vector<128x64xf32>
    %215 = arith.mulf %213, %214 : vector<128x64xf32>
    %216 = vector.broadcast %197 : vector<1x64xf32> to vector<128x64xf32>
    %217 = arith.addf %215, %216 : vector<128x64xf32>
    %218 = arith.truncf %217 : vector<128x64xf32> to vector<128x64xbf16>
    %c1_93 = arith.constant 1 : index
    %c0_94 = arith.constant 0 : index
    %c0_95 = arith.constant 0 : index
    %219 = vector.load %arg5[%c1_93, %c0_94, %c0_95] : memref<2x64x192xbf16, #tpu.memory_space<vmem>>, vector<1x64x192xbf16>
    %220 = vector.shape_cast %219 : vector<1x64x192xbf16> to vector<64x192xbf16>
    %cst_96 = arith.constant dense<0.000000e+00> : vector<128x192xf32>
    %221 = tpu.matmul %218, %220, %cst_96 {dimension_numbers = #tpu.dot_dimension_numbers<[1], [0], [0], [1], [0, 0, 1, 1], [], []>} : vector<128x64xbf16>, vector<64x192xbf16>, vector<128x192xf32> -> vector<128x192xf32>
    %222 = vector.extract_strided_slice %221 {offsets = [0, 0], sizes = [128, 64], strides = [1, 1]} : vector<128x192xf32> to vector<128x64xf32>
    %223 = vector.extract_strided_slice %221 {offsets = [0, 64], sizes = [128, 64], strides = [1, 1]} : vector<128x192xf32> to vector<128x64xf32>
    %224 = vector.extract_strided_slice %221 {offsets = [0, 128], sizes = [128, 64], strides = [1, 1]} : vector<128x192xf32> to vector<128x64xf32>
    %c0_97 = arith.constant 0 : index
    %c0_98 = arith.constant 0 : index
    %225 = vector.load %arg10[%c0_97, %c0_98] : memref<64x64xf32, #tpu.memory_space<vmem>>, vector<64x64xf32>
    %c10 = arith.constant 10 : index
    %c0_99 = arith.constant 0 : index
    %226 = vector.load %arg2[%c10, %c0_99] : memref<15x64xf32, #tpu.memory_space<vmem>>, vector<1x64xf32>
    %227 = vector.extract_strided_slice %222 {offsets = [0, 0], sizes = [64, 64], strides = [1, 1]} : vector<128x64xf32> to vector<64x64xf32>
    %228 = vector.extract_strided_slice %223 {offsets = [0, 0], sizes = [64, 64], strides = [1, 1]} : vector<128x64xf32> to vector<64x64xf32>
    %229 = vector.extract_strided_slice %224 {offsets = [0, 0], sizes = [64, 64], strides = [1, 1]} : vector<128x64xf32> to vector<64x64xf32>
    %230 = arith.mulf %227, %227 : vector<64x64xf32>
    %cst_100 = arith.constant dense<0.000000e+00> : vector<64xf32>
    %231 = vector.multi_reduction <add>, %230, %cst_100 [0] : vector<64x64xf32> to vector<64xf32>
    %232 = vector.shape_cast %231 : vector<64xf32> to vector<1x64xf32>
    %cst_101 = arith.constant 1.000000e-24 : f32
    %233 = vector.broadcast %cst_101 : f32 to vector<1x64xf32>
    %234 = arith.maximumf %232, %233 : vector<1x64xf32>
    %235 = math.rsqrt %234 : vector<1x64xf32>
    %236 = vector.broadcast %235 : vector<1x64xf32> to vector<64x64xf32>
    %237 = arith.mulf %227, %236 : vector<64x64xf32>
    %238 = arith.mulf %228, %228 : vector<64x64xf32>
    %cst_102 = arith.constant dense<0.000000e+00> : vector<64xf32>
    %239 = vector.multi_reduction <add>, %238, %cst_102 [0] : vector<64x64xf32> to vector<64xf32>
    %240 = vector.shape_cast %239 : vector<64xf32> to vector<1x64xf32>
    %cst_103 = arith.constant 1.000000e-24 : f32
    %241 = vector.broadcast %cst_103 : f32 to vector<1x64xf32>
    %242 = arith.maximumf %240, %241 : vector<1x64xf32>
    %243 = math.rsqrt %242 : vector<1x64xf32>
    %244 = vector.broadcast %243 : vector<1x64xf32> to vector<64x64xf32>
    %245 = arith.mulf %228, %244 : vector<64x64xf32>
    %246 = vector.broadcast %226 : vector<1x64xf32> to vector<64x64xf32>
    %247 = arith.mulf %237, %246 : vector<64x64xf32>
    %248 = arith.truncf %247 : vector<64x64xf32> to vector<64x64xbf16>
    %249 = arith.truncf %245 : vector<64x64xf32> to vector<64x64xbf16>
    %cst_104 = arith.constant dense<0.000000e+00> : vector<64x64xf32>
    %250 = tpu.matmul %248, %249, %cst_104 {dimension_numbers = #tpu.dot_dimension_numbers<[0], [0], [1], [1], [0, 1, 1, 1], [], []>} : vector<64x64xbf16>, vector<64x64xbf16>, vector<64x64xf32> -> vector<64x64xf32>
    %251 = arith.addf %250, %225 : vector<64x64xf32>
    %cst_105 = arith.constant dense<0xFF800000> : vector<64xf32>
    %252 = vector.multi_reduction <maximumf>, %251, %cst_105 [1] : vector<64x64xf32> to vector<64xf32>
    %253 = vector.shape_cast %252 : vector<64xf32> to vector<64x1xf32>
    %254 = vector.broadcast %253 : vector<64x1xf32> to vector<64x64xf32>
    %255 = arith.subf %251, %254 : vector<64x64xf32>
    %256 = math.exp %255 : vector<64x64xf32>
    %cst_106 = arith.constant dense<0.000000e+00> : vector<64xf32>
    %257 = vector.multi_reduction <add>, %256, %cst_106 [1] : vector<64x64xf32> to vector<64xf32>
    %258 = vector.shape_cast %257 : vector<64xf32> to vector<64x1xf32>
    %259 = vector.broadcast %258 : vector<64x1xf32> to vector<64x64xf32>
    %260 = arith.divf %256, %259 : vector<64x64xf32>
    %261 = arith.truncf %229 : vector<64x64xf32> to vector<64x64xbf16>
    %262 = arith.truncf %260 : vector<64x64xf32> to vector<64x64xbf16>
    %cst_107 = arith.constant dense<0.000000e+00> : vector<64x64xf32>
    %263 = tpu.matmul %261, %262, %cst_107 {dimension_numbers = #tpu.dot_dimension_numbers<[1], [1], [0], [0], [0, 0, 1, 0], [], []>} : vector<64x64xbf16>, vector<64x64xbf16>, vector<64x64xf32> -> vector<64x64xf32>
    %264 = vector.extract_strided_slice %222 {offsets = [64, 0], sizes = [64, 64], strides = [1, 1]} : vector<128x64xf32> to vector<64x64xf32>
    %265 = vector.extract_strided_slice %223 {offsets = [64, 0], sizes = [64, 64], strides = [1, 1]} : vector<128x64xf32> to vector<64x64xf32>
    %266 = vector.extract_strided_slice %224 {offsets = [64, 0], sizes = [64, 64], strides = [1, 1]} : vector<128x64xf32> to vector<64x64xf32>
    %267 = arith.mulf %264, %264 : vector<64x64xf32>
    %cst_108 = arith.constant dense<0.000000e+00> : vector<64xf32>
    %268 = vector.multi_reduction <add>, %267, %cst_108 [0] : vector<64x64xf32> to vector<64xf32>
    %269 = vector.shape_cast %268 : vector<64xf32> to vector<1x64xf32>
    %cst_109 = arith.constant 1.000000e-24 : f32
    %270 = vector.broadcast %cst_109 : f32 to vector<1x64xf32>
    %271 = arith.maximumf %269, %270 : vector<1x64xf32>
    %272 = math.rsqrt %271 : vector<1x64xf32>
    %273 = vector.broadcast %272 : vector<1x64xf32> to vector<64x64xf32>
    %274 = arith.mulf %264, %273 : vector<64x64xf32>
    %275 = arith.mulf %265, %265 : vector<64x64xf32>
    %cst_110 = arith.constant dense<0.000000e+00> : vector<64xf32>
    %276 = vector.multi_reduction <add>, %275, %cst_110 [0] : vector<64x64xf32> to vector<64xf32>
    %277 = vector.shape_cast %276 : vector<64xf32> to vector<1x64xf32>
    %cst_111 = arith.constant 1.000000e-24 : f32
    %278 = vector.broadcast %cst_111 : f32 to vector<1x64xf32>
    %279 = arith.maximumf %277, %278 : vector<1x64xf32>
    %280 = math.rsqrt %279 : vector<1x64xf32>
    %281 = vector.broadcast %280 : vector<1x64xf32> to vector<64x64xf32>
    %282 = arith.mulf %265, %281 : vector<64x64xf32>
    %283 = vector.broadcast %226 : vector<1x64xf32> to vector<64x64xf32>
    %284 = arith.mulf %274, %283 : vector<64x64xf32>
    %285 = arith.truncf %284 : vector<64x64xf32> to vector<64x64xbf16>
    %286 = arith.truncf %282 : vector<64x64xf32> to vector<64x64xbf16>
    %cst_112 = arith.constant dense<0.000000e+00> : vector<64x64xf32>
    %287 = tpu.matmul %285, %286, %cst_112 {dimension_numbers = #tpu.dot_dimension_numbers<[0], [0], [1], [1], [0, 1, 1, 1], [], []>} : vector<64x64xbf16>, vector<64x64xbf16>, vector<64x64xf32> -> vector<64x64xf32>
    %288 = arith.addf %287, %225 : vector<64x64xf32>
    %cst_113 = arith.constant dense<0xFF800000> : vector<64xf32>
    %289 = vector.multi_reduction <maximumf>, %288, %cst_113 [1] : vector<64x64xf32> to vector<64xf32>
    %290 = vector.shape_cast %289 : vector<64xf32> to vector<64x1xf32>
    %291 = vector.broadcast %290 : vector<64x1xf32> to vector<64x64xf32>
    %292 = arith.subf %288, %291 : vector<64x64xf32>
    %293 = math.exp %292 : vector<64x64xf32>
    %cst_114 = arith.constant dense<0.000000e+00> : vector<64xf32>
    %294 = vector.multi_reduction <add>, %293, %cst_114 [1] : vector<64x64xf32> to vector<64xf32>
    %295 = vector.shape_cast %294 : vector<64xf32> to vector<64x1xf32>
    %296 = vector.broadcast %295 : vector<64x1xf32> to vector<64x64xf32>
    %297 = arith.divf %293, %296 : vector<64x64xf32>
    %298 = arith.truncf %266 : vector<64x64xf32> to vector<64x64xbf16>
    %299 = arith.truncf %297 : vector<64x64xf32> to vector<64x64xbf16>
    %cst_115 = arith.constant dense<0.000000e+00> : vector<64x64xf32>
    %300 = tpu.matmul %298, %299, %cst_115 {dimension_numbers = #tpu.dot_dimension_numbers<[1], [1], [0], [0], [0, 0, 1, 0], [], []>} : vector<64x64xbf16>, vector<64x64xbf16>, vector<64x64xf32> -> vector<64x64xf32>
    %301 = tpu.concatenate %263, %300 in 0 : vector<64x64xf32>, vector<64x64xf32> -> vector<128x64xf32>
    %302 = arith.truncf %301 : vector<128x64xf32> to vector<128x64xbf16>
    %c2_116 = arith.constant 2 : index
    %c0_117 = arith.constant 0 : index
    %c0_118 = arith.constant 0 : index
    %303 = vector.load %arg4[%c2_116, %c0_117, %c0_118] : memref<3x64x64xbf16, #tpu.memory_space<vmem>>, vector<1x64x64xbf16>
    %304 = vector.shape_cast %303 : vector<1x64x64xbf16> to vector<64x64xbf16>
    %cst_119 = arith.constant dense<0.000000e+00> : vector<128x64xf32>
    %305 = tpu.matmul %302, %304, %cst_119 {dimension_numbers = #tpu.dot_dimension_numbers<[1], [0], [0], [1], [0, 0, 1, 1], [], []>} : vector<128x64xbf16>, vector<64x64xbf16>, vector<128x64xf32> -> vector<128x64xf32>
    %c11 = arith.constant 11 : index
    %c0_120 = arith.constant 0 : index
    %306 = vector.load %arg2[%c11, %c0_120] : memref<15x64xf32, #tpu.memory_space<vmem>>, vector<1x64xf32>
    %307 = vector.broadcast %306 : vector<1x64xf32> to vector<128x64xf32>
    %308 = arith.addf %305, %307 : vector<128x64xf32>
    %309 = arith.addf %195, %308 : vector<128x64xf32>
    %c12 = arith.constant 12 : index
    %c0_121 = arith.constant 0 : index
    %310 = vector.load %arg2[%c12, %c0_121] : memref<15x64xf32, #tpu.memory_space<vmem>>, vector<1x64xf32>
    %c13 = arith.constant 13 : index
    %c0_122 = arith.constant 0 : index
    %311 = vector.load %arg2[%c13, %c0_122] : memref<15x64xf32, #tpu.memory_space<vmem>>, vector<1x64xf32>
    %cst_123 = arith.constant dense<0.000000e+00> : vector<128xf32>
    %312 = vector.multi_reduction <add>, %309, %cst_123 [1] : vector<128x64xf32> to vector<128xf32>
    %313 = vector.shape_cast %312 : vector<128xf32> to vector<128x1xf32>
    %cst_124 = arith.constant 6.400000e+01 : f32
    %314 = vector.broadcast %cst_124 : f32 to vector<128x1xf32>
    %315 = arith.divf %313, %314 : vector<128x1xf32>
    %316 = vector.broadcast %315 : vector<128x1xf32> to vector<128x64xf32>
    %317 = arith.subf %309, %316 : vector<128x64xf32>
    %318 = arith.mulf %317, %317 : vector<128x64xf32>
    %cst_125 = arith.constant dense<0.000000e+00> : vector<128xf32>
    %319 = vector.multi_reduction <add>, %318, %cst_125 [1] : vector<128x64xf32> to vector<128xf32>
    %320 = vector.shape_cast %319 : vector<128xf32> to vector<128x1xf32>
    %cst_126 = arith.constant 6.400000e+01 : f32
    %321 = vector.broadcast %cst_126 : f32 to vector<128x1xf32>
    %322 = arith.divf %320, %321 : vector<128x1xf32>
    %cst_127 = arith.constant 9.99999974E-6 : f32
    %323 = vector.broadcast %cst_127 : f32 to vector<128x1xf32>
    %324 = arith.addf %322, %323 : vector<128x1xf32>
    %325 = math.rsqrt %324 : vector<128x1xf32>
    %326 = vector.broadcast %325 : vector<128x1xf32> to vector<128x64xf32>
    %327 = arith.mulf %317, %326 : vector<128x64xf32>
    %328 = vector.broadcast %310 : vector<1x64xf32> to vector<128x64xf32>
    %329 = arith.mulf %327, %328 : vector<128x64xf32>
    %330 = vector.broadcast %311 : vector<1x64xf32> to vector<128x64xf32>
    %331 = arith.addf %329, %330 : vector<128x64xf32>
    %332 = arith.truncf %331 : vector<128x64xf32> to vector<128x64xbf16>
    %c1_128 = arith.constant 1 : index
    %c0_129 = arith.constant 0 : index
    %c0_130 = arith.constant 0 : index
    %333 = vector.load %arg6[%c1_128, %c0_129, %c0_130] : memref<2x64x256xbf16, #tpu.memory_space<vmem>>, vector<1x64x256xbf16>
    %334 = vector.shape_cast %333 : vector<1x64x256xbf16> to vector<64x256xbf16>
    %cst_131 = arith.constant dense<0.000000e+00> : vector<128x256xf32>
    %335 = tpu.matmul %332, %334, %cst_131 {dimension_numbers = #tpu.dot_dimension_numbers<[1], [0], [0], [1], [0, 0, 1, 1], [], []>} : vector<128x64xbf16>, vector<64x256xbf16>, vector<128x256xf32> -> vector<128x256xf32>
    %c1_132 = arith.constant 1 : index
    %c0_133 = arith.constant 0 : index
    %336 = vector.load %arg3[%c1_132, %c0_133] : memref<2x256xf32, #tpu.memory_space<vmem>>, vector<1x256xf32>
    %337 = vector.broadcast %336 : vector<1x256xf32> to vector<128x256xf32>
    %338 = arith.addf %335, %337 : vector<128x256xf32>
    %cst_134 = arith.constant 5.000000e-01 : f32
    %339 = vector.broadcast %cst_134 : f32 to vector<128x256xf32>
    %340 = arith.mulf %339, %338 : vector<128x256xf32>
    %cst_135 = arith.constant 4.471500e-02 : f32
    %341 = vector.broadcast %cst_135 : f32 to vector<128x256xf32>
    %342 = arith.mulf %341, %338 : vector<128x256xf32>
    %343 = arith.mulf %342, %338 : vector<128x256xf32>
    %344 = arith.mulf %343, %338 : vector<128x256xf32>
    %345 = arith.addf %338, %344 : vector<128x256xf32>
    %cst_136 = arith.constant 0.797884583 : f32
    %346 = vector.broadcast %cst_136 : f32 to vector<128x256xf32>
    %347 = arith.mulf %346, %345 : vector<128x256xf32>
    %348 = math.tanh %347 : vector<128x256xf32>
    %cst_137 = arith.constant 1.000000e+00 : f32
    %349 = vector.broadcast %cst_137 : f32 to vector<128x256xf32>
    %350 = arith.addf %349, %348 : vector<128x256xf32>
    %351 = arith.mulf %340, %350 : vector<128x256xf32>
    %352 = arith.truncf %351 : vector<128x256xf32> to vector<128x256xbf16>
    %c1_138 = arith.constant 1 : index
    %c0_139 = arith.constant 0 : index
    %c0_140 = arith.constant 0 : index
    %353 = vector.load %arg7[%c1_138, %c0_139, %c0_140] : memref<2x256x64xbf16, #tpu.memory_space<vmem>>, vector<1x256x64xbf16>
    %354 = vector.shape_cast %353 : vector<1x256x64xbf16> to vector<256x64xbf16>
    %cst_141 = arith.constant dense<0.000000e+00> : vector<128x64xf32>
    %355 = tpu.matmul %352, %354, %cst_141 {dimension_numbers = #tpu.dot_dimension_numbers<[1], [0], [0], [1], [0, 0, 1, 1], [], []>} : vector<128x256xbf16>, vector<256x64xbf16>, vector<128x64xf32> -> vector<128x64xf32>
    %c14 = arith.constant 14 : index
    %c0_142 = arith.constant 0 : index
    %356 = vector.load %arg2[%c14, %c0_142] : memref<15x64xf32, #tpu.memory_space<vmem>>, vector<1x64xf32>
    %357 = vector.broadcast %356 : vector<1x64xf32> to vector<128x64xf32>
    %358 = arith.addf %355, %357 : vector<128x64xf32>
    %359 = arith.addf %309, %358 : vector<128x64xf32>
    %360 = vector.shape_cast %359 : vector<128x64xf32> to vector<2x64x64xf32>
    %c0_143 = arith.constant 0 : index
    %c0_144 = arith.constant 0 : index
    %c0_145 = arith.constant 0 : index
    %361 = vector.load %arg11[%c0_143, %c0_144, %c0_145] : memref<2x64x64xf32, #tpu.memory_space<vmem>>, vector<2x64x64xf32>
    tpu.vector_store %arg11[%c0_143, %c0_144, %c0_145], %360 {strides = array<i32>} : memref<2x64x64xf32, #tpu.memory_space<vmem>>, vector<2x64x64xf32>,
    return
  }
  func.func @transform_0(%arg0: i32) -> (i32, i32, i32) {
    %c0_i32 = arith.constant 0 : i32
    %c0_i32_0 = arith.constant 0 : i32
    %c0_i32_1 = arith.constant 0 : i32
    return %arg0, %c0_i32, %c0_i32_0 : i32, i32, i32
  }
  func.func @transform_1(%arg0: i32) -> (i32, i32) {
    %c0_i32 = arith.constant 0 : i32
    %c0_i32_0 = arith.constant 0 : i32
    %c0_i32_1 = arith.constant 0 : i32
    return %c0_i32, %c0_i32_0 : i32, i32
  }
  func.func @transform_2(%arg0: i32) -> (i32, i32) {
    %c0_i32 = arith.constant 0 : i32
    %c0_i32_0 = arith.constant 0 : i32
    %c0_i32_1 = arith.constant 0 : i32
    return %c0_i32, %c0_i32_0 : i32, i32
  }
  func.func @transform_3(%arg0: i32) -> (i32, i32, i32) {
    %c0_i32 = arith.constant 0 : i32
    %c0_i32_0 = arith.constant 0 : i32
    %c0_i32_1 = arith.constant 0 : i32
    %c0_i32_2 = arith.constant 0 : i32
    return %c0_i32, %c0_i32_0, %c0_i32_1 : i32, i32, i32
  }
  func.func @transform_4(%arg0: i32) -> (i32, i32, i32) {
    %c0_i32 = arith.constant 0 : i32
    %c0_i32_0 = arith.constant 0 : i32
    %c0_i32_1 = arith.constant 0 : i32
    %c0_i32_2 = arith.constant 0 : i32
    return %c0_i32, %c0_i32_0, %c0_i32_1 : i32, i32, i32
  }
  func.func @transform_5(%arg0: i32) -> (i32, i32, i32) {
    %c0_i32 = arith.constant 0 : i32
    %c0_i32_0 = arith.constant 0 : i32
    %c0_i32_1 = arith.constant 0 : i32
    %c0_i32_2 = arith.constant 0 : i32
    return %c0_i32, %c0_i32_0, %c0_i32_1 : i32, i32, i32
  }
  func.func @transform_6(%arg0: i32) -> (i32, i32, i32) {
    %c0_i32 = arith.constant 0 : i32
    %c0_i32_0 = arith.constant 0 : i32
    %c0_i32_1 = arith.constant 0 : i32
    %c0_i32_2 = arith.constant 0 : i32
    return %c0_i32, %c0_i32_0, %c0_i32_1 : i32, i32, i32
  }
  func.func @transform_7(%arg0: i32) -> (i32, i32, i32) {
    %c0_i32 = arith.constant 0 : i32
    %c0_i32_0 = arith.constant 0 : i32
    %c0_i32_1 = arith.constant 0 : i32
    %c0_i32_2 = arith.constant 0 : i32
    return %c0_i32, %c0_i32_0, %c0_i32_1 : i32, i32, i32
  }
  func.func @transform_8(%arg0: i32) -> (i32, i32, i32) {
    %c0_i32 = arith.constant 0 : i32
    %c0_i32_0 = arith.constant 0 : i32
    %c0_i32_1 = arith.constant 0 : i32
    %c0_i32_2 = arith.constant 0 : i32
    return %c0_i32, %c0_i32_0, %c0_i32_1 : i32, i32, i32
  }
  func.func @transform_9(%arg0: i32) -> (i32, i32) {
    %c0_i32 = arith.constant 0 : i32
    %c0_i32_0 = arith.constant 0 : i32
    %c0_i32_1 = arith.constant 0 : i32
    return %c0_i32, %c0_i32_0 : i32, i32
  }
  func.func @transform_10(%arg0: i32) -> (i32, i32, i32) {
    %c0_i32 = arith.constant 0 : i32
    %c0_i32_0 = arith.constant 0 : i32
    %c0_i32_1 = arith.constant 0 : i32
    return %arg0, %c0_i32, %c0_i32_0 : i32, i32, i32
  }
}

</mosaic_0001>

<bundles_post_ra>
// kernel: tpu_custom_call.1
= control target key start
LH: loop header
LB: loop body
LE: loop exit
PB: predicated region body
PF: predicated region fallthrough
CT: control target
= control target key end

     0   :  { %vm71_vm0 = vcmask 523264   ;;  %s16215_s0 = inlined_call_operand.vmem [shape: f32[2,64,64], index: 0, kind: input, shape index: {}]   ;;  %s16216_s1 = inlined_call_operand.vmem [shape: f32[15,64], index: 1, kind: input, shape index: {}]   ;;  %s16217_s2 = inlined_call_operand.vmem [shape: f32[2,256], index: 2, kind: input, shape index: {}]   ;;  %s16218_s3 = inlined_call_operand.vmem [shape: bf16[3,64,64], index: 3, kind: input, shape index: {}]   ;;  %s16219_s4 = inlined_call_operand.vmem [shape: bf16[2,64,192], index: 4, kind: input, shape index: {}]   ;;  %s16220_s5 = inlined_call_operand.vmem [shape: bf16[2,64,256], index: 5, kind: input, shape index: {}]   ;;  %s16221_s6 = inlined_call_operand.vmem [shape: bf16[2,256,64], index: 6, kind: input, shape index: {}]   ;;  %s16222_s7 = inlined_call_operand.vmem [shape: f32[9,128,64], index: 7, kind: input, shape index: {}]   ;;  %s16223_s8 = inlined_call_operand.vmem [shape: f32[8,1,64], index: 8, kind: input, shape index: {}]   ;;  %s16224_s9 = inlined_call_operand.vmem [shape: f32[64,64], index: 9, kind: input, shape index: {}]   ;;  %s16225_s10 = inlined_call_operand.hbm [shape: f32[2,64,64], index: 10, kind: output, shape index: {}]  }
   0x1   :  { %v37_v0 = vld [vmem:[%s16215_s0] sm:$0xff]  ;;  %v39_v1 = vld [vmem:[%s16215_s0 + $0x10] sm:$0xff]  ;;  %v38_v2 = vld [vmem:[%s16215_s0 + $0x8] sm:$0xff] }
   0x2   :  { %v72_v3 = vsel %vm71_vm0, %v37_v0, 0.0  ;;  %v78_v4 = vsel %vm71_vm0, %v39_v1, 0.0  ;;  %v40_v5 = vld [vmem:[%s16215_s0 + $0x18] sm:$0xff]  ;;  %v41_v6 = vld [vmem:[%s16215_s0 + $0x20] sm:$0xff]  ;;  %v42_v7 = vld [vmem:[%s16215_s0 + $0x28] sm:$0xff]  ;;  %v75_v8 = vsel %vm71_vm0, %v38_v2, 0.0 }
   0x3   :  { %73 = vadd.xlane.f32.xlu0 %v72_v3  ;;  %79 = vadd.xlane.f32.xlu1 %v78_v4  ;;  %v81_v9 = vsel %vm71_vm0, %v40_v5, 0.0  ;;  %v84_v10 = vsel %vm71_vm0, %v41_v6, 0.0  ;;  %v43_v11 = vld [vmem:[%s16215_s0 + $0x30] sm:$0xff]  ;;  %v44_v12 = vld [vmem:[%s16215_s0 + $0x38] sm:$0xff]  ;;  %v87_v13 = vsel %vm71_vm0, %v42_v7, 0.0 }
   0x4   :  { %v90_v14 = vsel %vm71_vm0, %v43_v11, 0.0  ;;  %v93_v15 = vsel %vm71_vm0, %v44_v12, 0.0 }
   0x7   :  { %76 = vadd.xlane.f32.xlu0 %v75_v8  ;;  %82 = vadd.xlane.f32.xlu1 %v81_v9 }
   0xb   :  { %85 = vadd.xlane.f32.xlu0 %v84_v10  ;;  %88 = vadd.xlane.f32.xlu1 %v87_v13 }
   0xf   :  { %91 = vadd.xlane.f32.xlu0 %v90_v14  ;;  %94 = vadd.xlane.f32.xlu1 %v93_v15 }
  0x10   :  { %15 = vsyncpa [#allocation3], 0  ;;  %v10826_v54 = vld [vmem:[%s16215_s0 + $0x40] sm:$0xff]  ;;  %v10835_v58 = vld [vmem:[%s16215_s0 + $0x48] sm:$0xff]  ;;  %s10694_s17 = smov 64   ;;  %vm6469_vm3 = vcmask 1048064  }
  0x11   :  { %v96_v57 = vsel %vm71_vm0, %v10826_v54, 0.0  ;;  %v10840_v59 = vld [vmem:[%s16215_s0 + $0x50] sm:$0xff]  ;;  %v99_v60 = vsel %vm71_vm0, %v10835_v58, 0.0  ;;  %v10849_v62 = vld [vmem:[%s16215_s0 + $0x58] sm:$0xff]  ;;  %v10854_v63 = vld [vmem:[%s16215_s0 + $0x60] sm:$0xff] }
  0x12   :  { %v102_v61 = vsel %vm71_vm0, %v10840_v59, 0.0  ;;  %v10868_v3 = vld [vmem:[%s16215_s0 + $0x70] sm:$0xff]  ;;  %v9703_v4 = vld [vmem:[%s16219_s4 + $0x4] ss:$8 sps:$4 sm:$0xff]   ;;  %v10883_v8 = vld [vmem:[%s16215_s0 + $0x78] sm:$0xff] }
  0x13   :  { %1048 = vmatprep.subr.bf16.mxu1 %v9703_v4  ;;  %v9706_v9 = vld [vmem:[%s16218_s3] sm:$0xff]   ;;  %v9707_v10 = vld [vmem:[%s16219_s4 + $0x14] ss:$8 sps:$4 sm:$0xff]   ;;  %v9710_v13 = vld [vmem:[%s16218_s3 + $0x8] sm:$0xff]  }
  0x14   :  { %9242 = vmatprep.subr.bf16.mxu0 %v9706_v9  ;;  %v9711_v14 = vld [vmem:[%s16219_s4 + $0x24] ss:$8 sps:$4 sm:$0xff]   ;;  %v9713_v15 = vld [vmem:[%s16219_s4 + $0x20] ss:$8 sps:$4 sm:$0xff]  }
  0x15   :  { %9243 = vmatpush3.bf16.msra.mxu0 %v9706_v9 }
  0x16   :  { %9244 = vmatprep.subr.bf16.mxu0 %v9710_v13 }
  0x19   :  { %9245 = vmatpush3.bf16.msra.mxu0 %v9710_v13 }
  0x90   :  { %v74_v16 = vpop.xlane.xlu0 %73  ;;  %v80_v17 = vpop.xlane.xlu1 %79 }
  0x91   :  { %v121_v18 = vmul.f32 0.015625, %v74_v16  ;;  %v123_v19 = vmul.f32 0.015625, %v80_v17  ;;  %v9714_v16 = vld [vmem:[%s16218_s3 + $0x10] sm:$0xff]  }
  0x92   :  { %v9715_v17 = vld [vmem:[%s16219_s4 + $0x34] ss:$8 sps:$4 sm:$0xff]   ;;  %9246 = vmatprep.subr.bf16.mxu0 %v9714_v16 }
  0x93   :  { %v10785_v20 = vsub.f32 %v37_v0, %v121_v18  ;;  %v10787_v21 = vsub.f32 %v39_v1, %v123_v19  ;;  %v105_v0 = vsel %vm71_vm0, %v10849_v62, 0.0  ;;  %v108_v1 = vsel %vm71_vm0, %v10854_v63, 0.0  ;;  %v9717_v18 = vld [vmem:[%s16219_s4 + $0x30] ss:$8 sps:$4 sm:$0xff]   ;;  %9247 = vmatpush3.bf16.msra.mxu0 %v9714_v16 }
  0x94   :  { %v77_v22 = vpop.xlane.xlu0 %76  ;;  %v83_v23 = vpop.xlane.xlu1 %82  ;;  %v9718_v19 = vld [vmem:[%s16218_s3 + $0x18] sm:$0xff]  }
  0x95   :  { %v122_v24 = vmul.f32 0.015625, %v77_v22  ;;  %v124_v25 = vmul.f32 0.015625, %v83_v23  ;;  %v153_v26 = vmul.f32 %v10785_v20, %v10785_v20  ;;  %v155_v27 = vmul.f32 %v10787_v21, %v10787_v21  ;;  %9248 = vmatprep.subr.bf16.mxu0 %v9718_v19 }
  0x96   :  { %v16226_v22 = vmov 0  }
  0x97   :  { %v10793_v28 = vsub.f32 %v38_v2, %v122_v24  ;;  %v10795_v29 = vsub.f32 %v40_v5, %v124_v25  ;;  %v169_v30 = vsel %vm71_vm0, %v153_v26, 0.0  ;;  %v175_v33 = vsel %vm71_vm0, %v155_v27, 0.0  ;;  %v10863_v2 = vld [vmem:[%s16215_s0 + $0x68] sm:$0xff]  ;;  %1080 = vmatprep.mubr.bf16.mxu1 %v16226_v22  ;;  %9249 = vmatpush3.bf16.msra.mxu0 %v9718_v19 }
  0x98   :  { %170 = vadd.xlane.f32.xlu0 %v169_v30  ;;  %v86_v31 = vpop.xlane.xlu0 %85  ;;  %v89_v32 = vpop.xlane.xlu1 %88  ;;  %v111_v5 = vsel %vm71_vm0, %v10863_v2, 0.0 }
  0x99   :  { %v125_v34 = vmul.f32 0.015625, %v86_v31  ;;  %v126_v35 = vmul.f32 0.015625, %v89_v32  ;;  %v154_v36 = vmul.f32 %v10793_v28, %v10793_v28  ;;  %v156_v37 = vmul.f32 %v10795_v29, %v10795_v29 }
  0x9b   :  { %v10803_v38 = vsub.f32 %v41_v6, %v125_v34  ;;  %v10805_v39 = vsub.f32 %v42_v7, %v126_v35  ;;  %v172_v40 = vsel %vm71_vm0, %v154_v36, 0.0  ;;  %v178_v43 = vsel %vm71_vm0, %v156_v37, 0.0  ;;  %v9705_v7 = vld [vmem:[%s16219_s4] ss:$8 sps:$4 sm:$0xff]  }
  0x9c   :  { %176 = vadd.xlane.f32.xlu0 %v175_v33  ;;  %173 = vadd.xlane.f32.xlu1 %v172_v40  ;;  %v92_v41 = vpop.xlane.xlu0 %91  ;;  %v95_v42 = vpop.xlane.xlu1 %94  ;;  %v114_v6 = vsel %vm71_vm0, %v10868_v3, 0.0 }
  0x9d   :  { %v127_v44 = vmul.f32 0.015625, %v92_v41  ;;  %v128_v45 = vmul.f32 0.015625, %v95_v42  ;;  %v157_v46 = vmul.f32 %v10803_v38, %v10803_v38  ;;  %v158_v47 = vmul.f32 %v10805_v39, %v10805_v39  ;;  %1049 = vmatpush1.bf16.msra.mxu1 %v9705_v7 }
  0x9e   :  { %1050 = vmatprep.subr.bf16.mxu1 %v9707_v10 }
  0x9f   :  { %v10813_v48 = vsub.f32 %v43_v11, %v127_v44  ;;  %v10815_v49 = vsub.f32 %v44_v12, %v128_v45  ;;  %v181_v50 = vsel %vm71_vm0, %v157_v46, 0.0  ;;  %v184_v51 = vsel %vm71_vm0, %v158_v47, 0.0  ;;  %v9709_v12 = vld [vmem:[%s16219_s4 + $0x10] ss:$8 sps:$4 sm:$0xff]  }
  0xa0   :  { %179 = vadd.xlane.f32.xlu1 %v178_v43  ;;  %182 = vadd.xlane.f32.xlu0 %v181_v50  ;;  %v117_v11 = vsel %vm71_vm0, %v10883_v8, 0.0 }
  0xa1   :  { %v159_v52 = vmul.f32 %v10813_v48, %v10813_v48  ;;  %v160_v53 = vmul.f32 %v10815_v49, %v10815_v49  ;;  %1051 = vmatpush1.bf16.msra.mxu1 %v9709_v12 }
  0xa2   :  { %1052 = vmatprep.subr.bf16.mxu1 %v9711_v14 }
  0xa3   :  { %v187_v55 = vsel %vm71_vm0, %v159_v52, 0.0  ;;  %v190_v56 = vsel %vm71_vm0, %v160_v53, 0.0 }
  0xa4   :  { %185 = vadd.xlane.f32.xlu1 %v184_v51  ;;  %188 = vadd.xlane.f32.xlu0 %v187_v55 }
  0xa5   :  { %1053 = vmatpush1.bf16.msra.mxu1 %v9713_v15 }
  0xa6   :  { %1054 = vmatprep.subr.bf16.mxu1 %v9715_v17 }
  0xa8   :  { %191 = vadd.xlane.f32.xlu1 %v190_v56  ;;  %97 = vadd.xlane.f32.xlu0 %v96_v57  ;;  %v10922_v57 = vld [vmem:[%s16216_s1] ss:$0 sm:$0xff] }
  0xa9   :  { %1055 = vmatpush1.bf16.msra.mxu1 %v9717_v18 }
  0xac   :  { %100 = vadd.xlane.f32.xlu1 %v99_v60  ;;  %103 = vadd.xlane.f32.xlu0 %v102_v61 }
  0xb0   :  { %106 = vadd.xlane.f32.xlu1 %v105_v0  ;;  %109 = vadd.xlane.f32.xlu0 %v108_v1 }
  0xb4   :  { %112 = vadd.xlane.f32.xlu1 %v111_v5  ;;  %115 = vadd.xlane.f32.xlu0 %v114_v6 }
  0xb8   :  { %118 = vadd.xlane.f32.xlu1 %v117_v11  ;;  %v10934_v11 = vld [vmem:[%s16216_s1 + $0x1] ss:$0 sm:$0xff] }
 0x125   :  { %v171_v23 = vpop.xlane.xlu0 %170 }
 0x126   :  { %v217_v24 = vmul.f32 0.015625, %v171_v23 }
 0x128   :  { %v233_v25 = vadd.f32 1e-05, %v217_v24 }
 0x129   :  { %v174_v26 = vpop.xlane.xlu1 %173  ;;  %v177_v27 = vpop.xlane.xlu0 %176 }
 0x12a   :  { %9795 = vrsqrt.f32 %v233_v25  ;;  %v218_v30 = vmul.f32 0.015625, %v174_v26  ;;  %v219_v31 = vmul.f32 0.015625, %v177_v27 }
 0x12c   :  { %v234_v32 = vadd.f32 1e-05, %v218_v30  ;;  %v235_v33 = vadd.f32 1e-05, %v219_v31 }
 0x12d   :  { %v180_v34 = vpop.xlane.xlu1 %179  ;;  %v183_v35 = vpop.xlane.xlu0 %182 }
 0x12e   :  { %9797 = vrsqrt.f32 %v234_v32  ;;  %v220_v36 = vmul.f32 0.015625, %v180_v34  ;;  %v221_v37 = vmul.f32 0.015625, %v183_v35 }
 0x12f   :  { %9799 = vrsqrt.f32 %v235_v33 }
 0x130   :  { %v236_v40 = vadd.f32 1e-05, %v220_v36  ;;  %v237_v41 = vadd.f32 1e-05, %v221_v37 }
 0x131   :  { %v186_v42 = vpop.xlane.xlu1 %185  ;;  %v189_v43 = vpop.xlane.xlu0 %188 }
 0x132   :  { %9801 = vrsqrt.f32 %v236_v40  ;;  %v222_v44 = vmul.f32 0.015625, %v186_v42  ;;  %v223_v45 = vmul.f32 0.015625, %v189_v43 }
 0x133   :  { %9803 = vrsqrt.f32 %v237_v41 }
 0x134   :  { %v9796_v46 = vpop.eup %9795  ;;  %v238_v47 = vadd.f32 1e-05, %v222_v44  ;;  %v239_v50 = vadd.f32 1e-05, %v223_v45 }
 0x135   :  { %v192_v51 = vpop.xlane.xlu1 %191  ;;  %v98_v52 = vpop.xlane.xlu0 %97  ;;  %v265_v53 = vmul.f32 %v9796_v46, %v10785_v20 }
 0x136   :  { %9805 = vrsqrt.f32 %v238_v47  ;;  %v224_v55 = vmul.f32 0.015625, %v192_v51  ;;  %v129_v56 = vmul.f32 0.015625, %v98_v52 }
 0x137   :  { %9807 = vrsqrt.f32 %v239_v50  ;;  %v285_v20 = vmul.f32 %v10922_v57, %v265_v53 }
 0x138   :  { %v9798_v60 = vpop.eup %9797  ;;  %v240_v61 = vadd.f32 1e-05, %v224_v55  ;;  %v10925_v0 = vsub.f32 %v10826_v54, %v129_v56 }
 0x139   :  { %v9800_v1 = vpop.eup %9799  ;;  %v101_v4 = vpop.xlane.xlu1 %100  ;;  %v266_v6 = vmul.f32 %v9798_v60, %v10793_v28  ;;  %v305_v19 = vadd.f32 %v10934_v11, %v285_v20 }
 0x13a   :  { %v104_v5 = vpop.xlane.xlu0 %103  ;;  %9809 = vrsqrt.f32 %v240_v61  ;;  %v130_v7 = vmul.f32 0.015625, %v101_v4  ;;  %v161_v10 = vmul.f32 %v10925_v0, %v10925_v0  ;;  %v267_v12 = vmul.f32 %v9800_v1, %v10787_v21 }
 0x13b   :  { %v131_v9 = vmul.f32 0.015625, %v104_v5  ;;  %v286_v54 = vmul.f32 %v10922_v57, %v266_v6 }
 0x13c   :  { %v9802_v13 = vpop.eup %9801  ;;  %v10939_v28 = vsub.f32 %v10835_v58, %v130_v7  ;;  %v193_v15 = vsel %vm71_vm0, %v161_v10, 0.0  ;;  %v287_v21 = vmul.f32 %v10922_v57, %v267_v12 }
 0x13d   :  { %v10942_v14 = vsub.f32 %v10840_v59, %v131_v9  ;;  %v9804_v16 = vpop.eup %9803  ;;  %v107_v17 = vpop.xlane.xlu1 %106  ;;  %194 = vadd.xlane.f32.xlu0 %v193_v15  ;;  %v306_v23 = vadd.f32 %v10934_v11, %v286_v54  ;;  %v268_v24 = vmul.f32 %v9802_v13, %v10795_v29 }
 0x13e   :  { %v110_v18 = vpop.xlane.xlu0 %109  ;;  %v132_v25 = vmul.f32 0.015625, %v107_v17  ;;  %v162_v59 = vmul.f32 %v10939_v28, %v10939_v28  ;;  %v307_v31 = vadd.f32 %v10934_v11, %v287_v21  ;;  %v269_v32 = vmul.f32 %v9804_v16, %v10803_v38 }
 0x13f   :  { %v133_v58 = vmul.f32 0.015625, %v110_v18  ;;  %v163_v26 = vmul.f32 %v10942_v14, %v10942_v14  ;;  %v321_v27 = vpack.c.bf16 %v306_v23, %v305_v19  ;;  %v288_v30 = vmul.f32 %v10922_v57, %v268_v24 }
 0x140   :  { %v9806_v33 = vpop.eup %9805  ;;  %v10957_v29 = vsub.f32 %v10849_v62, %v132_v25  ;;  %v196_v35 = vsel %vm71_vm0, %v162_v59, 0.0  ;;  %v289_v62 = vmul.f32 %v10922_v57, %v269_v32 }
 0x141   :  { %v10960_v34 = vsub.f32 %v10854_v63, %v133_v58  ;;  %v199_v36 = vsel %vm71_vm0, %v163_v26, 0.0  ;;  %v9808_v37 = vpop.eup %9807  ;;  %197 = vadd.xlane.f32.xlu1 %v196_v35  ;;  %v113_v40 = vpop.xlane.xlu1 %112  ;;  %9250 = vmatprep.mubr.msk.bf16.mxu0 %vm71_vm0, %v321_v27  ;;  %v308_v42 = vadd.f32 %v10934_v11, %v288_v30  ;;  %v270_v38 = vmul.f32 %v9806_v33, %v10805_v39 }
 0x142   :  { %v116_v41 = vpop.xlane.xlu0 %115  ;;  %v134_v43 = vmul.f32 0.015625, %v113_v40  ;;  %8570 = vmatmul.mubr.msk.bf16.vlgmr.msra.gmra.mrb[0].mxu1 %vm71_vm0, %v321_v27  ;;  %200 = vadd.xlane.f32.xlu0 %v199_v36  ;;  %v164_v44 = vmul.f32 %v10957_v29, %v10957_v29  ;;  %v309_v39 = vadd.f32 %v10934_v11, %v289_v62  ;;  %v271_v50 = vmul.f32 %v9808_v37, %v10813_v48 }
 0x143   :  { %v135_v63 = vmul.f32 0.015625, %v116_v41  ;;  %v165_v45 = vmul.f32 %v10960_v34, %v10960_v34  ;;  %v322_v46 = vpack.c.bf16 %v308_v42, %v307_v31  ;;  %1090 = vmatprep.mubr.bf16.mxu1 %v16226_v22  ;;  %v290_v47 = vmul.f32 %v10922_v57, %v270_v38 }
 0x144   :  { %v9810_v51 = vpop.eup %9809  ;;  %v10978_v52 = vsub.f32 %v10863_v2, %v134_v43  ;;  %v202_v55 = vsel %vm71_vm0, %v164_v44, 0.0  ;;  %v291_v48 = vmul.f32 %v10922_v57, %v271_v50 }
 0x145   :  { %v10981_v53 = vsub.f32 %v10868_v3, %v135_v63  ;;  %v205_v56 = vsel %vm71_vm0, %v165_v45, 0.0  ;;  %203 = vadd.xlane.f32.xlu1 %v202_v55  ;;  %v119_v60 = vpop.xlane.xlu1 %118  ;;  %9251 = vmatmul.mubr.msk.bf16.vlgmr.msra.gmra.mrb[0].mxu0 %vm71_vm0, %v322_v46  ;;  %v310_v61 = vadd.f32 %v10934_v11, %v290_v47  ;;  %v272_v1 = vmul.f32 %v9810_v51, %v10815_v49 }
 0x146   :  { %v136_v4 = vmul.f32 0.015625, %v119_v60  ;;  %206 = vadd.xlane.f32.xlu0 %v205_v56  ;;  %v166_v2 = vmul.f32 %v10978_v52, %v10978_v52  ;;  %v311_v9 = vadd.f32 %v10934_v11, %v291_v48 }
 0x147   :  { %v167_v3 = vmul.f32 %v10981_v53, %v10981_v53  ;;  %v323_v5 = vpack.c.bf16 %v310_v61, %v309_v39  ;;  %v292_v6 = vmul.f32 %v10922_v57, %v272_v1 }
 0x148   :  { %v10995_v20 = vsub.f32 %v10883_v8, %v136_v4  ;;  %v208_v7 = vsel %vm71_vm0, %v166_v2, 0.0 }
 0x149   :  { %v211_v49 = vsel %vm71_vm0, %v167_v3, 0.0  ;;  %209 = vadd.xlane.f32.xlu1 %v208_v7  ;;  %9254 = vmatprep.mubr.msk.bf16.mxu0 %vm71_vm0, %v323_v5  ;;  %v312_v10 = vadd.f32 %v10934_v11, %v292_v6 }
 0x14a   :  { %8571 = vmatmul.mubr.msk.bf16.gmra.mrb[4].mxu1 %vm71_vm0, %v322_v46  ;;  %212 = vadd.xlane.f32.xlu0 %v211_v49  ;;  %v168_v54 = vmul.f32 %v10995_v20, %v10995_v20 }
 0x14b   :  { %v324_v12 = vpack.c.bf16 %v312_v10, %v311_v9  ;;  %1100 = vmatprep.mubr.bf16.mxu1 %v16226_v22 }
 0x14c   :  { %v214_v8 = vsel %vm71_vm0, %v168_v54, 0.0 }
 0x14d   :  { %215 = vadd.xlane.f32.xlu1 %v214_v8  ;;  %9255 = vmatmul.mubr.msk.bf16.gmra.mrb[4].mxu0 %vm71_vm0, %v324_v12 }
 0x152   :  { %8572 = vmatmul.mubr.msk.bf16.gmra.mrb[8].mxu1 %vm71_vm0, %v323_v5 }
 0x153   :  { %1110 = vmatprep.mubr.bf16.mxu1 %v16226_v22 }
 0x15a   :  { %8573 = vmatmul.mubr.msk.bf16.gmra.mrb[12].mxu1 %vm71_vm0, %v324_v12 }
 0x15b   :  { %1120 = vmatprep.mubr.bf16.mxu1 %v16226_v22 }
 0x1ca   :  { %v195_v13 = vpop.xlane.xlu0 %194 }
 0x1cb   :  { %v225_v15 = vmul.f32 0.015625, %v195_v13 }
 0x1cd   :  { %v241_v16 = vadd.f32 1e-05, %v225_v15 }
 0x1ce   :  { %v198_v17 = vpop.xlane.xlu1 %197 }
 0x1cf   :  { %9811 = vrsqrt.f32 %v241_v16  ;;  %v226_v18 = vmul.f32 0.015625, %v198_v17  ;;  %v201_v19 = vpop.xlane.xlu0 %200 }
 0x1d0   :  { %v227_v23 = vmul.f32 0.015625, %v201_v19 }
 0x1d1   :  { %v242_v24 = vadd.f32 1e-05, %v226_v18 }
 0x1d2   :  { %v243_v21 = vadd.f32 1e-05, %v227_v23  ;;  %v204_v25 = vpop.xlane.xlu1 %203 }
 0x1d3   :  { %9813 = vrsqrt.f32 %v242_v24  ;;  %v228_v58 = vmul.f32 0.015625, %v204_v25  ;;  %v207_v59 = vpop.xlane.xlu0 %206 }
 0x1d4   :  { %9815 = vrsqrt.f32 %v243_v21  ;;  %v229_v26 = vmul.f32 0.015625, %v207_v59 }
 0x1d5   :  { %v244_v27 = vadd.f32 1e-05, %v228_v58  ;;  %v11063_v58 = vld [vmem:[%s16216_s1 + $0x2] ss:$0 sm:$0xff] }
 0x1d6   :  { %v245_v30 = vadd.f32 1e-05, %v229_v26  ;;  %v210_v31 = vpop.xlane.xlu1 %209 }
 0x1d7   :  { %9817 = vrsqrt.f32 %v244_v27  ;;  %v230_v32 = vmul.f32 0.015625, %v210_v31  ;;  %v213_v33 = vpop.xlane.xlu0 %212 }
 0x1d8   :  { %9819 = vrsqrt.f32 %v245_v30  ;;  %v231_v35 = vmul.f32 0.015625, %v213_v33 }
 0x1d9   :  { %v9812_v36 = vpop.eup %9811  ;;  %v246_v37 = vadd.f32 1e-05, %v230_v32 }
 0x1da   :  { %v247_v40 = vadd.f32 1e-05, %v231_v35  ;;  %v216_v41 = vpop.xlane.xlu1 %215  ;;  %v273_v42 = vmul.f32 %v9812_v36, %v10925_v0 }
 0x1db   :  { %9821 = vrsqrt.f32 %v246_v37  ;;  %v232_v38 = vmul.f32 0.015625, %v216_v41 }
 0x1dc   :  { %9823 = vrsqrt.f32 %v247_v40  ;;  %v293_v45 = vmul.f32 %v10922_v57, %v273_v42 }
 0x1dd   :  { %v9814_v62 = vpop.eup %9813  ;;  %v248_v43 = vadd.f32 1e-05, %v232_v38  ;;  %v524_v38 = vld [vmem:[%s16222_s7 + $0x10] sm:$0xff] }
 0x1de   :  { %v9816_v63 = vpop.eup %9815  ;;  %v274_v44 = vmul.f32 %v9814_v62, %v10939_v28  ;;  %v313_v0 = vadd.f32 %v10934_v11, %v293_v45  ;;  %v8435_v62 = vld [vmem:[%s16222_s7 + $0x90] sm:$0xff] }
 0x1df   :  { %9825 = vrsqrt.f32 %v248_v43  ;;  %v275_v46 = vmul.f32 %v9816_v63, %v10942_v14 }
 0x1e0   :  { %v294_v47 = vmul.f32 %v10922_v57, %v274_v44 }
 0x1e1   :  { %v9818_v39 = vpop.eup %9817  ;;  %v295_v50 = vmul.f32 %v10922_v57, %v275_v46 }
 0x1e2   :  { %v9820_v51 = vpop.eup %9819  ;;  %v314_v55 = vadd.f32 %v10934_v11, %v294_v47  ;;  %v276_v56 = vmul.f32 %v9818_v39, %v10957_v29 }
 0x1e3   :  { %v277_v60 = vmul.f32 %v9820_v51, %v10960_v34  ;;  %v315_v14 = vadd.f32 %v10934_v11, %v295_v50 }
 0x1e4   :  { %v325_v28 = vpack.c.bf16 %v314_v55, %v313_v0  ;;  %v296_v61 = vmul.f32 %v10922_v57, %v276_v56 }
 0x1e5   :  { %v9822_v1 = vpop.eup %9821  ;;  %v297_v3 = vmul.f32 %v10922_v57, %v277_v60 }
 0x1e6   :  { %v9824_v48 = vpop.eup %9823  ;;  %9258 = vmatprep.mubr.msk.bf16.mxu0 %vm71_vm0, %v325_v28  ;;  %8574 = vmatmul.mubr.msk.bf16.gmra.mrb[16].mxu1 %vm71_vm0, %v325_v28  ;;  %v316_v4 = vadd.f32 %v10934_v11, %v296_v61  ;;  %v278_v2 = vmul.f32 %v9822_v1, %v10978_v52  ;;  %v8451_v61 = vld [vmem:[%s16222_s7 + $0x110] sm:$0xff] }
 0x1e7   :  { %1130 = vmatprep.mubr.bf16.mxu1 %v16226_v22  ;;  %v279_v29 = vmul.f32 %v9824_v48, %v10981_v53  ;;  %v317_v7 = vadd.f32 %v10934_v11, %v297_v3 }
 0x1e8   :  { %v326_v34 = vpack.c.bf16 %v316_v4, %v315_v14  ;;  %v298_v5 = vmul.f32 %v10922_v57, %v278_v2 }
 0x1e9   :  { %v9826_v6 = vpop.eup %9825  ;;  %v299_v52 = vmul.f32 %v10922_v57, %v279_v29 }
 0x1ea   :  { %9259 = vmatmul.mubr.msk.bf16.gmra.mrb[8].mxu0 %vm71_vm0, %v326_v34  ;;  %v318_v49 = vadd.f32 %v10934_v11, %v298_v5  ;;  %v280_v9 = vmul.f32 %v9826_v6, %v10995_v20  ;;  %v53_v20 = vld [vmem:[%s16223_s8] sm:$0x1] }
 0x1eb   :  { %v319_v53 = vadd.f32 %v10934_v11, %v299_v52  ;;  %v61_v15 = vpack.c.bf16 %v53_v20, %v53_v20 }
 0x1ec   :  { %v327_v10 = vpack.c.bf16 %v318_v49, %v317_v7  ;;  %v300_v54 = vmul.f32 %v10922_v57, %v280_v9  ;;  %v503_v57 = vlaneseq }
 0x1ee   :  { %9262 = vmatprep.mubr.msk.bf16.mxu0 %vm71_vm0, %v327_v10  ;;  %8575 = vmatmul.mubr.msk.bf16.gmra.mrb[20].mxu1 %vm71_vm0, %v326_v34  ;;  %v320_v12 = vadd.f32 %v10934_v11, %v300_v54  ;;  %v11050_v13 = vshrl.u32 %v503_v57, 7  ;;  %v1178_v11 = vpack.i.b16 %v61_v15, %v61_v15  ;;  %v8439_v57 = vld [vmem:[%s16222_s7 + $0xb0] sm:$0xff] }
 0x1ef   :  { %1140 = vmatprep.mubr.bf16.mxu1 %v16226_v22 }
 0x1f0   :  { %v328_v8 = vpack.c.bf16 %v320_v12, %v319_v53  ;;  %16424 = vst [vmem:[#allocation5_spill] sm:$0xff] %v11050_v13  ;;  %v11053_v16 = vsub.s32 0, %v11050_v13  ;;  %vm505_vm1 = vcmp.lt.s32.totalorder %v11050_v13, 1  ;;  %vm619_vm2 = vcmp.lt.s32.totalorder %v11050_v13, 7 }
 0x1f2   :  { %9263 = vmatmul.mubr.msk.bf16.gmra.mrb[12].mxu0 %vm71_vm0, %v328_v8  ;;  %16425 = vst [vmem:[#allocation6_spill] sm:$0xff] %v11053_v16  ;;  %v11056_v19 = vrot.slane %v1178_v11, %v11053_v16 }
 0x1f4   :  { %16426 = vst [vmem:[#allocation7_spill] sm:$0xff] %v11056_v19 }
 0x1f6   :  { %8576 = vmatmul.mubr.msk.bf16.gmra.mrb[24].mxu1 %vm71_vm0, %v327_v10 }
 0x1f7   :  { %1150 = vmatprep.mubr.bf16.mxu1 %v16226_v22  ;;  %v8530_v22 = vld [vmem:[%s16222_s7 + $0x388] sm:$0xff] }
 0x1fe   :  { %8577 = vmatmul.mubr.msk.bf16.gmra.mrb[28].mxu1 %vm71_vm0, %v328_v8  ;;  %v528_v8 = vld [vmem:[%s16222_s7 + $0x30] sm:$0xff] }
 0x215   :  { %v1082_v17 = vpop.f32.mrb[0].mxu1 }
 0x216   :  { %v1084_v18 = vpop.f32.mrb[1].mxu1 }
 0x217   :  { %v1086_v23 = vpop.f32.mrb[2].mxu1 }
 0x218   :  { %v11058_v24 = vpack.c.bf16 %v1086_v23, %v1082_v17  ;;  %v1088_v21 = vpop.f32.mrb[3].mxu1  ;;  %v9252_v25 = vpop.f32.mrb[0].mxu0 }
 0x219   :  { %v1169_v59 = vpack.c.bf16 %v1088_v21, %v1084_v18  ;;  %v424_v26 = vpop.f32.mrb[1].mxu0  ;;  %v11070_v31 = vadd.f32 %v9252_v25, %v11063_v58 }
 0x21a   :  { %1269 = vrot.lane.b32.xlu0 %v11058_v24, %s10694_s17  ;;  %v9253_v27 = vpop.f32.mrb[2].mxu0  ;;  %v1233_v30 = vmul.bf16 %v11056_v19, %v11058_v24  ;;  %v11073_v33 = vadd.f32 %v11063_v58, %v424_v26  ;;  %v8437_v26 = vld [vmem:[%s16222_s7 + $0xa0] sm:$0xff] }
 0x21b   :  { %9338 = vmatprep.subr.bf16.mxu1 %v1169_v59  ;;  %v427_v32 = vpop.f32.mrb[3].mxu0  ;;  %v11077_v35 = vadd.f32 %v9253_v27, %v11063_v58  ;;  %v489_v41 = vrot.slane %v11070_v31, 7  ;;  %v605_v63 = vrot.slane %v11070_v31, 1 }
 0x21c   :  { %16427 = vst [vmem:[#allocation8_spill] sm:$0xff] %v11073_v33  ;;  %9274 = vmatprep.mubr.msk.bf16.mxu0 %vm71_vm0, %v1233_v30  ;;  %9339 = vmatpush3.bf16.msra.mxu1 %v1169_v59  ;;  %v11080_v36 = vadd.f32 %v11063_v58, %v427_v32  ;;  %v16233_v44 = vrot.slane %v11073_v33, 7  ;;  %v8455_v59 = vld [vmem:[%s16222_s7 + $0x130] sm:$0xff]  ;;  %v526_v32 = vld [vmem:[%s16222_s7 + $0x20] sm:$0xff] }
 0x21d   :  { %v1092_v37 = vpop.f32.mrb[4].mxu1  ;;  %v490_v42 = vrot.slane %v11077_v35, 7  ;;  %v606_v15 = vrot.slane %v11077_v35, 1 }
 0x21e   :  { %v1094_v40 = vpop.f32.mrb[5].mxu1  ;;  %v488_v45 = vrot.slane %v11080_v36, 7  ;;  %v604_v46 = vrot.slane %v11080_v36, 1  ;;  %v573_v48 = vmul.f32 %v8435_v62, %v11080_v36 }
 0x21f   :  { %v1096_v43 = vpop.f32.mrb[6].mxu1  ;;  %v11102_v55 = vsel %vm505_vm1, %v489_v41, %v490_v42 }
 0x220   :  { %v1098_v47 = vpop.f32.mrb[7].mxu1  ;;  %v9256_v39 = vpop.f32.mrb[4].mxu0  ;;  %v11096_v50 = vpack.c.bf16 %v1096_v43, %v1092_v37  ;;  %v11106_v56 = vsel %vm505_vm1, %v488_v45, %v489_v41  ;;  %v11112_v60 = vsel %vm505_vm1, %v16233_v44, %v488_v45  ;;  %v11120_v28 = vsel %vm619_vm2, %v604_v46, %v605_v63 }
 0x221   :  { %v1170_v51 = vpack.c.bf16 %v1098_v47, %v1094_v40  ;;  %v440_v0 = vpop.f32.mrb[5].mxu0  ;;  %v540_v14 = vmul.f32 %v524_v38, %v11112_v60  ;;  %v11132_v2 = vadd.f32 %v9256_v39, %v11063_v58  ;;  %v655_v29 = vmul.f32 %v8451_v61, %v11120_v28  ;;  %v8453_v40 = vld [vmem:[%s16222_s7 + $0x120] sm:$0xff]  ;;  %v525_v61 = vld [vmem:[%s16222_s7 + $0x18] sm:$0xff] }
 0x222   :  { %v11125_v1 = vpop.f32.mrb[6].mxu0  ;;  %1271 = vrot.lane.b32.xlu1 %v11096_v50, %s10694_s17  ;;  %v11136_v34 = vadd.f32 %v11063_v58, %v440_v0  ;;  %v575_v43 = vmul.f32 %v8437_v26, %v11077_v35  ;;  %v542_v47 = vmul.f32 %v526_v32, %v11102_v55  ;;  %v8467_v0 = vld [vmem:[%s16222_s7 + $0x190] sm:$0xff] }
 0x223   :  { %9340 = vmatprep.subr.bf16.mxu1 %v1170_v51  ;;  %v443_v4 = vpop.f32.mrb[7].mxu0  ;;  %v589_v3 = vadd.f32 %v573_v48, %v540_v14  ;;  %v493_v52 = vrot.slane %v11132_v2, 7  ;;  %v609_v54 = vrot.slane %v11132_v2, 1 }
 0x224   :  { %9341 = vmatpush3.bf16.msra.mxu1 %v1170_v51  ;;  %v11139_v6 = vadd.f32 %v11063_v58, %v443_v4  ;;  %v491_v53 = vrot.slane %v11136_v34, 7  ;;  %v607_v18 = vrot.slane %v11136_v34, 1  ;;  %v11205_v51 = vsel %vm619_vm2, %v605_v63, %v606_v15  ;;  %v8483_v63 = vld [vmem:[%s16222_s7 + $0x210] sm:$0xff] }
 0x225   :  { %v1102_v5 = vpop.f32.mrb[8].mxu1  ;;  %v671_v49 = vadd.f32 %v655_v29, %v589_v3  ;;  %v753_v26 = vmul.f32 %v8483_v63, %v11070_v31 }
 0x226   :  { %v1104_v7 = vpop.f32.mrb[9].mxu1  ;;  %v492_v12 = vrot.slane %v11139_v6, 7  ;;  %v608_v20 = vrot.slane %v11139_v6, 1  ;;  %v577_v30 = vmul.f32 %v8439_v57, %v11139_v6  ;;  %v11199_v39 = vsel %vm619_vm2, %v606_v15, %v607_v18  ;;  %v8440_v57 = vld [vmem:[%s16222_s7 + $0xb8] sm:$0xff]  ;;  %v8438_v15 = vld [vmem:[%s16222_s7 + $0xa8] sm:$0xff] }
 0x227   :  { %v1106_v9 = vpop.f32.mrb[10].mxu1  ;;  %v657_v3 = vmul.f32 %v8453_v40, %v11199_v39  ;;  %v8515_v40 = vld [vmem:[%s16222_s7 + $0x310] sm:$0xff]  ;;  %v517_v63 = vsel %vm505_vm1, %v490_v42, %v491_v53 }
 0x228   :  { %v1108_v10 = vpop.f32.mrb[11].mxu1  ;;  %v11153_v11 = vpack.c.bf16 %v1106_v9, %v1102_v5  ;;  %v11160_v23 = vsel %vm505_vm1, %v492_v12, %v493_v52  ;;  %v11166_v21 = vsel %vm505_vm1, %v491_v53, %v492_v12  ;;  %v11174_v25 = vsel %vm619_vm2, %v608_v20, %v609_v54  ;;  %v8484_v9 = vld [vmem:[%s16222_s7 + $0x218] sm:$0xff] }
 0x229   :  { %v1171_v17 = vpack.c.bf16 %v1108_v10, %v1104_v7  ;;  %v544_v27 = vmul.f32 %v528_v8, %v11166_v21  ;;  %v659_v38 = vmul.f32 %v8455_v59, %v11174_v25  ;;  %v591_v5 = vadd.f32 %v575_v43, %v542_v47  ;;  %v8436_v7 = vld [vmem:[%s16222_s7 + $0x98] sm:$0xff]  ;;  %v8499_v59 = vld [vmem:[%s16222_s7 + $0x290] sm:$0xff] }
 0x22a   :  { %1273 = vrot.lane.b32.xlu1 %v11153_v11, %s10694_s17  ;;  %v704_v10 = vmul.f32 %v8467_v0, %v11106_v56  ;;  %v16232_v12 = vrot.slane %v11073_v33, 1  ;;  %v541_v8 = vmul.f32 %v525_v61, %v11106_v56  ;;  %v8468_v43 = vld [vmem:[%s16222_s7 + $0x198] sm:$0xff]  ;;  %v802_v47 = vmul.f32 %v8499_v59, %v11205_v51  ;;  %v8487_v0 = vld [vmem:[%s16222_s7 + $0x230] sm:$0xff] }
 0x22b   :  { %9342 = vmatprep.subr.bf16.mxu1 %v1171_v17  ;;  %v593_v41 = vadd.f32 %v577_v30, %v544_v27  ;;  %v8452_v27 = vld [vmem:[%s16222_s7 + $0x118] sm:$0xff]  ;;  %v11249_v30 = vadd.f32 %v657_v3, %v591_v5  ;;  %v8531_v3 = vld [vmem:[%s16222_s7 + $0x390] sm:$0xff]  ;;  %v8485_v5 = vld [vmem:[%s16222_s7 + $0x220] sm:$0xff]  ;;  %v630_v42 = vsel %vm619_vm2, %v607_v18, %v608_v20 }
 0x22c   :  { %9343 = vmatpush3.bf16.msra.mxu1 %v1171_v17  ;;  %v11240_v17 = vadd.f32 %v11125_v1, %v11063_v58  ;;  %v720_v32 = vadd.f32 %v704_v10, %v671_v49  ;;  %v754_v1 = vmul.f32 %v8484_v9, %v11077_v35  ;;  %v527_v49 = vld [vmem:[%s16222_s7 + $0x28] sm:$0xff]  ;;  %v8488_v9 = vld [vmem:[%s16222_s7 + $0x238] sm:$0xff]  ;;  %v755_v18 = vmul.f32 %v8485_v5, %v11136_v34 }
 0x22d   :  { %v1112_v37 = vpop.f32.mrb[12].mxu1  ;;  %v11213_v14 = vadd.f32 %v659_v38, %v593_v41  ;;  %v11262_v41 = vsel %vm619_vm2, %v16232_v12, %v604_v46  ;;  %v11268_v38 = vmul.f32 %v8440_v57, %v11132_v2  ;;  %v8454_v46 = vld [vmem:[%s16222_s7 + $0x128] sm:$0xff]  ;;  %v851_v57 = vmul.f32 %v8515_v40, %v11102_v55  ;;  %v8500_v59 = vld [vmem:[%s16222_s7 + $0x298] sm:$0xff] }
 0x22e   :  { %v1114_v62 = vpop.f32.mrb[13].mxu1  ;;  %16428 = vst [vmem:[#allocation9_spill] sm:$0xff] %v11262_v41  ;;  %v494_v61 = vrot.slane %v11240_v17, 7  ;;  %v610_v53 = vrot.slane %v11240_v17, 1 }
 0x22f   :  { %v1116_v45 = vpop.f32.mrb[14].mxu1 }
 0x230   :  { %v11215_v48 = vpack.c.bf16 %v1116_v45, %v1112_v37  ;;  %v1118_v4 = vpop.f32.mrb[15].mxu1  ;;  %v574_v37 = vmul.f32 %v8436_v7, %v11070_v31  ;;  %v769_v45 = vadd.f32 %v753_v26, %v720_v32  ;;  %v8441_v7 = vld [vmem:[%s16222_s7 + $0xc0] sm:$0xff]  ;;  %v8547_v26 = vld [vmem:[%s16222_s7 + $0x410] sm:$0xff] }
 0x231   :  { %v1172_v29 = vpack.c.bf16 %v1118_v4, %v1114_v62  ;;  %v576_v62 = vmul.f32 %v8438_v15, %v11136_v34  ;;  %v656_v4 = vmul.f32 %v8452_v27, %v11205_v51  ;;  %v543_v15 = vmul.f32 %v527_v49, %v517_v63 }
 0x232   :  { %1275 = vrot.lane.b32.xlu1 %v11215_v48, %s10694_s17  ;;  %v818_v10 = vadd.f32 %v802_v47, %v769_v45  ;;  %v658_v27 = vmul.f32 %v8454_v46, %v630_v42  ;;  %v900_v49 = vmul.f32 %v8531_v3, %v11077_v35  ;;  %v11324_v45 = vmul.f32 %v8488_v9, %v11240_v17  ;;  %v529_v47 = vld [vmem:[%s16222_s7 + $0x38] sm:$0xff]  ;;  %v8469_v35 = vld [vmem:[%s16222_s7 + $0x1a0] sm:$0xff] }
 0x233   :  { %9344 = vmatprep.subr.bf16.mxu1 %v1172_v29  ;;  %v592_v20 = vadd.f32 %v576_v62, %v543_v15  ;;  %v530_v46 = vld [vmem:[%s16222_s7 + $0x40] sm:$0xff] }
 0x234   :  { %9345 = vmatpush3.bf16.msra.mxu1 %v1172_v29  ;;  %v590_v29 = vadd.f32 %v574_v37, %v541_v8  ;;  %v705_v8 = vmul.f32 %v8468_v43, %v11102_v55  ;;  %v757_v37 = vmul.f32 %v8487_v0, %v11132_v2  ;;  %v867_v40 = vadd.f32 %v851_v57, %v818_v10  ;;  %v8471_v55 = vld [vmem:[%s16222_s7 + $0x1b0] sm:$0xff]  ;;  %v8486_v0 = vld [vmem:[%s16222_s7 + $0x228] sm:$0xff]  ;;  %v8501_v10 = vld [vmem:[%s16222_s7 + $0x2a0] sm:$0xff] }
 0x235   :  { %v579_v43 = vmul.f32 %v8441_v7, %v11240_v17  ;;  %v674_v5 = vadd.f32 %v658_v27, %v592_v20  ;;  %v8516_v7 = vld [vmem:[%s16222_s7 + $0x318] sm:$0xff]  ;;  %v708_v15 = vmul.f32 %v8471_v55, %v11160_v23 }
 0x236   :  { %v672_v32 = vadd.f32 %v656_v4, %v590_v29  ;;  %v803_v4 = vmul.f32 %v8500_v59, %v11199_v39  ;;  %v916_v3 = vadd.f32 %v900_v49, %v867_v40  ;;  %v949_v29 = vmul.f32 %v8547_v26, %v11199_v39  ;;  %v8532_v57 = vld [vmem:[%s16222_s7 + $0x398] sm:$0xff] }
 0x237   :  { %v514_v39 = vsel %vm505_vm1, %v493_v52, %v494_v61  ;;  %v706_v26 = vmul.f32 %v8469_v35, %v517_v63  ;;  %v8548_v27 = vld [vmem:[%s16222_s7 + $0x418] sm:$0xff]  ;;  %v8503_v52 = vld [vmem:[%s16222_s7 + $0x2b0] sm:$0xff]  ;;  %v756_v40 = vmul.f32 %v8486_v0, %v11139_v6  ;;  %v724_v55 = vadd.f32 %v708_v15, %v11213_v14 }
 0x238   :  { %v721_v62 = vadd.f32 %v705_v8, %v672_v32  ;;  %v545_v8 = vmul.f32 %v529_v47, %v11160_v23  ;;  %v11363_v59 = vadd.f32 %v949_v29, %v916_v3  ;;  %v546_v32 = vmul.f32 %v530_v46, %v514_v39  ;;  %v8456_v20 = vld [vmem:[%s16222_s7 + $0x138] sm:$0xff]  ;;  %v8470_v47 = vld [vmem:[%s16222_s7 + $0x1a8] sm:$0xff] }
 0x239   :  { %v804_v35 = vmul.f32 %v8501_v10, %v630_v42  ;;  %v8472_v0 = vld [vmem:[%s16222_s7 + $0x1b8] sm:$0xff]  ;;  %v950_v3 = vmul.f32 %v8548_v27, %v630_v42  ;;  %v773_v29 = vadd.f32 %v757_v37, %v724_v55  ;;  %v707_v42 = vmul.f32 %v8470_v47, %v11166_v21  ;;  %v8518_v47 = vld [vmem:[%s16222_s7 + $0x328] sm:$0xff] }
 0x23a   :  { %v770_v9 = vadd.f32 %v754_v1, %v721_v62  ;;  %v628_v1 = vsel %vm619_vm2, %v609_v54, %v610_v53  ;;  %16429 = vst [vmem:[#allocation10_spill] sm:$0xff] %v11363_v59  ;;  %v852_v54 = vmul.f32 %v8516_v7, %v517_v63  ;;  %v901_v62 = vmul.f32 %v8532_v57, %v11136_v34  ;;  %v8519_v63 = vld [vmem:[%s16222_s7 + $0x330] sm:$0xff]  ;;  %v8517_v34 = vld [vmem:[%s16222_s7 + $0x320] sm:$0xff] }
 0x23b   :  { %v11380_v46 = vadd.f32 %v579_v43, %v546_v32  ;;  %v806_v7 = vmul.f32 %v8503_v52, %v628_v1  ;;  %v660_v43 = vmul.f32 %v8456_v20, %v628_v1  ;;  %v8533_v57 = vld [vmem:[%s16222_s7 + $0x3a0] sm:$0xff]  ;;  %v709_v15 = vmul.f32 %v8472_v0, %v514_v39  ;;  %v8502_v32 = vld [vmem:[%s16222_s7 + $0x2a8] sm:$0xff] }
 0x23c   :  { %v819_v49 = vadd.f32 %v803_v4, %v770_v9  ;;  %v722_v4 = vadd.f32 %v706_v26, %v11249_v30  ;;  %v8535_v9 = vld [vmem:[%s16222_s7 + $0x3b0] sm:$0xff]  ;;  %v594_v30 = vadd.f32 %v11268_v38, %v545_v8  ;;  %v855_v27 = vmul.f32 %v8519_v63, %v514_v39 }
 0x23d   :  { %v822_v26 = vadd.f32 %v806_v7, %v773_v29  ;;  %v723_v20 = vadd.f32 %v707_v42, %v674_v5  ;;  %v904_v55 = vmul.f32 %v8535_v9, %v11240_v17  ;;  %v902_v39 = vmul.f32 %v8533_v57, %v11139_v6 }
 0x23e   :  { %v868_v14 = vadd.f32 %v852_v54, %v819_v49  ;;  %v771_v10 = vadd.f32 %v755_v18, %v722_v4  ;;  %v853_v49 = vmul.f32 %v8517_v34, %v11166_v21  ;;  %v8549_v18 = vld [vmem:[%s16222_s7 + $0x420] sm:$0xff]  ;;  %v676_v54 = vadd.f32 %v660_v43, %v594_v30  ;;  %v8534_v4 = vld [vmem:[%s16222_s7 + $0x3a8] sm:$0xff] }
 0x23f   :  { %v871_v8 = vadd.f32 %v855_v27, %v822_v26  ;;  %v772_v21 = vadd.f32 %v756_v40, %v723_v20  ;;  %v805_v0 = vmul.f32 %v8502_v32, %v11174_v25  ;;  %v951_v5 = vmul.f32 %v8549_v18, %v11174_v25  ;;  %v8550_v40 = vld [vmem:[%s16222_s7 + $0x428] sm:$0xff]  ;;  %v55_v18 = vld [vmem:[%s16223_s8 + $0x2] sm:$0x1]  ;;  %v56_v20 = vld [vmem:[%s16223_s8 + $0x3] sm:$0x1] }
 0x240   :  { %v917_v37 = vadd.f32 %v901_v62, %v868_v14  ;;  %v820_v52 = vadd.f32 %v804_v35, %v771_v10  ;;  %v725_v62 = vadd.f32 %v709_v15, %v676_v54  ;;  %v854_v29 = vmul.f32 %v8518_v47, %v11160_v23  ;;  %v54_v15 = vld [vmem:[%s16223_s8 + $0x1] sm:$0x1] }
 0x241   :  { %v11415_v63 = vadd.f32 %v904_v55, %v871_v8  ;;  %v903_v25 = vmul.f32 %v8534_v4, %v11132_v2  ;;  %v952_v9 = vmul.f32 %v8550_v40, %v628_v1  ;;  %v62_v26 = vpack.c.bf16 %v54_v15, %v54_v15 }
 0x242   :  { %v11407_v38 = vadd.f32 %v950_v3, %v917_v37  ;;  %v869_v35 = vadd.f32 %v853_v49, %v820_v52  ;;  %v11422_v6 = vadd.f32 %v11324_v45, %v725_v62  ;;  %v821_v3 = vadd.f32 %v805_v0, %v772_v21 }
 0x243   :  { %v1234_v27 = vmul.bf16 %v11056_v19, %v11096_v50  ;;  %v1235_v32 = vmul.bf16 %v11056_v19, %v11153_v11  ;;  %v1185_v52 = vpack.i.b16 %v62_v26, %v62_v26  ;;  %v1236_v54 = vmul.bf16 %v11056_v19, %v11215_v48  ;;  %v8434_v26 = vld [vmem:[%s16222_s7 + $0x88] sm:$0xff] }
 0x244   :  { %16430 = vst [vmem:[#allocation11_spill] sm:$0xff] %v11407_v38  ;;  %v918_v14 = vadd.f32 %v902_v39, %v869_v35  ;;  %v870_v34 = vadd.f32 %v854_v29, %v821_v3  ;;  %v63_v55 = vpack.c.bf16 %v55_v18, %v55_v18  ;;  %v57_v39 = vld [vmem:[%s16223_s8 + $0x4] sm:$0x1]  ;;  %v64_v47 = vpack.c.bf16 %v56_v20, %v56_v20  ;;  %v58_v35 = vld [vmem:[%s16223_s8 + $0x5] sm:$0x1] }
 0x245   :  { %v11451_v49 = vrot.slane %v1185_v52, %v11053_v16  ;;  %v65_v0 = vpack.c.bf16 %v57_v39, %v57_v39 }
 0x246   :  { %v11428_v7 = vadd.f32 %v951_v5, %v918_v14  ;;  %v919_v43 = vadd.f32 %v903_v25, %v870_v34  ;;  %v1192_v4 = vpack.i.b16 %v63_v55, %v63_v55  ;;  %v66_v14 = vpack.c.bf16 %v58_v35, %v58_v35 }
 0x247   :  { %16433 = vst [vmem:[#allocation14_spill] sm:$0xff] %v11451_v49  ;;  %v1237_v8 = vmul.bf16 %v11451_v49, %v11058_v24  ;;  %v1199_v40 = vpack.i.b16 %v64_v47, %v64_v47  ;;  %v1238_v25 = vmul.bf16 %v11451_v49, %v11096_v50 }
 0x248   :  { %16431 = vst [vmem:[#allocation12_spill] sm:$0xff] %v11428_v7  ;;  %v11431_v10 = vadd.f32 %v952_v9, %v919_v43  ;;  %v1239_v9 = vmul.bf16 %v11451_v49, %v11153_v11 }
 0x249   :  { %v11494_v15 = vrot.slane %v1199_v40, %v11053_v16 }
 0x24a   :  { %16432 = vst [vmem:[#allocation13_spill] sm:$0xff] %v11431_v10 }
 0x28c   :  { %v1270_v57 = vpop.permute.xlu0 %1269 }
 0x28d   :  { %9682 = vmatprep.subr.msk.bf16.mxu0 %vm71_vm0, %v1270_v57  ;;  %v1374_v45 = vsel %vm71_vm0, %v1270_v57, 0 }
 0x28e   :  { %9267 = vmatpush3.bf16.xpose.msra.mxu0 %v1374_v45  ;;  %v1206_v45 = vpack.i.b16 %v65_v0, %v65_v0 }
 0x290   :  { %v11511_v55 = vrot.slane %v1206_v45, %v11053_v16  ;;  %v8482_v45 = vld [vmem:[%s16222_s7 + $0x208] sm:$0xff] }
 0x294   :  { %v1272_v23 = vpop.permute.xlu1 %1271 }
 0x295   :  { %9683 = vmatprep.subr.msk.bf16.mxu0 %vm71_vm0, %v1272_v23  ;;  %v1377_v30 = vsel %vm71_vm0, %v1272_v23, 0 }
 0x296   :  { %9269 = vmatpush3.bf16.xpose.msra.mxu0 %v1377_v30 }
 0x29c   :  { %v1274_v42 = vpop.permute.xlu1 %1273 }
 0x29d   :  { %9684 = vmatprep.subr.msk.bf16.mxu0 %vm71_vm0, %v1274_v42  ;;  %v1380_v2 = vsel %vm71_vm0, %v1274_v42, 0  ;;  %v11487_v42 = vrot.slane %v1192_v4, %v11053_v16 }
 0x29e   :  { %9271 = vmatpush3.bf16.xpose.msra.mxu0 %v1380_v2  ;;  %v1213_v2 = vpack.i.b16 %v66_v14, %v66_v14  ;;  %v532_v14 = vld [vmem:[%s16222_s7 + $0x50] sm:$0xff] }
 0x29f   :  { %16436 = vst [vmem:[#allocation17_spill] sm:$0xff] %v11487_v42  ;;  %v1241_v35 = vmul.bf16 %v11487_v42, %v11058_v24 }
 0x2a4   :  { %v1276_v1 = vpop.permute.xlu1 %1275 }
 0x2a5   :  { %9685 = vmatprep.subr.msk.bf16.mxu0 %vm71_vm0, %v1276_v1  ;;  %v1383_v37 = vsel %vm71_vm0, %v1276_v1, 0  ;;  %v59_v1 = vld [vmem:[%s16223_s8 + $0x6] sm:$0x1] }
 0x2a6   :  { %9273 = vmatpush3.bf16.xpose.msra.mxu0 %v1383_v37  ;;  %v11513_v39 = vpack.c.bf16 %v59_v1, %v59_v1 }
 0x2a8   :  { %16437 = vst [vmem:[#allocation18_spill] sm:$0xff] %v11513_v39  ;;  %v8497_v39 = vld [vmem:[%s16222_s7 + $0x280] sm:$0xff] }
 0x2ad   :  { %9275 = vmatmul.mubr.msk.bf16.vlgmr.msra.gmra.mrb[16].mxu0 %vm71_vm0, %v1234_v27  ;;  %v8481_v27 = vld [vmem:[%s16222_s7 + $0x200] sm:$0xff] }
 0x2ae   :  { %9278 = vmatprep.mubr.msk.bf16.mxu0 %vm71_vm0, %v1235_v32  ;;  %v11538_v4 = vmul.f32 %v8481_v27, %v11073_v33 }
 0x2b5   :  { %9279 = vmatmul.mubr.msk.bf16.gmra.mrb[20].mxu0 %vm71_vm0, %v1236_v54 }
 0x2b6   :  { %9282 = vmatprep.mubr.msk.bf16.mxu0 %vm71_vm0, %v1237_v8 }
 0x2b9   :  { %v1122_v62 = vpop.f32.mrb[16].mxu1 }
 0x2ba   :  { %v1124_v21 = vpop.f32.mrb[17].mxu1 }
 0x2bb   :  { %v1126_v5 = vpop.f32.mrb[18].mxu1 }
 0x2bc   :  { %v11471_v3 = vpack.c.bf16 %v1126_v5, %v1122_v62  ;;  %v1128_v29 = vpop.f32.mrb[19].mxu1  ;;  %v11518_v62 = vrot.slane %v1213_v2, %v11053_v16  ;;  %v11535_v5 = vmul.f32 %v8434_v26, %v11073_v33 }
 0x2bd   :  { %v11473_v34 = vpack.c.bf16 %v1128_v29, %v1124_v21  ;;  %v9260_v43 = vpop.f32.mrb[8].mxu0  ;;  %9283 = vmatmul.mubr.msk.bf16.gmra.mrb[24].mxu0 %vm71_vm0, %v1238_v25 }
 0x2be   :  { %16434 = vst [vmem:[#allocation15_spill] sm:$0xff] %v11471_v3  ;;  %3063 = vrot.lane.b32.xlu0 %v11471_v3, %s10694_s17  ;;  %v456_v57 = vpop.f32.mrb[9].mxu0  ;;  %9286 = vmatprep.mubr.msk.bf16.mxu0 %vm71_vm0, %v1239_v9  ;;  %v11503_v32 = vadd.f32 %v9260_v43, %v11063_v58  ;;  %16438 = vst [vmem:[#allocation19_spill] sm:$0xff] %v11518_v62  ;;  %v8443_v43 = vld [vmem:[%s16222_s7 + $0xd0] sm:$0xff] }
 0x2bf   :  { %16435 = vst [vmem:[#allocation16_spill] sm:$0xff] %v11473_v34  ;;  %v11483_v23 = vadd.f32 %v11063_v58, %v456_v57  ;;  %v9261_v30 = vpop.f32.mrb[10].mxu0  ;;  %9482 = vmatprep.subr.bf16.mxu1 %v11473_v34 }
 0x2c0   :  { %v459_v37 = vpop.f32.mrb[11].mxu0  ;;  %v16229_v40 = vrot.slane %v11503_v32, 1  ;;  %v11558_v2 = vadd.f32 %v9261_v30, %v11063_v58 }
 0x2c1   :  { %v495_v52 = vrot.slane %v11483_v23, 7  ;;  %v16228_v18 = vrot.slane %v11483_v23, 1  ;;  %v1132_v54 = vpop.f32.mrb[20].mxu1  ;;  %v11508_v20 = vadd.f32 %v11063_v58, %v459_v37 }
 0x2c2   :  { %v1134_v8 = vpop.f32.mrb[21].mxu1 }
 0x2c3   :  { %v1136_v47 = vpop.f32.mrb[22].mxu1  ;;  %v11526_v21 = vsel %vm619_vm2, %v610_v53, %v16228_v18  ;;  %v11532_v0 = vsel %vm505_vm1, %v494_v61, %v495_v52  ;;  %v1240_v53 = vmul.bf16 %v11451_v49, %v11215_v48  ;;  %v16230_v61 = vrot.slane %v11503_v32, 7 }
 0x2c4   :  { %v1138_v29 = vpop.f32.mrb[23].mxu1  ;;  %v496_v25 = vrot.slane %v11508_v20, 7  ;;  %v16231_v9 = vrot.slane %v11508_v20, 1  ;;  %v11560_v1 = vpack.c.bf16 %v1136_v47, %v1132_v54 }
 0x2c5   :  { %v9264_v57 = vpop.f32.mrb[12].mxu0  ;;  %v11562_v37 = vpack.c.bf16 %v1138_v29, %v1134_v8  ;;  %v8459_v8 = vld [vmem:[%s16222_s7 + $0x150] sm:$0xff]  ;;  %9287 = vmatmul.mubr.msk.bf16.gmra.mrb[28].mxu0 %vm71_vm0, %v1240_v53 }
 0x2c6   :  { %16439 = vst [vmem:[#allocation20_spill] sm:$0xff] %v11560_v1  ;;  %v472_v26 = vpop.f32.mrb[13].mxu0  ;;  %v11573_v18 = vsel %vm505_vm1, %v496_v25, %v16230_v61  ;;  %v11577_v30 = vsel %vm505_vm1, %v495_v52, %v496_v25  ;;  %v11585_v54 = vsel %vm619_vm2, %v16231_v9, %v16229_v40  ;;  %v581_v25 = vmul.f32 %v8443_v43, %v11508_v20 }
 0x2c7   :  { %16440 = vst [vmem:[#allocation21_spill] sm:$0xff] %v11562_v37  ;;  %16441 = vst [vmem:[#allocation22_spill] sm:$0xff] %v11577_v30  ;;  %v11592_v47 = vadd.f32 %v11063_v58, %v472_v26  ;;  %v9265_v29 = vpop.f32.mrb[14].mxu0  ;;  %v548_v52 = vmul.f32 %v532_v14, %v11577_v30  ;;  %9290 = vmatprep.mubr.msk.bf16.mxu0 %vm71_vm0, %v1241_v35  ;;  %3065 = vrot.lane.b32.xlu1 %v11560_v1, %s10694_s17  ;;  %v16234_v35 = vrot.slane %v11558_v2, 7  ;;  %v8466_v30 = vld [vmem:[%s16222_s7 + $0x188] sm:$0xff] }
 0x2c8   :  { %16442 = vst [vmem:[#allocation23_spill] sm:$0xff] %v11585_v54  ;;  %v475_v27 = vpop.f32.mrb[15].mxu0  ;;  %v11602_v61 = vmul.f32 %v8482_v45, %v11080_v36  ;;  %v11605_v53 = vadd.f32 %v9264_v57, %v11063_v58  ;;  %v1242_v14 = vmul.bf16 %v11487_v42, %v11096_v50  ;;  %v11610_v43 = vmul.f32 %v8530_v22, %v11070_v31  ;;  %v535_v45 = vld [vmem:[%s16222_s7 + $0x68] sm:$0xff] }
 0x2c9   :  { %v1142_v26 = vpop.f32.mrb[24].mxu1  ;;  %v597_v9 = vadd.f32 %v581_v25, %v548_v52  ;;  %v663_v17 = vmul.f32 %v8459_v8, %v11585_v54  ;;  %v499_v40 = vrot.slane %v11592_v47, 7  ;;  %v8446_v57 = vld [vmem:[%s16222_s7 + $0xe8] sm:$0xff]  ;;  %v11624_v22 = vadd.f32 %v9265_v29, %v11063_v58 }
 0x2ca   :  { %16443 = vst [vmem:[#allocation24_spill] sm:$0xff] %v11605_v53  ;;  %v11621_v12 = vpop.f32.mrb[25].mxu1  ;;  %v11627_v31 = vadd.f32 %v11063_v58, %v475_v27  ;;  %v8433_v58 = vld [vmem:[%s16222_s7 + $0x80] sm:$0xff]  ;;  %v1243_v8 = vmul.bf16 %v11487_v42, %v11153_v11  ;;  %v501_v25 = vrot.slane %v11605_v53, 7  ;;  %v617_v38 = vrot.slane %v11605_v53, 1 }
 0x2cb   :  { %v1146_v52 = vpop.f32.mrb[26].mxu1  ;;  %v11633_v44 = vadd.f32 %v663_v17, %v597_v9  ;;  %v11639_v10 = vsel %vm505_vm1, %v16234_v35, %v499_v40  ;;  %v584_v9 = vmul.f32 %v8446_v57, %v11592_v47  ;;  %v502_v7 = vrot.slane %v11624_v22, 7  ;;  %v522_v35 = vld [vmem:[%s16222_s7] sm:$0xff] }
 0x2cc   :  { %v11644_v27 = vpack.c.bf16 %v1146_v52, %v1142_v26  ;;  %v1148_v29 = vpop.f32.mrb[27].mxu1  ;;  %v551_v17 = vmul.f32 %v535_v45, %v11639_v10  ;;  %v523_v26 = vld [vmem:[%s16222_s7 + $0x8] sm:$0xff]  ;;  %v8448_v52 = vld [vmem:[%s16222_s7 + $0xf8] sm:$0xff]  ;;  %v618_v45 = vrot.slane %v11624_v22, 1  ;;  %v8449_v57 = vld [vmem:[%s16222_s7 + $0x100] sm:$0xff]  ;;  %v500_v59 = vrot.slane %v11627_v31, 7 }
 0x2cd   :  { %v11675_v49 = vsel %vm505_vm1, %v501_v25, %v502_v7  ;;  %v16446_v1 = vrot.slane %v11073_v33, 7  ;;  %v571_v3 = vmul.f32 %v8433_v58, %v11624_v22  ;;  %9291 = vmatmul.mubr.msk.bf16.gmra.mrb[32].mxu0 %vm71_vm0, %v1242_v14  ;;  %v8447_v14 = vld [vmem:[%s16222_s7 + $0xf0] sm:$0xff] }
 0x2ce   :  { %16444 = vst [vmem:[#allocation25_spill] sm:$0xff] %v11644_v27  ;;  %3067 = vrot.lane.b32.xlu0 %v11644_v27, %s10694_s17  ;;  %v11671_v34 = vadd.f32 %v584_v9, %v551_v17  ;;  %v538_v27 = vmul.f32 %v522_v35, %v11675_v49  ;;  %v11689_v17 = vsel %vm619_vm2, %v617_v38, %v618_v45  ;;  %v16448_v9 = vrot.slane %v11073_v33, 1 }
 0x2cf   :  { %v11681_v19 = vsel %vm505_vm1, %v502_v7, %v16446_v1  ;;  %v536_v7 = vld [vmem:[%s16222_s7 + $0x70] sm:$0xff]  ;;  %v537_v1 = vld [vmem:[%s16222_s7 + $0x78] sm:$0xff]  ;;  %9294 = vmatprep.mubr.msk.bf16.mxu0 %vm71_vm0, %v1243_v8  ;;  %v586_v35 = vmul.f32 %v8448_v52, %v11605_v53  ;;  %v11721_v8 = vsel %vm505_vm1, %v500_v59, %v501_v25  ;;  %v11725_v52 = vsel %vm505_vm1, %v499_v40, %v500_v59  ;;  %v8450_v25 = vld [vmem:[%s16222_s7 + $0x108] sm:$0xff] }
 0x2d0   :  { %16445 = vst [vmem:[#allocation26_spill] sm:$0xff] %v11671_v34  ;;  %16447 = vst [vmem:[#allocation27_spill] sm:$0xff] %v11681_v19  ;;  %v539_v37 = vmul.f32 %v523_v26, %v11681_v19  ;;  %v11695_v16 = vsel %vm619_vm2, %v618_v45, %v16448_v9  ;;  %v8465_v26 = vld [vmem:[%s16222_s7 + $0x180] sm:$0xff]  ;;  %v1244_v9 = vmul.bf16 %v11487_v42, %v11215_v48 }
 0x2d1   :  { %16449 = vst [vmem:[#allocation28_spill] sm:$0xff] %v11695_v16  ;;  %v653_v58 = vmul.f32 %v8449_v57, %v11695_v16  ;;  %v1152_v45 = vpop.f32.mrb[28].mxu1  ;;  %v587_v33 = vadd.f32 %v571_v3, %v538_v27  ;;  %16450 = vst [vmem:[#allocation29_spill] sm:$0xff] %v11721_v8  ;;  %v552_v16 = vmul.f32 %v536_v7, %v11725_v52  ;;  %v8529_v59 = vld [vmem:[%s16222_s7 + $0x380] sm:$0xff] }
 0x2d2   :  { %v11717_v62 = vadd.f32 %v11535_v5, %v539_v37  ;;  %v1154_v57 = vpop.f32.mrb[29].mxu1  ;;  %v553_v42 = vmul.f32 %v537_v1, %v11721_v8  ;;  %v585_v54 = vmul.f32 %v8447_v14, %v11627_v31  ;;  %v8463_v5 = vld [vmem:[%s16222_s7 + $0x170] sm:$0xff]  ;;  %v702_v27 = vmul.f32 %v8465_v26, %v11681_v19  ;;  %v8513_v3 = vld [vmem:[%s16222_s7 + $0x300] sm:$0xff] }
 0x2d3   :  { %v1156_v37 = vpop.f32.mrb[30].mxu1  ;;  %v669_v40 = vadd.f32 %v653_v58, %v587_v33  ;;  %v8545_v33 = vld [vmem:[%s16222_s7 + $0x400] sm:$0xff]  ;;  %v16452_v1 = vrot.slane %v11627_v31, 1  ;;  %v8479_v19 = vld [vmem:[%s16222_s7 + $0x1f0] sm:$0xff]  ;;  %v11766_v34 = vpack.c.bf16 %v1148_v29, %v11621_v12  ;;  %v8514_v12 = vld [vmem:[%s16222_s7 + $0x308] sm:$0xff] }
 0x2d4   :  { %v1158_v7 = vpop.f32.mrb[31].mxu1  ;;  %v601_v58 = vadd.f32 %v585_v54, %v552_v16  ;;  %v11754_v26 = vadd.f32 %v586_v35, %v553_v42  ;;  %v8498_v16 = vld [vmem:[%s16222_s7 + $0x288] sm:$0xff]  ;;  %v11778_v35 = vpack.c.bf16 %v1156_v37, %v1152_v45  ;;  %v654_v45 = vmul.f32 %v8450_v25, %v11262_v41 }
 0x2d5   :  { %v11760_v14 = vsel %vm619_vm2, %v16452_v1, %v617_v38  ;;  %16454 = vst [vmem:[#allocation32_spill] sm:$0xff] %v11766_v34  ;;  %v8444_v38 = vld [vmem:[%s16222_s7 + $0xd8] sm:$0xff]  ;;  %v718_v42 = vadd.f32 %v702_v27, %v669_v40  ;;  %v11780_v1 = vpack.c.bf16 %v1158_v7, %v1154_v57  ;;  %v8546_v29 = vld [vmem:[%s16222_s7 + $0x408] sm:$0xff]  ;;  %v8491_v34 = vld [vmem:[%s16222_s7 + $0x250] sm:$0xff]  ;;  %9295 = vmatmul.mubr.msk.bf16.gmra.mrb[36].mxu0 %vm71_vm0, %v1244_v9 }
 0x2d6   :  { %16451 = vst [vmem:[#allocation30_spill] sm:$0xff] %v11754_v26  ;;  %16453 = vst [vmem:[#allocation31_spill] sm:$0xff] %v11760_v14  ;;  %v667_v54 = vmul.f32 %v8463_v5, %v11760_v14  ;;  %v8442_v5 = vld [vmem:[%s16222_s7 + $0xc8] sm:$0xff]  ;;  %v800_v57 = vmul.f32 %v8497_v39, %v11262_v41  ;;  %v849_v37 = vmul.f32 %v8513_v3, %v11112_v60  ;;  %v8457_v27 = vld [vmem:[%s16222_s7 + $0x140] sm:$0xff]  ;;  %3069 = vrot.lane.b32.xlu1 %v11778_v35, %s10694_s17 }
 0x2d7   :  { %16455 = vst [vmem:[#allocation33_spill] sm:$0xff] %v11778_v35  ;;  %16456 = vst [vmem:[#allocation34_spill] sm:$0xff] %v11780_v1  ;;  %v11799_v40 = vmul.f32 %v8529_v59, %v11080_v36  ;;  %v8489_v7 = vld [vmem:[%s16222_s7 + $0x240] sm:$0xff]  ;;  %v716_v39 = vmul.f32 %v8479_v19, %v11721_v8  ;;  %v16457_v3 = vmul.bf16 %v11494_v15, %v11058_v24  ;;  %v8536_v59 = vld [vmem:[%s16222_s7 + $0x3b8] sm:$0xff] }
 0x2d8   :  { %v8445_v9 = vld [vmem:[%s16222_s7 + $0xe0] sm:$0xff]  ;;  %v683_v25 = vadd.f32 %v667_v54, %v601_v58  ;;  %v11818_v36 = vmul.f32 %v8545_v33, %v11120_v28  ;;  %v8492_v58 = vld [vmem:[%s16222_s7 + $0x258] sm:$0xff]  ;;  %v8490_v54 = vld [vmem:[%s16222_s7 + $0x248] sm:$0xff]  ;;  %v801_v33 = vmul.f32 %v8498_v16, %v11120_v28  ;;  %v11835_v1 = vmul.f32 %v8514_v12, %v11106_v56 }
 0x2d9   :  { %9298 = vmatprep.mubr.msk.bf16.mxu0 %vm71_vm0, %v16457_v3  ;;  %v533_v19 = vld [vmem:[%s16222_s7 + $0x58] sm:$0xff]  ;;  %v703_v3 = vmul.f32 %v8466_v30, %v11112_v60  ;;  %v11838_v35 = vmul.f32 %v8546_v29, %v11205_v51  ;;  %v11841_v41 = vmul.f32 %v8444_v38, %v11503_v32  ;;  %v11844_v8 = vmul.f32 %v8491_v34, %v11503_v32  ;;  %v8495_v14 = vld [vmem:[%s16222_s7 + $0x270] sm:$0xff]  ;;  %v531_v16 = vld [vmem:[%s16222_s7 + $0x48] sm:$0xff] }
 0x2da   :  { %v11849_v26 = vadd.f32 %v716_v39, %v683_v25  ;;  %v661_v60 = vmul.f32 %v8457_v27, %v11526_v21  ;;  %v580_v56 = vmul.f32 %v8442_v5, %v11483_v23  ;;  %v11854_v28 = vmul.f32 %v8489_v7, %v11483_v23  ;;  %v8504_v34 = vld [vmem:[%s16222_s7 + $0x2b8] sm:$0xff]  ;;  %v8551_v30 = vld [vmem:[%s16222_s7 + $0x430] sm:$0xff]  ;;  %v8493_v7 = vld [vmem:[%s16222_s7 + $0x260] sm:$0xff] }
 0x2db   :  { %v583_v51 = vmul.f32 %v8445_v9, %v11558_v2  ;;  %v905_v38 = vmul.f32 %v8536_v59, %v11483_v23  ;;  %v614_v12 = vrot.slane %v11558_v2, 1  ;;  %v11869_v29 = vmul.f32 %v8492_v58, %v11558_v2  ;;  %v8540_v39 = vld [vmem:[%s16222_s7 + $0x3d8] sm:$0xff] }
 0x2dc   :  { %v11872_v5 = vmul.f32 %v533_v19, %v11573_v18  ;;  %v11875_v27 = vmul.f32 %v8490_v54, %v11508_v20  ;;  %v11881_v9 = vmul.f32 %v8495_v14, %v11605_v53  ;;  %v767_v59 = vadd.f32 %v11538_v4, %v718_v42  ;;  %v8458_v19 = vld [vmem:[%s16222_s7 + $0x148] sm:$0xff] }
 0x2dd   :  { %v670_v58 = vadd.f32 %v654_v45, %v11717_v62  ;;  %v11893_v54 = vadd.f32 %v661_v60, %v11380_v46  ;;  %v807_v14 = vmul.f32 %v8504_v34, %v11526_v21  ;;  %v953_v53 = vmul.f32 %v8551_v30, %v11526_v21  ;;  %v8477_v62 = vld [vmem:[%s16222_s7 + $0x1e0] sm:$0xff]  ;;  %v8496_v46 = vld [vmem:[%s16222_s7 + $0x278] sm:$0xff] }
 0x2de   :  { %16458 = vst [vmem:[#allocation35_spill] sm:$0xff] %v11875_v27  ;;  %v547_v25 = vmul.f32 %v531_v16, %v11532_v0  ;;  %v8520_v27 = vld [vmem:[%s16222_s7 + $0x338] sm:$0xff]  ;;  %v11905_v4 = vmul.f32 %v8493_v7, %v11592_v47  ;;  %v16459_v21 = vmul.bf16 %v11494_v15, %v11096_v50  ;;  %v816_v42 = vadd.f32 %v800_v57, %v767_v59 }
 0x2df   :  { %v719_v45 = vadd.f32 %v703_v3, %v670_v58  ;;  %v16460_v60 = vrot.slane %v11508_v20, 1  ;;  %v16461_v34 = vrot.slane %v11483_v23, 1  ;;  %v11923_v16 = vmul.f32 %v8540_v39, %v11592_v47  ;;  %v534_v23 = vld [vmem:[%s16222_s7 + $0x60] sm:$0xff] }
 0x2e0   :  { %9299 = vmatmul.mubr.msk.bf16.gmra.mrb[40].mxu0 %vm71_vm0, %v16459_v21  ;;  %v16462_v7 = vmul.bf16 %v11494_v15, %v11153_v11  ;;  %v11930_v21 = vadd.f32 %v953_v53, %v11415_v63  ;;  %v596_v57 = vadd.f32 %v580_v56, %v547_v25  ;;  %v865_v59 = vadd.f32 %v849_v37, %v816_v42  ;;  %v8475_v63 = vld [vmem:[%s16222_s7 + $0x1d0] sm:$0xff]  ;;  %v8464_v25 = vld [vmem:[%s16222_s7 + $0x178] sm:$0xff] }
 0x2e1   :  { %v11920_v30 = vsel %vm619_vm2, %v16461_v34, %v16460_v60  ;;  %v768_v58 = vadd.f32 %v11602_v61, %v719_v45  ;;  %v823_v39 = vadd.f32 %v807_v14, %v11422_v6  ;;  %v856_v60 = vmul.f32 %v8520_v27, %v11532_v0  ;;  %v8552_v34 = vld [vmem:[%s16222_s7 + $0x438] sm:$0xff]  ;;  %v8461_v45 = vld [vmem:[%s16222_s7 + $0x160] sm:$0xff] }
 0x2e2   :  { %9302 = vmatprep.mubr.msk.bf16.mxu0 %vm71_vm0, %v16462_v7  ;;  %16463 = vst [vmem:[#allocation36_spill] sm:$0xff] %v11930_v21  ;;  %v662_v3 = vmul.f32 %v8458_v19, %v11920_v30  ;;  %v11946_v53 = vmul.f32 %v8477_v62, %v11639_v10  ;;  %v11949_v56 = vmul.f32 %v8496_v46, %v11624_v22  ;;  %v16464_v6 = vrot.slane %v11558_v2, 7  ;;  %v8543_v19 = vld [vmem:[%s16222_s7 + $0x3f0] sm:$0xff]  ;;  %v8480_v7 = vld [vmem:[%s16222_s7 + $0x1f8] sm:$0xff] }
 0x2e3   :  { %v16465_v61 = vrot.slane %v11503_v32, 7  ;;  %v914_v14 = vadd.f32 %v11799_v40, %v865_v59  ;;  %v817_v62 = vadd.f32 %v801_v33, %v768_v58  ;;  %v872_v46 = vadd.f32 %v856_v60, %v823_v39  ;;  %v8478_v58 = vld [vmem:[%s16222_s7 + $0x1e8] sm:$0xff] }
 0x2e4   :  { %v11951_v37 = vadd.f32 %v662_v3, %v596_v57  ;;  %v8473_v57 = vld [vmem:[%s16222_s7 + $0x1c0] sm:$0xff]  ;;  %v954_v3 = vmul.f32 %v8552_v34, %v11920_v30  ;;  %v16467_v33 = vrot.slane %v11503_v32, 1  ;;  %v712_v59 = vmul.f32 %v8475_v63, %v11573_v18 }
 0x2e5   :  { %v510_v27 = vsel %vm505_vm1, %v16465_v61, %v16464_v6  ;;  %v16466_v6 = vrot.slane %v11592_v47, 1  ;;  %v11991_v39 = vadd.f32 %v11818_v36, %v914_v14  ;;  %v866_v60 = vadd.f32 %v11835_v1, %v817_v62  ;;  %v8541_v1 = vld [vmem:[%s16222_s7 + $0x3e0] sm:$0xff] }
 0x2e6   :  { %v550_v42 = vmul.f32 %v534_v23, %v510_v27  ;;  %v11984_v23 = vsel %vm619_vm2, %v16467_v33, %v614_v12  ;;  %v921_v34 = vadd.f32 %v905_v38, %v872_v46  ;;  %v12001_v63 = vmul.f32 %v8543_v19, %v11624_v22  ;;  %v8494_v33 = vld [vmem:[%s16222_s7 + $0x268] sm:$0xff]  ;;  %v8505_v14 = vld [vmem:[%s16222_s7 + $0x2c0] sm:$0xff]  ;;  %v8523_v46 = vld [vmem:[%s16222_s7 + $0x350] sm:$0xff] }
 0x2e7   :  { %v623_v40 = vsel %vm619_vm2, %v614_v12, %v16466_v6  ;;  %16468 = vst [vmem:[#allocation37_spill] sm:$0xff] %v11991_v39  ;;  %v8507_v6 = vld [vmem:[%s16222_s7 + $0x2d0] sm:$0xff]  ;;  %v11998_v12 = vmul.f32 %v8464_v25, %v11689_v17  ;;  %v12011_v38 = vmul.f32 %v8480_v7, %v11675_v49  ;;  %v16469_v25 = vmul.bf16 %v11494_v15, %v11215_v48 }
 0x2e8   :  { %v599_v61 = vadd.f32 %v583_v51, %v550_v42  ;;  %v665_v36 = vmul.f32 %v8461_v45, %v623_v40  ;;  %v728_v51 = vadd.f32 %v712_v59, %v11633_v44  ;;  %v915_v22 = vadd.f32 %v11610_v43, %v866_v60  ;;  %v8476_v44 = vld [vmem:[%s16222_s7 + $0x1d8] sm:$0xff] }
 0x2e9   :  { %9303 = vmatmul.mubr.msk.bf16.gmra.mrb[44].mxu0 %vm71_vm0, %v16469_v25  ;;  %v710_v19 = vmul.f32 %v8473_v57, %v11532_v0  ;;  %v12022_v62 = vadd.f32 %v954_v3, %v921_v34  ;;  %v12031_v42 = vmul.f32 %v8478_v58, %v11725_v52  ;;  %v16471_v0 = vmul.bf16 %v11511_v55, %v11058_v24  ;;  %v8460_v43 = vld [vmem:[%s16222_s7 + $0x158] sm:$0xff]  ;;  %v8539_v34 = vld [vmem:[%s16222_s7 + $0x3d0] sm:$0xff] }
 0x2ea   :  { %v681_v45 = vadd.f32 %v665_v36, %v599_v61  ;;  %v777_v7 = vadd.f32 %v11844_v8, %v728_v51  ;;  %v810_v57 = vmul.f32 %v8507_v6, %v11984_v23  ;;  %v12043_v3 = vmul.f32 %v8494_v33, %v11627_v31  ;;  %v8508_v60 = vld [vmem:[%s16222_s7 + $0x2d8] sm:$0xff]  ;;  %v8462_v61 = vld [vmem:[%s16222_s7 + $0x168] sm:$0xff]  ;;  %v8521_v36 = vld [vmem:[%s16222_s7 + $0x340] sm:$0xff] }
 0x2eb   :  { %16470 = vst [vmem:[#allocation38_spill] sm:$0xff] %v12022_v62  ;;  %9306 = vmatprep.mubr.msk.bf16.mxu0 %vm71_vm0, %v16471_v0  ;;  %v12046_v59 = vmul.f32 %v8541_v1, %v11627_v31  ;;  %v12049_v58 = vadd.f32 %v11838_v35, %v915_v22  ;;  %v726_v8 = vadd.f32 %v710_v19, %v11893_v54  ;;  %v8474_v51 = vld [vmem:[%s16222_s7 + $0x1c8] sm:$0xff]  ;;  %v8555_v54 = vld [vmem:[%s16222_s7 + $0x450] sm:$0xff]  ;;  %v16473_v19 = vrot.slane %v11627_v31, 1 }
 0x2ec   :  { %v808_v6 = vmul.f32 %v8505_v14, %v11920_v30  ;;  %v713_v33 = vmul.f32 %v8476_v44, %v510_v27  ;;  %v826_v1 = vadd.f32 %v810_v57, %v777_v7  ;;  %v859_v35 = vmul.f32 %v8523_v46, %v510_v27  ;;  %v8537_v30 = vld [vmem:[%s16222_s7 + $0x3c0] sm:$0xff] }
 0x2ed   :  { %16472 = vst [vmem:[#allocation39_spill] sm:$0xff] %v12049_v58  ;;  %v664_v25 = vmul.f32 %v8460_v43, %v11984_v23  ;;  %v775_v22 = vadd.f32 %v11854_v28, %v726_v8  ;;  %v598_v27 = vadd.f32 %v11841_v41, %v11872_v5  ;;  %v16474_v14 = vrot.slane %v11592_v47, 1  ;;  %v8553_v28 = vld [vmem:[%s16222_s7 + $0x440] sm:$0xff]  ;;  %v16475_v8 = vld [vmem:[#allocation22_spill] sm:$0xff]  ;;  %v8511_v5 = vld [vmem:[%s16222_s7 + $0x2f0] sm:$0xff] }
 0x2ee   :  { %v811_v46 = vmul.f32 %v8508_v60, %v623_v40  ;;  %v875_v0 = vadd.f32 %v859_v35, %v826_v1  ;;  %v908_v43 = vmul.f32 %v8539_v34, %v11558_v2  ;;  %v857_v62 = vmul.f32 %v8521_v36, %v16475_v8  ;;  %v8509_v47 = vld [vmem:[%s16222_s7 + $0x2e0] sm:$0xff]  ;;  %v16476_v1 = vld [vmem:[#allocation26_spill] sm:$0xff] }
 0x2ef   :  { %v622_v44 = vsel %vm619_vm2, %v16474_v14, %v16473_v19  ;;  %v824_v57 = vadd.f32 %v808_v6, %v775_v22  ;;  %v680_v41 = vadd.f32 %v664_v25, %v598_v27  ;;  %v711_v31 = vmul.f32 %v8474_v51, %v16475_v8  ;;  %v8506_v6 = vld [vmem:[%s16222_s7 + $0x2c8] sm:$0xff]  ;;  %v16478_v51 = vld [vmem:[#allocation23_spill] sm:$0xff] }
 0x2f0   :  { %v666_v7 = vmul.f32 %v8462_v61, %v622_v44  ;;  %v924_v2 = vadd.f32 %v908_v43, %v875_v0  ;;  %v957_v60 = vmul.f32 %v8555_v54, %v623_v40  ;;  %v906_v34 = vmul.f32 %v8537_v30, %v11508_v20  ;;  %v8524_v40 = vld [vmem:[%s16222_s7 + $0x358] sm:$0xff]  ;;  %v8527_v54 = vld [vmem:[%s16222_s7 + $0x370] sm:$0xff] }
 0x2f1   :  { %v16477_v35 = vmul.bf16 %v11511_v55, %v11096_v50  ;;  %v873_v36 = vadd.f32 %v857_v62, %v824_v57  ;;  %v955_v25 = vmul.f32 %v8553_v28, %v16478_v51  ;;  %v729_v22 = vadd.f32 %v713_v33, %v680_v41  ;;  %v8522_v33 = vld [vmem:[%s16222_s7 + $0x348] sm:$0xff]  ;;  %v8556_v43 = vld [vmem:[%s16222_s7 + $0x458] sm:$0xff]  ;;  %v16481_v28 = vld [vmem:[#allocation35_spill] sm:$0xff] }
 0x2f2   :  { %v682_v61 = vadd.f32 %v666_v7, %v16476_v1  ;;  %v727_v20 = vadd.f32 %v711_v31, %v11951_v37  ;;  %v16479_v30 = vmul.bf16 %v11511_v55, %v11153_v11  ;;  %v12117_v27 = vadd.f32 %v957_v60, %v924_v2  ;;  %v8538_v41 = vld [vmem:[%s16222_s7 + $0x3c8] sm:$0xff] }
 0x2f3   :  { %9307 = vmatmul.mubr.msk.bf16.gmra.mrb[48].mxu0 %vm71_vm0, %v16477_v35  ;;  %v812_v62 = vmul.f32 %v8509_v47, %v622_v44  ;;  %v781_v19 = vadd.f32 %v11881_v9, %v11849_v26  ;;  %v814_v37 = vmul.f32 %v8511_v5, %v11689_v17  ;;  %v922_v14 = vadd.f32 %v906_v34, %v873_v36  ;;  %v16483_v35 = vld [vmem:[#allocation30_spill] sm:$0xff] }
 0x2f4   :  { %9310 = vmatprep.mubr.msk.bf16.mxu0 %vm71_vm0, %v16479_v30  ;;  %16480 = vst [vmem:[#allocation22_spill] sm:$0xff] %v12117_v27  ;;  %v778_v0 = vadd.f32 %v11869_v29, %v729_v22  ;;  %v776_v7 = vadd.f32 %v16481_v28, %v727_v20  ;;  %v809_v57 = vmul.f32 %v8506_v6, %v16478_v51  ;;  %v8559_v29 = vld [vmem:[%s16222_s7 + $0x470] sm:$0xff] }
 0x2f5   :  { %v860_v8 = vmul.f32 %v8524_v40, %v11639_v10  ;;  %v830_v26 = vadd.f32 %v814_v37, %v781_v19  ;;  %v863_v9 = vmul.f32 %v8527_v54, %v11675_v49  ;;  %v730_v47 = vadd.f32 %v11946_v53, %v681_v45  ;;  %v8525_v10 = vld [vmem:[%s16222_s7 + $0x360] sm:$0xff]  ;;  %v8554_v49 = vld [vmem:[%s16222_s7 + $0x448] sm:$0xff]  ;;  %v16491_v28 = vld [vmem:[#allocation31_spill] sm:$0xff] }
 0x2f6   :  { %v12140_v31 = vadd.f32 %v955_v25, %v922_v14  ;;  %v827_v5 = vadd.f32 %v811_v46, %v778_v0  ;;  %v825_v2 = vadd.f32 %v809_v57, %v776_v7  ;;  %v858_v60 = vmul.f32 %v8522_v33, %v11573_v18  ;;  %v16484_v18 = vld [vmem:[#allocation28_spill] sm:$0xff]  ;;  %v8526_v14 = vld [vmem:[%s16222_s7 + $0x368] sm:$0xff] }
 0x2f7   :  { %v958_v34 = vmul.f32 %v8556_v43, %v622_v44  ;;  %v879_v1 = vadd.f32 %v863_v9, %v830_v26  ;;  %v779_v6 = vadd.f32 %v11905_v4, %v730_v47  ;;  %v684_v53 = vadd.f32 %v11998_v12, %v16483_v35  ;;  %v8512_v44 = vld [vmem:[%s16222_s7 + $0x2f8] sm:$0xff]  ;;  %v8510_v12 = vld [vmem:[%s16222_s7 + $0x2e8] sm:$0xff]  ;;  %v16492_v26 = vld [vmem:[#allocation27_spill] sm:$0xff] }
 0x2f8   :  { %16482 = vst [vmem:[#allocation26_spill] sm:$0xff] %v12140_v31  ;;  %v876_v45 = vadd.f32 %v860_v8, %v827_v5  ;;  %v874_v46 = vadd.f32 %v858_v60, %v825_v2  ;;  %v907_v36 = vmul.f32 %v8538_v41, %v11503_v32  ;;  %v961_v51 = vmul.f32 %v8559_v29, %v16484_v18  ;;  %v8560_v29 = vld [vmem:[%s16222_s7 + $0x478] sm:$0xff]  ;;  %v16493_v5 = vld [vmem:[#allocation29_spill] sm:$0xff] }
 0x2f9   :  { %v928_v25 = vadd.f32 %v12001_v63, %v879_v1  ;;  %v828_v22 = vadd.f32 %v812_v62, %v779_v6  ;;  %v861_v40 = vmul.f32 %v8525_v10, %v11725_v52  ;;  %v733_v4 = vadd.f32 %v12011_v38, %v684_v53  ;;  %v8557_v52 = vld [vmem:[%s16222_s7 + $0x460] sm:$0xff]  ;;  %v8528_v63 = vld [vmem:[%s16222_s7 + $0x378] sm:$0xff]  ;;  %v16486_v62 = vld [vmem:[#allocation19_spill] sm:$0xff] }
 0x2fa   :  { %v16485_v32 = vmul.bf16 %v11511_v55, %v11215_v48  ;;  %v925_v20 = vadd.f32 %v11923_v16, %v876_v45  ;;  %v923_v54 = vadd.f32 %v907_v36, %v874_v46  ;;  %v956_v30 = vmul.f32 %v8554_v49, %v11984_v23  ;;  %v16495_v10 = vld [vmem:[#allocation8_spill] sm:$0xff]  ;;  %v16497_v45 = vld [vmem:[#allocation18_spill] sm:$0xff] }
 0x2fb   :  { %v731_v38 = vadd.f32 %v12031_v42, %v682_v61  ;;  %v16487_v33 = vmul.bf16 %v16486_v62, %v11058_v24  ;;  %v12180_v19 = vadd.f32 %v961_v51, %v928_v25  ;;  %v877_v16 = vadd.f32 %v861_v40, %v828_v22  ;;  %v8544_v42 = vld [vmem:[%s16222_s7 + $0x3f8] sm:$0xff] }
 0x2fc   :  { %9311 = vmatmul.mubr.msk.bf16.gmra.mrb[52].mxu0 %vm71_vm0, %v16485_v32  ;;  %v782_v23 = vadd.f32 %v11949_v56, %v733_v4  ;;  %v815_v37 = vmul.f32 %v8512_v44, %v16484_v18  ;;  %v12187_v0 = vadd.f32 %v958_v34, %v925_v20  ;;  %v12189_v43 = vadd.f32 %v956_v30, %v923_v54  ;;  %v8542_v56 = vld [vmem:[%s16222_s7 + $0x3e8] sm:$0xff]  ;;  %v16496_v49 = vld [vmem:[#allocation24_spill] sm:$0xff]  ;;  %v16498_v18 = vld [vmem:[#allocation9_spill] sm:$0xff] }
 0x2fd   :  { %9314 = vmatprep.mubr.msk.bf16.mxu0 %vm71_vm0, %v16487_v33  ;;  %16488 = vst [vmem:[#allocation23_spill] sm:$0xff] %v12180_v19  ;;  %v780_v61 = vadd.f32 %v12043_v3, %v731_v38  ;;  %v813_v7 = vmul.f32 %v8510_v12, %v16491_v28  ;;  %v926_v57 = vadd.f32 %v12046_v59, %v877_v16  ;;  %v8558_v59 = vld [vmem:[%s16222_s7 + $0x468] sm:$0xff] }
 0x2fe   :  { %16489 = vst [vmem:[#allocation35_spill] sm:$0xff] %v12187_v0  ;;  %16490 = vst [vmem:[#allocation30_spill] sm:$0xff] %v12189_v43  ;;  %v959_v8 = vmul.f32 %v8557_v52, %v16491_v28  ;;  %v831_v41 = vadd.f32 %v815_v37, %v782_v23  ;;  %v864_v9 = vmul.f32 %v8528_v63, %v16492_v26  ;;  %v16501_v4 = vld [vmem:[#allocation6_spill] sm:$0xff] }
 0x2ff   :  { %v829_v47 = vadd.f32 %v813_v7, %v780_v61  ;;  %v862_v3 = vmul.f32 %v8526_v14, %v16493_v5  ;;  %v913_v34 = vmul.f32 %v8544_v42, %v16495_v10  ;;  %v911_v1 = vmul.f32 %v8542_v56, %v16496_v49  ;;  %v16502_v42 = vld [vmem:[#allocation15_spill] sm:$0xff]  ;;  %v16508_v49 = vld [vmem:[#allocation17_spill] sm:$0xff] }
 0x300   :  { %v12206_v2 = vadd.f32 %v959_v8, %v926_v57  ;;  %v880_v60 = vadd.f32 %v864_v9, %v831_v41  ;;  %v1254_v6 = vmul.bf16 %v16486_v62, %v11096_v50  ;;  %v1255_v53 = vmul.bf16 %v16486_v62, %v11153_v11  ;;  %v16503_v61 = vld [vmem:[#allocation7_spill] sm:$0xff]  ;;  %v16504_v41 = vld [vmem:[#allocation20_spill] sm:$0xff]  ;;  %v16505_v9 = vld [vmem:[#allocation25_spill] sm:$0xff] }
 0x301   :  { %v878_v35 = vadd.f32 %v862_v3, %v829_v47  ;;  %v1220_v46 = vpack.i.b16 %v16497_v45, %v16497_v45  ;;  %v962_v51 = vmul.f32 %v8560_v29, %v16498_v18  ;;  %v960_v25 = vmul.f32 %v8558_v59, %v11689_v17  ;;  %v60_v17 = vld [vmem:[%s16223_s8 + $0x7] sm:$0x1]  ;;  %v16507_v3 = vld [vmem:[#allocation14_spill] sm:$0xff] }
 0x302   :  { %16494 = vst [vmem:[#allocation28_spill] sm:$0xff] %v12206_v2  ;;  %v929_v36 = vadd.f32 %v913_v34, %v880_v60  ;;  %v1256_v32 = vmul.bf16 %v16486_v62, %v11215_v48  ;;  %v68_v54 = vpack.c.bf16 %v60_v17, %v60_v17  ;;  %v3028_v26 = vmul.bf16 %v16503_v61, %v16504_v41  ;;  %v16506_v47 = vld [vmem:[#allocation33_spill] sm:$0xff] }
 0x303   :  { %v927_v44 = vadd.f32 %v911_v1, %v878_v35  ;;  %v12228_v12 = vrot.slane %v1220_v46, %v16501_v4  ;;  %v3029_v29 = vmul.bf16 %v16503_v61, %v16505_v9  ;;  %v3030_v5 = vmul.bf16 %v16503_v61, %v16506_v47 }
 0x304   :  { %9315 = vmatmul.mubr.msk.bf16.gmra.mrb[56].mxu0 %vm71_vm0, %v1254_v6  ;;  %v12223_v22 = vadd.f32 %v962_v51, %v929_v36  ;;  %v1227_v63 = vpack.i.b16 %v68_v54, %v68_v54  ;;  %v3031_v60 = vmul.bf16 %v16507_v3, %v16502_v42  ;;  %v3032_v10 = vmul.bf16 %v16507_v3, %v16504_v41 }
 0x305   :  { %9318 = vmatprep.mubr.msk.bf16.mxu0 %vm71_vm0, %v1255_v53  ;;  %v12225_v40 = vadd.f32 %v960_v25, %v927_v44  ;;  %v1257_v20 = vmul.bf16 %v12228_v12, %v11058_v24  ;;  %v1258_v30 = vmul.bf16 %v12228_v12, %v11096_v50  ;;  %v1259_v52 = vmul.bf16 %v12228_v12, %v11153_v11 }
 0x306   :  { %16499 = vst [vmem:[#allocation19_spill] sm:$0xff] %v12223_v22  ;;  %v12246_v38 = vrot.slane %v1227_v63, %v16501_v4  ;;  %v1260_v33 = vmul.bf16 %v12228_v12, %v11215_v48  ;;  %v3033_v34 = vmul.bf16 %v16507_v3, %v16505_v9  ;;  %v3034_v59 = vmul.bf16 %v16507_v3, %v16506_v47 }
 0x307   :  { %16500 = vst [vmem:[#allocation31_spill] sm:$0xff] %v12225_v40  ;;  %v3035_v1 = vmul.bf16 %v16508_v49, %v16502_v42  ;;  %v3036_v6 = vmul.bf16 %v16508_v49, %v16504_v41  ;;  %v3037_v35 = vmul.bf16 %v16508_v49, %v16505_v9  ;;  %v3038_v53 = vmul.bf16 %v16508_v49, %v16506_v47 }
 0x308   :  { %v1261_v16 = vmul.bf16 %v12246_v38, %v11058_v24  ;;  %v1262_v23 = vmul.bf16 %v12246_v38, %v11096_v50  ;;  %v1263_v37 = vmul.bf16 %v12246_v38, %v11153_v11  ;;  %v1264_v14 = vmul.bf16 %v12246_v38, %v11215_v48 }
 0x309   :  { %v3027_v24 = vmul.bf16 %v16503_v61, %v16502_v42  ;;  %v3039_v45 = vmul.bf16 %v11494_v15, %v16502_v42  ;;  %v3040_v46 = vmul.bf16 %v11494_v15, %v16504_v41  ;;  %v3041_v18 = vmul.bf16 %v11494_v15, %v16505_v9 }
 0x30a   :  { %v3042_v54 = vmul.bf16 %v11494_v15, %v16506_v47  ;;  %v3044_v61 = vmul.bf16 %v11511_v55, %v16504_v41 }
 0x30c   :  { %9319 = vmatmul.mubr.msk.bf16.gmra.mrb[60].mxu0 %vm71_vm0, %v1256_v32 }
 0x30d   :  { %9322 = vmatprep.mubr.msk.bf16.mxu0 %vm71_vm0, %v1257_v20 }
 0x314   :  { %9323 = vmatmul.mubr.msk.bf16.gmra.mrb[64].mxu0 %vm71_vm0, %v1258_v30 }
 0x315   :  { %9326 = vmatprep.mubr.msk.bf16.mxu0 %vm71_vm0, %v1259_v52  ;;  %v3043_v52 = vmul.bf16 %v11511_v55, %v16502_v42 }
 0x31c   :  { %9327 = vmatmul.mubr.msk.bf16.gmra.mrb[68].mxu0 %vm71_vm0, %v1260_v33 }
 0x31d   :  { %9330 = vmatprep.mubr.msk.bf16.mxu0 %vm71_vm0, %v1261_v16 }
 0x324   :  { %9331 = vmatmul.mubr.msk.bf16.gmra.mrb[72].mxu0 %vm71_vm0, %v1262_v23 }
 0x325   :  { %9334 = vmatprep.mubr.msk.bf16.mxu0 %vm71_vm0, %v1263_v37 }
 0x32c   :  { %9335 = vmatmul.mubr.msk.bf16.gmra.mrb[76].mxu0 %vm71_vm0, %v1264_v14 }
 0x32d   :  { %9418 = vmatprep.mubr.msk.bf16.mxu0 %vm71_vm0, %v3027_v24 }
 0x330   :  { %v3064_v28 = vpop.permute.xlu0 %3063 }
 0x331   :  { %9686 = vmatprep.subr.msk.bf16.mxu0 %vm71_vm0, %v3064_v28  ;;  %v3168_v50 = vsel %vm71_vm0, %v3064_v28, 0  ;;  %v3045_v28 = vmul.bf16 %v11511_v55, %v16505_v9 }
 0x332   :  { %9411 = vmatpush3.bf16.xpose.msra.mxu0 %v3168_v50 }
 0x339   :  { %v3066_v11 = vpop.permute.xlu1 %3065 }
 0x33a   :  { %9687 = vmatprep.subr.msk.bf16.mxu0 %vm71_vm0, %v3066_v11  ;;  %v3171_v7 = vsel %vm71_vm0, %v3066_v11, 0 }
 0x33b   :  { %9413 = vmatpush3.bf16.xpose.msra.mxu0 %v3171_v7 }
 0x340   :  { %v3068_v48 = vpop.permute.xlu0 %3067 }
 0x341   :  { %9688 = vmatprep.subr.msk.bf16.mxu0 %vm71_vm0, %v3068_v48  ;;  %v3174_v56 = vsel %vm71_vm0, %v3068_v48, 0 }
 0x343   :  { %9415 = vmatpush3.bf16.xpose.msra.mxu0 %v3174_v56 }
 0x348   :  { %v3070_v57 = vpop.permute.xlu1 %3069 }
 0x349   :  { %9689 = vmatprep.subr.msk.bf16.mxu0 %vm71_vm0, %v3070_v57  ;;  %v3177_v8 = vsel %vm71_vm0, %v3070_v57, 0 }
 0x34b   :  { %9417 = vmatpush3.bf16.xpose.msra.mxu0 %v3177_v8 }
 0x352   :  { %9419 = vmatmul.mubr.msk.bf16.vlgmr.msra.gmra.mrb[80].mxu0 %vm71_vm0, %v3028_v26  ;;  %v3046_v26 = vmul.bf16 %v11511_v55, %v16506_v47 }
 0x353   :  { %9422 = vmatprep.mubr.msk.bf16.mxu0 %vm71_vm0, %v3029_v29 }
 0x35a   :  { %9423 = vmatmul.mubr.msk.bf16.gmra.mrb[84].mxu0 %vm71_vm0, %v3030_v5  ;;  %v3047_v5 = vmul.bf16 %v16486_v62, %v16502_v42 }
 0x35b   :  { %9426 = vmatprep.mubr.msk.bf16.mxu0 %vm71_vm0, %v3031_v60 }
 0x362   :  { %9427 = vmatmul.mubr.msk.bf16.gmra.mrb[88].mxu0 %vm71_vm0, %v3032_v10 }
 0x363   :  { %9430 = vmatprep.mubr.msk.bf16.mxu0 %vm71_vm0, %v3033_v34 }
 0x36a   :  { %9431 = vmatmul.mubr.msk.bf16.gmra.mrb[92].mxu0 %vm71_vm0, %v3034_v59 }
 0x36b   :  { %9434 = vmatprep.mubr.msk.bf16.mxu0 %vm71_vm0, %v3035_v1  ;;  %v3048_v1 = vmul.bf16 %v16486_v62, %v16504_v41 }
 0x372   :  { %9435 = vmatmul.mubr.msk.bf16.gmra.mrb[96].mxu0 %vm71_vm0, %v3036_v6 }
 0x373   :  { %9438 = vmatprep.mubr.msk.bf16.mxu0 %vm71_vm0, %v3037_v35  ;;  %v3049_v35 = vmul.bf16 %v16486_v62, %v16505_v9 }
 0x37a   :  { %9439 = vmatmul.mubr.msk.bf16.gmra.mrb[100].mxu0 %vm71_vm0, %v3038_v53 }
 0x37b   :  { %9442 = vmatprep.mubr.msk.bf16.mxu0 %vm71_vm0, %v3039_v45 }
 0x380   :  { %v12312_v36 = vpop.f32.mrb[16].mxu0 }
 0x381   :  { %v12316_v51 = vpop.f32.mrb[17].mxu0  ;;  %v1680_v44 = vsel %vm71_vm0, %v12312_v36, -inf }
 0x382   :  { %9443 = vmatmul.mubr.msk.bf16.gmra.mrb[104].mxu0 %vm71_vm0, %v3040_v46  ;;  %1681 = vmax.xlane.f32.xlu0 %v1680_v44  ;;  %v12321_v25 = vpop.f32.mrb[18].mxu0  ;;  %v1674_v17 = vsel %vm71_vm0, %v12316_v51, -inf }
 0x383   :  { %9446 = vmatprep.mubr.msk.bf16.mxu0 %vm71_vm0, %v3041_v18  ;;  %v12324_v32 = vpop.f32.mrb[19].mxu0  ;;  %v1683_v33 = vsel %vm71_vm0, %v12321_v25, -inf }
 0x384   :  { %v1677_v20 = vsel %vm71_vm0, %v12324_v32, -inf }
 0x385   :  { %1678 = vmax.xlane.f32.xlu1 %v1677_v20 }
 0x386   :  { %1675 = vmax.xlane.f32.xlu0 %v1674_v17 }
 0x388   :  { %v12332_v30 = vpop.f32.mrb[20].mxu0 }
 0x389   :  { %v12336_v63 = vpop.f32.mrb[21].mxu0  ;;  %v1692_v37 = vsel %vm71_vm0, %v12332_v30, -inf }
 0x38a   :  { %9447 = vmatmul.mubr.msk.bf16.gmra.mrb[108].mxu0 %vm71_vm0, %v3042_v54  ;;  %1684 = vmax.xlane.f32.xlu0 %v1683_v33  ;;  %v12341_v16 = vpop.f32.mrb[22].mxu0  ;;  %v1686_v11 = vsel %vm71_vm0, %v12336_v63, -inf  ;;  %v3050_v54 = vmul.bf16 %v16486_v62, %v16506_v47  ;;  %v3051_v33 = vmul.bf16 %v12228_v12, %v16502_v42 }
 0x38b   :  { %9450 = vmatprep.mubr.msk.bf16.mxu0 %vm71_vm0, %v3043_v52  ;;  %v12344_v23 = vpop.f32.mrb[23].mxu0  ;;  %v1695_v15 = vsel %vm71_vm0, %v12341_v16, -inf }
 0x38c   :  { %1696 = vmax.xlane.f32.xlu1 %v1695_v15  ;;  %v1689_v14 = vsel %vm71_vm0, %v12344_v23, -inf }
 0x38e   :  { %1693 = vmax.xlane.f32.xlu0 %v1692_v37 }
 0x390   :  { %1690 = vmax.xlane.f32.xlu1 %v1689_v14  ;;  %v12354_v24 = vpop.f32.mrb[24].mxu0 }
 0x391   :  { %v12358_v50 = vpop.f32.mrb[25].mxu0  ;;  %v1704_v57 = vsel %vm71_vm0, %v12354_v24, -inf }
 0x392   :  { %9451 = vmatmul.mubr.msk.bf16.gmra.mrb[112].mxu0 %vm71_vm0, %v3044_v61  ;;  %1687 = vmax.xlane.f32.xlu0 %v1686_v11  ;;  %v12363_v7 = vpop.f32.mrb[26].mxu0  ;;  %v1698_v60 = vsel %vm71_vm0, %v12358_v50, -inf }
 0x393   :  { %9454 = vmatprep.mubr.msk.bf16.mxu0 %vm71_vm0, %v3045_v28  ;;  %v12366_v48 = vpop.f32.mrb[27].mxu0  ;;  %v1707_v56 = vsel %vm71_vm0, %v12363_v7, -inf }
 0x394   :  { %1708 = vmax.xlane.f32.xlu1 %v1707_v56  ;;  %v1701_v8 = vsel %vm71_vm0, %v12366_v48, -inf  ;;  %v3052_v56 = vmul.bf16 %v12228_v12, %v16504_v41 }
 0x396   :  { %1705 = vmax.xlane.f32.xlu0 %v1704_v57 }
 0x398   :  { %1702 = vmax.xlane.f32.xlu1 %v1701_v8  ;;  %v12376_v29 = vpop.f32.mrb[28].mxu0  ;;  %v3053_v8 = vmul.bf16 %v12228_v12, %v16505_v9 }
 0x399   :  { %v12380_v3 = vpop.f32.mrb[29].mxu0  ;;  %v1716_v59 = vsel %vm71_vm0, %v12376_v29, -inf }
 0x39a   :  { %9455 = vmatmul.mubr.msk.bf16.gmra.mrb[116].mxu0 %vm71_vm0, %v3046_v26  ;;  %1699 = vmax.xlane.f32.xlu0 %v1698_v60  ;;  %v12385_v10 = vpop.f32.mrb[30].mxu0  ;;  %v1710_v45 = vsel %vm71_vm0, %v12380_v3, -inf }
 0x39b   :  { %9458 = vmatprep.mubr.msk.bf16.mxu0 %vm71_vm0, %v3047_v5  ;;  %v12388_v34 = vpop.f32.mrb[31].mxu0  ;;  %v1719_v55 = vsel %vm71_vm0, %v12385_v10, -inf }
 0x39c   :  { %1720 = vmax.xlane.f32.xlu1 %v1719_v55  ;;  %v1713_v49 = vsel %vm71_vm0, %v12388_v34, -inf }
 0x39e   :  { %1717 = vmax.xlane.f32.xlu0 %v1716_v59 }
 0x3a0   :  { %1714 = vmax.xlane.f32.xlu1 %v1713_v49  ;;  %v12398_v6 = vpop.f32.mrb[32].mxu0 }
 0x3a1   :  { %v12402_v53 = vpop.f32.mrb[33].mxu0  ;;  %v1728_v20 = vsel %vm71_vm0, %v12398_v6, -inf }
 0x3a2   :  { %9459 = vmatmul.mubr.msk.bf16.gmra.mrb[120].mxu0 %vm71_vm0, %v3048_v1  ;;  %1711 = vmax.xlane.f32.xlu0 %v1710_v45  ;;  %v12407_v46 = vpop.f32.mrb[34].mxu0  ;;  %v1722_v37 = vsel %vm71_vm0, %v12402_v53, -inf }
 0x3a3   :  { %9462 = vmatprep.mubr.msk.bf16.mxu0 %vm71_vm0, %v3049_v35  ;;  %v12410_v18 = vpop.f32.mrb[35].mxu0  ;;  %v1731_v44 = vsel %vm71_vm0, %v12407_v46, -inf  ;;  %v3054_v35 = vmul.bf16 %v12228_v12, %v16506_v47 }
 0x3a4   :  { %1732 = vmax.xlane.f32.xlu1 %v1731_v44  ;;  %v1725_v17 = vsel %vm71_vm0, %v12410_v18, -inf  ;;  %v3055_v44 = vmul.bf16 %v12246_v38, %v16502_v42 }
 0x3a6   :  { %1729 = vmax.xlane.f32.xlu0 %v1728_v20 }
 0x3a8   :  { %1726 = vmax.xlane.f32.xlu1 %v1725_v17  ;;  %v12420_v52 = vpop.f32.mrb[36].mxu0 }
 0x3a9   :  { %v12424_v15 = vpop.f32.mrb[37].mxu0  ;;  %v1740_v28 = vsel %vm71_vm0, %v12420_v52, -inf }
 0x3aa   :  { %9463 = vmatmul.mubr.msk.bf16.gmra.mrb[124].mxu0 %vm71_vm0, %v3050_v54  ;;  %1723 = vmax.xlane.f32.xlu0 %v1722_v37  ;;  %v12429_v14 = vpop.f32.mrb[38].mxu0  ;;  %v1734_v5 = vsel %vm71_vm0, %v12424_v15, -inf }
 0x3ab   :  { %9466 = vmatprep.mubr.msk.bf16.mxu0 %vm71_vm0, %v3051_v33  ;;  %v12432_v61 = vpop.f32.mrb[39].mxu0  ;;  %v1743_v62 = vsel %vm71_vm0, %v12429_v14, -inf }
 0x3ac   :  { %1744 = vmax.xlane.f32.xlu1 %v1743_v62  ;;  %v1737_v11 = vsel %vm71_vm0, %v12432_v61, -inf  ;;  %v3056_v62 = vmul.bf16 %v12246_v38, %v16504_v41 }
 0x3ae   :  { %1741 = vmax.xlane.f32.xlu0 %v1740_v28 }
 0x3b0   :  { %1738 = vmax.xlane.f32.xlu1 %v1737_v11  ;;  %v3057_v11 = vmul.bf16 %v12246_v38, %v16505_v9 }
 0x3b2   :  { %9467 = vmatmul.mubr.msk.bf16.gmra.mrb[128].mxu0 %vm71_vm0, %v3052_v56  ;;  %1735 = vmax.xlane.f32.xlu0 %v1734_v5 }
 0x3b3   :  { %v12442_v57 = vpop.f32.mrb[40].mxu0  ;;  %9470 = vmatprep.mubr.msk.bf16.mxu0 %vm71_vm0, %v3053_v8 }
 0x3b4   :  { %v12446_v26 = vpop.f32.mrb[41].mxu0  ;;  %v1752_v49 = vsel %vm71_vm0, %v12442_v57, -inf }
 0x3b5   :  { %v12451_v60 = vpop.f32.mrb[42].mxu0  ;;  %v1746_v17 = vsel %vm71_vm0, %v12446_v26, -inf }
 0x3b6   :  { %v12454_v55 = vpop.f32.mrb[43].mxu0  ;;  %v1755_v59 = vsel %vm71_vm0, %v12451_v60, -inf  ;;  %1753 = vmax.xlane.f32.xlu0 %v1752_v49 }
 0x3b7   :  { %1756 = vmax.xlane.f32.xlu1 %v1755_v59  ;;  %v1749_v1 = vsel %vm71_vm0, %v12454_v55, -inf }
 0x3ba   :  { %9471 = vmatmul.mubr.msk.bf16.gmra.mrb[132].mxu0 %vm71_vm0, %v3054_v35  ;;  %1747 = vmax.xlane.f32.xlu0 %v1746_v17 }
 0x3bb   :  { %1750 = vmax.xlane.f32.xlu1 %v1749_v1  ;;  %9474 = vmatprep.mubr.msk.bf16.mxu0 %vm71_vm0, %v3055_v44  ;;  %v3058_v1 = vmul.bf16 %v12246_v38, %v16506_v47 }
 0x3bc   :  { %v12464_v45 = vpop.f32.mrb[44].mxu0 }
 0x3bd   :  { %v12468_v20 = vpop.f32.mrb[45].mxu0  ;;  %v1764_v42 = vsel %vm71_vm0, %v12464_v45, -inf }
 0x3be   :  { %v12473_v54 = vpop.f32.mrb[46].mxu0  ;;  %1765 = vmax.xlane.f32.xlu0 %v1764_v42  ;;  %v1758_v8 = vsel %vm71_vm0, %v12468_v20, -inf }
 0x3bf   :  { %v12476_v33 = vpop.f32.mrb[47].mxu0  ;;  %v1767_v12 = vsel %vm71_vm0, %v12473_v54, -inf }
 0x3c0   :  { %1768 = vmax.xlane.f32.xlu1 %v1767_v12  ;;  %v1761_v37 = vsel %vm71_vm0, %v12476_v33, -inf }
 0x3c2   :  { %9475 = vmatmul.mubr.msk.bf16.gmra.mrb[136].mxu0 %vm71_vm0, %v3056_v62  ;;  %1759 = vmax.xlane.f32.xlu0 %v1758_v8 }
 0x3c3   :  { %9478 = vmatprep.mubr.msk.bf16.mxu0 %vm71_vm0, %v3057_v11 }
 0x3c4   :  { %1762 = vmax.xlane.f32.xlu1 %v1761_v37 }
 0x3c6   :  { %v12486_v28 = vpop.f32.mrb[48].mxu0 }
 0x3c7   :  { %v12490_v56 = vpop.f32.mrb[49].mxu0  ;;  %v1776_v9 = vsel %vm71_vm0, %v12486_v28, -inf }
 0x3c8   :  { %v12495_v5 = vpop.f32.mrb[50].mxu0  ;;  %1777 = vmax.xlane.f32.xlu0 %v1776_v9  ;;  %v1770_v17 = vsel %vm71_vm0, %v12490_v56, -inf }
 0x3c9   :  { %v12498_v59 = vpop.f32.mrb[51].mxu0  ;;  %v1779_v41 = vsel %vm71_vm0, %v12495_v5, -inf }
 0x3ca   :  { %1780 = vmax.xlane.f32.xlu1 %v1779_v41  ;;  %v1773_v49 = vsel %vm71_vm0, %v12498_v59, -inf  ;;  %9479 = vmatmul.mubr.msk.bf16.gmra.mrb[140].mxu0 %vm71_vm0, %v3058_v1 }
 0x3cc   :  { %1771 = vmax.xlane.f32.xlu0 %v1770_v17 }
 0x3ce   :  { %1774 = vmax.xlane.f32.xlu1 %v1773_v49 }
 0x3cf   :  { %v12508_v35 = vpop.f32.mrb[52].mxu0 }
 0x3d0   :  { %v12510_v44 = vpop.f32.mrb[53].mxu0  ;;  %v1788_v37 = vsel %vm71_vm0, %v12508_v35, -inf }
 0x3d1   :  { %v12515_v12 = vpop.f32.mrb[54].mxu0  ;;  %v1782_v38 = vsel %vm71_vm0, %v12510_v44, -inf }
 0x3d2   :  { %v12517_v42 = vpop.f32.mrb[55].mxu0  ;;  %1789 = vmax.xlane.f32.xlu1 %v1788_v37  ;;  %1783 = vmax.xlane.f32.xlu0 %v1782_v38  ;;  %v1791_v47 = vsel %vm71_vm0, %v12515_v12, -inf }
 0x3d3   :  { %v1785_v49 = vsel %vm71_vm0, %v12517_v42, -inf }
 0x3d6   :  { %1792 = vmax.xlane.f32.xlu1 %v1791_v47 }
 0x3d7   :  { %v12525_v62 = vpop.f32.mrb[56].mxu0 }
 0x3d8   :  { %v12527_v11 = vpop.f32.mrb[57].mxu0  ;;  %v1800_v8 = vsel %vm71_vm0, %v12525_v62, -inf }
 0x3d9   :  { %1801 = vmax.xlane.f32.xlu0 %v1800_v8  ;;  %v12531_v41 = vpop.f32.mrb[58].mxu0  ;;  %v1794_v1 = vsel %vm71_vm0, %v12527_v11, -inf }
 0x3da   :  { %v12533_v9 = vpop.f32.mrb[59].mxu0  ;;  %1786 = vmax.xlane.f32.xlu1 %v1785_v49  ;;  %v1803_v4 = vsel %vm71_vm0, %v12531_v41, -inf }
 0x3de   :  { %1795 = vmax.xlane.f32.xlu1 %v1794_v1  ;;  %v1797_v1 = vsel %vm71_vm0, %v12533_v9, -inf }
 0x3df   :  { %v12539_v17 = vpop.f32.mrb[60].mxu0 }
 0x3e0   :  { %v12541_v37 = vpop.f32.mrb[61].mxu0  ;;  %v1812_v2 = vsel %vm71_vm0, %v12539_v17, -inf }
 0x3e1   :  { %v12543_v38 = vpop.f32.mrb[62].mxu0  ;;  %v1806_v47 = vsel %vm71_vm0, %v12541_v37, -inf }
 0x3e2   :  { %16509 = vst [vmem:[#allocation27_spill] sm:$0xff] %v12543_v38  ;;  %1807 = vmax.xlane.f32.xlu0 %v1806_v47  ;;  %v12547_v8 = vpop.f32.mrb[63].mxu0  ;;  %1804 = vmax.xlane.f32.xlu1 %v1803_v4 }
 0x3e3   :  { %v1809_v49 = vsel %vm71_vm0, %v12547_v8, -inf }
 0x3e6   :  { %1810 = vmax.xlane.f32.xlu0 %v1809_v49  ;;  %1798 = vmax.xlane.f32.xlu1 %v1797_v1  ;;  %v1815_v49 = vsel %vm71_vm0, %v12543_v38, -inf }
 0x3e7   :  { %v12555_v13 = vpop.f32.mrb[64].mxu0 }
 0x3e8   :  { %16510 = vst [vmem:[#allocation29_spill] sm:$0xff] %v12555_v13  ;;  %v12557_v40 = vpop.f32.mrb[65].mxu0 }
 0x3e9   :  { %16511 = vst [vmem:[#allocation8_spill] sm:$0xff] %v12557_v40  ;;  %v12559_v22 = vpop.f32.mrb[66].mxu0 }
 0x3ea   :  { %16512 = vst [vmem:[#allocation24_spill] sm:$0xff] %v12559_v22  ;;  %v12561_v47 = vpop.f32.mrb[67].mxu0  ;;  %v1827_v4 = vsel %vm71_vm0, %v12559_v22, -inf  ;;  %1813 = vmax.xlane.f32.xlu1 %v1812_v2  ;;  %v1824_v2 = vsel %vm71_vm0, %v12555_v13, -inf }
 0x3eb   :  { %16513 = vst [vmem:[#allocation18_spill] sm:$0xff] %v12561_v47  ;;  %1828 = vmax.xlane.f32.xlu0 %v1827_v4 }
 0x3ee   :  { %1816 = vmax.xlane.f32.xlu1 %v1815_v49  ;;  %v1818_v49 = vsel %vm71_vm0, %v12557_v40, -inf }
 0x3ef   :  { %v12569_v1 = vpop.f32.mrb[68].mxu0 }
 0x3f0   :  { %16514 = vst [vmem:[#allocation9_spill] sm:$0xff] %v12569_v1  ;;  %v12571_v19 = vpop.f32.mrb[69].mxu0  ;;  %v1836_v43 = vsel %vm71_vm0, %v12569_v1, -inf }
 0x3f1   :  { %16515 = vst [vmem:[#allocation15_spill] sm:$0xff] %v12571_v19  ;;  %1837 = vmax.xlane.f32.xlu0 %v1836_v43  ;;  %v12575_v0 = vpop.f32.mrb[70].mxu0  ;;  %v1830_v4 = vsel %vm71_vm0, %v12571_v19, -inf }
 0x3f2   :  { %16516 = vst [vmem:[#allocation7_spill] sm:$0xff] %v12575_v0  ;;  %v12577_v31 = vpop.f32.mrb[71].mxu0  ;;  %1825 = vmax.xlane.f32.xlu1 %v1824_v2  ;;  %v1821_v2 = vsel %vm71_vm0, %v12561_v47, -inf }
 0x3f3   :  { %16517 = vst [vmem:[#allocation20_spill] sm:$0xff] %v12577_v31  ;;  %v1833_v43 = vsel %vm71_vm0, %v12577_v31, -inf }
 0x3f5   :  { %1831 = vmax.xlane.f32.xlu0 %v1830_v4 }
 0x3f6   :  { %1819 = vmax.xlane.f32.xlu1 %v1818_v49  ;;  %v1839_v49 = vsel %vm71_vm0, %v12575_v0, -inf }
 0x3f7   :  { %v12585_v27 = vpop.f32.mrb[72].mxu0 }
 0x3f8   :  { %16518 = vst [vmem:[#allocation25_spill] sm:$0xff] %v12585_v27  ;;  %v12587_v21 = vpop.f32.mrb[73].mxu0  ;;  %v1848_v4 = vsel %vm71_vm0, %v12585_v27, -inf }
 0x3f9   :  { %16519 = vst [vmem:[#allocation33_spill] sm:$0xff] %v12587_v21  ;;  %1834 = vmax.xlane.f32.xlu0 %v1833_v43  ;;  %v12591_v58 = vpop.f32.mrb[74].mxu0  ;;  %v1842_v43 = vsel %vm71_vm0, %v12587_v21, -inf }
 0x3fa   :  { %16520 = vst [vmem:[#allocation14_spill] sm:$0xff] %v12591_v58  ;;  %v12593_v39 = vpop.f32.mrb[75].mxu0  ;;  %1822 = vmax.xlane.f32.xlu1 %v1821_v2  ;;  %v1851_v2 = vsel %vm71_vm0, %v12591_v58, -inf }
 0x3fb   :  { %16521 = vst [vmem:[#allocation17_spill] sm:$0xff] %v12593_v39 }
 0x3fd   :  { %1849 = vmax.xlane.f32.xlu0 %v1848_v4 }
 0x3fe   :  { %1840 = vmax.xlane.f32.xlu1 %v1839_v49  ;;  %v1845_v49 = vsel %vm71_vm0, %v12593_v39, -inf }
 0x3ff   :  { %v12601_v1 = vpop.f32.mrb[76].mxu0 }
 0x400   :  { %v12603_v31 = vpop.f32.mrb[77].mxu0 }
 0x401   :  { %16522 = vst [vmem:[#allocation40_spill] sm:$0xff] %v12603_v31  ;;  %1843 = vmax.xlane.f32.xlu0 %v1842_v43  ;;  %v12607_v19 = vpop.f32.mrb[78].mxu0  ;;  %v1854_v4 = vsel %vm71_vm0, %v12603_v31, -inf }
 0x402   :  { %v12609_v47 = vpop.f32.mrb[79].mxu0  ;;  %1852 = vmax.xlane.f32.xlu1 %v1851_v2 }
 0x405   :  { %1855 = vmax.xlane.f32.xlu0 %v1854_v4 }
 0x406   :  { %1846 = vmax.xlane.f32.xlu1 %v1845_v49 }
 0x40f   :  { %v1682_v27 = vpop.xlane.xlu0 %1681 }
 0x410   :  { %v1868_v21 = vsub.f32 %v12312_v36, %v1682_v27 }
 0x412   :  { %v1934_v43 = vmul.f32 1.442695, %v1868_v21  ;;  %v1679_v0 = vpop.xlane.xlu1 %1678 }
 0x413   :  { %v1867_v22 = vsub.f32 %v12324_v32, %v1679_v0  ;;  %v1676_v40 = vpop.xlane.xlu0 %1675 }
 0x414   :  { %9827 = vpow2.f32 %v1934_v43  ;;  %v1866_v58 = vsub.f32 %v12316_v51, %v1676_v40 }
 0x415   :  { %v1932_v2 = vmul.f32 1.442695, %v1867_v22 }
 0x416   :  { %v1930_v13 = vmul.f32 1.442695, %v1866_v58 }
 0x417   :  { %v1685_v38 = vpop.xlane.xlu0 %1684 }
 0x418   :  { %9829 = vpow2.f32 %v1930_v13  ;;  %v1869_v4 = vsub.f32 %v12321_v25, %v1685_v38 }
 0x419   :  { %v1697_v31 = vpop.xlane.xlu1 %1696  ;;  %9831 = vpow2.f32 %v1932_v2 }
 0x41a   :  { %v1936_v49 = vmul.f32 1.442695, %v1869_v4  ;;  %v1873_v0 = vsub.f32 %v12341_v16, %v1697_v31 }
 0x41b   :  { %v1694_v39 = vpop.xlane.xlu0 %1693 }
 0x41c   :  { %9833 = vpow2.f32 %v1936_v49  ;;  %v1872_v21 = vsub.f32 %v12332_v30, %v1694_v39  ;;  %v1944_v39 = vmul.f32 1.442695, %v1873_v0 }
 0x41d   :  { %v1691_v27 = vpop.xlane.xlu1 %1690 }
 0x41e   :  { %v12622_v36 = vpop.eup %9827  ;;  %v1942_v32 = vmul.f32 1.442695, %v1872_v21  ;;  %v1871_v22 = vsub.f32 %v12344_v23, %v1691_v27 }
 0x41f   :  { %v1688_v58 = vpop.xlane.xlu0 %1687  ;;  %v2064_v13 = vsel %vm71_vm0, %v12622_v36, 0.0 }
 0x420   :  { %9835 = vpow2.f32 %v1942_v32  ;;  %v1940_v40 = vmul.f32 1.442695, %v1871_v22  ;;  %v1870_v51 = vsub.f32 %v12336_v63, %v1688_v58  ;;  %2065 = vadd.xlane.f32.xlu1 %v2064_v13 }
 0x421   :  { %v1709_v25 = vpop.xlane.xlu1 %1708 }
 0x422   :  { %v12629_v38 = vpop.eup %9829  ;;  %9837 = vpow2.f32 %v1940_v40  ;;  %v1938_v30 = vmul.f32 1.442695, %v1870_v51  ;;  %v1877_v31 = vsub.f32 %v12363_v7, %v1709_v25 }
 0x423   :  { %v1706_v16 = vpop.xlane.xlu0 %1705  ;;  %v2058_v23 = vsel %vm71_vm0, %v12629_v38, 0.0  ;;  %v12634_v43 = vpop.eup %9831 }
 0x424   :  { %9839 = vpow2.f32 %v1938_v30  ;;  %v1952_v2 = vmul.f32 1.442695, %v1877_v31  ;;  %v1876_v4 = vsub.f32 %v12354_v24, %v1706_v16  ;;  %2059 = vadd.xlane.f32.xlu0 %v2058_v23  ;;  %v2061_v58 = vsel %vm71_vm0, %v12634_v43, 0.0 }
 0x425   :  { %v12637_v63 = vpop.f32.mrb[80].mxu0  ;;  %v1703_v49 = vpop.xlane.xlu1 %1702  ;;  %9841 = vpow2.f32 %v1944_v39 }
 0x426   :  { %16523 = vst [vmem:[#allocation41_spill] sm:$0xff] %v12637_v63  ;;  %v12639_v21 = vpop.f32.mrb[81].mxu0  ;;  %v12641_v27 = vpop.eup %9833  ;;  %v1950_v7 = vmul.f32 1.442695, %v1876_v4  ;;  %9843 = vpow2.f32 %v1952_v2  ;;  %v1875_v40 = vsub.f32 %v12366_v48, %v1703_v49 }
 0x427   :  { %16524 = vst [vmem:[#allocation42_spill] sm:$0xff] %v12639_v21  ;;  %v12643_v0 = vpop.f32.mrb[82].mxu0  ;;  %v1700_v32 = vpop.xlane.xlu0 %1699  ;;  %v2067_v24 = vsel %vm71_vm0, %v12641_v27, 0.0 }
 0x428   :  { %v12645_v22 = vpop.f32.mrb[83].mxu0  ;;  %v1874_v13 = vsub.f32 %v12358_v50, %v1700_v32  ;;  %2062 = vadd.xlane.f32.xlu0 %v2061_v58  ;;  %2068 = vadd.xlane.f32.xlu1 %v2067_v24  ;;  %9845 = vpow2.f32 %v1950_v7  ;;  %v1948_v4 = vmul.f32 1.442695, %v1875_v40 }
 0x429   :  { %v1721_v51 = vpop.xlane.xlu1 %1720 }
 0x42a   :  { %v12653_v25 = vpop.eup %9835  ;;  %v1946_v39 = vmul.f32 1.442695, %v1874_v13  ;;  %v1881_v30 = vsub.f32 %v12385_v10, %v1721_v51 }
 0x42b   :  { %v1718_v31 = vpop.xlane.xlu0 %1717  ;;  %v2076_v16 = vsel %vm71_vm0, %v12653_v25, 0.0 }
 0x42c   :  { %v12658_v23 = vpop.eup %9837  ;;  %v1960_v2 = vmul.f32 1.442695, %v1881_v30  ;;  %2077 = vadd.xlane.f32.xlu0 %v2076_v16  ;;  %9847 = vpow2.f32 %v1946_v39  ;;  %v1880_v48 = vsub.f32 %v12376_v29, %v1718_v31 }
 0x42d   :  { %v12660_v50 = vpop.f32.mrb[84].mxu0  ;;  %v1715_v49 = vpop.xlane.xlu1 %1714  ;;  %v2073_v10 = vsel %vm71_vm0, %v12658_v23, 0.0 }
 0x42e   :  { %16525 = vst [vmem:[#allocation43_spill] sm:$0xff] %v12660_v50  ;;  %v12663_v32 = vpop.f32.mrb[85].mxu0  ;;  %v12667_v7 = vpop.eup %9839  ;;  %9849 = vpow2.f32 %v1960_v2  ;;  %v1879_v58 = vsub.f32 %v12388_v34, %v1715_v49  ;;  %2074 = vadd.xlane.f32.xlu1 %v2073_v10  ;;  %v1958_v30 = vmul.f32 1.442695, %v1880_v48  ;;  %v1857_v34 = vsel %vm71_vm0, %v12609_v47, -inf }
 0x42f   :  { %16526 = vst [vmem:[#allocation44_spill] sm:$0xff] %v12663_v32  ;;  %v12670_v24 = vpop.f32.mrb[86].mxu0  ;;  %v1712_v13 = vpop.xlane.xlu0 %1711  ;;  %v2070_v29 = vsel %vm71_vm0, %v12667_v7, 0.0  ;;  %9851 = vpow2.f32 %v1948_v4 }
 0x430   :  { %16527 = vst [vmem:[#allocation45_spill] sm:$0xff] %v12670_v24  ;;  %v12672_v51 = vpop.f32.mrb[87].mxu0  ;;  %v12676_v40 = vpop.eup %9841  ;;  %v1956_v39 = vmul.f32 1.442695, %v1879_v58  ;;  %2071 = vadd.xlane.f32.xlu0 %v2070_v29  ;;  %v1878_v31 = vsub.f32 %v12380_v3, %v1712_v13 }
 0x431   :  { %v1733_v16 = vpop.xlane.xlu1 %1732  ;;  %v12681_v2 = vpop.eup %9843  ;;  %v2079_v50 = vsel %vm71_vm0, %v12676_v40, 0.0 }
 0x432   :  { %9853 = vpow2.f32 %v1956_v39  ;;  %v1885_v49 = vsub.f32 %v12407_v46, %v1733_v16  ;;  %1858 = vmax.xlane.f32.xlu1 %v1857_v34  ;;  %v12686_v58 = vpop.eup %9845  ;;  %v1954_v3 = vmul.f32 1.442695, %v1878_v31  ;;  %v2091_v39 = vsel %vm71_vm0, %v12681_v2, 0.0 }
 0x433   :  { %v1730_v10 = vpop.xlane.xlu0 %1729  ;;  %9855 = vpow2.f32 %v1958_v30  ;;  %v2088_v30 = vsel %vm71_vm0, %v12686_v58, 0.0 }
 0x434   :  { %v1968_v4 = vmul.f32 1.442695, %v1885_v49  ;;  %2080 = vadd.xlane.f32.xlu0 %v2079_v50  ;;  %v1884_v46 = vsub.f32 %v12398_v6, %v1730_v10 }
 0x435   :  { %v12688_v48 = vpop.f32.mrb[88].mxu0  ;;  %v1727_v13 = vpop.xlane.xlu1 %1726 }
 0x436   :  { %16528 = vst [vmem:[#allocation46_spill] sm:$0xff] %v12688_v48  ;;  %v12690_v29 = vpop.f32.mrb[89].mxu0  ;;  %9857 = vpow2.f32 %v1968_v4  ;;  %v1883_v16 = vsub.f32 %v12410_v18, %v1727_v13  ;;  %2092 = vadd.xlane.f32.xlu1 %v2091_v39  ;;  %v12698_v49 = vpop.eup %9847  ;;  %v1966_v4 = vmul.f32 1.442695, %v1884_v46 }
 0x437   :  { %16529 = vst [vmem:[#allocation47_spill] sm:$0xff] %v12690_v29  ;;  %v12696_v34 = vpop.f32.mrb[90].mxu0  ;;  %v1724_v50 = vpop.xlane.xlu0 %1723  ;;  %9859 = vpow2.f32 %v1954_v3 }
 0x438   :  { %16530 = vst [vmem:[#allocation48_spill] sm:$0xff] %v12696_v34  ;;  %v12700_v48 = vpop.f32.mrb[91].mxu0  ;;  %v12704_v31 = vpop.eup %9849  ;;  %v1964_v29 = vmul.f32 1.442695, %v1883_v16  ;;  %2089 = vadd.xlane.f32.xlu0 %v2088_v30  ;;  %v1882_v6 = vsub.f32 %v12402_v53, %v1724_v50  ;;  %v2082_v34 = vsel %vm71_vm0, %v12698_v49, 0.0 }
 0x439   :  { %16531 = vst [vmem:[#allocation49_spill] sm:$0xff] %v12700_v48  ;;  %v1745_v10 = vpop.xlane.xlu1 %1744  ;;  %v2103_v18 = vsel %vm71_vm0, %v12704_v31, 0.0  ;;  %v12709_v13 = vpop.eup %9851 }
 0x43a   :  { %9861 = vpow2.f32 %v1964_v29  ;;  %2104 = vadd.xlane.f32.xlu1 %v2103_v18  ;;  %v1889_v16 = vsub.f32 %v12429_v14, %v1745_v10  ;;  %v1962_v53 = vmul.f32 1.442695, %v1882_v6 }
 0x43b   :  { %v1742_v39 = vpop.xlane.xlu0 %1741  ;;  %9863 = vpow2.f32 %v1966_v4 }
 0x43c   :  { %v12713_v32 = vpop.eup %9853  ;;  %2083 = vadd.xlane.f32.xlu0 %v2082_v34  ;;  %v2085_v34 = vsel %vm71_vm0, %v12709_v13, 0.0  ;;  %v1976_v10 = vmul.f32 1.442695, %v1889_v16  ;;  %9865 = vpow2.f32 %v1962_v53 }
 0x43d   :  { %v12716_v3 = vpop.f32.mrb[92].mxu0  ;;  %v1739_v50 = vpop.xlane.xlu1 %1738  ;;  %v2097_v29 = vsel %vm71_vm0, %v12713_v32, 0.0 }
 0x43e   :  { %16532 = vst [vmem:[#allocation50_spill] sm:$0xff] %v12716_v3  ;;  %v12718_v30 = vpop.f32.mrb[93].mxu0  ;;  %v1887_v46 = vsub.f32 %v12432_v61, %v1739_v50  ;;  %2098 = vadd.xlane.f32.xlu1 %v2097_v29  ;;  %v12725_v48 = vpop.eup %9855 }
 0x43f   :  { %16533 = vst [vmem:[#allocation51_spill] sm:$0xff] %v12718_v30  ;;  %v12723_v18 = vpop.f32.mrb[94].mxu0  ;;  %v1736_v63 = vpop.xlane.xlu0 %1735 }
 0x440   :  { %16534 = vst [vmem:[#allocation52_spill] sm:$0xff] %v12723_v18  ;;  %v12727_v14 = vpop.f32.mrb[95].mxu0  ;;  %v12731_v6 = vpop.eup %9857  ;;  %v1972_v3 = vmul.f32 1.442695, %v1887_v46  ;;  %2086 = vadd.xlane.f32.xlu0 %v2085_v34  ;;  %v1886_v4 = vsub.f32 %v12424_v15, %v1736_v63  ;;  %v2100_v18 = vsel %vm71_vm0, %v12725_v48, 0.0  ;;  %v1888_v34 = vsub.f32 %v12420_v52, %v1742_v39 }
 0x441   :  { %16535 = vst [vmem:[#allocation53_spill] sm:$0xff] %v12727_v14  ;;  %v2115_v50 = vsel %vm71_vm0, %v12731_v6, 0.0  ;;  %v12736_v29 = vpop.eup %9859 }
 0x442   :  { %9867 = vpow2.f32 %v1972_v3  ;;  %2116 = vadd.xlane.f32.xlu1 %v2115_v50  ;;  %v1970_v15 = vmul.f32 1.442695, %v1886_v4  ;;  %v1974_v39 = vmul.f32 1.442695, %v1888_v34 }
 0x443   :  { %v1754_v30 = vpop.xlane.xlu0 %1753  ;;  %9869 = vpow2.f32 %v1976_v10 }
 0x444   :  { %v1757_v61 = vpop.xlane.xlu1 %1756  ;;  %v12740_v14 = vpop.eup %9861  ;;  %2101 = vadd.xlane.f32.xlu0 %v2100_v18  ;;  %9871 = vpow2.f32 %v1970_v15 }
 0x445   :  { %v1893_v16 = vsub.f32 %v12451_v60, %v1757_v61  ;;  %v12743_v53 = vpop.f32.mrb[96].mxu0  ;;  %v2109_v3 = vsel %vm71_vm0, %v12740_v14, 0.0  ;;  %v2094_v60 = vsel %vm71_vm0, %v12736_v29, 0.0  ;;  %v12757_v18 = vpop.eup %9863 }
 0x446   :  { %16536 = vst [vmem:[#allocation54_spill] sm:$0xff] %v12743_v53  ;;  %v12745_v46 = vpop.f32.mrb[97].mxu0  ;;  %2110 = vadd.xlane.f32.xlu1 %v2109_v3 }
 0x447   :  { %16537 = vst [vmem:[#allocation55_spill] sm:$0xff] %v12745_v46  ;;  %v12751_v24 = vpop.f32.mrb[98].mxu0  ;;  %v1748_v10 = vpop.xlane.xlu0 %1747  ;;  %v1984_v4 = vmul.f32 1.442695, %v1893_v16  ;;  %v2112_v46 = vsel %vm71_vm0, %v12757_v18, 0.0 }
 0x448   :  { %v1751_v63 = vpop.xlane.xlu1 %1750  ;;  %16538 = vst [vmem:[#allocation56_spill] sm:$0xff] %v12751_v24  ;;  %v12753_v21 = vpop.f32.mrb[99].mxu0  ;;  %2095 = vadd.xlane.f32.xlu0 %v2094_v60  ;;  %v1890_v53 = vsub.f32 %v12446_v26, %v1748_v10 }
 0x449   :  { %v1891_v50 = vsub.f32 %v12454_v55, %v1751_v63  ;;  %v1863_v55 = vsel %vm71_vm0, %v12607_v19, -inf  ;;  %v12762_v63 = vpop.eup %9865 }
 0x44a   :  { %1864 = vmax.xlane.f32.xlu1 %v1863_v55  ;;  %v1978_v15 = vmul.f32 1.442695, %v1890_v53  ;;  %v2106_v53 = vsel %vm71_vm0, %v12762_v63, 0.0 }
 0x44b   :  { %v1980_v61 = vmul.f32 1.442695, %v1891_v50  ;;  %v1766_v3 = vpop.xlane.xlu0 %1765 }
 0x44c   :  { %v12766_v24 = vpop.eup %9867  ;;  %2113 = vadd.xlane.f32.xlu0 %v2112_v46 }
 0x44d   :  { %v1769_v52 = vpop.xlane.xlu1 %1768  ;;  %9873 = vpow2.f32 %v1980_v61  ;;  %v12769_v26 = vpop.f32.mrb[100].mxu0  ;;  %v2121_v34 = vsel %vm71_vm0, %v12766_v24, 0.0  ;;  %v1892_v61 = vsub.f32 %v12442_v57, %v1754_v30 }
 0x44e   :  { %9875 = vpow2.f32 %v1984_v4  ;;  %v1897_v16 = vsub.f32 %v12473_v54, %v1769_v52  ;;  %16539 = vst [vmem:[#allocation57_spill] sm:$0xff] %v12769_v26  ;;  %v12771_v10 = vpop.f32.mrb[101].mxu0  ;;  %v12775_v60 = vpop.eup %9869  ;;  %2122 = vadd.xlane.f32.xlu1 %v2121_v34  ;;  %v1860_v34 = vsel %vm71_vm0, %v12601_v1, -inf }
 0x44f   :  { %16540 = vst [vmem:[#allocation58_spill] sm:$0xff] %v12771_v10  ;;  %9877 = vpow2.f32 %v1974_v39  ;;  %v12779_v4 = vpop.f32.mrb[102].mxu0  ;;  %v1760_v54 = vpop.xlane.xlu0 %1759  ;;  %v2127_v57 = vsel %vm71_vm0, %v12775_v60, 0.0 }
 0x450   :  { %16541 = vst [vmem:[#allocation59_spill] sm:$0xff] %v12779_v4  ;;  %v12781_v46 = vpop.f32.mrb[103].mxu0  ;;  %v1992_v52 = vmul.f32 1.442695, %v1897_v16  ;;  %2107 = vadd.xlane.f32.xlu0 %v2106_v53  ;;  %9879 = vpow2.f32 %v1978_v15  ;;  %v1894_v10 = vsub.f32 %v12468_v20, %v1760_v54  ;;  %v12788_v30 = vpop.eup %9871  ;;  %v1896_v53 = vsub.f32 %v12464_v45, %v1766_v3 }
 0x451   :  { %v1763_v50 = vpop.xlane.xlu1 %1762  ;;  %16542 = vst [vmem:[#allocation60_spill] sm:$0xff] %v12781_v46 }
 0x452   :  { %v1895_v55 = vsub.f32 %v12476_v33, %v1763_v50  ;;  %v1982_v33 = vmul.f32 1.442695, %v1892_v61  ;;  %2128 = vadd.xlane.f32.xlu1 %v2127_v57  ;;  %v1986_v15 = vmul.f32 1.442695, %v1894_v10  ;;  %v2118_v10 = vsel %vm71_vm0, %v12788_v30, 0.0 }
 0x454   :  { %v1988_v26 = vmul.f32 1.442695, %v1895_v55  ;;  %1861 = vmax.xlane.f32.xlu0 %v1860_v34 }
 0x455   :  { %v1778_v50 = vpop.xlane.xlu0 %1777  ;;  %v12795_v20 = vpop.f32.mrb[104].mxu0 }
 0x456   :  { %9881 = vpow2.f32 %v1988_v26  ;;  %16543 = vst [vmem:[#allocation61_spill] sm:$0xff] %v12795_v20  ;;  %v12797_v54 = vpop.f32.mrb[105].mxu0 }
 0x457   :  { %v1781_v39 = vpop.xlane.xlu1 %1780  ;;  %v12792_v4 = vpop.eup %9873  ;;  %9883 = vpow2.f32 %v1992_v52  ;;  %16544 = vst [vmem:[#allocation62_spill] sm:$0xff] %v12797_v54 }
 0x458   :  { %v1901_v16 = vsub.f32 %v12495_v5, %v1781_v39  ;;  %v2133_v26 = vsel %vm71_vm0, %v12792_v4, 0.0  ;;  %v12801_v61 = vpop.eup %9875  ;;  %9885 = vpow2.f32 %v1982_v33  ;;  %v12805_v52 = vpop.f32.mrb[106].mxu0  ;;  %2119 = vadd.xlane.f32.xlu0 %v2118_v10 }
 0x459   :  { %2134 = vadd.xlane.f32.xlu1 %v2133_v26  ;;  %16545 = vst [vmem:[#allocation63_spill] sm:$0xff] %v12805_v52  ;;  %v1772_v5 = vpop.xlane.xlu0 %1771  ;;  %v12807_v39 = vpop.f32.mrb[107].mxu0  ;;  %9887 = vpow2.f32 %v1986_v15  ;;  %v2139_v45 = vsel %vm71_vm0, %v12801_v61, 0.0  ;;  %v1900_v15 = vsub.f32 %v12486_v28, %v1778_v50 }
 0x45a   :  { %16546 = vst [vmem:[#allocation64_spill] sm:$0xff] %v12807_v39  ;;  %v12811_v34 = vpop.eup %9877  ;;  %v2000_v20 = vmul.f32 1.442695, %v1901_v16  ;;  %v1898_v3 = vsub.f32 %v12490_v56, %v1772_v5 }
 0x45b   :  { %v1775_v55 = vpop.xlane.xlu1 %1774  ;;  %v2124_v26 = vsel %vm71_vm0, %v12811_v34, 0.0 }
 0x45c   :  { %v1899_v57 = vsub.f32 %v12498_v59, %v1775_v55  ;;  %v1990_v59 = vmul.f32 1.442695, %v1896_v53  ;;  %v12816_v55 = vpop.eup %9879  ;;  %2125 = vadd.xlane.f32.xlu0 %v2124_v26  ;;  %v1994_v53 = vmul.f32 1.442695, %v1898_v3 }
 0x45d   :  { %2140 = vadd.xlane.f32.xlu1 %v2139_v45  ;;  %v12822_v16 = vpop.f32.mrb[108].mxu0  ;;  %v2130_v26 = vsel %vm71_vm0, %v12816_v55, 0.0 }
 0x45e   :  { %v1996_v54 = vmul.f32 1.442695, %v1899_v57  ;;  %16547 = vst [vmem:[#allocation65_spill] sm:$0xff] %v12822_v16  ;;  %v12825_v10 = vpop.f32.mrb[109].mxu0  ;;  %v1998_v16 = vmul.f32 1.442695, %v1900_v15 }
 0x45f   :  { %v1790_v33 = vpop.xlane.xlu1 %1789  ;;  %16548 = vst [vmem:[#allocation66_spill] sm:$0xff] %v12825_v10  ;;  %v1784_v5 = vpop.xlane.xlu0 %1783 }
 0x460   :  { %9889 = vpow2.f32 %v1996_v54  ;;  %v12820_v52 = vpop.eup %9881  ;;  %v12831_v45 = vpop.f32.mrb[110].mxu0  ;;  %2131 = vadd.xlane.f32.xlu0 %v2130_v26  ;;  %v1902_v3 = vsub.f32 %v12510_v44, %v1784_v5 }
 0x461   :  { %9891 = vpow2.f32 %v2000_v20  ;;  %v2145_v56 = vsel %vm71_vm0, %v12820_v52, 0.0  ;;  %v12829_v54 = vpop.eup %9883  ;;  %16549 = vst [vmem:[#allocation67_spill] sm:$0xff] %v12831_v45  ;;  %v12833_v20 = vpop.f32.mrb[111].mxu0 }
 0x462   :  { %9893 = vpow2.f32 %v1990_v59  ;;  %2146 = vadd.xlane.f32.xlu1 %v2145_v56  ;;  %16550 = vst [vmem:[#allocation68_spill] sm:$0xff] %v12833_v20  ;;  %v12837_v28 = vpop.eup %9885  ;;  %v2151_v59 = vsel %vm71_vm0, %v12829_v54, 0.0  ;;  %v2002_v5 = vmul.f32 1.442695, %v1902_v3 }
 0x463   :  { %v1793_v57 = vpop.xlane.xlu1 %1792  ;;  %9895 = vpow2.f32 %v1994_v53  ;;  %v12844_v45 = vpop.eup %9887  ;;  %v2136_v20 = vsel %vm71_vm0, %v12837_v28, 0.0 }
 0x464   :  { %v1905_v50 = vsub.f32 %v12515_v12, %v1793_v57  ;;  %2137 = vadd.xlane.f32.xlu0 %v2136_v20  ;;  %9897 = vpow2.f32 %v1998_v16  ;;  %v2142_v16 = vsel %vm71_vm0, %v12844_v45, 0.0 }
 0x465   :  { %v12850_v26 = vpop.f32.mrb[112].mxu0 }
 0x466   :  { %2152 = vadd.xlane.f32.xlu1 %v2151_v59  ;;  %v2008_v12 = vmul.f32 1.442695, %v1905_v50  ;;  %v1802_v57 = vpop.xlane.xlu0 %1801  ;;  %16551 = vst [vmem:[#allocation69_spill] sm:$0xff] %v12850_v26  ;;  %v12852_v46 = vpop.f32.mrb[113].mxu0 }
 0x467   :  { %v1787_v10 = vpop.xlane.xlu1 %1786  ;;  %16552 = vst [vmem:[#allocation70_spill] sm:$0xff] %v12852_v46  ;;  %v12859_v50 = vpop.f32.mrb[114].mxu0 }
 0x468   :  { %v1903_v56 = vsub.f32 %v12517_v42, %v1787_v10  ;;  %v1904_v10 = vsub.f32 %v12508_v35, %v1790_v33  ;;  %16554 = vst [vmem:[#allocation72_spill] sm:$0xff] %v12859_v50  ;;  %v12861_v59 = vpop.f32.mrb[115].mxu0  ;;  %2143 = vadd.xlane.f32.xlu0 %v2142_v16 }
 0x469   :  { %16555 = vst [vmem:[#allocation73_spill] sm:$0xff] %v12861_v59 }
 0x46a   :  { %v12848_v39 = vpop.eup %9889  ;;  %v2004_v15 = vmul.f32 1.442695, %v1903_v56  ;;  %v2006_v33 = vmul.f32 1.442695, %v1904_v10  ;;  %v1908_v10 = vsub.f32 %v12525_v62, %v1802_v57 }
 0x46b   :  { %v1796_v53 = vpop.xlane.xlu1 %1795  ;;  %v2157_v44 = vsel %vm71_vm0, %v12848_v39, 0.0  ;;  %v12856_v42 = vpop.eup %9891 }
 0x46c   :  { %16553 = vst [vmem:[#allocation71_spill] sm:$0xff] %v12856_v42  ;;  %9899 = vpow2.f32 %v2004_v15  ;;  %2158 = vadd.xlane.f32.xlu1 %v2157_v44  ;;  %v12865_v20 = vpop.eup %9893  ;;  %v1906_v26 = vsub.f32 %v12527_v11, %v1796_v53  ;;  %v2163_v35 = vsel %vm71_vm0, %v12856_v42, 0.0 }
 0x46d   :  { %9901 = vpow2.f32 %v2008_v12  ;;  %v2148_v3 = vsel %vm71_vm0, %v12865_v20, 0.0  ;;  %v12872_v15 = vpop.eup %9895  ;;  %v12875_v16 = vpop.f32.mrb[116].mxu0 }
 0x46e   :  { %9903 = vpow2.f32 %v2002_v5  ;;  %2149 = vadd.xlane.f32.xlu0 %v2148_v3  ;;  %16556 = vst [vmem:[#allocation74_spill] sm:$0xff] %v12875_v16  ;;  %v2010_v50 = vmul.f32 1.442695, %v1906_v26  ;;  %v12877_v53 = vpop.f32.mrb[117].mxu0  ;;  %v12883_v59 = vpop.eup %9897 }
 0x46f   :  { %v1808_v56 = vpop.xlane.xlu0 %1807  ;;  %v1805_v46 = vpop.xlane.xlu1 %1804  ;;  %16557 = vst [vmem:[#allocation75_spill] sm:$0xff] %v12877_v53  ;;  %9905 = vpow2.f32 %v2006_v33  ;;  %16559 = vst [vmem:[#allocation77_spill] sm:$0xff] %v12883_v59  ;;  %v2014_v33 = vmul.f32 1.442695, %v1908_v10 }
 0x470   :  { %2164 = vadd.xlane.f32.xlu1 %v2163_v35  ;;  %v1909_v44 = vsub.f32 %v12531_v41, %v1805_v46  ;;  %v12881_v35 = vpop.f32.mrb[118].mxu0  ;;  %v2154_v41 = vsel %vm71_vm0, %v12872_v15, 0.0  ;;  %9907 = vpow2.f32 %v2010_v50 }
 0x471   :  { %16558 = vst [vmem:[#allocation76_spill] sm:$0xff] %v12881_v35  ;;  %v12885_v42 = vpop.f32.mrb[119].mxu0 }
 0x472   :  { %16560 = vst [vmem:[#allocation78_spill] sm:$0xff] %v12885_v42  ;;  %v2016_v26 = vmul.f32 1.442695, %v1909_v44  ;;  %2155 = vadd.xlane.f32.xlu0 %v2154_v41  ;;  %v2160_v44 = vsel %vm71_vm0, %v12883_v59, 0.0 }
 0x473   :  { %v1811_v12 = vpop.xlane.xlu0 %1810  ;;  %v1799_v11 = vpop.xlane.xlu1 %1798 }
 0x474   :  { %v1907_v5 = vsub.f32 %v12533_v9, %v1799_v11  ;;  %v1911_v3 = vsub.f32 %v12547_v8, %v1811_v12  ;;  %v1910_v11 = vsub.f32 %v12541_v37, %v1808_v56 }
 0x475   :  { %v12901_v50 = vpop.f32.mrb[120].mxu0 }
 0x476   :  { %v12889_v46 = vpop.eup %9899  ;;  %v2012_v16 = vmul.f32 1.442695, %v1907_v5  ;;  %v2020_v8 = vmul.f32 1.442695, %v1911_v3  ;;  %2161 = vadd.xlane.f32.xlu0 %v2160_v44  ;;  %16564 = vst [vmem:[#allocation82_spill] sm:$0xff] %v12901_v50  ;;  %v12903_v5 = vpop.f32.mrb[121].mxu0 }
 0x477   :  { %16561 = vst [vmem:[#allocation79_spill] sm:$0xff] %v12889_v46  ;;  %v1814_v62 = vpop.xlane.xlu1 %1813  ;;  %v2169_v9 = vsel %vm71_vm0, %v12889_v46, 0.0  ;;  %v12894_v57 = vpop.eup %9901  ;;  %16565 = vst [vmem:[#allocation83_spill] sm:$0xff] %v12903_v5  ;;  %v2018_v37 = vmul.f32 1.442695, %v1910_v11 }
 0x478   :  { %16562 = vst [vmem:[#allocation80_spill] sm:$0xff] %v12894_v57  ;;  %9909 = vpow2.f32 %v2012_v16  ;;  %2170 = vadd.xlane.f32.xlu1 %v2169_v9  ;;  %v1829_v53 = vpop.xlane.xlu0 %1828  ;;  %v12899_v35 = vpop.eup %9903  ;;  %v2175_v10 = vsel %vm71_vm0, %v12894_v57, 0.0  ;;  %v1912_v56 = vsub.f32 %v12539_v17, %v1814_v62  ;;  %v16566_v16 = vld [vmem:[#allocation27_spill] sm:$0xff] }
 0x479   :  { %16563 = vst [vmem:[#allocation81_spill] sm:$0xff] %v12899_v35  ;;  %9911 = vpow2.f32 %v2016_v26  ;;  %v12909_v9 = vpop.f32.mrb[122].mxu0  ;;  %v2166_v44 = vsel %vm71_vm0, %v12899_v35, 0.0  ;;  %v12917_v50 = vpop.eup %9905 }
 0x47a   :  { %9913 = vpow2.f32 %v2014_v33  ;;  %16567 = vst [vmem:[#allocation27_spill] sm:$0xff] %v12909_v9  ;;  %v12913_v3 = vpop.f32.mrb[123].mxu0  ;;  %16569 = vst [vmem:[#allocation85_spill] sm:$0xff] %v12917_v50  ;;  %2167 = vadd.xlane.f32.xlu0 %v2166_v44  ;;  %v2022_v17 = vmul.f32 1.442695, %v1912_v56  ;;  %v12919_v62 = vpop.eup %9907  ;;  %v16573_v9 = vld [vmem:[#allocation29_spill] sm:$0xff] }
 0x47b   :  { %v1817_v12 = vpop.xlane.xlu1 %1816  ;;  %16568 = vst [vmem:[#allocation84_spill] sm:$0xff] %v12913_v3  ;;  %9915 = vpow2.f32 %v2020_v8  ;;  %16570 = vst [vmem:[#allocation86_spill] sm:$0xff] %v12919_v62  ;;  %v16576_v44 = vld [vmem:[#allocation8_spill] sm:$0xff] }
 0x47c   :  { %v1913_v41 = vsub.f32 %v16566_v16, %v1817_v12  ;;  %2176 = vadd.xlane.f32.xlu1 %v2175_v10  ;;  %9917 = vpow2.f32 %v2018_v37  ;;  %v2172_v12 = vsel %vm71_vm0, %v12917_v50, 0.0 }
 0x47d   :  { %v12925_v16 = vpop.f32.mrb[124].mxu0 }
 0x47e   :  { %v12911_v26 = vpop.xlane.xlu0 %1837  ;;  %v2024_v5 = vmul.f32 1.442695, %v1913_v41  ;;  %2173 = vadd.xlane.f32.xlu0 %v2172_v12  ;;  %16572 = vst [vmem:[#allocation88_spill] sm:$0xff] %v12925_v16  ;;  %v12928_v41 = vpop.f32.mrb[125].mxu0  ;;  %v16579_v16 = vld [vmem:[#allocation24_spill] sm:$0xff] }
 0x47f   :  { %v1826_v33 = vpop.xlane.xlu1 %1825  ;;  %16574 = vst [vmem:[#allocation29_spill] sm:$0xff] %v12928_v41  ;;  %v12935_v57 = vpop.f32.mrb[126].mxu0  ;;  %v1917_v41 = vsub.f32 %v16579_v16, %v1829_v53 }
 0x480   :  { %9919 = vpow2.f32 %v2024_v5  ;;  %v1916_v3 = vsub.f32 %v16573_v9, %v1826_v33  ;;  %16577 = vst [vmem:[#allocation8_spill] sm:$0xff] %v12935_v57  ;;  %v12937_v12 = vpop.f32.mrb[127].mxu0  ;;  %v2178_v9 = vsel %vm71_vm0, %v12919_v62, 0.0  ;;  %v16582_v57 = vld [vmem:[#allocation18_spill] sm:$0xff] }
 0x481   :  { %9921 = vpow2.f32 %v2022_v17  ;;  %16578 = vst [vmem:[#allocation90_spill] sm:$0xff] %v12937_v12 }
 0x482   :  { %v1832_v11 = vpop.xlane.xlu0 %1831  ;;  %v12923_v10 = vpop.eup %9909  ;;  %2179 = vadd.xlane.f32.xlu0 %v2178_v9 }
 0x483   :  { %16571 = vst [vmem:[#allocation87_spill] sm:$0xff] %v12923_v10  ;;  %v1820_v8 = vpop.xlane.xlu1 %1819  ;;  %v2181_v37 = vsel %vm71_vm0, %v12923_v10, 0.0  ;;  %v12932_v56 = vpop.eup %9911  ;;  %v2030_v10 = vmul.f32 1.442695, %v1916_v3  ;;  %v16583_v3 = vld [vmem:[#allocation20_spill] sm:$0xff] }
 0x484   :  { %16575 = vst [vmem:[#allocation89_spill] sm:$0xff] %v12932_v56  ;;  %v1914_v42 = vsub.f32 %v16576_v44, %v1820_v8  ;;  %2182 = vadd.xlane.f32.xlu1 %v2181_v37  ;;  %v12941_v33 = vpop.eup %9913  ;;  %v2187_v17 = vsel %vm71_vm0, %v12932_v56, 0.0  ;;  %v16581_v37 = vld [vmem:[#allocation15_spill] sm:$0xff] }
 0x485   :  { %v12946_v8 = vpop.eup %9915  ;;  %v1918_v44 = vsub.f32 %v16581_v37, %v1832_v11  ;;  %v2184_v35 = vsel %vm71_vm0, %v12941_v33, 0.0  ;;  %v12955_v56 = vpop.f32.mrb[128].mxu0 }
 0x486   :  { %v1835_v5 = vpop.xlane.xlu0 %1834  ;;  %v2026_v50 = vmul.f32 1.442695, %v1914_v42  ;;  %16580 = vst [vmem:[#allocation24_spill] sm:$0xff] %v12946_v8  ;;  %v12952_v53 = vpop.eup %9917  ;;  %v2032_v42 = vmul.f32 1.442695, %v1917_v41  ;;  %2185 = vadd.xlane.f32.xlu0 %v2184_v35  ;;  %16584 = vst [vmem:[#allocation15_spill] sm:$0xff] %v12955_v56 }
 0x487   :  { %v1823_v46 = vpop.xlane.xlu1 %1822  ;;  %v1919_v16 = vsub.f32 %v16583_v3, %v1835_v5  ;;  %v12957_v11 = vpop.f32.mrb[129].mxu0  ;;  %v2034_v37 = vmul.f32 1.442695, %v1918_v44  ;;  %v16591_v56 = vld [vmem:[#allocation7_spill] sm:$0xff] }
 0x488   :  { %9923 = vpow2.f32 %v2026_v50  ;;  %v1915_v12 = vsub.f32 %v16582_v57, %v1823_v46  ;;  %2188 = vadd.xlane.f32.xlu1 %v2187_v17  ;;  %16585 = vst [vmem:[#allocation18_spill] sm:$0xff] %v12957_v11  ;;  %v2193_v46 = vsel %vm71_vm0, %v12946_v8, 0.0  ;;  %v16587_v50 = vld [vmem:[#allocation9_spill] sm:$0xff]  ;;  %v12965_v41 = vpop.f32.mrb[130].mxu0 }
 0x489   :  { %9925 = vpow2.f32 %v2030_v10  ;;  %v1920_v17 = vsub.f32 %v16587_v50, %v12911_v26  ;;  %16588 = vst [vmem:[#allocation9_spill] sm:$0xff] %v12965_v41  ;;  %v12967_v5 = vpop.f32.mrb[131].mxu0  ;;  %v2190_v10 = vsel %vm71_vm0, %v12952_v53, 0.0  ;;  %v2036_v3 = vmul.f32 1.442695, %v1919_v16 }
 0x48a   :  { %v1850_v62 = vpop.xlane.xlu0 %1849  ;;  %v2028_v9 = vmul.f32 1.442695, %v1915_v12  ;;  %v12961_v57 = vpop.eup %9919  ;;  %16589 = vst [vmem:[#allocation91_spill] sm:$0xff] %v12967_v5  ;;  %2191 = vadd.xlane.f32.xlu0 %v2190_v10  ;;  %v16595_v10 = vld [vmem:[#allocation25_spill] sm:$0xff] }
 0x48b   :  { %v1841_v59 = vpop.xlane.xlu1 %1840  ;;  %16586 = vst [vmem:[#allocation20_spill] sm:$0xff] %v12961_v57  ;;  %v12971_v12 = vpop.eup %9921  ;;  %v2199_v26 = vsel %vm71_vm0, %v12961_v57, 0.0  ;;  %v2038_v44 = vmul.f32 1.442695, %v1920_v17  ;;  %v1924_v17 = vsub.f32 %v16595_v10, %v1850_v62  ;;  %v16596_v5 = vld [vmem:[#allocation17_spill] sm:$0xff] }
 0x48c   :  { %9927 = vpow2.f32 %v2028_v9  ;;  %2194 = vadd.xlane.f32.xlu1 %v2193_v46  ;;  %16590 = vst [vmem:[#allocation92_spill] sm:$0xff] %v12971_v12  ;;  %v1921_v11 = vsub.f32 %v16591_v56, %v1841_v59  ;;  %v16592_v9 = vld [vmem:[#allocation33_spill] sm:$0xff]  ;;  %v2196_v50 = vsel %vm71_vm0, %v12971_v12, 0.0 }
 0x48d   :  { %9929 = vpow2.f32 %v2032_v42  ;;  %v12981_v16 = vpop.f32.mrb[132].mxu0 }
 0x48e   :  { %v1844_v35 = vpop.xlane.xlu0 %1843  ;;  %9931 = vpow2.f32 %v2034_v37  ;;  %v2040_v42 = vmul.f32 1.442695, %v1921_v11  ;;  %2197 = vadd.xlane.f32.xlu0 %v2196_v50  ;;  %16593 = vst [vmem:[#allocation7_spill] sm:$0xff] %v12981_v16  ;;  %v12983_v56 = vpop.f32.mrb[133].mxu0  ;;  %v16599_v50 = vld [vmem:[#allocation14_spill] sm:$0xff] }
 0x48f   :  { %v1853_v8 = vpop.xlane.xlu1 %1852  ;;  %v1922_v46 = vsub.f32 %v16592_v9, %v1844_v35  ;;  %9933 = vpow2.f32 %v2036_v3  ;;  %16594 = vst [vmem:[#allocation33_spill] sm:$0xff] %v12983_v56 }
 0x490   :  { %2200 = vadd.xlane.f32.xlu1 %v2199_v26  ;;  %9935 = vpow2.f32 %v2038_v44  ;;  %v12987_v26 = vpop.f32.mrb[134].mxu0  ;;  %v1925_v44 = vsub.f32 %v16599_v50, %v1853_v8 }
 0x491   :  { %v2042_v37 = vmul.f32 1.442695, %v1922_v46  ;;  %16597 = vst [vmem:[#allocation25_spill] sm:$0xff] %v12987_v26  ;;  %v12991_v12 = vpop.f32.mrb[135].mxu0  ;;  %9937 = vpow2.f32 %v2040_v42  ;;  %v2046_v46 = vmul.f32 1.442695, %v1924_v17 }
 0x492   :  { %v12979_v41 = vpop.eup %9923  ;;  %v1856_v57 = vpop.xlane.xlu0 %1855  ;;  %16598 = vst [vmem:[#allocation17_spill] sm:$0xff] %v12991_v12  ;;  %v2048_v42 = vmul.f32 1.442695, %v1925_v44 }
 0x493   :  { %v1847_v59 = vpop.xlane.xlu1 %1846  ;;  %v12989_v9 = vpop.eup %9925  ;;  %v2202_v11 = vsel %vm71_vm0, %v12979_v41, 0.0  ;;  %9939 = vpow2.f32 %v2042_v37 }
 0x494   :  { %v1923_v35 = vsub.f32 %v16596_v5, %v1847_v59  ;;  %2203 = vadd.xlane.f32.xlu0 %v2202_v11  ;;  %v16600_v59 = vld [vmem:[#allocation40_spill] sm:$0xff]  ;;  %v2208_v56 = vsel %vm71_vm0, %v12989_v9, 0.0 }
 0x495   :  { %v1926_v10 = vsub.f32 %v16600_v59, %v1856_v57  ;;  %v13007_v8 = vpop.f32.mrb[136].mxu0 }
 0x496   :  { %v12995_v3 = vpop.eup %9927  ;;  %v2044_v16 = vmul.f32 1.442695, %v1923_v35  ;;  %16602 = vst [vmem:[#allocation40_spill] sm:$0xff] %v13007_v8  ;;  %v13009_v35 = vpop.f32.mrb[137].mxu0 }
 0x497   :  { %v2205_v62 = vsel %vm71_vm0, %v12995_v3, 0.0  ;;  %v13000_v5 = vpop.eup %9929  ;;  %16603 = vst [vmem:[#allocation93_spill] sm:$0xff] %v13009_v35  ;;  %v2050_v57 = vmul.f32 1.442695, %v1926_v10  ;;  %v13015_v37 = vpop.f32.mrb[138].mxu0 }
 0x498   :  { %2206 = vadd.xlane.f32.xlu1 %v2205_v62  ;;  %v13005_v26 = vpop.eup %9931  ;;  %9941 = vpow2.f32 %v2044_v16  ;;  %2209 = vadd.xlane.f32.xlu0 %v2208_v56  ;;  %v2211_v11 = vsel %vm71_vm0, %v13000_v5, 0.0  ;;  %16605 = vst [vmem:[#allocation95_spill] sm:$0xff] %v13015_v37  ;;  %v13017_v50 = vpop.f32.mrb[139].mxu0 }
 0x499   :  { %16601 = vst [vmem:[#allocation14_spill] sm:$0xff] %v13005_v26  ;;  %v13013_v17 = vpop.eup %9933  ;;  %9943 = vpow2.f32 %v2046_v46  ;;  %16606 = vst [vmem:[#allocation96_spill] sm:$0xff] %v13017_v50  ;;  %v2214_v16 = vsel %vm71_vm0, %v13005_v26, 0.0 }
 0x49a   :  { %16604 = vst [vmem:[#allocation94_spill] sm:$0xff] %v13013_v17  ;;  %v13021_v56 = vpop.eup %9935  ;;  %9945 = vpow2.f32 %v2048_v42  ;;  %v2217_v44 = vsel %vm71_vm0, %v13013_v17, 0.0 }
 0x49b   :  { %16607 = vst [vmem:[#allocation97_spill] sm:$0xff] %v13021_v56  ;;  %v13025_v62 = vpop.eup %9937  ;;  %9947 = vpow2.f32 %v2050_v57  ;;  %v2220_v46 = vsel %vm71_vm0, %v13021_v56, 0.0 }
 0x49c   :  { %2212 = vadd.xlane.f32.xlu1 %v2211_v11  ;;  %2215 = vadd.xlane.f32.xlu0 %v2214_v16  ;;  %16608 = vst [vmem:[#allocation98_spill] sm:$0xff] %v13025_v62  ;;  %v2223_v42 = vsel %vm71_vm0, %v13025_v62, 0.0 }
 0x49d   :  { %v13029_v59 = vpop.eup %9939  ;;  %v13031_v10 = vpop.f32.mrb[140].mxu0 }
 0x49e   :  { %16609 = vst [vmem:[#allocation99_spill] sm:$0xff] %v13029_v59  ;;  %16610 = vst [vmem:[#allocation100_spill] sm:$0xff] %v13031_v10  ;;  %v13033_v11 = vpop.f32.mrb[141].mxu0 }
 0x49f   :  { %16611 = vst [vmem:[#allocation101_spill] sm:$0xff] %v13033_v11  ;;  %v13039_v8 = vpop.f32.mrb[142].mxu0 }
 0x4a0   :  { %2218 = vadd.xlane.f32.xlu1 %v2217_v44  ;;  %2221 = vadd.xlane.f32.xlu0 %v2220_v46  ;;  %16613 = vst [vmem:[#allocation103_spill] sm:$0xff] %v13039_v8  ;;  %v13041_v57 = vpop.f32.mrb[143].mxu0  ;;  %v2226_v44 = vsel %vm71_vm0, %v13029_v59, 0.0 }
 0x4a1   :  { %16614 = vst [vmem:[#allocation104_spill] sm:$0xff] %v13041_v57 }
 0x4a2   :  { %v13037_v16 = vpop.eup %9941 }
 0x4a3   :  { %16612 = vst [vmem:[#allocation102_spill] sm:$0xff] %v13037_v16  ;;  %v13045_v35 = vpop.eup %9943  ;;  %v2229_v46 = vsel %vm71_vm0, %v13037_v16, 0.0 }
 0x4a4   :  { %2224 = vadd.xlane.f32.xlu1 %v2223_v42  ;;  %16615 = vst [vmem:[#allocation105_spill] sm:$0xff] %v13045_v35  ;;  %2227 = vadd.xlane.f32.xlu0 %v2226_v44  ;;  %v13049_v10 = vpop.eup %9945  ;;  %v2232_v11 = vsel %vm71_vm0, %v13045_v35, 0.0 }
 0x4a5   :  { %16616 = vst [vmem:[#allocation106_spill] sm:$0xff] %v13049_v10  ;;  %v13053_v42 = vpop.eup %9947  ;;  %v2235_v8 = vsel %vm71_vm0, %v13049_v10, 0.0 }
 0x4a6   :  { %16617 = vst [vmem:[#allocation107_spill] sm:$0xff] %v13053_v42  ;;  %v2238_v57 = vsel %vm71_vm0, %v13053_v42, 0.0 }
 0x4a8   :  { %2230 = vadd.xlane.f32.xlu1 %v2229_v46  ;;  %2233 = vadd.xlane.f32.xlu0 %v2232_v11 }
 0x4ac   :  { %2236 = vadd.xlane.f32.xlu1 %v2235_v8  ;;  %2239 = vadd.xlane.f32.xlu0 %v2238_v57 }
 0x4ad   :  { %v2066_v44 = vpop.xlane.xlu1 %2065 }
 0x4ae   :  { %9949 = vrcp.f32 %v2066_v44 }
 0x4b1   :  { %v2060_v37 = vpop.xlane.xlu0 %2059 }
 0x4b2   :  { %9951 = vrcp.f32 %v2060_v37 }
 0x4b5   :  { %v2069_v50 = vpop.xlane.xlu1 %2068  ;;  %v2063_v46 = vpop.xlane.xlu0 %2062 }
 0x4b6   :  { %9953 = vrcp.f32 %v2069_v50 }
 0x4b7   :  { %9955 = vrcp.f32 %v2063_v46 }
 0x4b8   :  { %v9950_v16 = vpop.eup %9949 }
 0x4b9   :  { %v2078_v12 = vpop.xlane.xlu0 %2077  ;;  %v2255_v44 = vmul.f32 %v9950_v16, %v12622_v36 }
 0x4bb   :  { %v2075_v35 = vpop.xlane.xlu1 %2074 }
 0x4bc   :  { %9957 = vrcp.f32 %v2075_v35  ;;  %v9952_v10 = vpop.eup %9951 }
 0x4bd   :  { %v2072_v11 = vpop.xlane.xlu0 %2071  ;;  %v2251_v46 = vmul.f32 %v9952_v10, %v12629_v38 }
 0x4be   :  { %9959 = vrcp.f32 %v2072_v11 }
 0x4bf   :  { %v1859_v8 = vpop.xlane.xlu1 %1858  ;;  %9961 = vrcp.f32 %v2078_v12 }
 0x4c0   :  { %v9954_v59 = vpop.eup %9953  ;;  %v1927_v57 = vsub.f32 %v12609_v47, %v1859_v8 }
 0x4c1   :  { %v9956_v42 = vpop.eup %9955  ;;  %v2257_v37 = vmul.f32 %v9954_v59, %v12641_v27  ;;  %v2081_v62 = vpop.xlane.xlu0 %2080  ;;  %v16618_v27 = vld [vmem:[#allocation16_spill] sm:$0xff]  ;;  %v16619_v59 = vld [vmem:[#allocation21_spill] sm:$0xff] }
 0x4c2   :  { %v2052_v50 = vmul.f32 1.442695, %v1927_v57  ;;  %9963 = vrcp.f32 %v2081_v62  ;;  %v2253_v35 = vmul.f32 %v9956_v42, %v12634_v43 }
 0x4c3   :  { %v2379_v56 = vpack.c.bf16 %v2257_v37, %v2255_v44  ;;  %v2093_v11 = vpop.xlane.xlu1 %2092 }
 0x4c4   :  { %9965 = vpow2.f32 %v2052_v50  ;;  %v2378_v17 = vpack.c.bf16 %v2253_v35, %v2251_v46  ;;  %v16621_v50 = vld [vmem:[#allocation34_spill] sm:$0xff] }
 0x4c5   :  { %v2090_v26 = vpop.xlane.xlu0 %2089 }
 0x4c6   :  { %v9958_v12 = vpop.eup %9957  ;;  %9346 = vmatprep.mubr.msk.bf16.mxu1 %vm71_vm0, %v2378_v17  ;;  %9967 = vrcp.f32 %v2090_v26  ;;  %v16620_v17 = vld [vmem:[#allocation32_spill] sm:$0xff] }
 0x4c7   :  { %9347 = vmatmul.mubr.msk.bf16.vlgmr.msra.gmra.mrb[32].mxu1 %vm71_vm0, %v2379_v56  ;;  %v2105_v47 = vpop.xlane.xlu1 %2104  ;;  %v2261_v43 = vmul.f32 %v9958_v12, %v12658_v23 }
 0x4c8   :  { %v9960_v36 = vpop.eup %9959  ;;  %9483 = vmatpush3.bf16.msra.mxu1 %v16618_v27 }
 0x4c9   :  { %9484 = vmatprep.subr.bf16.mxu1 %v16619_v59  ;;  %v2084_v62 = vpop.xlane.xlu0 %2083  ;;  %v2259_v38 = vmul.f32 %v9960_v36, %v12667_v7  ;;  %v9962_v10 = vpop.eup %9961 }
 0x4ca   :  { %9969 = vrcp.f32 %v2084_v62  ;;  %v2263_v57 = vmul.f32 %v9962_v10, %v12653_v25 }
 0x4cb   :  { %v2099_v16 = vpop.xlane.xlu1 %2098  ;;  %v2380_v42 = vpack.c.bf16 %v2261_v43, %v2259_v38  ;;  %9971 = vrcp.f32 %v2093_v11 }
 0x4cc   :  { %v9964_v8 = vpop.eup %9963  ;;  %9485 = vmatpush3.bf16.msra.mxu1 %v16619_v59 }
 0x4cd   :  { %9486 = vmatprep.subr.bf16.mxu1 %v16620_v17  ;;  %9350 = vmatprep.mubr.msk.bf16.mxu1 %vm71_vm0, %v2380_v42  ;;  %v2087_v56 = vpop.xlane.xlu0 %2086  ;;  %v2265_v7 = vmul.f32 %v9964_v8, %v12676_v40 }
 0x4ce   :  { %v13075_v44 = vpop.eup %9965  ;;  %9973 = vrcp.f32 %v2087_v56 }
 0x4cf   :  { %v2117_v23 = vpop.xlane.xlu1 %2116  ;;  %v2241_v26 = vsel %vm71_vm0, %v13075_v44, 0.0  ;;  %v2381_v37 = vpack.c.bf16 %v2265_v7, %v2263_v57 }
 0x4d0   :  { %9487 = vmatpush3.bf16.msra.mxu1 %v16620_v17  ;;  %2242 = vadd.xlane.f32.xlu1 %v2241_v26  ;;  %v9968_v40 = vpop.eup %9967 }
 0x4d1   :  { %9488 = vmatprep.subr.bf16.mxu1 %v16621_v50  ;;  %9351 = vmatmul.mubr.msk.bf16.gmra.mrb[36].mxu1 %vm71_vm0, %v2381_v37  ;;  %v2102_v46 = vpop.xlane.xlu0 %2101  ;;  %v2271_v62 = vmul.f32 %v9968_v40, %v12686_v58 }
 0x4d2   :  { %9975 = vrcp.f32 %v2102_v46 }
 0x4d3   :  { %v2111_v25 = vpop.xlane.xlu1 %2110  ;;  %9977 = vrcp.f32 %v2099_v16 }
 0x4d4   :  { %9489 = vmatpush3.bf16.msra.mxu1 %v16621_v50  ;;  %9979 = vrcp.f32 %v2105_v47  ;;  %v9970_v11 = vpop.eup %9969 }
 0x4d5   :  { %v2096_v35 = vpop.xlane.xlu0 %2095  ;;  %v9972_v12 = vpop.eup %9971  ;;  %v2267_v43 = vmul.f32 %v9970_v11, %v12698_v49 }
 0x4d6   :  { %9981 = vrcp.f32 %v2096_v35  ;;  %v2273_v42 = vmul.f32 %v9972_v12, %v12681_v2 }
 0x4d7   :  { %v1865_v36 = vpop.xlane.xlu1 %1864  ;;  %9983 = vrcp.f32 %v2111_v25 }
 0x4d8   :  { %v9974_v27 = vpop.eup %9973  ;;  %v1929_v59 = vsub.f32 %v12607_v19, %v1865_v36  ;;  %v2383_v17 = vpack.c.bf16 %v2273_v42, %v2271_v62 }
 0x4d9   :  { %v2114_v38 = vpop.xlane.xlu0 %2113  ;;  %v2269_v10 = vmul.f32 %v9974_v27, %v12709_v13 }
 0x4da   :  { %v2056_v16 = vmul.f32 1.442695, %v1929_v59  ;;  %9985 = vrcp.f32 %v2114_v38 }
 0x4db   :  { %v2123_v47 = vpop.xlane.xlu1 %2122  ;;  %v2382_v8 = vpack.c.bf16 %v2269_v10, %v2267_v43 }
 0x4dc   :  { %9987 = vpow2.f32 %v2056_v16  ;;  %v9976_v56 = vpop.eup %9975  ;;  %v3471_v16 = vsel %vm71_vm0, %v12645_v22, -inf }
 0x4dd   :  { %9989 = vrcp.f32 %v2117_v23  ;;  %9354 = vmatprep.mubr.msk.bf16.mxu1 %vm71_vm0, %v2382_v8  ;;  %v2108_v19 = vpop.xlane.xlu0 %2107  ;;  %v9978_v58 = vpop.eup %9977  ;;  %v2279_v7 = vmul.f32 %v9976_v56, %v12725_v48 }
 0x4de   :  { %9991 = vrcp.f32 %v2108_v19  ;;  %9355 = vmatmul.mubr.msk.bf16.gmra.mrb[40].mxu1 %vm71_vm0, %v2383_v17  ;;  %v9980_v49 = vpop.eup %9979  ;;  %v2277_v37 = vmul.f32 %v9978_v58, %v12713_v32 }
 0x4df   :  { %v2129_v13 = vpop.xlane.xlu1 %2128  ;;  %v2281_v23 = vmul.f32 %v9980_v49, %v12704_v31  ;;  %9993 = vrcp.f32 %v2123_v47 }
 0x4e0   :  { %v9982_v57 = vpop.eup %9981 }
 0x4e1   :  { %v1862_v2 = vpop.xlane.xlu0 %1861  ;;  %v2275_v26 = vmul.f32 %v9982_v57, %v12736_v29  ;;  %v9984_v40 = vpop.eup %9983  ;;  %v2385_v11 = vpack.c.bf16 %v2281_v23, %v2279_v7  ;;  %v3483_v57 = vsel %vm71_vm0, %v12672_v51, -inf }
 0x4e2   :  { %v1928_v50 = vsub.f32 %v12601_v1, %v1862_v2  ;;  %v2285_v38 = vmul.f32 %v9984_v40, %v12740_v14  ;;  %v3477_v14 = vsel %vm71_vm0, %v12643_v0, -inf }
 0x4e3   :  { %v2384_v25 = vpack.c.bf16 %v2277_v37, %v2275_v26 }
 0x4e4   :  { %v2054_v35 = vmul.f32 1.442695, %v1928_v50  ;;  %v9986_v12 = vpop.eup %9985  ;;  %v16622_v50 = vld [vmem:[#allocation42_spill] sm:$0xff] }
 0x4e5   :  { %9358 = vmatprep.mubr.msk.bf16.mxu1 %vm71_vm0, %v2384_v25  ;;  %v2120_v36 = vpop.xlane.xlu0 %2119  ;;  %v2287_v27 = vmul.f32 %v9986_v12, %v12757_v18  ;;  %v3468_v23 = vsel %vm71_vm0, %v16622_v50, -inf }
 0x4e6   :  { %v2135_v46 = vpop.xlane.xlu1 %2134  ;;  %v13096_v48 = vpop.eup %9987  ;;  %9995 = vpow2.f32 %v2054_v35  ;;  %9359 = vmatmul.mubr.msk.bf16.gmra.mrb[44].mxu1 %vm71_vm0, %v2385_v11 }
 0x4e7   :  { %v9990_v32 = vpop.eup %9989  ;;  %9997 = vrcp.f32 %v2120_v36  ;;  %v2247_v31 = vsel %vm71_vm0, %v13096_v48, 0.0  ;;  %v16624_v36 = vld [vmem:[#allocation41_spill] sm:$0xff] }
 0x4e8   :  { %v9992_v29 = vpop.eup %9991  ;;  %9999 = vrcp.f32 %v2129_v13  ;;  %2248 = vadd.xlane.f32.xlu1 %v2247_v31  ;;  %v2289_v43 = vmul.f32 %v9990_v32, %v12731_v6 }
 0x4e9   :  { %v2126_v59 = vpop.xlane.xlu0 %2125  ;;  %v2283_v62 = vmul.f32 %v9992_v29, %v12762_v63  ;;  %v9994_v18 = vpop.eup %9993  ;;  %v16625_v29 = vld [vmem:[#allocation49_spill] sm:$0xff] }
 0x4ea   :  { %v2141_v1 = vpop.xlane.xlu1 %2140  ;;  %10001 = vrcp.f32 %v2126_v59  ;;  %v2387_v47 = vpack.c.bf16 %v2289_v43, %v2287_v27  ;;  %v2293_v13 = vmul.f32 %v9994_v18, %v12766_v24  ;;  %v16623_v24 = vld [vmem:[#allocation45_spill] sm:$0xff]  ;;  %v3495_v27 = vsel %vm71_vm0, %v16625_v29, -inf  ;;  %v16626_v43 = vld [vmem:[#allocation44_spill] sm:$0xff] }
 0x4eb   :  { %v2386_v42 = vpack.c.bf16 %v2285_v38, %v2283_v62  ;;  %10003 = vrcp.f32 %v2135_v46 }
 0x4ec   :  { %3472 = vmax.xlane.f32.xlu1 %v3471_v16 }
 0x4ed   :  { %9362 = vmatprep.mubr.msk.bf16.mxu1 %vm71_vm0, %v2386_v42  ;;  %v2132_v8 = vpop.xlane.xlu0 %2131 }
 0x4ee   :  { %10005 = vrcp.f32 %v2132_v8  ;;  %9363 = vmatmul.mubr.msk.bf16.gmra.mrb[48].mxu1 %vm71_vm0, %v2387_v47  ;;  %v16627_v47 = vld [vmem:[#allocation48_spill] sm:$0xff] }
 0x4ef   :  { %v2147_v10 = vpop.xlane.xlu1 %2146  ;;  %10007 = vrcp.f32 %v2141_v1  ;;  %v3501_v8 = vsel %vm71_vm0, %v16627_v47, -inf }
 0x4f0   :  { %v13111_v6 = vpop.eup %9995  ;;  %3478 = vmax.xlane.f32.xlu1 %v3477_v14 }
 0x4f1   :  { %v9998_v17 = vpop.eup %9997  ;;  %v2138_v56 = vpop.xlane.xlu0 %2137  ;;  %v2244_v19 = vsel %vm71_vm0, %v13111_v6, 0.0 }
 0x4f2   :  { %v10000_v58 = vpop.eup %9999  ;;  %10009 = vrcp.f32 %v2138_v56  ;;  %2245 = vadd.xlane.f32.xlu0 %v2244_v19  ;;  %v2291_v49 = vmul.f32 %v9998_v17, %v12788_v30  ;;  %v3489_v30 = vsel %vm71_vm0, %v16623_v24, -inf  ;;  %v16628_v17 = vld [vmem:[#allocation43_spill] sm:$0xff] }
 0x4f3   :  { %v2153_v63 = vpop.xlane.xlu1 %2152  ;;  %10011 = vrcp.f32 %v2147_v10  ;;  %v2297_v25 = vmul.f32 %v10000_v58, %v12775_v60  ;;  %v3480_v10 = vsel %vm71_vm0, %v16626_v43, -inf  ;;  %v3486_v56 = vsel %vm71_vm0, %v16628_v17, -inf  ;;  %v16629_v58 = vld [vmem:[#allocation53_spill] sm:$0xff] }
 0x4f4   :  { %v10002_v7 = vpop.eup %10001  ;;  %3484 = vmax.xlane.f32.xlu1 %v3483_v57  ;;  %v2388_v2 = vpack.c.bf16 %v2293_v13, %v2291_v49  ;;  %v3507_v49 = vsel %vm71_vm0, %v16629_v58, -inf }
 0x4f5   :  { %v2144_v37 = vpop.xlane.xlu0 %2143  ;;  %v2295_v46 = vmul.f32 %v10002_v7, %v12811_v34  ;;  %v10004_v40 = vpop.eup %10003  ;;  %v3474_v34 = vsel %vm71_vm0, %v16624_v36, -inf }
 0x4f6   :  { %9366 = vmatprep.mubr.msk.bf16.mxu1 %vm71_vm0, %v2388_v2  ;;  %10013 = vrcp.f32 %v2144_v37  ;;  %3469 = vmax.xlane.f32.xlu0 %v3468_v23  ;;  %v2301_v32 = vmul.f32 %v10004_v40, %v12792_v4 }
 0x4f7   :  { %v2389_v35 = vpack.c.bf16 %v2297_v25, %v2295_v46  ;;  %10015 = vrcp.f32 %v2153_v63  ;;  %v16631_v46 = vld [vmem:[#allocation52_spill] sm:$0xff] }
 0x4f8   :  { %v10006_v11 = vpop.eup %10005  ;;  %3490 = vmax.xlane.f32.xlu1 %v3489_v30  ;;  %v3513_v25 = vsel %vm71_vm0, %v16631_v46, -inf }
 0x4f9   :  { %v2159_v26 = vpop.xlane.xlu1 %2158  ;;  %9367 = vmatmul.mubr.msk.bf16.gmra.mrb[52].mxu1 %vm71_vm0, %v2389_v35  ;;  %v2299_v60 = vmul.f32 %v10006_v11, %v12816_v55  ;;  %v10008_v1 = vpop.eup %10007  ;;  %v16632_v11 = vld [vmem:[#allocation46_spill] sm:$0xff] }
 0x4fa   :  { %3475 = vmax.xlane.f32.xlu0 %v3474_v34  ;;  %v2305_v4 = vmul.f32 %v10008_v1, %v12801_v61 }
 0x4fb   :  { %v2150_v12 = vpop.xlane.xlu0 %2149  ;;  %v2390_v59 = vpack.c.bf16 %v2301_v32, %v2299_v60  ;;  %v3519_v32 = vsel %vm71_vm0, %v12753_v21, -inf }
 0x4fc   :  { %10017 = vrcp.f32 %v2150_v12  ;;  %v10010_v62 = vpop.eup %10009  ;;  %3496 = vmax.xlane.f32.xlu1 %v3495_v27  ;;  %v3498_v12 = vsel %vm71_vm0, %v16632_v11, -inf }
 0x4fd   :  { %v2165_v31 = vpop.xlane.xlu1 %2164  ;;  %10019 = vrcp.f32 %v2159_v26  ;;  %9370 = vmatprep.mubr.msk.bf16.mxu1 %vm71_vm0, %v2390_v59  ;;  %v2303_v55 = vmul.f32 %v10010_v62, %v12837_v28  ;;  %v10012_v16 = vpop.eup %10011  ;;  %v16630_v26 = vld [vmem:[#allocation47_spill] sm:$0xff] }
 0x4fe   :  { %3481 = vmax.xlane.f32.xlu0 %v3480_v10  ;;  %v2309_v61 = vmul.f32 %v10012_v16, %v12820_v52  ;;  %v3492_v37 = vsel %vm71_vm0, %v16630_v26, -inf  ;;  %v16633_v59 = vld [vmem:[#allocation51_spill] sm:$0xff]  ;;  %v16636_v16 = vld [vmem:[#allocation56_spill] sm:$0xff] }
 0x4ff   :  { %v2156_v38 = vpop.xlane.xlu0 %2155  ;;  %v2391_v18 = vpack.c.bf16 %v2305_v4, %v2303_v55  ;;  %v3504_v62 = vsel %vm71_vm0, %v16633_v59, -inf }
 0x500   :  { %10021 = vrcp.f32 %v2156_v38  ;;  %v10014_v63 = vpop.eup %10013  ;;  %3502 = vmax.xlane.f32.xlu1 %v3501_v8 }
 0x501   :  { %10023 = vrcp.f32 %v2165_v31  ;;  %9371 = vmatmul.mubr.msk.bf16.gmra.mrb[56].mxu1 %vm71_vm0, %v2391_v18  ;;  %v2307_v28 = vmul.f32 %v10014_v63, %v12844_v45  ;;  %v10016_v19 = vpop.eup %10015 }
 0x502   :  { %3487 = vmax.xlane.f32.xlu0 %v3486_v56  ;;  %v2313_v52 = vmul.f32 %v10016_v19, %v12829_v54  ;;  %v16639_v19 = vld [vmem:[#allocation79_spill] sm:$0xff] }
 0x503   :  { %v2162_v14 = vpop.xlane.xlu0 %2161  ;;  %v2392_v13 = vpack.c.bf16 %v2309_v61, %v2307_v28  ;;  %v16638_v28 = vld [vmem:[#allocation81_spill] sm:$0xff] }
 0x504   :  { %10025 = vrcp.f32 %v2162_v14  ;;  %3508 = vmax.xlane.f32.xlu1 %v3507_v49  ;;  %v16637_v14 = vld [vmem:[#allocation50_spill] sm:$0xff] }
 0x505   :  { %v2171_v42 = vpop.xlane.xlu1 %2170  ;;  %9374 = vmatprep.mubr.msk.bf16.mxu1 %vm71_vm0, %v2392_v13  ;;  %v3510_v56 = vsel %vm71_vm0, %v16637_v14, -inf }
 0x506   :  { %v10018_v57 = vpop.eup %10017  ;;  %10027 = vrcp.f32 %v2171_v42  ;;  %3493 = vmax.xlane.f32.xlu0 %v3492_v37  ;;  %v3525_v42 = vsel %vm71_vm0, %v16636_v16, -inf }
 0x507   :  { %v2168_v2 = vpop.xlane.xlu0 %2167  ;;  %v2311_v45 = vmul.f32 %v10018_v57, %v12865_v20  ;;  %v10020_v23 = vpop.eup %10019 }
 0x508   :  { %10029 = vrcp.f32 %v2168_v2  ;;  %3514 = vmax.xlane.f32.xlu1 %v3513_v25  ;;  %v2317_v54 = vmul.f32 %v10020_v23, %v12848_v39  ;;  %v16635_v39 = vld [vmem:[#allocation71_spill] sm:$0xff] }
 0x509   :  { %v2177_v7 = vpop.xlane.xlu1 %2176  ;;  %v2393_v40 = vpack.c.bf16 %v2313_v52, %v2311_v45  ;;  %v16641_v23 = vld [vmem:[#allocation55_spill] sm:$0xff] }
 0x50a   :  { %v10022_v30 = vpop.eup %10021  ;;  %10031 = vrcp.f32 %v2177_v7  ;;  %3499 = vmax.xlane.f32.xlu0 %v3498_v12  ;;  %v16640_v7 = vld [vmem:[#allocation60_spill] sm:$0xff]  ;;  %v3516_v25 = vsel %vm71_vm0, %v16641_v23, -inf }
 0x50b   :  { %9375 = vmatmul.mubr.msk.bf16.gmra.mrb[60].mxu1 %vm71_vm0, %v2393_v40  ;;  %v2174_v35 = vpop.xlane.xlu0 %2173  ;;  %v2315_v20 = vmul.f32 %v10022_v30, %v12872_v15  ;;  %v10024_v34 = vpop.eup %10023  ;;  %v16634_v15 = vld [vmem:[#allocation77_spill] sm:$0xff]  ;;  %v3531_v2 = vsel %vm71_vm0, %v16640_v7, -inf }
 0x50c   :  { %10033 = vrcp.f32 %v2174_v35  ;;  %3520 = vmax.xlane.f32.xlu1 %v3519_v32  ;;  %v2321_v10 = vmul.f32 %v10024_v34, %v16635_v39  ;;  %v16642_v40 = vld [vmem:[#allocation85_spill] sm:$0xff]  ;;  %v16643_v35 = vld [vmem:[#allocation80_spill] sm:$0xff]  ;;  %v16644_v34 = vld [vmem:[#allocation59_spill] sm:$0xff] }
 0x50d   :  { %v2394_v1 = vpack.c.bf16 %v2317_v54, %v2315_v20  ;;  %v16647_v39 = vld [vmem:[#allocation87_spill] sm:$0xff] }
 0x50e   :  { %v10026_v31 = vpop.eup %10025  ;;  %3505 = vmax.xlane.f32.xlu0 %v3504_v62 }
 0x50f   :  { %9378 = vmatprep.mubr.msk.bf16.mxu1 %vm71_vm0, %v2394_v1  ;;  %v2180_v27 = vpop.xlane.xlu0 %2179  ;;  %v2319_v38 = vmul.f32 %v10026_v31, %v16634_v15  ;;  %v16646_v15 = vld [vmem:[#allocation86_spill] sm:$0xff] }
 0x510   :  { %v10028_v55 = vpop.eup %10027  ;;  %3526 = vmax.xlane.f32.xlu1 %v3525_v42 }
 0x511   :  { %v2183_v60 = vpop.xlane.xlu1 %2182  ;;  %v2395_v8 = vpack.c.bf16 %v2321_v10, %v2319_v38  ;;  %v2325_v49 = vmul.f32 %v10028_v55, %v16639_v19  ;;  %v16650_v19 = vld [vmem:[#allocation89_spill] sm:$0xff] }
 0x512   :  { %10035 = vrcp.f32 %v2183_v60  ;;  %v10030_v18 = vpop.eup %10029  ;;  %3511 = vmax.xlane.f32.xlu0 %v3510_v56  ;;  %v3537_v60 = vsel %vm71_vm0, %v16644_v34, -inf  ;;  %v16649_v56 = vld [vmem:[#allocation58_spill] sm:$0xff] }
 0x513   :  { %10037 = vrcp.f32 %v2180_v27  ;;  %9379 = vmatmul.mubr.msk.bf16.gmra.mrb[64].mxu1 %vm71_vm0, %v2395_v8  ;;  %v2186_v63 = vpop.xlane.xlu0 %2185  ;;  %v2323_v61 = vmul.f32 %v10030_v18, %v16638_v28  ;;  %v16645_v27 = vld [vmem:[#allocation54_spill] sm:$0xff]  ;;  %v3528_v28 = vsel %vm71_vm0, %v16649_v56, -inf }
 0x514   :  { %v10032_v13 = vpop.eup %10031  ;;  %3532 = vmax.xlane.f32.xlu1 %v3531_v2  ;;  %v3522_v62 = vsel %vm71_vm0, %v16645_v27, -inf  ;;  %v16651_v2 = vld [vmem:[#allocation63_spill] sm:$0xff] }
 0x515   :  { %v2189_v4 = vpop.xlane.xlu1 %2188  ;;  %v2396_v37 = vpack.c.bf16 %v2325_v49, %v2323_v61  ;;  %v2329_v12 = vmul.f32 %v10032_v13, %v16643_v35  ;;  %v16653_v35 = vld [vmem:[#allocation24_spill] sm:$0xff] }
 0x516   :  { %10039 = vrcp.f32 %v2189_v4  ;;  %v10034_v45 = vpop.eup %10033  ;;  %3517 = vmax.xlane.f32.xlu0 %v3516_v25  ;;  %v16648_v4 = vld [vmem:[#allocation64_spill] sm:$0xff] }
 0x517   :  { %10041 = vrcp.f32 %v2186_v63  ;;  %9382 = vmatprep.mubr.msk.bf16.mxu1 %vm71_vm0, %v2396_v37  ;;  %v2192_v52 = vpop.xlane.xlu0 %2191  ;;  %v2327_v30 = vmul.f32 %v10034_v45, %v16642_v40  ;;  %v3543_v42 = vsel %vm71_vm0, %v16648_v4, -inf  ;;  %v3549_v37 = vsel %vm71_vm0, %v16651_v2, -inf  ;;  %v16652_v40 = vld [vmem:[#allocation57_spill] sm:$0xff] }
 0x518   :  { %3538 = vmax.xlane.f32.xlu1 %v3537_v60  ;;  %v16654_v60 = vld [vmem:[#allocation68_spill] sm:$0xff] }
 0x519   :  { %v2195_v57 = vpop.xlane.xlu1 %2194  ;;  %v2397_v32 = vpack.c.bf16 %v2329_v12, %v2327_v30  ;;  %v3534_v30 = vsel %vm71_vm0, %v16652_v40, -inf }
 0x51a   :  { %10043 = vrcp.f32 %v2195_v57  ;;  %3523 = vmax.xlane.f32.xlu0 %v3522_v62 }
 0x51b   :  { %10045 = vrcp.f32 %v2192_v52  ;;  %9383 = vmatmul.mubr.msk.bf16.gmra.mrb[68].mxu1 %vm71_vm0, %v2397_v32  ;;  %v2198_v31 = vpop.xlane.xlu0 %2197  ;;  %v3555_v32 = vsel %vm71_vm0, %v16654_v60, -inf }
 0x51c   :  { %v10036_v20 = vpop.eup %10035  ;;  %3544 = vmax.xlane.f32.xlu1 %v3543_v42 }
 0x51d   :  { %v2201_v54 = vpop.xlane.xlu1 %2200  ;;  %v10038_v1 = vpop.eup %10037  ;;  %v2333_v10 = vmul.f32 %v10036_v20, %v16647_v39 }
 0x51e   :  { %10047 = vrcp.f32 %v2201_v54  ;;  %v2331_v38 = vmul.f32 %v10038_v1, %v16646_v15  ;;  %3529 = vmax.xlane.f32.xlu0 %v3528_v28  ;;  %v16655_v15 = vld [vmem:[#allocation62_spill] sm:$0xff] }
 0x51f   :  { %10049 = vrcp.f32 %v2198_v31 }
 0x520   :  { %v10040_v55 = vpop.eup %10039  ;;  %v2398_v8 = vpack.c.bf16 %v2333_v10, %v2331_v38  ;;  %3550 = vmax.xlane.f32.xlu1 %v3549_v37  ;;  %v3540_v38 = vsel %vm71_vm0, %v16655_v15, -inf  ;;  %v16657_v10 = vld [vmem:[#allocation20_spill] sm:$0xff]  ;;  %v16660_v37 = vld [vmem:[#allocation73_spill] sm:$0xff] }
 0x521   :  { %v10042_v18 = vpop.eup %10041  ;;  %v2204_v63 = vpop.xlane.xlu0 %2203  ;;  %v2337_v49 = vmul.f32 %v10040_v55, %v16650_v19  ;;  %v16659_v19 = vld [vmem:[#allocation61_spill] sm:$0xff] }
 0x522   :  { %9386 = vmatprep.mubr.msk.bf16.mxu1 %vm71_vm0, %v2398_v8  ;;  %v2335_v61 = vmul.f32 %v10042_v18, %v12941_v33  ;;  %10051 = vrcp.f32 %v2204_v63  ;;  %3535 = vmax.xlane.f32.xlu0 %v3534_v30  ;;  %v16658_v8 = vld [vmem:[#allocation67_spill] sm:$0xff] }
 0x523   :  { %v3561_v18 = vsel %vm71_vm0, %v16658_v8, -inf }
 0x524   :  { %v10044_v13 = vpop.eup %10043  ;;  %v2399_v45 = vpack.c.bf16 %v2337_v49, %v2335_v61  ;;  %3556 = vmax.xlane.f32.xlu1 %v3555_v32  ;;  %v3546_v49 = vsel %vm71_vm0, %v16659_v19, -inf }
 0x525   :  { %v2207_v57 = vpop.xlane.xlu1 %2206  ;;  %v10046_v52 = vpop.eup %10045  ;;  %v2341_v12 = vmul.f32 %v10044_v13, %v16653_v35  ;;  %v16661_v35 = vld [vmem:[#allocation66_spill] sm:$0xff] }
 0x526   :  { %10053 = vrcp.f32 %v2207_v57  ;;  %9387 = vmatmul.mubr.msk.bf16.gmra.mrb[72].mxu1 %vm71_vm0, %v2399_v45  ;;  %v2210_v25 = vpop.xlane.xlu0 %2209  ;;  %v2339_v33 = vmul.f32 %v10046_v52, %v12952_v53  ;;  %v16656_v53 = vld [vmem:[#allocation92_spill] sm:$0xff]  ;;  %3541 = vmax.xlane.f32.xlu0 %v3540_v38  ;;  %v3567_v45 = vsel %vm71_vm0, %v16660_v37, -inf }
 0x527   :  { %10055 = vrcp.f32 %v2210_v25 }
 0x528   :  { %v10048_v20 = vpop.eup %10047  ;;  %v2400_v1 = vpack.c.bf16 %v2341_v12, %v2339_v33  ;;  %3562 = vmax.xlane.f32.xlu1 %v3561_v18  ;;  %v3552_v12 = vsel %vm71_vm0, %v16661_v35, -inf  ;;  %v16664_v18 = vld [vmem:[#allocation78_spill] sm:$0xff] }
 0x529   :  { %v2213_v54 = vpop.xlane.xlu1 %2212  ;;  %v10050_v31 = vpop.eup %10049  ;;  %v2345_v55 = vmul.f32 %v10048_v20, %v16657_v10 }
 0x52a   :  { %10057 = vrcp.f32 %v2213_v54  ;;  %9390 = vmatprep.mubr.msk.bf16.mxu1 %vm71_vm0, %v2400_v1  ;;  %v2216_v62 = vpop.xlane.xlu0 %2215  ;;  %v2343_v39 = vmul.f32 %v10050_v31, %v16656_v53  ;;  %3547 = vmax.xlane.f32.xlu0 %v3546_v49  ;;  %v16662_v1 = vld [vmem:[#allocation72_spill] sm:$0xff]  ;;  %v16663_v53 = vld [vmem:[#allocation65_spill] sm:$0xff] }
 0x52b   :  { %10059 = vrcp.f32 %v2216_v62  ;;  %v3573_v31 = vsel %vm71_vm0, %v16662_v1, -inf }
 0x52c   :  { %v2401_v63 = vpack.c.bf16 %v2345_v55, %v2343_v39  ;;  %v10052_v28 = vpop.eup %10051  ;;  %3568 = vmax.xlane.f32.xlu1 %v3567_v45  ;;  %v3558_v39 = vsel %vm71_vm0, %v16663_v53, -inf }
 0x52d   :  { %v2219_v42 = vpop.xlane.xlu1 %2218  ;;  %v2347_v52 = vmul.f32 %v10052_v28, %v12979_v41 }
 0x52e   :  { %10061 = vrcp.f32 %v2219_v42  ;;  %9391 = vmatmul.mubr.msk.bf16.gmra.mrb[76].mxu1 %vm71_vm0, %v2401_v63  ;;  %v2222_v61 = vpop.xlane.xlu0 %2221  ;;  %3553 = vmax.xlane.f32.xlu0 %v3552_v12  ;;  %v3579_v63 = vsel %vm71_vm0, %v16664_v18, -inf }
 0x52f   :  { %10063 = vrcp.f32 %v2222_v61 }
 0x530   :  { %v10054_v13 = vpop.eup %10053  ;;  %3574 = vmax.xlane.f32.xlu1 %v3573_v31  ;;  %v16671_v31 = vld [vmem:[#allocation69_spill] sm:$0xff] }
 0x531   :  { %v2225_v57 = vpop.xlane.xlu1 %2224  ;;  %v2349_v25 = vmul.f32 %v10054_v13, %v12995_v3  ;;  %v10056_v30 = vpop.eup %10055  ;;  %v16667_v13 = vld [vmem:[#allocation70_spill] sm:$0xff] }
 0x532   :  { %10065 = vrcp.f32 %v2225_v57  ;;  %v2228_v33 = vpop.xlane.xlu0 %2227  ;;  %v2351_v41 = vmul.f32 %v10056_v30, %v12989_v9  ;;  %3559 = vmax.xlane.f32.xlu0 %v3558_v39  ;;  %v16665_v9 = vld [vmem:[#allocation14_spill] sm:$0xff]  ;;  %v3564_v57 = vsel %vm71_vm0, %v16667_v13, -inf }
 0x533   :  { %v2402_v20 = vpack.c.bf16 %v2349_v25, %v2347_v52  ;;  %10067 = vrcp.f32 %v2228_v33  ;;  %v16668_v25 = vld [vmem:[#allocation76_spill] sm:$0xff]  ;;  %v16669_v33 = vld [vmem:[#allocation97_spill] sm:$0xff] }
 0x534   :  { %v10058_v54 = vpop.eup %10057  ;;  %3580 = vmax.xlane.f32.xlu1 %v3579_v63  ;;  %v3585_v30 = vsel %vm71_vm0, %v16668_v25, -inf }
 0x535   :  { %v2231_v32 = vpop.xlane.xlu1 %2230  ;;  %9394 = vmatprep.mubr.msk.bf16.mxu1 %vm71_vm0, %v2402_v20  ;;  %v2353_v3 = vmul.f32 %v10058_v54, %v13000_v5  ;;  %v10060_v62 = vpop.eup %10059  ;;  %v16666_v5 = vld [vmem:[#allocation94_spill] sm:$0xff] }
 0x536   :  { %10069 = vrcp.f32 %v2231_v32  ;;  %v2234_v38 = vpop.xlane.xlu0 %2233  ;;  %v2355_v28 = vmul.f32 %v10060_v62, %v16665_v9  ;;  %3565 = vmax.xlane.f32.xlu0 %v3564_v57  ;;  %v16670_v20 = vld [vmem:[#allocation98_spill] sm:$0xff]  ;;  %v16676_v57 = vld [vmem:[#allocation27_spill] sm:$0xff] }
 0x537   :  { %v2403_v10 = vpack.c.bf16 %v2353_v3, %v2351_v41  ;;  %10071 = vrcp.f32 %v2234_v38  ;;  %v3570_v41 = vsel %vm71_vm0, %v16671_v31, -inf  ;;  %v16672_v38 = vld [vmem:[#allocation84_spill] sm:$0xff] }
 0x538   :  { %v10062_v55 = vpop.eup %10061  ;;  %3586 = vmax.xlane.f32.xlu1 %v3585_v30  ;;  %v3591_v39 = vsel %vm71_vm0, %v16672_v38, -inf }
 0x539   :  { %v2237_v42 = vpop.xlane.xlu1 %2236  ;;  %9395 = vmatmul.mubr.msk.bf16.gmra.mrb[80].mxu1 %vm71_vm0, %v2403_v10  ;;  %v2357_v61 = vmul.f32 %v10062_v55, %v16666_v5  ;;  %v10064_v49 = vpop.eup %10063  ;;  %v16673_v10 = vld [vmem:[#allocation99_spill] sm:$0xff] }
 0x53a   :  { %10073 = vrcp.f32 %v2237_v42  ;;  %v2359_v12 = vmul.f32 %v10064_v49, %v16669_v33  ;;  %3571 = vmax.xlane.f32.xlu0 %v3570_v41  ;;  %v16674_v42 = vld [vmem:[#allocation102_spill] sm:$0xff] }
 0x53b   :  { %v2404_v45 = vpack.c.bf16 %v2357_v61, %v2355_v28  ;;  %v16675_v28 = vld [vmem:[#allocation75_spill] sm:$0xff]  ;;  %v16678_v33 = vld [vmem:[#allocation106_spill] sm:$0xff] }
 0x53c   :  { %v10066_v52 = vpop.eup %10065  ;;  %3592 = vmax.xlane.f32.xlu1 %v3591_v39  ;;  %v3576_v5 = vsel %vm71_vm0, %v16675_v28, -inf  ;;  %v16680_v41 = vld [vmem:[#allocation90_spill] sm:$0xff] }
 0x53d   :  { %9398 = vmatprep.mubr.msk.bf16.mxu1 %vm71_vm0, %v2404_v45  ;;  %v2361_v54 = vmul.f32 %v10066_v52, %v16670_v20  ;;  %v10068_v32 = vpop.eup %10067  ;;  %v3597_v45 = vsel %vm71_vm0, %v16676_v57, -inf  ;;  %v16677_v52 = vld [vmem:[#allocation105_spill] sm:$0xff]  ;;  %v16679_v20 = vld [vmem:[#allocation74_spill] sm:$0xff] }
 0x53e   :  { %v2363_v55 = vmul.f32 %v10068_v32, %v16673_v10  ;;  %3577 = vmax.xlane.f32.xlu0 %v3576_v5  ;;  %v16682_v10 = vld [vmem:[#allocation8_spill] sm:$0xff] }
 0x53f   :  { %v2405_v3 = vpack.c.bf16 %v2361_v54, %v2359_v12  ;;  %v3582_v54 = vsel %vm71_vm0, %v16679_v20, -inf }
 0x540   :  { %v10070_v62 = vpop.eup %10069  ;;  %3598 = vmax.xlane.f32.xlu1 %v3597_v45  ;;  %v16686_v45 = vld [vmem:[#allocation9_spill] sm:$0xff] }
 0x541   :  { %9399 = vmatmul.mubr.msk.bf16.gmra.mrb[84].mxu1 %vm71_vm0, %v2405_v3  ;;  %v2365_v63 = vmul.f32 %v10070_v62, %v16674_v42  ;;  %v10072_v9 = vpop.eup %10071  ;;  %v3603_v3 = vsel %vm71_vm0, %v16680_v41, -inf  ;;  %v16681_v62 = vld [vmem:[#allocation83_spill] sm:$0xff]  ;;  %v16683_v42 = vld [vmem:[#allocation82_spill] sm:$0xff] }
 0x542   :  { %v2367_v30 = vmul.f32 %v10072_v9, %v16677_v52  ;;  %3583 = vmax.xlane.f32.xlu0 %v3582_v54  ;;  %v3588_v39 = vsel %vm71_vm0, %v16681_v62, -inf  ;;  %v16684_v9 = vld [vmem:[#allocation91_spill] sm:$0xff]  ;;  %v3621_v52 = vsel %vm71_vm0, %v16686_v45, -inf }
 0x543   :  { %v2406_v61 = vpack.c.bf16 %v2365_v63, %v2363_v55  ;;  %v3609_v55 = vsel %vm71_vm0, %v16682_v10, -inf  ;;  %v3594_v63 = vsel %vm71_vm0, %v16683_v42, -inf  ;;  %v3615_v5 = vsel %vm71_vm0, %v16684_v9, -inf  ;;  %v16699_v45 = vld [vmem:[#allocation107_spill] sm:$0xff] }
 0x544   :  { %v10074_v49 = vpop.eup %10073  ;;  %3604 = vmax.xlane.f32.xlu1 %v3603_v3 }
 0x545   :  { %9402 = vmatprep.mubr.msk.bf16.mxu1 %vm71_vm0, %v2406_v61  ;;  %v2369_v12 = vmul.f32 %v10074_v49, %v16678_v33  ;;  %v16685_v61 = vld [vmem:[#allocation29_spill] sm:$0xff] }
 0x546   :  { %3589 = vmax.xlane.f32.xlu0 %v3588_v39  ;;  %v3600_v49 = vsel %vm71_vm0, %v16685_v61, -inf  ;;  %v16690_v39 = vld [vmem:[#allocation25_spill] sm:$0xff] }
 0x547   :  { %v2407_v32 = vpack.c.bf16 %v2369_v12, %v2367_v30  ;;  %v16687_v30 = vld [vmem:[#allocation88_spill] sm:$0xff]  ;;  %v16688_v12 = vld [vmem:[#allocation17_spill] sm:$0xff] }
 0x548   :  { %3610 = vmax.xlane.f32.xlu1 %v3609_v55  ;;  %v3606_v33 = vsel %vm71_vm0, %v16687_v30, -inf  ;;  %v3627_v54 = vsel %vm71_vm0, %v16688_v12, -inf  ;;  %v3633_v55 = vsel %vm71_vm0, %v16690_v39, -inf }
 0x549   :  { %9403 = vmatmul.mubr.msk.bf16.gmra.mrb[88].mxu1 %vm71_vm0, %v2407_v32  ;;  %v16689_v32 = vld [vmem:[#allocation18_spill] sm:$0xff] }
 0x54a   :  { %3595 = vmax.xlane.f32.xlu0 %v3594_v63  ;;  %v3612_v3 = vsel %vm71_vm0, %v16689_v32, -inf  ;;  %v2240_v63 = vpop.xlane.xlu0 %2239 }
 0x54b   :  { %10075 = vrcp.f32 %v2240_v63  ;;  %v16697_v63 = vld [vmem:[#allocation93_spill] sm:$0xff] }
 0x54c   :  { %3616 = vmax.xlane.f32.xlu1 %v3615_v5  ;;  %v16691_v5 = vld [vmem:[#allocation15_spill] sm:$0xff] }
 0x54e   :  { %3601 = vmax.xlane.f32.xlu0 %v3600_v49  ;;  %v3618_v49 = vsel %vm71_vm0, %v16691_v5, -inf }
 0x550   :  { %3622 = vmax.xlane.f32.xlu1 %v3621_v52  ;;  %v16692_v52 = vld [vmem:[#allocation96_spill] sm:$0xff] }
 0x552   :  { %3607 = vmax.xlane.f32.xlu0 %v3606_v33  ;;  %v3639_v33 = vsel %vm71_vm0, %v16692_v52, -inf }
 0x554   :  { %3628 = vmax.xlane.f32.xlu1 %v3627_v54  ;;  %v16693_v54 = vld [vmem:[#allocation33_spill] sm:$0xff] }
 0x555   :  { %v3624_v30 = vsel %vm71_vm0, %v16693_v54, -inf  ;;  %v10076_v52 = vpop.eup %10075 }
 0x556   :  { %3613 = vmax.xlane.f32.xlu0 %v3612_v3  ;;  %v16694_v3 = vld [vmem:[#allocation95_spill] sm:$0xff] }
 0x557   :  { %v3645_v39 = vsel %vm71_vm0, %v16694_v3, -inf  ;;  %v2371_v3 = vmul.f32 %v10076_v52, %v16699_v45 }
 0x558   :  { %3634 = vmax.xlane.f32.xlu1 %v3633_v55  ;;  %v16695_v55 = vld [vmem:[#allocation7_spill] sm:$0xff] }
 0x559   :  { %v3630_v32 = vsel %vm71_vm0, %v16695_v55, -inf }
 0x55a   :  { %3619 = vmax.xlane.f32.xlu0 %v3618_v49  ;;  %v16696_v49 = vld [vmem:[#allocation104_spill] sm:$0xff] }
 0x55b   :  { %v3651_v5 = vsel %vm71_vm0, %v16696_v49, -inf }
 0x55c   :  { %3640 = vmax.xlane.f32.xlu1 %v3639_v33  ;;  %v3636_v33 = vsel %vm71_vm0, %v16697_v63, -inf }
 0x55d   :  { %v2243_v12 = vpop.xlane.xlu1 %2242 }
 0x55e   :  { %10077 = vrcp.f32 %v2243_v12  ;;  %3625 = vmax.xlane.f32.xlu0 %v3624_v30  ;;  %v16698_v12 = vld [vmem:[#allocation40_spill] sm:$0xff] }
 0x55f   :  { %v3642_v30 = vsel %vm71_vm0, %v16698_v12, -inf }
 0x560   :  { %3646 = vmax.xlane.f32.xlu1 %v3645_v39 }
 0x562   :  { %3631 = vmax.xlane.f32.xlu0 %v3630_v32  ;;  %v16700_v32 = vld [vmem:[#allocation101_spill] sm:$0xff] }
 0x564   :  { %3652 = vmax.xlane.f32.xlu1 %v3651_v5  ;;  %v3648_v5 = vsel %vm71_vm0, %v16700_v32, -inf }
 0x566   :  { %3637 = vmax.xlane.f32.xlu0 %v3636_v33 }
 0x568   :  { %v10078_v54 = vpop.eup %10077 }
 0x569   :  { %v2373_v39 = vmul.f32 %v10078_v54, %v13075_v44 }
 0x56a   :  { %3643 = vmax.xlane.f32.xlu0 %v3642_v30 }
 0x56b   :  { %v2408_v55 = vpack.c.bf16 %v2373_v39, %v2371_v3 }
 0x56d   :  { %9406 = vmatprep.mubr.msk.bf16.mxu1 %vm71_vm0, %v2408_v55  ;;  %v9719_v55 = vld [vmem:[%s16218_s3 + $0x20] sm:$0xff]  }
 0x56e   :  { %3649 = vmax.xlane.f32.xlu0 %v3648_v5  ;;  %9554 = vmatprep.subr.bf16.mxu0 %v9719_v55 }
 0x56f   :  { %9555 = vmatpush3.bf16.msra.mxu0 %v9719_v55 }
 0x575   :  { %v2249_v49 = vpop.xlane.xlu1 %2248 }
 0x576   :  { %10079 = vrcp.f32 %v2249_v49 }
 0x579   :  { %v3473_v63 = vpop.xlane.xlu1 %3472 }
 0x57a   :  { %v3661_v33 = vsub.f32 %v12645_v22, %v3473_v63 }
 0x57c   :  { %v3726_v45 = vmul.f32 1.442695, %v3661_v33 }
 0x57d   :  { %v3479_v61 = vpop.xlane.xlu1 %3478 }
 0x57e   :  { %v3663_v12 = vsub.f32 %v12643_v0, %v3479_v61 }
 0x57f   :  { %v2246_v9 = vpop.xlane.xlu0 %2245 }
 0x580   :  { %v3730_v52 = vmul.f32 1.442695, %v3663_v12  ;;  %10081 = vrcp.f32 %v2246_v9  ;;  %v10080_v9 = vpop.eup %10079 }
 0x581   :  { %v3485_v44 = vpop.xlane.xlu1 %3484 }
 0x582   :  { %10083 = vpow2.f32 %v3730_v52  ;;  %v3665_v54 = vsub.f32 %v12672_v51, %v3485_v44 }
 0x583   :  { %v3470_v3 = vpop.xlane.xlu0 %3469  ;;  %10085 = vpow2.f32 %v3726_v45 }
 0x584   :  { %v3660_v22 = vsub.f32 %v16622_v50, %v3470_v3  ;;  %v3734_v61 = vmul.f32 1.442695, %v3665_v54 }
 0x585   :  { %v3491_v30 = vpop.xlane.xlu1 %3490 }
 0x586   :  { %v3667_v0 = vsub.f32 %v16623_v24, %v3491_v30  ;;  %v3724_v5 = vmul.f32 1.442695, %v3660_v22  ;;  %v2377_v24 = vmul.f32 %v10080_v9, %v13096_v48 }
 0x587   :  { %v3476_v49 = vpop.xlane.xlu0 %3475 }
 0x588   :  { %v3738_v63 = vmul.f32 1.442695, %v3667_v0  ;;  %v3662_v12 = vsub.f32 %v16624_v36, %v3476_v49 }
 0x589   :  { %v3497_v51 = vpop.xlane.xlu1 %3496 }
 0x58a   :  { %v10082_v39 = vpop.eup %10081  ;;  %10087 = vpow2.f32 %v3738_v63  ;;  %v3728_v33 = vmul.f32 1.442695, %v3662_v12  ;;  %v3669_v45 = vsub.f32 %v16625_v29, %v3497_v51 }
 0x58b   :  { %10089 = vpow2.f32 %v3734_v61  ;;  %v3482_v52 = vpop.xlane.xlu0 %3481  ;;  %v2375_v50 = vmul.f32 %v10082_v39, %v13111_v6 }
 0x58c   :  { %v13310_v44 = vpop.eup %10083  ;;  %10091 = vpow2.f32 %v3728_v33  ;;  %v3664_v30 = vsub.f32 %v16626_v43, %v3482_v52  ;;  %v3742_v22 = vmul.f32 1.442695, %v3669_v45 }
 0x58d   :  { %v3503_v54 = vpop.xlane.xlu1 %3502  ;;  %v3861_v36 = vsel %vm71_vm0, %v13310_v44, 0.0  ;;  %v2409_v3 = vpack.c.bf16 %v2377_v24, %v2375_v50  ;;  %v13314_v55 = vpop.eup %10085  ;;  %10093 = vpow2.f32 %v3724_v5 }
 0x58e   :  { %v3671_v29 = vsub.f32 %v16627_v47, %v3503_v54  ;;  %3862 = vadd.xlane.f32.xlu1 %v3861_v36  ;;  %v3855_v49 = vsel %vm71_vm0, %v13314_v55, 0.0  ;;  %v3732_v9 = vmul.f32 1.442695, %v3664_v30 }
 0x58f   :  { %9407 = vmatmul.mubr.msk.bf16.gmra.mrb[92].mxu1 %vm71_vm0, %v2409_v3  ;;  %v3488_v48 = vpop.xlane.xlu0 %3487 }
 0x590   :  { %v3746_v6 = vmul.f32 1.442695, %v3671_v29  ;;  %v3666_v0 = vsub.f32 %v16628_v17, %v3488_v48 }
 0x591   :  { %v3509_v61 = vpop.xlane.xlu1 %3508 }
 0x592   :  { %10095 = vpow2.f32 %v3746_v6  ;;  %v3736_v63 = vmul.f32 1.442695, %v3666_v0  ;;  %3856 = vadd.xlane.f32.xlu1 %v3855_v49  ;;  %v3673_v43 = vsub.f32 %v16629_v58, %v3509_v61 }
 0x593   :  { %10097 = vpow2.f32 %v3742_v22  ;;  %v3494_v47 = vpop.xlane.xlu0 %3493 }
 0x594   :  { %v13323_v12 = vpop.eup %10087  ;;  %10099 = vpow2.f32 %v3736_v63  ;;  %v3668_v33 = vsub.f32 %v16630_v26, %v3494_v47  ;;  %v3750_v52 = vmul.f32 1.442695, %v3673_v43 }
 0x595   :  { %v13325_v51 = vpop.eup %10089  ;;  %v3515_v39 = vpop.xlane.xlu1 %3514  ;;  %v3873_v17 = vsel %vm71_vm0, %v13323_v12, 0.0  ;;  %10101 = vpow2.f32 %v3732_v9 }
 0x596   :  { %v13329_v5 = vpop.eup %10091  ;;  %v3675_v45 = vsub.f32 %v16631_v46, %v3515_v39  ;;  %3874 = vadd.xlane.f32.xlu1 %v3873_v17  ;;  %v3867_v30 = vsel %vm71_vm0, %v13325_v51, 0.0  ;;  %v3740_v29 = vmul.f32 1.442695, %v3668_v33 }
 0x597   :  { %v3500_v58 = vpop.xlane.xlu0 %3499  ;;  %v3858_v50 = vsel %vm71_vm0, %v13329_v5, 0.0  ;;  %v13335_v24 = vpop.eup %10093 }
 0x598   :  { %v3754_v54 = vmul.f32 1.442695, %v3675_v45  ;;  %v3670_v36 = vsub.f32 %v16632_v11, %v3500_v58  ;;  %3859 = vadd.xlane.f32.xlu0 %v3858_v50  ;;  %v3852_v11 = vsel %vm71_vm0, %v13335_v24, 0.0  ;;  %v9720_v50 = vld [vmem:[%s16218_s3 + $0x28] sm:$0xff]  }
 0x599   :  { %v3521_v3 = vpop.xlane.xlu1 %3520  ;;  %9556 = vmatprep.subr.bf16.mxu0 %v9720_v50 }
 0x59a   :  { %10103 = vpow2.f32 %v3754_v54  ;;  %v3744_v26 = vmul.f32 1.442695, %v3670_v36  ;;  %v13340_v46 = vpop.f32.mrb[32].mxu1  ;;  %3868 = vadd.xlane.f32.xlu1 %v3867_v30  ;;  %v3677_v22 = vsub.f32 %v12753_v21, %v3521_v3  ;;  %9557 = vmatpush3.bf16.msra.mxu0 %v9720_v50 }
 0x59b   :  { %10105 = vpow2.f32 %v3750_v52  ;;  %v13343_v48 = vpop.f32.mrb[33].mxu1  ;;  %v3506_v6 = vpop.xlane.xlu0 %3505 }
 0x59c   :  { %v13347_v0 = vpop.eup %10095  ;;  %10107 = vpow2.f32 %v3744_v26  ;;  %v13349_v61 = vpop.f32.mrb[34].mxu1  ;;  %3853 = vadd.xlane.f32.xlu0 %v3852_v11  ;;  %v3672_v47 = vsub.f32 %v16633_v59, %v3506_v6  ;;  %v3758_v39 = vmul.f32 1.442695, %v3677_v22 }
 0x59d   :  { %16701 = vst [vmem:[#allocation16_spill] sm:$0xff] %v13347_v0  ;;  %v13351_v49 = vpop.eup %10097  ;;  %v13353_v9 = vpop.f32.mrb[35].mxu1  ;;  %v3885_v21 = vsel %vm71_vm0, %v13347_v0, 0.0  ;;  %10109 = vpow2.f32 %v3740_v29 }
 0x59e   :  { %16702 = vst [vmem:[#allocation21_spill] sm:$0xff] %v13351_v49  ;;  %v3527_v63 = vpop.xlane.xlu1 %3526  ;;  %v13357_v43 = vpop.eup %10099  ;;  %3886 = vadd.xlane.f32.xlu1 %v3885_v21  ;;  %v3879_v59 = vsel %vm71_vm0, %v13351_v49, 0.0  ;;  %v3748_v36 = vmul.f32 1.442695, %v3672_v47  ;;  %10111 = vpow2.f32 %v3758_v39  ;;  %v13388_v39 = vld [vmem:[%s16223_s8] ss:$0 sm:$0xff] }
 0x59f   :  { %v3679_v17 = vsub.f32 %v16636_v16, %v3527_v63  ;;  %v3512_v33 = vpop.xlane.xlu0 %3511  ;;  %v3870_v45 = vsel %vm71_vm0, %v13357_v43, 0.0  ;;  %v13363_v52 = vpop.eup %10101  ;;  %16705 = vst [vmem:[#allocation42_spill] sm:$0xff] %v13388_v39 }
 0x5a0   :  { %v3674_v58 = vsub.f32 %v16637_v14, %v3512_v33  ;;  %3871 = vadd.xlane.f32.xlu0 %v3870_v45  ;;  %v3864_v14 = vsel %vm71_vm0, %v13363_v52, 0.0 }
 0x5a1   :  { %v3762_v16 = vmul.f32 1.442695, %v3679_v17 }
 0x5a2   :  { %v3533_v54 = vpop.xlane.xlu1 %3532  ;;  %v3752_v3 = vmul.f32 1.442695, %v3674_v58  ;;  %3880 = vadd.xlane.f32.xlu1 %v3879_v59  ;;  %v9722_v59 = vld [vmem:[%s16218_s3 + $0x38] sm:$0xff]  }
 0x5a3   :  { %v3681_v30 = vsub.f32 %v16640_v7, %v3533_v54  ;;  %v3518_v29 = vpop.xlane.xlu0 %3517  ;;  %v9721_v54 = vld [vmem:[%s16218_s3 + $0x30] sm:$0xff]  }
 0x5a4   :  { %v13374_v26 = vpop.eup %10103  ;;  %10113 = vpow2.f32 %v3752_v3  ;;  %v3676_v22 = vsub.f32 %v16641_v23, %v3518_v29  ;;  %v13377_v6 = vpop.f32.mrb[36].mxu1  ;;  %3865 = vadd.xlane.f32.xlu0 %v3864_v14  ;;  %9558 = vmatprep.subr.bf16.mxu0 %v9721_v54  ;;  %v2845_v29 = vmul.f32 %v13388_v39, %v13340_v46 }
 0x5a5   :  { %16703 = vst [vmem:[#allocation32_spill] sm:$0xff] %v13374_v26  ;;  %v13379_v11 = vpop.eup %10105  ;;  %v2556_v21 = vpop.f32.mrb[37].mxu1  ;;  %v3897_v7 = vsel %vm71_vm0, %v13374_v26, 0.0  ;;  %10115 = vpow2.f32 %v3748_v36  ;;  %v3766_v33 = vmul.f32 1.442695, %v3681_v30  ;;  %9559 = vmatpush3.bf16.msra.mxu0 %v9721_v54 }
 0x5a6   :  { %16704 = vst [vmem:[#allocation34_spill] sm:$0xff] %v13379_v11  ;;  %v3539_v63 = vpop.xlane.xlu1 %3538  ;;  %v13383_v47 = vpop.eup %10107  ;;  %3898 = vadd.xlane.f32.xlu1 %v3897_v7  ;;  %10117 = vpow2.f32 %v3762_v16  ;;  %v3891_v30 = vsel %vm71_vm0, %v13379_v11, 0.0  ;;  %9560 = vmatprep.subr.bf16.mxu0 %v9722_v59 }
 0x5a7   :  { %v3683_v23 = vsub.f32 %v16644_v34, %v3539_v63  ;;  %v9353_v17 = vpop.f32.mrb[38].mxu1  ;;  %v3524_v58 = vpop.xlane.xlu0 %3523  ;;  %v3882_v50 = vsel %vm71_vm0, %v13383_v47, 0.0  ;;  %v3756_v34 = vmul.f32 1.442695, %v3676_v22  ;;  %10119 = vpow2.f32 %v3766_v33 }
 0x5a8   :  { %v2559_v45 = vpop.f32.mrb[39].mxu1  ;;  %v13399_v36 = vpop.eup %10109  ;;  %3883 = vadd.xlane.f32.xlu0 %v3882_v50  ;;  %v3678_v3 = vsub.f32 %v16645_v27, %v3524_v58  ;;  %v2843_v27 = vmul.f32 %v13388_v39, %v13343_v48  ;;  %v2846_v58 = vmul.f32 %v13388_v39, %v13349_v61  ;;  %v16708_v50 = vld [vmem:[#allocation103_spill] sm:$0xff]  ;;  %v13428_v48 = vld [vmem:[%s16223_s8 + $0x2] ss:$0 sm:$0xff]  ;;  %v16711_v61 = vld [vmem:[#allocation100_spill] sm:$0xff] }
 0x5a9   :  { %v3770_v14 = vmul.f32 1.442695, %v3683_v23  ;;  %v3876_v22 = vsel %vm71_vm0, %v13399_v36, 0.0  ;;  %10121 = vpow2.f32 %v3756_v34  ;;  %v13414_v23 = vpop.eup %10111  ;;  %v3657_v54 = vsel %vm71_vm0, %v16708_v50, -inf  ;;  %16710 = vst [vmem:[#allocation44_spill] sm:$0xff] %v13428_v48  ;;  %9561 = vmatpush3.bf16.msra.mxu0 %v9722_v59 }
 0x5aa   :  { %v3545_v16 = vpop.xlane.xlu1 %3544  ;;  %3892 = vadd.xlane.f32.xlu1 %v3891_v30  ;;  %v3760_v63 = vmul.f32 1.442695, %v3678_v3  ;;  %16706 = vst [vmem:[#allocation45_spill] sm:$0xff] %v13414_v23  ;;  %v2937_v34 = vsel %vm71_vm0, %v2845_v29, 0.0  ;;  %v2907_v0 = vsel %vm71_vm0, %v2843_v27, 0.0  ;;  %v2849_v29 = vmul.f32 %v13388_v39, %v13377_v6 }
 0x5ab   :  { %v3685_v7 = vsub.f32 %v16648_v4, %v3545_v16  ;;  %v3530_v26 = vpop.xlane.xlu0 %3529  ;;  %v13419_v4 = vld [vmem:[%s16223_s8 + $0x1] ss:$0 sm:$0xff]  ;;  %10123 = vpow2.f32 %v3770_v14  ;;  %v2952_v14 = vsel %vm71_vm0, %v2846_v58, 0.0  ;;  %v3903_v27 = vsel %vm71_vm0, %v13414_v23, 0.0 }
 0x5ac   :  { %v3680_v46 = vsub.f32 %v16649_v56, %v3530_v26  ;;  %3877 = vadd.xlane.f32.xlu0 %v3876_v22  ;;  %16707 = vst [vmem:[#allocation41_spill] sm:$0xff] %v13419_v4  ;;  %v3654_v26 = vsel %vm71_vm0, %v16711_v61, -inf  ;;  %10125 = vpow2.f32 %v3760_v63  ;;  %v2847_v63 = vmul.f32 %v13388_v39, %v2556_v21 }
 0x5ad   :  { %v3774_v16 = vmul.f32 1.442695, %v3685_v7  ;;  %v2850_v58 = vmul.f32 %v13388_v39, %v9353_v17  ;;  %v2848_v61 = vmul.f32 %v13388_v39, %v2559_v45 }
 0x5ae   :  { %v3551_v33 = vpop.xlane.xlu1 %3550  ;;  %v13423_v3 = vpop.eup %10113  ;;  %3658 = vmax.xlane.f32.xlu1 %v3657_v54 }
 0x5af   :  { %16709 = vst [vmem:[#allocation49_spill] sm:$0xff] %v13423_v3  ;;  %v3687_v56 = vsub.f32 %v16651_v2, %v3551_v33  ;;  %v3536_v30 = vpop.xlane.xlu0 %3535  ;;  %v3894_v22 = vsel %vm71_vm0, %v13423_v3, 0.0  ;;  %v13436_v11 = vpop.eup %10115  ;;  %v2844_v2 = vmul.f32 %v13388_v39, %v13353_v9  ;;  %v3764_v33 = vmul.f32 1.442695, %v3680_v46 }
 0x5b0   :  { %3895 = vadd.xlane.f32.xlu0 %v3894_v22  ;;  %v13442_v59 = vpop.eup %10117  ;;  %v3682_v9 = vsub.f32 %v16652_v40, %v3536_v30  ;;  %10127 = vpow2.f32 %v3774_v16  ;;  %v3888_v23 = vsel %vm71_vm0, %v13436_v11, 0.0 }
 0x5b1   :  { %16712 = vst [vmem:[#allocation48_spill] sm:$0xff] %v13442_v59  ;;  %v3778_v7 = vmul.f32 1.442695, %v3687_v56  ;;  %v9356_v3 = vpop.f32.mrb[40].mxu1  ;;  %10129 = vpow2.f32 %v3764_v33  ;;  %v13461_v16 = vpop.eup %10119  ;;  %v2922_v39 = vsel %vm71_vm0, %v2844_v2, 0.0 }
 0x5b2   :  { %v3557_v54 = vpop.xlane.xlu1 %3556  ;;  %v2853_v46 = vmul.f32 %v13419_v4, %v9356_v3  ;;  %3904 = vadd.xlane.f32.xlu1 %v3903_v27  ;;  %v2572_v22 = vpop.f32.mrb[41].mxu1  ;;  %v3909_v3 = vsel %vm71_vm0, %v13442_v59, 0.0  ;;  %v2997_v59 = vsel %vm71_vm0, %v2849_v29, 0.0 }
 0x5b3   :  { %v3689_v6 = vsub.f32 %v16654_v60, %v3557_v54  ;;  %v2851_v21 = vmul.f32 %v13419_v4, %v2572_v22  ;;  %v9357_v56 = vpop.f32.mrb[42].mxu1  ;;  %v3542_v49 = vpop.xlane.xlu0 %3541  ;;  %10131 = vpow2.f32 %v3778_v7 }
 0x5b4   :  { %v2938_v17 = vsel %vm71_vm0, %v2853_v46, 0.0  ;;  %v2854_v45 = vmul.f32 %v13419_v4, %v9357_v56  ;;  %v2575_v40 = vpop.f32.mrb[43].mxu1  ;;  %3889 = vadd.xlane.f32.xlu0 %v3888_v23  ;;  %v13467_v33 = vpop.eup %10121  ;;  %v3768_v46 = vmul.f32 1.442695, %v3682_v9  ;;  %v3684_v56 = vsub.f32 %v16655_v15, %v3542_v49 }
 0x5b5   :  { %v13463_v60 = vadd.f32 %v2938_v17, %v2937_v34  ;;  %v2908_v30 = vsel %vm71_vm0, %v2851_v21, 0.0  ;;  %v2852_v54 = vmul.f32 %v13419_v4, %v2575_v40  ;;  %v3782_v7 = vmul.f32 1.442695, %v3689_v6  ;;  %v13477_v40 = vpop.eup %10123 }
 0x5b6   :  { %v3563_v27 = vpop.xlane.xlu1 %3562  ;;  %v13469_v22 = vadd.f32 %v2908_v30, %v2907_v0  ;;  %v2953_v23 = vsel %vm71_vm0, %v2854_v45, 0.0  ;;  %3910 = vadd.xlane.f32.xlu1 %v3909_v3  ;;  %v2967_v0 = vsel %vm71_vm0, %v2847_v63, 0.0  ;;  %v13484_v15 = vpop.eup %10125  ;;  %v3012_v49 = vsel %vm71_vm0, %v2850_v58, 0.0 }
 0x5b7   :  { %v13474_v34 = vadd.f32 %v2953_v23, %v2952_v14  ;;  %v2923_v21 = vsel %vm71_vm0, %v2852_v54, 0.0  ;;  %v3548_v17 = vpop.xlane.xlu0 %3547  ;;  %v3691_v45 = vsub.f32 %v16658_v8, %v3563_v27  ;;  %v2982_v14 = vsel %vm71_vm0, %v2848_v61, 0.0 }
 0x5b8   :  { %v13481_v9 = vadd.f32 %v2923_v21, %v2922_v39  ;;  %3655 = vmax.xlane.f32.xlu0 %v3654_v26  ;;  %v3915_v3 = vsel %vm71_vm0, %v13461_v16, 0.0  ;;  %v3900_v29 = vsel %vm71_vm0, %v13467_v33, 0.0  ;;  %10133 = vpow2.f32 %v3768_v46 }
 0x5b9   :  { %v9360_v6 = vpop.f32.mrb[44].mxu1  ;;  %v3772_v39 = vmul.f32 1.442695, %v3684_v56  ;;  %v3686_v63 = vsub.f32 %v16659_v19, %v3548_v17  ;;  %10135 = vpow2.f32 %v3782_v7  ;;  %v3921_v27 = vsel %vm71_vm0, %v13477_v40, 0.0 }
 0x5ba   :  { %v3569_v2 = vpop.xlane.xlu1 %3568  ;;  %v2857_v8 = vmul.f32 %v13419_v4, %v9360_v6  ;;  %3916 = vadd.xlane.f32.xlu1 %v3915_v3  ;;  %v2588_v26 = vpop.f32.mrb[45].mxu1  ;;  %v3786_v23 = vmul.f32 1.442695, %v3691_v45  ;;  %v3906_v21 = vsel %vm71_vm0, %v13484_v15, 0.0 }
 0x5bb   :  { %v3693_v58 = vsub.f32 %v16660_v37, %v3569_v2  ;;  %v2855_v61 = vmul.f32 %v13419_v4, %v2588_v26  ;;  %v9361_v30 = vpop.f32.mrb[46].mxu1  ;;  %v3554_v54 = vpop.xlane.xlu0 %3553  ;;  %10137 = vpow2.f32 %v3772_v39 }
 0x5bc   :  { %v2998_v46 = vsel %vm71_vm0, %v2857_v8, 0.0  ;;  %v2858_v56 = vmul.f32 %v13419_v4, %v9361_v30  ;;  %v2591_v19 = vpop.f32.mrb[47].mxu1  ;;  %3901 = vadd.xlane.f32.xlu0 %v3900_v29  ;;  %v13502_v7 = vpop.eup %10127  ;;  %v3688_v2 = vsub.f32 %v16661_v35, %v3554_v54  ;;  %v3776_v8 = vmul.f32 1.442695, %v3686_v63 }
 0x5bd   :  { %v13504_v37 = vadd.f32 %v2998_v46, %v2997_v59  ;;  %v2968_v17 = vsel %vm71_vm0, %v2855_v61, 0.0  ;;  %v2856_v6 = vmul.f32 %v13419_v4, %v2591_v19  ;;  %v13509_v3 = vpop.eup %10129  ;;  %v3790_v59 = vmul.f32 1.442695, %v3693_v58 }
 0x5be   :  { %v3575_v45 = vpop.xlane.xlu1 %3574  ;;  %v13511_v26 = vadd.f32 %v2968_v17, %v2967_v0  ;;  %v3013_v29 = vsel %vm71_vm0, %v2858_v56, 0.0  ;;  %3922 = vadd.xlane.f32.xlu1 %v3921_v27  ;;  %v13514_v30 = vpop.eup %10131  ;;  %10139 = vpow2.f32 %v3786_v23  ;;  %v3780_v19 = vmul.f32 1.442695, %v3688_v2 }
 0x5bf   :  { %v13516_v46 = vadd.f32 %v3013_v29, %v3012_v49  ;;  %v2983_v61 = vsel %vm71_vm0, %v2856_v6, 0.0  ;;  %v3695_v35 = vsub.f32 %v16662_v1, %v3575_v45  ;;  %v3560_v54 = vpop.xlane.xlu0 %3559  ;;  %v3927_v63 = vsel %vm71_vm0, %v13502_v7, 0.0 }
 0x5c0   :  { %v13520_v4 = vadd.f32 %v2983_v61, %v2982_v14  ;;  %3907 = vadd.xlane.f32.xlu0 %v3906_v21  ;;  %10141 = vpow2.f32 %v3776_v8  ;;  %v3690_v58 = vsub.f32 %v16663_v53, %v3560_v54  ;;  %v3912_v1 = vsel %vm71_vm0, %v13509_v3, 0.0 }
 0x5c1   :  { %v9364_v39 = vpop.f32.mrb[48].mxu1  ;;  %10143 = vpow2.f32 %v3790_v59  ;;  %v3794_v23 = vmul.f32 1.442695, %v3695_v35  ;;  %v3933_v17 = vsel %vm71_vm0, %v13514_v30, 0.0 }
 0x5c2   :  { %v3581_v0 = vpop.xlane.xlu1 %3580  ;;  %v2861_v49 = vmul.f32 %v13428_v48, %v9364_v39  ;;  %3928 = vadd.xlane.f32.xlu1 %v3927_v63  ;;  %v2604_v27 = vpop.f32.mrb[49].mxu1  ;;  %10145 = vpow2.f32 %v3780_v19  ;;  %v3784_v39 = vmul.f32 1.442695, %v3690_v58 }
 0x5c3   :  { %v2859_v14 = vmul.f32 %v13428_v48, %v2604_v27  ;;  %v9365_v56 = vpop.f32.mrb[50].mxu1  ;;  %v3566_v21 = vpop.xlane.xlu0 %3565  ;;  %v3697_v53 = vsub.f32 %v16664_v18, %v3581_v0  ;;  %10147 = vpow2.f32 %v3794_v23 }
 0x5c4   :  { %v13531_v2 = vpop.eup %10133  ;;  %v2940_v6 = vsel %vm71_vm0, %v2861_v49, 0.0  ;;  %v2862_v45 = vmul.f32 %v13428_v48, %v9365_v56  ;;  %v2607_v8 = vpop.f32.mrb[51].mxu1  ;;  %3913 = vadd.xlane.f32.xlu0 %v3912_v1  ;;  %v3692_v35 = vsub.f32 %v16667_v13, %v3566_v21  ;;  %10149 = vpow2.f32 %v3784_v39 }
 0x5c5   :  { %v13536_v29 = vpop.eup %10135  ;;  %v13539_v59 = vadd.f32 %v2940_v6, %v13463_v60  ;;  %v2910_v61 = vsel %vm71_vm0, %v2859_v14, 0.0  ;;  %v2860_v54 = vmul.f32 %v13428_v48, %v2607_v8  ;;  %v3918_v13 = vsel %vm71_vm0, %v13531_v2, 0.0 }
 0x5c6   :  { %v3587_v19 = vpop.xlane.xlu1 %3586  ;;  %v13545_v18 = vadd.f32 %v2910_v61, %v13469_v22  ;;  %v2955_v0 = vsel %vm71_vm0, %v2862_v45, 0.0  ;;  %3934 = vadd.xlane.f32.xlu1 %v3933_v17  ;;  %v13555_v1 = vpop.eup %10137  ;;  %v3798_v58 = vmul.f32 1.442695, %v3697_v53 }
 0x5c7   :  { %v3699_v63 = vsub.f32 %v16668_v25, %v3587_v19  ;;  %v13550_v49 = vadd.f32 %v2955_v0, %v13474_v34  ;;  %v2925_v60 = vsel %vm71_vm0, %v2860_v54, 0.0  ;;  %v3572_v27 = vpop.xlane.xlu0 %3571  ;;  %v3788_v25 = vmul.f32 1.442695, %v3692_v35  ;;  %v13580_v0 = vld [vmem:[%s16223_s8 + $0x3] ss:$0 sm:$0xff] }
 0x5c8   :  { %v13558_v22 = vadd.f32 %v2925_v60, %v13481_v9  ;;  %v3694_v14 = vsub.f32 %v16671_v31, %v3572_v27  ;;  %3919 = vadd.xlane.f32.xlu0 %v3918_v13  ;;  %v3939_v34 = vsel %vm71_vm0, %v13536_v29, 0.0  ;;  %v13563_v21 = vpop.eup %10139  ;;  %v3924_v23 = vsel %vm71_vm0, %v13555_v1, 0.0  ;;  %16713 = vst [vmem:[#allocation43_spill] sm:$0xff] %v13580_v0 }
 0x5c9   :  { %v3802_v17 = vmul.f32 1.442695, %v3699_v63  ;;  %10151 = vpow2.f32 %v3798_v58  ;;  %v3945_v19 = vsel %vm71_vm0, %v13563_v21, 0.0 }
 0x5ca   :  { %v3593_v56 = vpop.xlane.xlu1 %3592  ;;  %3940 = vadd.xlane.f32.xlu1 %v3939_v34  ;;  %v3792_v6 = vmul.f32 1.442695, %v3694_v14  ;;  %v13567_v9 = vpop.eup %10141  ;;  %10153 = vpow2.f32 %v3788_v25 }
 0x5cb   :  { %v3578_v45 = vpop.xlane.xlu0 %3577  ;;  %v3701_v31 = vsub.f32 %v16672_v38, %v3593_v56  ;;  %v13570_v8 = vpop.eup %10143  ;;  %10155 = vpow2.f32 %v3802_v17  ;;  %v3930_v25 = vsel %vm71_vm0, %v13567_v9, 0.0 }
 0x5cc   :  { %v9368_v53 = vpop.f32.mrb[52].mxu1  ;;  %3925 = vadd.xlane.f32.xlu0 %v3924_v23  ;;  %v13575_v39 = vpop.eup %10145  ;;  %v3696_v38 = vsub.f32 %v16675_v28, %v3578_v45  ;;  %10157 = vpow2.f32 %v3792_v6 }
 0x5cd   :  { %v2865_v61 = vmul.f32 %v13428_v48, %v9368_v53  ;;  %v2620_v54 = vpop.f32.mrb[53].mxu1  ;;  %v3806_v56 = vmul.f32 1.442695, %v3701_v31  ;;  %v13600_v31 = vpop.eup %10147 }
 0x5ce   :  { %v3599_v35 = vpop.xlane.xlu1 %3598  ;;  %v2863_v63 = vmul.f32 %v13428_v48, %v2620_v54  ;;  %3946 = vadd.xlane.f32.xlu1 %v3945_v19  ;;  %v9369_v60 = vpop.f32.mrb[54].mxu1 }
 0x5cf   :  { %v3000_v27 = vsel %vm71_vm0, %v2865_v61, 0.0  ;;  %v2866_v13 = vmul.f32 %v13428_v48, %v9369_v60  ;;  %v2623_v58 = vpop.f32.mrb[55].mxu1  ;;  %v3584_v14 = vpop.xlane.xlu0 %3583  ;;  %v3703_v28 = vsub.f32 %v16676_v57, %v3599_v35  ;;  %v3951_v61 = vsel %vm71_vm0, %v13570_v8, 0.0 }
 0x5d0   :  { %v13589_v34 = vadd.f32 %v3000_v27, %v13504_v37  ;;  %v2970_v17 = vsel %vm71_vm0, %v2863_v63, 0.0  ;;  %3931 = vadd.xlane.f32.xlu0 %v3930_v25  ;;  %v2864_v23 = vmul.f32 %v13428_v48, %v2623_v58  ;;  %v3796_v37 = vmul.f32 1.442695, %v3696_v38  ;;  %v13610_v60 = vpop.eup %10149 }
 0x5d1   :  { %v13594_v6 = vadd.f32 %v2970_v17, %v13511_v26  ;;  %v3015_v45 = vsel %vm71_vm0, %v2866_v13, 0.0  ;;  %v3698_v57 = vsub.f32 %v16679_v20, %v3584_v14  ;;  %v3936_v63 = vsel %vm71_vm0, %v13575_v39, 0.0 }
 0x5d2   :  { %v3605_v53 = vpop.xlane.xlu1 %3604  ;;  %v13603_v54 = vadd.f32 %v3015_v45, %v13516_v46  ;;  %3952 = vadd.xlane.f32.xlu1 %v3951_v61  ;;  %v2985_v26 = vsel %vm71_vm0, %v2864_v23, 0.0  ;;  %10159 = vpow2.f32 %v3806_v56  ;;  %v3810_v27 = vmul.f32 1.442695, %v3703_v28 }
 0x5d3   :  { %v3705_v35 = vsub.f32 %v16680_v41, %v3605_v53  ;;  %v3590_v19 = vpop.xlane.xlu0 %3589  ;;  %v13613_v38 = vadd.f32 %v2985_v26, %v13520_v4  ;;  %v3957_v41 = vsel %vm71_vm0, %v13600_v31, 0.0  ;;  %v13618_v14 = vpop.eup %10151  ;;  %10161 = vpow2.f32 %v3796_v37 }
 0x5d4   :  { %v9372_v46 = vpop.f32.mrb[56].mxu1  ;;  %3937 = vadd.xlane.f32.xlu0 %v3936_v63  ;;  %16714 = vst [vmem:[#allocation53_spill] sm:$0xff] %v13618_v14  ;;  %v3800_v25 = vmul.f32 1.442695, %v3698_v57  ;;  %v3700_v17 = vsub.f32 %v16681_v62, %v3590_v19  ;;  %v13622_v28 = vpop.eup %10153  ;;  %v3942_v63 = vsel %vm71_vm0, %v13610_v60, 0.0  ;;  %10163 = vpow2.f32 %v3810_v27 }
 0x5d5   :  { %v2869_v20 = vmul.f32 %v13580_v0, %v9372_v46  ;;  %v2636_v58 = vpop.f32.mrb[57].mxu1  ;;  %v3814_v45 = vmul.f32 1.442695, %v3705_v35  ;;  %v13628_v37 = vpop.eup %10155  ;;  %v3963_v27 = vsel %vm71_vm0, %v13618_v14, 0.0 }
 0x5d6   :  { %v3611_v13 = vpop.xlane.xlu1 %3610  ;;  %v2867_v56 = vmul.f32 %v13580_v0, %v2636_v58  ;;  %3958 = vadd.xlane.f32.xlu1 %v3957_v41  ;;  %v9373_v4 = vpop.f32.mrb[58].mxu1  ;;  %16715 = vst [vmem:[#allocation47_spill] sm:$0xff] %v13628_v37  ;;  %10165 = vpow2.f32 %v3800_v25 }
 0x5d7   :  { %v2942_v23 = vsel %vm71_vm0, %v2869_v20, 0.0  ;;  %v2870_v53 = vmul.f32 %v13580_v0, %v9373_v4  ;;  %v2639_v61 = vpop.f32.mrb[59].mxu1  ;;  %v3596_v26 = vpop.xlane.xlu0 %3595  ;;  %v3707_v57 = vsub.f32 %v16682_v10, %v3611_v13  ;;  %10167 = vpow2.f32 %v3814_v45 }
 0x5d8   :  { %v13631_v62 = vadd.f32 %v2942_v23, %v13539_v59  ;;  %v2912_v19 = vsel %vm71_vm0, %v2867_v56, 0.0  ;;  %3943 = vadd.xlane.f32.xlu0 %v3942_v63  ;;  %v13635_v35 = vpop.eup %10157  ;;  %v2868_v58 = vmul.f32 %v13580_v0, %v2639_v61  ;;  %v3804_v59 = vmul.f32 1.442695, %v3700_v17  ;;  %v16716_v56 = vld [vmem:[#allocation91_spill] sm:$0xff] }
 0x5d9   :  { %v13638_v46 = vadd.f32 %v2912_v19, %v13545_v18  ;;  %v2957_v20 = vsel %vm71_vm0, %v2870_v53, 0.0  ;;  %v3702_v13 = vsub.f32 %v16683_v42, %v3596_v26  ;;  %v3948_v53 = vsel %vm71_vm0, %v13622_v28, 0.0 }
 0x5da   :  { %v3617_v41 = vpop.xlane.xlu1 %3616  ;;  %v13645_v10 = vadd.f32 %v2957_v20, %v13550_v49  ;;  %3964 = vadd.xlane.f32.xlu1 %v3963_v27  ;;  %v2927_v18 = vsel %vm71_vm0, %v2868_v58, 0.0  ;;  %v3818_v61 = vmul.f32 1.442695, %v3707_v57  ;;  %v3969_v45 = vsel %vm71_vm0, %v13628_v37, 0.0  ;;  %v16718_v57 = vld [vmem:[#allocation29_spill] sm:$0xff] }
 0x5db   :  { %v3709_v4 = vsub.f32 %v16716_v56, %v3617_v41  ;;  %v3602_v23 = vpop.xlane.xlu0 %3601  ;;  %v13653_v63 = vadd.f32 %v2927_v18, %v13558_v22  ;;  %v3954_v26 = vsel %vm71_vm0, %v13635_v35, 0.0  ;;  %10169 = vpow2.f32 %v3804_v59  ;;  %v16719_v56 = vld [vmem:[#allocation9_spill] sm:$0xff] }
 0x5dc   :  { %3949 = vadd.xlane.f32.xlu0 %v3948_v53  ;;  %v13660_v19 = vpop.eup %10159  ;;  %v3808_v20 = vmul.f32 1.442695, %v3702_v13  ;;  %v3704_v58 = vsub.f32 %v16718_v57, %v3602_v23  ;;  %v13672_v59 = vld [vmem:[%s16223_s8 + $0x4] ss:$0 sm:$0xff]  ;;  %10171 = vpow2.f32 %v3818_v61 }
 0x5dd   :  { %16717 = vst [vmem:[#allocation52_spill] sm:$0xff] %v13660_v19  ;;  %v3822_v27 = vmul.f32 1.442695, %v3709_v4  ;;  %v13667_v14 = vpop.eup %10161  ;;  %16721 = vst [vmem:[#allocation51_spill] sm:$0xff] %v13672_v59 }
 0x5de   :  { %v9376_v25 = vpop.f32.mrb[60].mxu1  ;;  %v3623_v17 = vpop.xlane.xlu1 %3622  ;;  %3970 = vadd.xlane.f32.xlu1 %v3969_v45  ;;  %16720 = vst [vmem:[#allocation46_spill] sm:$0xff] %v13667_v14  ;;  %v3975_v45 = vsel %vm71_vm0, %v13660_v19, 0.0  ;;  %10173 = vpow2.f32 %v3808_v20  ;;  %v3812_v61 = vmul.f32 1.442695, %v3704_v58  ;;  %v16725_v20 = vld [vmem:[#allocation17_spill] sm:$0xff] }
 0x5df   :  { %v2873_v49 = vmul.f32 %v13580_v0, %v9376_v25  ;;  %v2652_v42 = vpop.f32.mrb[61].mxu1  ;;  %v3711_v53 = vsub.f32 %v16719_v56, %v3623_v17  ;;  %v3608_v37 = vpop.xlane.xlu0 %3607  ;;  %10175 = vpow2.f32 %v3822_v27 }
 0x5e0   :  { %v2871_v22 = vmul.f32 %v13580_v0, %v2652_v42  ;;  %v9377_v41 = vpop.f32.mrb[62].mxu1  ;;  %3955 = vadd.xlane.f32.xlu0 %v3954_v26  ;;  %v13685_v57 = vpop.eup %10163  ;;  %10177 = vpow2.f32 %v3812_v61 }
 0x5e1   :  { %v3002_v18 = vsel %vm71_vm0, %v2873_v49, 0.0  ;;  %v2874_v25 = vmul.f32 %v13580_v0, %v9377_v41  ;;  %v2655_v48 = vpop.f32.mrb[63].mxu1  ;;  %16722 = vst [vmem:[#allocation77_spill] sm:$0xff] %v13685_v57  ;;  %v13694_v56 = vpop.eup %10165 }
 0x5e2   :  { %v13675_v13 = vadd.f32 %v3002_v18, %v13589_v34  ;;  %v2972_v4 = vsel %vm71_vm0, %v2871_v22, 0.0  ;;  %v2872_v17 = vmul.f32 %v13580_v0, %v2655_v48  ;;  %v3629_v42 = vpop.xlane.xlu1 %3628  ;;  %v16723_v22 = vld [vmem:[#allocation88_spill] sm:$0xff]  ;;  %3976 = vadd.xlane.f32.xlu1 %v3975_v45  ;;  %v3960_v48 = vsel %vm71_vm0, %v13667_v14, 0.0  ;;  %16724 = vst [vmem:[#allocation71_spill] sm:$0xff] %v13694_v56  ;;  %v16728_v0 = vld [vmem:[#allocation25_spill] sm:$0xff] }
 0x5e3   :  { %v13679_v23 = vadd.f32 %v2972_v4, %v13594_v6  ;;  %v3017_v49 = vsel %vm71_vm0, %v2874_v25, 0.0  ;;  %v3706_v26 = vsub.f32 %v16723_v22, %v3608_v37  ;;  %v3826_v6 = vmul.f32 1.442695, %v3711_v53  ;;  %v3614_v18 = vpop.xlane.xlu0 %3613  ;;  %v13700_v4 = vpop.eup %10167  ;;  %v16727_v37 = vld [vmem:[#allocation18_spill] sm:$0xff] }
 0x5e4   :  { %v13688_v34 = vadd.f32 %v3017_v49, %v13603_v54  ;;  %v2987_v41 = vsel %vm71_vm0, %v2872_v17, 0.0  ;;  %v3713_v58 = vsub.f32 %v16725_v20, %v3629_v42  ;;  %3961 = vadd.xlane.f32.xlu0 %v3960_v48  ;;  %16726 = vst [vmem:[#allocation56_spill] sm:$0xff] %v13700_v4  ;;  %v3708_v27 = vsub.f32 %v16727_v37, %v3614_v18 }
 0x5e5   :  { %v13697_v25 = vadd.f32 %v2987_v41, %v13613_v38  ;;  %v3981_v45 = vsel %vm71_vm0, %v13685_v57, 0.0  ;;  %v3816_v22 = vmul.f32 1.442695, %v3706_v26  ;;  %10179 = vpow2.f32 %v3826_v6  ;;  %v13712_v19 = vpop.eup %10169 }
 0x5e6   :  { %v9380_v54 = vpop.f32.mrb[64].mxu1  ;;  %v3635_v49 = vpop.xlane.xlu1 %3634  ;;  %3982 = vadd.xlane.f32.xlu1 %v3981_v45  ;;  %v3966_v37 = vsel %vm71_vm0, %v13694_v56, 0.0  ;;  %16729 = vst [vmem:[#allocation50_spill] sm:$0xff] %v13712_v19  ;;  %v3830_v61 = vmul.f32 1.442695, %v3713_v58  ;;  %v3987_v6 = vsel %vm71_vm0, %v13700_v4, 0.0 }
 0x5e7   :  { %v2877_v53 = vmul.f32 %v13672_v59, %v9380_v54  ;;  %v2668_v17 = vpop.f32.mrb[65].mxu1  ;;  %v3715_v38 = vsub.f32 %v16728_v0, %v3635_v49  ;;  %v3620_v54 = vpop.xlane.xlu0 %3619  ;;  %10181 = vpow2.f32 %v3816_v22  ;;  %v16732_v22 = vld [vmem:[#allocation96_spill] sm:$0xff]  ;;  %v16736_v4 = vld [vmem:[#allocation95_spill] sm:$0xff] }
 0x5e8   :  { %v2875_v41 = vmul.f32 %v13672_v59, %v2668_v17  ;;  %v9381_v42 = vpop.f32.mrb[66].mxu1  ;;  %3967 = vadd.xlane.f32.xlu0 %v3966_v37  ;;  %v13725_v57 = vpop.eup %10171  ;;  %10183 = vpow2.f32 %v3830_v61 }
 0x5e9   :  { %v2944_v48 = vsel %vm71_vm0, %v2877_v53, 0.0  ;;  %v2878_v18 = vmul.f32 %v13672_v59, %v9381_v42  ;;  %v2671_v20 = vpop.f32.mrb[67].mxu1  ;;  %v3820_v53 = vmul.f32 1.442695, %v3708_v27  ;;  %16730 = vst [vmem:[#allocation81_spill] sm:$0xff] %v13725_v57 }
 0x5ea   :  { %v13715_v26 = vadd.f32 %v2944_v48, %v13631_v62  ;;  %v2914_v0 = vsel %vm71_vm0, %v2875_v41, 0.0  ;;  %v2876_v45 = vmul.f32 %v13672_v59, %v2671_v20  ;;  %v3641_v42 = vpop.xlane.xlu1 %3640  ;;  %v3834_v62 = vmul.f32 1.442695, %v3715_v38  ;;  %v16731_v41 = vld [vmem:[#allocation15_spill] sm:$0xff]  ;;  %3988 = vadd.xlane.f32.xlu1 %v3987_v6 }
 0x5eb   :  { %v13721_v49 = vadd.f32 %v2914_v0, %v13638_v46  ;;  %v2959_v17 = vsel %vm71_vm0, %v2878_v18, 0.0  ;;  %v3710_v48 = vsub.f32 %v16731_v41, %v3620_v54  ;;  %v3626_v37 = vpop.xlane.xlu0 %3625  ;;  %v3972_v46 = vsel %vm71_vm0, %v13712_v19, 0.0  ;;  %v13734_v18 = vpop.eup %10173  ;;  %v13745_v54 = vld [vmem:[%s16223_s8 + $0x5] ss:$0 sm:$0xff] }
 0x5ec   :  { %v13728_v58 = vadd.f32 %v2959_v17, %v13645_v10  ;;  %v2929_v27 = vsel %vm71_vm0, %v2876_v45, 0.0  ;;  %v3717_v38 = vsub.f32 %v16732_v22, %v3641_v42  ;;  %3973 = vadd.xlane.f32.xlu0 %v3972_v46  ;;  %v13740_v10 = vpop.eup %10175  ;;  %16734 = vst [vmem:[#allocation60_spill] sm:$0xff] %v13745_v54  ;;  %10185 = vpow2.f32 %v3820_v53  ;;  %v16735_v42 = vld [vmem:[#allocation33_spill] sm:$0xff] }
 0x5ed   :  { %v13737_v20 = vadd.f32 %v2929_v27, %v13653_v63  ;;  %16733 = vst [vmem:[#allocation79_spill] sm:$0xff] %v13740_v10  ;;  %v3993_v63 = vsel %vm71_vm0, %v13725_v57, 0.0  ;;  %10187 = vpow2.f32 %v3834_v62  ;;  %v3824_v61 = vmul.f32 1.442695, %v3710_v48  ;;  %v13757_v57 = vpop.eup %10177 }
 0x5ee   :  { %v9384_v0 = vpop.f32.mrb[68].mxu1  ;;  %v3647_v17 = vpop.xlane.xlu1 %3646  ;;  %v3712_v41 = vsub.f32 %v16735_v42, %v3626_v37  ;;  %3994 = vadd.xlane.f32.xlu1 %v3993_v63  ;;  %v3978_v14 = vsel %vm71_vm0, %v13734_v18, 0.0  ;;  %v3838_v62 = vmul.f32 1.442695, %v3717_v38  ;;  %v16738_v42 = vld [vmem:[#allocation7_spill] sm:$0xff] }
 0x5ef   :  { %v2881_v6 = vmul.f32 %v13672_v59, %v9384_v0  ;;  %v2684_v45 = vpop.f32.mrb[69].mxu1  ;;  %v3719_v19 = vsub.f32 %v16736_v4, %v3647_v17  ;;  %v3632_v56 = vpop.xlane.xlu0 %3631  ;;  %10189 = vpow2.f32 %v3824_v61 }
 0x5f0   :  { %v2879_v27 = vmul.f32 %v13672_v59, %v2684_v45  ;;  %v9385_v46 = vpop.f32.mrb[70].mxu1  ;;  %3979 = vadd.xlane.f32.xlu0 %v3978_v14  ;;  %v13765_v4 = vpop.eup %10179  ;;  %v3714_v38 = vsub.f32 %v16738_v42, %v3632_v56  ;;  %10191 = vpow2.f32 %v3838_v62  ;;  %v16739_v56 = vld [vmem:[#allocation104_spill] sm:$0xff] }
 0x5f1   :  { %v3004_v22 = vsel %vm71_vm0, %v2881_v6, 0.0  ;;  %v2882_v53 = vmul.f32 %v13672_v59, %v9385_v46  ;;  %v2687_v0 = vpop.f32.mrb[71].mxu1  ;;  %v3999_v6 = vsel %vm71_vm0, %v13740_v10, 0.0  ;;  %16737 = vst [vmem:[#allocation55_spill] sm:$0xff] %v13765_v4  ;;  %v3842_v14 = vmul.f32 1.442695, %v3719_v19 }
 0x5f2   :  { %v13760_v48 = vadd.f32 %v3004_v22, %v13675_v13  ;;  %v2974_v37 = vsel %vm71_vm0, %v2879_v27, 0.0  ;;  %v2880_v63 = vmul.f32 %v13672_v59, %v2687_v0  ;;  %v3653_v46 = vpop.xlane.xlu1 %3652  ;;  %v3828_v13 = vmul.f32 1.442695, %v3712_v41  ;;  %4000 = vadd.xlane.f32.xlu1 %v3999_v6 }
 0x5f3   :  { %v13768_v17 = vadd.f32 %v2974_v37, %v13679_v23  ;;  %v3019_v45 = vsel %vm71_vm0, %v2882_v53, 0.0  ;;  %v3638_v10 = vpop.xlane.xlu0 %3637  ;;  %v3984_v23 = vsel %vm71_vm0, %v13757_v57, 0.0  ;;  %v13779_v37 = vpop.eup %10181  ;;  %v3721_v61 = vsub.f32 %v16739_v56, %v3653_v46 }
 0x5f4   :  { %v13774_v27 = vadd.f32 %v3019_v45, %v13688_v34  ;;  %v2989_v22 = vsel %vm71_vm0, %v2880_v63, 0.0  ;;  %3985 = vadd.xlane.f32.xlu0 %v3984_v23  ;;  %v3832_v34 = vmul.f32 1.442695, %v3714_v38  ;;  %v4005_v6 = vsel %vm71_vm0, %v13765_v4, 0.0  ;;  %v13788_v45 = vpop.eup %10183  ;;  %v16741_v63 = vld [vmem:[#allocation93_spill] sm:$0xff] }
 0x5f5   :  { %v13782_v53 = vadd.f32 %v2989_v22, %v13697_v25  ;;  %16740 = vst [vmem:[#allocation85_spill] sm:$0xff] %v13788_v45  ;;  %10193 = vpow2.f32 %v3828_v13  ;;  %v3716_v42 = vsub.f32 %v16741_v63, %v3638_v10  ;;  %v3846_v13 = vmul.f32 1.442695, %v3721_v61 }
 0x5f6   :  { %4006 = vadd.xlane.f32.xlu1 %v4005_v6  ;;  %v13792_v22 = vpop.eup %10185  ;;  %10195 = vpow2.f32 %v3842_v14  ;;  %v4011_v63 = vsel %vm71_vm0, %v13788_v45, 0.0 }
 0x5f7   :  { %16742 = vst [vmem:[#allocation80_spill] sm:$0xff] %v13792_v22  ;;  %v3644_v56 = vpop.xlane.xlu0 %3643  ;;  %v13798_v59 = vpop.eup %10187  ;;  %10197 = vpow2.f32 %v3832_v34 }
 0x5f8   :  { %16743 = vst [vmem:[#allocation59_spill] sm:$0xff] %v13798_v59  ;;  %10199 = vpow2.f32 %v3846_v13 }
 0x5f9   :  { %v9388_v41 = vpop.f32.mrb[72].mxu1 }
 0x5fa   :  { %v2885_v0 = vmul.f32 %v13745_v54, %v9388_v41  ;;  %v2700_v19 = vpop.f32.mrb[73].mxu1  ;;  %v3990_v41 = vsel %vm71_vm0, %v13779_v37, 0.0  ;;  %4012 = vadd.xlane.f32.xlu1 %v4011_v63 }
 0x5fb   :  { %v2883_v62 = vmul.f32 %v13745_v54, %v2700_v19  ;;  %v9389_v25 = vpop.f32.mrb[74].mxu1  ;;  %3991 = vadd.xlane.f32.xlu0 %v3990_v41  ;;  %v3650_v34 = vpop.xlane.xlu0 %3649 }
 0x5fc   :  { %v2946_v38 = vsel %vm71_vm0, %v2885_v0, 0.0  ;;  %v2886_v46 = vmul.f32 %v13745_v54, %v9389_v25  ;;  %v2703_v23 = vpop.f32.mrb[75].mxu1  ;;  %v3836_v25 = vmul.f32 1.442695, %v3716_v42 }
 0x5fd   :  { %v13801_v10 = vadd.f32 %v2946_v38, %v13715_v26  ;;  %v2916_v19 = vsel %vm71_vm0, %v2883_v62, 0.0  ;;  %v2884_v6 = vmul.f32 %v13745_v54, %v2703_v23  ;;  %v16744_v38 = vld [vmem:[#allocation40_spill] sm:$0xff] }
 0x5fe   :  { %v13806_v14 = vadd.f32 %v2916_v19, %v13721_v49  ;;  %v2961_v0 = vsel %vm71_vm0, %v2886_v46, 0.0  ;;  %v3718_v62 = vsub.f32 %v16744_v38, %v3644_v56  ;;  %v3996_v49 = vsel %vm71_vm0, %v13792_v22, 0.0  ;;  %v13821_v46 = vpop.eup %10189 }
 0x5ff   :  { %v13812_v61 = vadd.f32 %v2961_v0, %v13728_v58  ;;  %v2931_v26 = vsel %vm71_vm0, %v2884_v6, 0.0  ;;  %16745 = vst [vmem:[#allocation54_spill] sm:$0xff] %v13821_v46  ;;  %3997 = vadd.xlane.f32.xlu0 %v3996_v49  ;;  %v4017_v19 = vsel %vm71_vm0, %v13798_v59, 0.0  ;;  %v13826_v56 = vpop.eup %10191  ;;  %10201 = vpow2.f32 %v3836_v25 }
 0x600   :  { %v13817_v23 = vadd.f32 %v2931_v26, %v13737_v20  ;;  %16746 = vst [vmem:[#allocation86_spill] sm:$0xff] %v13826_v56  ;;  %v3840_v20 = vmul.f32 1.442695, %v3718_v62  ;;  %v3720_v6 = vsub.f32 %v16700_v32, %v3650_v34  ;;  %4018 = vadd.xlane.f32.xlu1 %v4017_v19  ;;  %v4002_v49 = vsel %vm71_vm0, %v13821_v46, 0.0 }
 0x601   :  { %v9392_v41 = vpop.f32.mrb[76].mxu1 }
 0x602   :  { %v2889_v58 = vmul.f32 %v13745_v54, %v9392_v41  ;;  %v2716_v42 = vpop.f32.mrb[77].mxu1  ;;  %v13834_v41 = vpop.eup %10193  ;;  %10203 = vpow2.f32 %v3840_v20  ;;  %v3844_v19 = vmul.f32 1.442695, %v3720_v6 }
 0x603   :  { %v2887_v0 = vmul.f32 %v13745_v54, %v2716_v42  ;;  %v9393_v63 = vpop.f32.mrb[78].mxu1  ;;  %16747 = vst [vmem:[#allocation87_spill] sm:$0xff] %v13834_v41  ;;  %4003 = vadd.xlane.f32.xlu0 %v4002_v49  ;;  %v13839_v62 = vpop.eup %10195  ;;  %v4023_v42 = vsel %vm71_vm0, %v13826_v56, 0.0  ;;  %v16756_v56 = vld [vmem:[#allocation37_spill] sm:$0xff] }
 0x604   :  { %v3006_v13 = vsel %vm71_vm0, %v2889_v58, 0.0  ;;  %v2890_v26 = vmul.f32 %v13745_v54, %v9393_v63  ;;  %v2719_v38 = vpop.f32.mrb[79].mxu1  ;;  %16748 = vst [vmem:[#allocation64_spill] sm:$0xff] %v13839_v62  ;;  %4024 = vadd.xlane.f32.xlu1 %v4023_v42  ;;  %v4029_v20 = vsel %vm71_vm0, %v13839_v62, 0.0  ;;  %10205 = vpow2.f32 %v3844_v19 }
 0x605   :  { %v3007_v59 = vadd.f32 %v3006_v13, %v13760_v48  ;;  %v2976_v25 = vsel %vm71_vm0, %v2887_v0, 0.0  ;;  %v2888_v32 = vmul.f32 %v13745_v54, %v2719_v38  ;;  %v13847_v0 = vpop.eup %10197  ;;  %v13852_v13 = vld [vmem:[%s16223_s8 + $0x6] ss:$0 sm:$0xff] }
 0x606   :  { %v2977_v34 = vadd.f32 %v2976_v25, %v13768_v17  ;;  %v3021_v58 = vsel %vm71_vm0, %v2890_v26, 0.0  ;;  %16749 = vst [vmem:[#allocation58_spill] sm:$0xff] %v13847_v0  ;;  %16750 = vst [vmem:[#allocation89_spill] sm:$0xff] %v13852_v13  ;;  %v4008_v26 = vsel %vm71_vm0, %v13834_v41, 0.0  ;;  %v4014_v25 = vsel %vm71_vm0, %v13847_v0, 0.0 }
 0x607   :  { %v3022_v63 = vadd.f32 %v3021_v58, %v13774_v27  ;;  %v2991_v48 = vsel %vm71_vm0, %v2888_v32, 0.0  ;;  %4009 = vadd.xlane.f32.xlu0 %v4008_v26  ;;  %v13859_v27 = vpop.eup %10199 }
 0x608   :  { %v2992_v17 = vadd.f32 %v2991_v48, %v13782_v53  ;;  %16751 = vst [vmem:[#allocation63_spill] sm:$0xff] %v13859_v27  ;;  %4030 = vadd.xlane.f32.xlu1 %v4029_v20  ;;  %v4035_v19 = vsel %vm71_vm0, %v13859_v27, 0.0 }
 0x609   :  { %v13864_v32 = vpop.eup %10201 }
 0x60a   :  { %16752 = vst [vmem:[#allocation57_spill] sm:$0xff] %v13864_v32 }
 0x60b   :  { %4015 = vadd.xlane.f32.xlu0 %v4014_v25 }
 0x60c   :  { %v9396_v6 = vpop.f32.mrb[80].mxu1  ;;  %4036 = vadd.xlane.f32.xlu1 %v4035_v19  ;;  %v13878_v25 = vpop.eup %10203 }
 0x60d   :  { %v2893_v38 = vmul.f32 %v13852_v13, %v9396_v6  ;;  %v2732_v49 = vpop.f32.mrb[81].mxu1  ;;  %16753 = vst [vmem:[#allocation24_spill] sm:$0xff] %v13878_v25 }
 0x60e   :  { %v2891_v53 = vmul.f32 %v13852_v13, %v2732_v49  ;;  %v9397_v58 = vpop.f32.mrb[82].mxu1 }
 0x60f   :  { %v2948_v42 = vsel %vm71_vm0, %v2893_v38, 0.0  ;;  %v2894_v48 = vmul.f32 %v13852_v13, %v9397_v58  ;;  %v2735_v26 = vpop.f32.mrb[83].mxu1  ;;  %v4020_v38 = vsel %vm71_vm0, %v13864_v32, 0.0 }
 0x610   :  { %v2949_v20 = vadd.f32 %v2948_v42, %v13801_v10  ;;  %v2918_v6 = vsel %vm71_vm0, %v2891_v53, 0.0  ;;  %v2892_v54 = vmul.f32 %v13852_v13, %v2735_v26  ;;  %4021 = vadd.xlane.f32.xlu0 %v4020_v38 }
 0x611   :  { %v2919_v62 = vadd.f32 %v2918_v6, %v13806_v14  ;;  %v2963_v49 = vsel %vm71_vm0, %v2894_v48, 0.0  ;;  %v4026_v14 = vsel %vm71_vm0, %v13878_v25, 0.0  ;;  %v13886_v48 = vpop.eup %10205 }
 0x612   :  { %v2964_v58 = vadd.f32 %v2963_v49, %v13812_v61  ;;  %v2933_v27 = vsel %vm71_vm0, %v2892_v54, 0.0  ;;  %16754 = vst [vmem:[#allocation68_spill] sm:$0xff] %v13886_v48 }
 0x613   :  { %v2934_v10 = vadd.f32 %v2933_v27, %v13817_v23 }
 0x614   :  { %v9400_v53 = vpop.f32.mrb[84].mxu1  ;;  %4027 = vadd.xlane.f32.xlu0 %v4026_v14 }
 0x615   :  { %v2897_v42 = vmul.f32 %v13852_v13, %v9400_v53  ;;  %v2748_v26 = vpop.f32.mrb[85].mxu1  ;;  %v13898_v53 = vld [vmem:[%s16223_s8 + $0x7] ss:$0 sm:$0xff] }
 0x616   :  { %v2895_v19 = vmul.f32 %v13852_v13, %v2748_v26  ;;  %v9401_v6 = vpop.f32.mrb[86].mxu1 }
 0x617   :  { %v3008_v61 = vsel %vm71_vm0, %v2897_v42, 0.0  ;;  %v2898_v54 = vmul.f32 %v13852_v13, %v9401_v6  ;;  %v2751_v49 = vpop.f32.mrb[87].mxu1  ;;  %v4032_v42 = vsel %vm71_vm0, %v13886_v48, 0.0 }
 0x618   :  { %v13891_v38 = vadd.f32 %v3008_v61, %v3007_v59  ;;  %v2978_v23 = vsel %vm71_vm0, %v2895_v19, 0.0  ;;  %v2896_v27 = vmul.f32 %v13852_v13, %v2751_v49  ;;  %4033 = vadd.xlane.f32.xlu0 %v4032_v42  ;;  %v13913_v61 = vld [vmem:[%s16216_s1 + $0x3] ss:$0 sm:$0xff]  ;;  %v16755_v42 = vld [vmem:[#allocation10_spill] sm:$0xff] }
 0x619   :  { %v13900_v25 = vadd.f32 %v2978_v23, %v2977_v34  ;;  %v3023_v26 = vsel %vm71_vm0, %v2898_v54, 0.0 }
 0x61a   :  { %v13905_v14 = vadd.f32 %v3023_v26, %v3022_v63  ;;  %v2993_v59 = vsel %vm71_vm0, %v2896_v27, 0.0 }
 0x61b   :  { %v13908_v19 = vadd.f32 %v2993_v59, %v2992_v17  ;;  %v986_v17 = vadd.f32 %v13913_v61, %v16755_v42  ;;  %v3863_v0 = vpop.xlane.xlu1 %3862 }
 0x61c   :  { %v9404_v6 = vpop.f32.mrb[88].mxu1 }
 0x61d   :  { %v2901_v34 = vmul.f32 %v13898_v53, %v9404_v6  ;;  %v2764_v49 = vpop.f32.mrb[89].mxu1  ;;  %v984_v6 = vadd.f32 %v13913_v61, %v16756_v56 }
 0x61e   :  { %v2899_v54 = vmul.f32 %v13898_v53, %v2764_v49  ;;  %v9405_v23 = vpop.f32.mrb[90].mxu1 }
 0x61f   :  { %v2950_v63 = vsel %vm71_vm0, %v2901_v34, 0.0  ;;  %v2902_v26 = vmul.f32 %v13898_v53, %v9405_v23  ;;  %v2767_v27 = vpop.f32.mrb[91].mxu1  ;;  %v16757_v34 = vld [vmem:[#allocation11_spill] sm:$0xff]  ;;  %v3857_v22 = vpop.xlane.xlu1 %3856 }
 0x620   :  { %v2951_v59 = vadd.f32 %v2950_v63, %v2949_v20  ;;  %v2920_v13 = vsel %vm71_vm0, %v2899_v54, 0.0  ;;  %v2900_v48 = vmul.f32 %v13898_v53, %v2767_v27  ;;  %v987_v23 = vadd.f32 %v13913_v61, %v16757_v34  ;;  %v16758_v20 = vld [vmem:[#allocation39_spill] sm:$0xff] }
 0x621   :  { %v2921_v32 = vadd.f32 %v2920_v13, %v2919_v62  ;;  %v2965_v49 = vsel %vm71_vm0, %v2902_v26, 0.0  ;;  %v985_v54 = vadd.f32 %v13913_v61, %v16758_v20 }
 0x622   :  { %v4775_v45 = vadd.f32 %v2951_v59, %v986_v17  ;;  %v2966_v41 = vadd.f32 %v2965_v49, %v2964_v58  ;;  %v2935_v4 = vsel %vm71_vm0, %v2900_v48, 0.0 }
 0x623   :  { %v4773_v42 = vadd.f32 %v2921_v32, %v984_v6  ;;  %v2936_v63 = vadd.f32 %v2935_v4, %v2934_v10  ;;  %v3875_v13 = vpop.xlane.xlu1 %3874 }
 0x624   :  { %v4776_v27 = vadd.f32 %v2966_v41, %v987_v23 }
 0x625   :  { %v4774_v46 = vadd.f32 %v2936_v63, %v985_v54  ;;  %v3860_v26 = vpop.xlane.xlu0 %3859 }
 0x626   :  { %v4790_v56 = vpack.c.bf16 %v4776_v27, %v4775_v45  ;;  %10207 = vrcp.f32 %v3860_v26 }
 0x627   :  { %v4789_v62 = vpack.c.bf16 %v4774_v46, %v4773_v42  ;;  %v3869_v58 = vpop.xlane.xlu1 %3868  ;;  %10209 = vrcp.f32 %v3857_v22 }
 0x628   :  { %10211 = vrcp.f32 %v3863_v0 }
 0x629   :  { %9562 = vmatprep.mubr.msk.bf16.mxu0 %vm71_vm0, %v4789_v62  ;;  %v3854_v32 = vpop.xlane.xlu0 %3853 }
 0x62a   :  { %9563 = vmatmul.mubr.msk.bf16.vlgmr.msra.gmra.mrb[144].mxu0 %vm71_vm0, %v4790_v56  ;;  %10213 = vrcp.f32 %v3854_v32 }
 0x62b   :  { %v3887_v48 = vpop.xlane.xlu1 %3886 }
 0x62d   :  { %v3872_v17 = vpop.xlane.xlu0 %3871 }
 0x62e   :  { %10215 = vrcp.f32 %v3872_v17 }
 0x62f   :  { %v3881_v4 = vpop.xlane.xlu1 %3880  ;;  %10217 = vrcp.f32 %v3869_v58 }
 0x630   :  { %v10208_v41 = vpop.eup %10207  ;;  %10219 = vrcp.f32 %v3875_v13 }
 0x631   :  { %v3866_v45 = vpop.xlane.xlu0 %3865  ;;  %v10210_v46 = vpop.eup %10209  ;;  %v4049_v49 = vmul.f32 %v10208_v41, %v13329_v5 }
 0x632   :  { %10221 = vrcp.f32 %v3866_v45  ;;  %v10212_v10 = vpop.eup %10211  ;;  %v4047_v0 = vmul.f32 %v10210_v46, %v13314_v55 }
 0x633   :  { %v3899_v59 = vpop.xlane.xlu1 %3898  ;;  %v4051_v23 = vmul.f32 %v10212_v10, %v13310_v44 }
 0x634   :  { %v10214_v6 = vpop.eup %10213 }
 0x635   :  { %v3884_v34 = vpop.xlane.xlu0 %3883  ;;  %v4045_v22 = vmul.f32 %v10214_v6, %v13335_v24  ;;  %v4173_v54 = vpack.c.bf16 %v4051_v23, %v4049_v49  ;;  %v16759_v49 = vld [vmem:[#allocation21_spill] sm:$0xff] }
 0x636   :  { %10223 = vrcp.f32 %v3884_v34 }
 0x637   :  { %v3893_v42 = vpop.xlane.xlu1 %3892  ;;  %v4172_v20 = vpack.c.bf16 %v4047_v0, %v4045_v22  ;;  %10225 = vrcp.f32 %v3881_v4  ;;  %v16760_v22 = vld [vmem:[#allocation100_spill] sm:$0xff] }
 0x638   :  { %v10216_v63 = vpop.eup %10215  ;;  %10227 = vrcp.f32 %v3887_v48 }
 0x639   :  { %9490 = vmatprep.mubr.msk.bf16.mxu1 %vm71_vm0, %v4172_v20  ;;  %v3878_v27 = vpop.xlane.xlu0 %3877  ;;  %v10218_v56 = vpop.eup %10217  ;;  %v4057_v44 = vmul.f32 %v10216_v63, %v13357_v43 }
 0x63a   :  { %10229 = vrcp.f32 %v3878_v27  ;;  %9491 = vmatmul.mubr.msk.bf16.vlgmr.msra.gmra.mrb[96].mxu1 %vm71_vm0, %v4173_v54  ;;  %v10220_v5 = vpop.eup %10219  ;;  %v4055_v58 = vmul.f32 %v10218_v56, %v13325_v51 }
 0x63b   :  { %v3659_v24 = vpop.xlane.xlu1 %3658  ;;  %10231 = vrcp.f32 %v3893_v42  ;;  %v4059_v48 = vmul.f32 %v10220_v5, %v13323_v12 }
 0x63c   :  { %v10222_v62 = vpop.eup %10221  ;;  %v3723_v55 = vsub.f32 %v16708_v50, %v3659_v24 }
 0x63d   :  { %v3896_v13 = vpop.xlane.xlu0 %3895  ;;  %v4053_v26 = vmul.f32 %v10222_v62, %v13363_v52  ;;  %v4175_v41 = vpack.c.bf16 %v4059_v48, %v4057_v44  ;;  %v16762_v44 = vld [vmem:[#allocation49_spill] sm:$0xff] }
 0x63e   :  { %v3850_v32 = vmul.f32 1.442695, %v3723_v55  ;;  %10233 = vrcp.f32 %v3896_v13 }
 0x63f   :  { %v3905_v17 = vpop.xlane.xlu1 %3904  ;;  %v4174_v4 = vpack.c.bf16 %v4055_v58, %v4053_v26 }
 0x640   :  { %10235 = vpow2.f32 %v3850_v32  ;;  %v10224_v45 = vpop.eup %10223  ;;  %v16763_v32 = vld [vmem:[#allocation34_spill] sm:$0xff] }
 0x641   :  { %10237 = vrcp.f32 %v3899_v59  ;;  %9494 = vmatprep.mubr.msk.bf16.mxu1 %vm71_vm0, %v4174_v4  ;;  %v3890_v50 = vpop.xlane.xlu0 %3889  ;;  %v10226_v43 = vpop.eup %10225  ;;  %v4065_v10 = vmul.f32 %v10224_v45, %v13383_v47  ;;  %v16761_v59 = vld [vmem:[#allocation16_spill] sm:$0xff] }
 0x642   :  { %10239 = vrcp.f32 %v3890_v50  ;;  %9495 = vmatmul.mubr.msk.bf16.gmra.mrb[100].mxu1 %vm71_vm0, %v4175_v41  ;;  %v10228_v52 = vpop.eup %10227  ;;  %v4063_v34 = vmul.f32 %v10226_v43, %v16759_v49 }
 0x643   :  { %v3911_v51 = vpop.xlane.xlu1 %3910  ;;  %v4067_v23 = vmul.f32 %v10228_v52, %v16761_v59  ;;  %10241 = vrcp.f32 %v3905_v17  ;;  %v16764_v17 = vld [vmem:[#allocation32_spill] sm:$0xff] }
 0x644   :  { %v10230_v46 = vpop.eup %10229 }
 0x645   :  { %v3656_v12 = vpop.xlane.xlu0 %3655  ;;  %v4061_v6 = vmul.f32 %v10230_v46, %v13399_v36  ;;  %v10232_v54 = vpop.eup %10231  ;;  %v4177_v27 = vpack.c.bf16 %v4067_v23, %v4065_v10 }
 0x646   :  { %v3722_v0 = vsub.f32 %v16760_v22, %v3656_v12  ;;  %v4071_v48 = vmul.f32 %v10232_v54, %v16763_v32  ;;  %v16766_v54 = vld [vmem:[#allocation48_spill] sm:$0xff] }
 0x647   :  { %v3917_v42 = vpop.xlane.xlu1 %3916  ;;  %v4176_v20 = vpack.c.bf16 %v4063_v34, %v4061_v6  ;;  %v16765_v34 = vld [vmem:[#allocation45_spill] sm:$0xff] }
 0x648   :  { %v3848_v63 = vmul.f32 1.442695, %v3722_v0  ;;  %v10234_v56 = vpop.eup %10233 }
 0x649   :  { %9498 = vmatprep.mubr.msk.bf16.mxu1 %vm71_vm0, %v4176_v20  ;;  %v3902_v5 = vpop.xlane.xlu0 %3901  ;;  %v4073_v13 = vmul.f32 %v10234_v56, %v16762_v44 }
 0x64a   :  { %v13952_v47 = vpop.eup %10235  ;;  %10243 = vpow2.f32 %v3848_v63  ;;  %9499 = vmatmul.mubr.msk.bf16.gmra.mrb[104].mxu1 %vm71_vm0, %v4177_v27 }
 0x64b   :  { %v10238_v36 = vpop.eup %10237  ;;  %10245 = vrcp.f32 %v3902_v5  ;;  %v3923_v24 = vpop.xlane.xlu1 %3922  ;;  %v4041_v62 = vsel %vm71_vm0, %v13952_v47, 0.0 }
 0x64c   :  { %v10240_v55 = vpop.eup %10239  ;;  %10247 = vrcp.f32 %v3911_v51  ;;  %4042 = vadd.xlane.f32.xlu1 %v4041_v62  ;;  %v4075_v4 = vmul.f32 %v10238_v36, %v16764_v17 }
 0x64d   :  { %v3908_v26 = vpop.xlane.xlu0 %3907  ;;  %v4069_v58 = vmul.f32 %v10240_v55, %v13436_v11  ;;  %v10242_v52 = vpop.eup %10241 }
 0x64e   :  { %10249 = vrcp.f32 %v3908_v26  ;;  %v4179_v50 = vpack.c.bf16 %v4075_v4, %v4073_v13  ;;  %v4079_v22 = vmul.f32 %v10242_v52, %v16765_v34  ;;  %v16768_v52 = vld [vmem:[#allocation36_spill] sm:$0xff] }
 0x64f   :  { %v3929_v41 = vpop.xlane.xlu1 %3928  ;;  %v4178_v45 = vpack.c.bf16 %v4071_v48, %v4069_v58  ;;  %10251 = vrcp.f32 %v3917_v42 }
 0x651   :  { %9502 = vmatprep.mubr.msk.bf16.mxu1 %vm71_vm0, %v4178_v45  ;;  %v3914_v43 = vpop.xlane.xlu0 %3913 }
 0x652   :  { %10253 = vrcp.f32 %v3914_v43  ;;  %9503 = vmatmul.mubr.msk.bf16.gmra.mrb[108].mxu1 %vm71_vm0, %v4179_v50 }
 0x653   :  { %v3935_v51 = vpop.xlane.xlu1 %3934  ;;  %10255 = vrcp.f32 %v3923_v24 }
 0x654   :  { %v13963_v46 = vpop.eup %10243 }
 0x655   :  { %v10246_v11 = vpop.eup %10245  ;;  %v3920_v10 = vpop.xlane.xlu0 %3919  ;;  %v4038_v12 = vsel %vm71_vm0, %v13963_v46, 0.0 }
 0x656   :  { %v10248_v6 = vpop.eup %10247  ;;  %10257 = vrcp.f32 %v3920_v10  ;;  %4039 = vadd.xlane.f32.xlu0 %v4038_v12  ;;  %v4077_v49 = vmul.f32 %v10246_v11, %v13467_v33 }
 0x657   :  { %v3941_v0 = vpop.xlane.xlu1 %3940  ;;  %10259 = vrcp.f32 %v3929_v41  ;;  %v4083_v63 = vmul.f32 %v10248_v6, %v16766_v54 }
 0x658   :  { %v10250_v59 = vpop.eup %10249  ;;  %v4180_v23 = vpack.c.bf16 %v4079_v22, %v4077_v49 }
 0x659   :  { %v3926_v42 = vpop.xlane.xlu0 %3925  ;;  %v4081_v20 = vmul.f32 %v10250_v59, %v13484_v15  ;;  %v10252_v27 = vpop.eup %10251 }
 0x65a   :  { %9506 = vmatprep.mubr.msk.bf16.mxu1 %vm71_vm0, %v4180_v23  ;;  %10261 = vrcp.f32 %v3926_v42  ;;  %v4087_v62 = vmul.f32 %v10252_v27, %v13461_v16  ;;  %v16767_v16 = vld [vmem:[#allocation12_spill] sm:$0xff] }
 0x65b   :  { %v3947_v56 = vpop.xlane.xlu1 %3946  ;;  %v4181_v5 = vpack.c.bf16 %v4083_v63, %v4081_v20  ;;  %10263 = vrcp.f32 %v3935_v51  ;;  %v988_v41 = vadd.f32 %v13913_v61, %v16767_v16  ;;  %v990_v51 = vadd.f32 %v13913_v61, %v16768_v52  ;;  %v16770_v63 = vld [vmem:[#allocation38_spill] sm:$0xff] }
 0x65c   :  { %v10254_v36 = vpop.eup %10253  ;;  %v991_v27 = vadd.f32 %v13913_v61, %v16770_v63 }
 0x65d   :  { %9507 = vmatmul.mubr.msk.bf16.gmra.mrb[112].mxu1 %vm71_vm0, %v4181_v5  ;;  %v3932_v33 = vpop.xlane.xlu0 %3931  ;;  %v4085_v24 = vmul.f32 %v10254_v36, %v13509_v3  ;;  %v10256_v55 = vpop.eup %10255 }
 0x65e   :  { %10265 = vrcp.f32 %v3932_v33  ;;  %v4091_v32 = vmul.f32 %v10256_v55, %v13477_v40  ;;  %v16769_v40 = vld [vmem:[#allocation13_spill] sm:$0xff] }
 0x65f   :  { %v3953_v15 = vpop.xlane.xlu1 %3952  ;;  %v4182_v44 = vpack.c.bf16 %v4087_v62, %v4085_v24  ;;  %10267 = vrcp.f32 %v3941_v0  ;;  %v989_v10 = vadd.f32 %v13913_v61, %v16769_v40 }
 0x660   :  { %v10258_v13 = vpop.eup %10257 }
 0x661   :  { %9510 = vmatprep.mubr.msk.bf16.mxu1 %vm71_vm0, %v4182_v44  ;;  %v3938_v26 = vpop.xlane.xlu0 %3937  ;;  %v4089_v58 = vmul.f32 %v10258_v13, %v13531_v2  ;;  %v10260_v48 = vpop.eup %10259 }
 0x662   :  { %10269 = vrcp.f32 %v3938_v26  ;;  %v9408_v17 = vpop.f32.mrb[92].mxu1  ;;  %v4095_v0 = vmul.f32 %v10260_v48, %v13502_v7 }
 0x663   :  { %v2905_v3 = vmul.f32 %v13898_v53, %v9408_v17  ;;  %v3959_v4 = vpop.xlane.xlu1 %3958  ;;  %v2780_v45 = vpop.f32.mrb[93].mxu1  ;;  %v4183_v50 = vpack.c.bf16 %v4091_v32, %v4089_v58  ;;  %10271 = vrcp.f32 %v3947_v56 }
 0x664   :  { %v10262_v43 = vpop.eup %10261  ;;  %v2903_v2 = vmul.f32 %v13898_v53, %v2780_v45  ;;  %v9409_v11 = vpop.f32.mrb[94].mxu1 }
 0x665   :  { %v3010_v12 = vsel %vm71_vm0, %v2905_v3, 0.0  ;;  %v2906_v6 = vmul.f32 %v13898_v53, %v9409_v11  ;;  %v2783_v49 = vpop.f32.mrb[95].mxu1  ;;  %9511 = vmatmul.mubr.msk.bf16.gmra.mrb[116].mxu1 %vm71_vm0, %v4183_v50  ;;  %v3944_v34 = vpop.xlane.xlu0 %3943  ;;  %v4093_v22 = vmul.f32 %v10262_v43, %v13555_v1 }
 0x666   :  { %v10264_v59 = vpop.eup %10263  ;;  %v3011_v23 = vadd.f32 %v3010_v12, %v13891_v38  ;;  %v2980_v42 = vsel %vm71_vm0, %v2903_v2, 0.0  ;;  %v2904_v20 = vmul.f32 %v13898_v53, %v2783_v49  ;;  %10273 = vrcp.f32 %v3944_v34 }
 0x667   :  { %v2981_v54 = vadd.f32 %v2980_v42, %v13900_v25  ;;  %v3025_v56 = vsel %vm71_vm0, %v2906_v6, 0.0  ;;  %v3965_v5 = vpop.xlane.xlu1 %3964  ;;  %v4184_v36 = vpack.c.bf16 %v4095_v0, %v4093_v22  ;;  %10275 = vrcp.f32 %v3953_v15  ;;  %v16772_v42 = vld [vmem:[#allocation53_spill] sm:$0xff] }
 0x668   :  { %v10266_v1 = vpop.eup %10265  ;;  %v4779_v7 = vadd.f32 %v3011_v23, %v990_v51  ;;  %v3026_v33 = vadd.f32 %v3025_v56, %v13905_v14  ;;  %v2995_v38 = vsel %vm71_vm0, %v2904_v20, 0.0  ;;  %v4099_v61 = vmul.f32 %v10264_v59, %v13514_v30  ;;  %v16771_v59 = vld [vmem:[#allocation46_spill] sm:$0xff]  ;;  %v16773_v56 = vld [vmem:[#allocation71_spill] sm:$0xff] }
 0x669   :  { %v4777_v24 = vadd.f32 %v2981_v54, %v988_v41  ;;  %v2996_v62 = vadd.f32 %v2995_v38, %v13908_v19  ;;  %9514 = vmatprep.mubr.msk.bf16.mxu1 %vm71_vm0, %v4184_v36  ;;  %v3950_v25 = vpop.xlane.xlu0 %3949  ;;  %v4097_v55 = vmul.f32 %v10266_v1, %v13567_v9  ;;  %v10268_v44 = vpop.eup %10267  ;;  %v16774_v36 = vld [vmem:[#allocation47_spill] sm:$0xff] }
 0x66a   :  { %v4780_v13 = vadd.f32 %v3026_v33, %v991_v27  ;;  %10277 = vrcp.f32 %v3950_v25  ;;  %v4103_v3 = vmul.f32 %v10268_v44, %v13536_v29  ;;  %v16775_v25 = vld [vmem:[#allocation50_spill] sm:$0xff] }
 0x66b   :  { %v4778_v26 = vadd.f32 %v2996_v62, %v989_v10  ;;  %v3971_v15 = vpop.xlane.xlu1 %3970  ;;  %v4185_v58 = vpack.c.bf16 %v4099_v61, %v4097_v55  ;;  %10279 = vrcp.f32 %v3959_v4  ;;  %v16776_v61 = vld [vmem:[#allocation52_spill] sm:$0xff] }
 0x66c   :  { %v10270_v32 = vpop.eup %10269  ;;  %v4792_v14 = vpack.c.bf16 %v4780_v13, %v4779_v7 }
 0x66d   :  { %9515 = vmatmul.mubr.msk.bf16.gmra.mrb[120].mxu1 %vm71_vm0, %v4185_v58  ;;  %v3956_v48 = vpop.xlane.xlu0 %3955  ;;  %v4791_v19 = vpack.c.bf16 %v4778_v26, %v4777_v24  ;;  %v4101_v17 = vmul.f32 %v10270_v32, %v13575_v39  ;;  %v10272_v9 = vpop.eup %10271 }
 0x66e   :  { %10281 = vrcp.f32 %v3956_v48  ;;  %v4107_v50 = vmul.f32 %v10272_v9, %v13563_v21  ;;  %v16777_v48 = vld [vmem:[#allocation77_spill] sm:$0xff] }
 0x66f   :  { %v3977_v30 = vpop.xlane.xlu1 %3976  ;;  %9566 = vmatprep.mubr.msk.bf16.mxu0 %vm71_vm0, %v4791_v19  ;;  %v4186_v16 = vpack.c.bf16 %v4103_v3, %v4101_v17  ;;  %10283 = vrcp.f32 %v3965_v5 }
 0x670   :  { %v10274_v41 = vpop.eup %10273  ;;  %9567 = vmatmul.mubr.msk.bf16.gmra.mrb[148].mxu0 %vm71_vm0, %v4792_v14 }
 0x671   :  { %9518 = vmatprep.mubr.msk.bf16.mxu1 %vm71_vm0, %v4186_v16  ;;  %v3962_v4 = vpop.xlane.xlu0 %3961  ;;  %v4105_v45 = vmul.f32 %v10274_v41, %v13610_v60  ;;  %v10276_v39 = vpop.eup %10275 }
 0x672   :  { %10285 = vrcp.f32 %v3962_v4  ;;  %v4111_v11 = vmul.f32 %v10276_v39, %v13570_v8  ;;  %v16778_v4 = vld [vmem:[#allocation56_spill] sm:$0xff] }
 0x673   :  { %v3983_v29 = vpop.xlane.xlu1 %3982  ;;  %v4187_v43 = vpack.c.bf16 %v4107_v50, %v4105_v45  ;;  %10287 = vrcp.f32 %v3971_v15 }
 0x674   :  { %v10278_v52 = vpop.eup %10277 }
 0x675   :  { %9519 = vmatmul.mubr.msk.bf16.gmra.mrb[124].mxu1 %vm71_vm0, %v4187_v43  ;;  %v3968_v51 = vpop.xlane.xlu0 %3967  ;;  %v4109_v2 = vmul.f32 %v10278_v52, %v13622_v28  ;;  %v10280_v40 = vpop.eup %10279 }
 0x676   :  { %10289 = vrcp.f32 %v3968_v51  ;;  %v4115_v49 = vmul.f32 %v10280_v40, %v13600_v31  ;;  %v16779_v51 = vld [vmem:[#allocation81_spill] sm:$0xff] }
 0x677   :  { %v3989_v10 = vpop.xlane.xlu1 %3988  ;;  %v4188_v12 = vpack.c.bf16 %v4111_v11, %v4109_v2  ;;  %10291 = vrcp.f32 %v3977_v30 }
 0x678   :  { %v10282_v60 = vpop.eup %10281 }
 0x679   :  { %9522 = vmatprep.mubr.msk.bf16.mxu1 %vm71_vm0, %v4188_v12  ;;  %v3974_v21 = vpop.xlane.xlu0 %3973  ;;  %v4113_v6 = vmul.f32 %v10282_v60, %v13635_v35  ;;  %v10284_v34 = vpop.eup %10283  ;;  %v16780_v12 = vld [vmem:[#allocation80_spill] sm:$0xff] }
 0x67a   :  { %10293 = vrcp.f32 %v3974_v21  ;;  %v4119_v20 = vmul.f32 %v10284_v34, %v16772_v42  ;;  %v16781_v21 = vld [vmem:[#allocation79_spill] sm:$0xff] }
 0x67b   :  { %v3995_v22 = vpop.xlane.xlu1 %3994  ;;  %v4189_v0 = vpack.c.bf16 %v4115_v49, %v4113_v6  ;;  %10295 = vrcp.f32 %v3983_v29 }
 0x67c   :  { %v10286_v28 = vpop.eup %10285 }
 0x67d   :  { %9523 = vmatmul.mubr.msk.bf16.gmra.mrb[128].mxu1 %vm71_vm0, %v4189_v0  ;;  %v3980_v8 = vpop.xlane.xlu0 %3979  ;;  %v4117_v23 = vmul.f32 %v10286_v28, %v16771_v59  ;;  %v10288_v54 = vpop.eup %10287  ;;  %v16782_v28 = vld [vmem:[#allocation54_spill] sm:$0xff]  ;;  %v16783_v59 = vld [vmem:[#allocation55_spill] sm:$0xff] }
 0x67e   :  { %10297 = vrcp.f32 %v3980_v8  ;;  %v4123_v1 = vmul.f32 %v10288_v54, %v16774_v36 }
 0x67f   :  { %v4001_v63 = vpop.xlane.xlu1 %4000  ;;  %v4190_v27 = vpack.c.bf16 %v4119_v20, %v4117_v23  ;;  %10299 = vrcp.f32 %v3989_v10 }
 0x680   :  { %v10290_v35 = vpop.eup %10289 }
 0x681   :  { %9526 = vmatprep.mubr.msk.bf16.mxu1 %vm71_vm0, %v4190_v27  ;;  %v3986_v31 = vpop.xlane.xlu0 %3985  ;;  %v4121_v5 = vmul.f32 %v10290_v35, %v16773_v56  ;;  %v10292_v7 = vpop.eup %10291  ;;  %v16784_v35 = vld [vmem:[#allocation87_spill] sm:$0xff]  ;;  %v16785_v56 = vld [vmem:[#allocation85_spill] sm:$0xff] }
 0x682   :  { %10301 = vrcp.f32 %v3986_v31  ;;  %v4127_v44 = vmul.f32 %v10292_v7, %v16776_v61 }
 0x683   :  { %v4007_v33 = vpop.xlane.xlu1 %4006  ;;  %v4191_v38 = vpack.c.bf16 %v4123_v1, %v4121_v5  ;;  %10303 = vrcp.f32 %v3995_v22 }
 0x684   :  { %v10294_v24 = vpop.eup %10293 }
 0x685   :  { %9527 = vmatmul.mubr.msk.bf16.gmra.mrb[132].mxu1 %vm71_vm0, %v4191_v38  ;;  %v4125_v55 = vmul.f32 %v10294_v24, %v16775_v25  ;;  %v10296_v13 = vpop.eup %10295  ;;  %v16786_v38 = vld [vmem:[#allocation58_spill] sm:$0xff] }
 0x686   :  { %v4131_v19 = vmul.f32 %v10296_v13, %v16777_v48  ;;  %v16788_v13 = vld [vmem:[#allocation57_spill] sm:$0xff] }
 0x687   :  { %v4013_v26 = vpop.xlane.xlu1 %4012  ;;  %v4192_v15 = vpack.c.bf16 %v4127_v44, %v4125_v55 }
 0x688   :  { %v3992_v62 = vpop.xlane.xlu0 %3991  ;;  %v10298_v58 = vpop.eup %10297 }
 0x689   :  { %10305 = vrcp.f32 %v3992_v62  ;;  %9530 = vmatprep.mubr.msk.bf16.mxu1 %vm71_vm0, %v4192_v15  ;;  %v4129_v14 = vmul.f32 %v10298_v58, %v13734_v18  ;;  %v10300_v17 = vpop.eup %10299  ;;  %v16787_v62 = vld [vmem:[#allocation59_spill] sm:$0xff]  ;;  %v16789_v15 = vld [vmem:[#allocation86_spill] sm:$0xff] }
 0x68a   :  { %10307 = vrcp.f32 %v4001_v63  ;;  %v4135_v45 = vmul.f32 %v10300_v17, %v16778_v4  ;;  %v16792_v4 = vld [vmem:[#allocation68_spill] sm:$0xff] }
 0x68b   :  { %v4193_v9 = vpack.c.bf16 %v4131_v19, %v4129_v14  ;;  %v16790_v19 = vld [vmem:[#allocation24_spill] sm:$0xff] }
 0x68c   :  { %v3998_v32 = vpop.xlane.xlu0 %3997  ;;  %v10302_v30 = vpop.eup %10301 }
 0x68d   :  { %10309 = vrcp.f32 %v3998_v32  ;;  %v4019_v3 = vpop.xlane.xlu1 %4018  ;;  %9531 = vmatmul.mubr.msk.bf16.gmra.mrb[136].mxu1 %vm71_vm0, %v4193_v9  ;;  %v4133_v41 = vmul.f32 %v10302_v30, %v13757_v57  ;;  %v10304_v50 = vpop.eup %10303 }
 0x68e   :  { %10311 = vrcp.f32 %v4007_v33  ;;  %v4139_v2 = vmul.f32 %v10304_v50, %v16779_v51  ;;  %v16793_v50 = vld [vmem:[#allocation63_spill] sm:$0xff] }
 0x68f   :  { %v4194_v39 = vpack.c.bf16 %v4135_v45, %v4133_v41 }
 0x690   :  { %v4004_v16 = vpop.xlane.xlu0 %4003 }
 0x691   :  { %10313 = vrcp.f32 %v4004_v16  ;;  %v4025_v18 = vpop.xlane.xlu1 %4024  ;;  %9534 = vmatprep.mubr.msk.bf16.mxu1 %vm71_vm0, %v4194_v39 }
 0x692   :  { %10315 = vrcp.f32 %v4013_v26 }
 0x693   :  { %v10306_v29 = vpop.eup %10305 }
 0x694   :  { %v4010_v43 = vpop.xlane.xlu0 %4009  ;;  %v4137_v52 = vmul.f32 %v10306_v29, %v13779_v37  ;;  %v10308_v11 = vpop.eup %10307 }
 0x695   :  { %10317 = vrcp.f32 %v4010_v43  ;;  %v4143_v6 = vmul.f32 %v10308_v11, %v16781_v21  ;;  %v4031_v34 = vpop.xlane.xlu1 %4030 }
 0x696   :  { %v4195_v40 = vpack.c.bf16 %v4139_v2, %v4137_v52  ;;  %10319 = vrcp.f32 %v4019_v3  ;;  %v16791_v3 = vld [vmem:[#allocation64_spill] sm:$0xff] }
 0x697   :  { %v10310_v10 = vpop.eup %10309 }
 0x698   :  { %9535 = vmatmul.mubr.msk.bf16.gmra.mrb[140].mxu1 %vm71_vm0, %v4195_v40  ;;  %v4016_v57 = vpop.xlane.xlu0 %4015  ;;  %v4141_v60 = vmul.f32 %v10310_v10, %v16780_v12  ;;  %v10312_v49 = vpop.eup %10311  ;;  %v14064_v10 = vld [vmem:[%s16216_s1 + $0x4] ss:$0 sm:$0xff] }
 0x699   :  { %10321 = vrcp.f32 %v4016_v57  ;;  %v4147_v23 = vmul.f32 %v10312_v49, %v16783_v59  ;;  %v4037_v63 = vpop.xlane.xlu1 %4036 }
 0x69a   :  { %v4196_v22 = vpack.c.bf16 %v4143_v6, %v4141_v60  ;;  %10323 = vrcp.f32 %v4025_v18 }
 0x69b   :  { %v10314_v0 = vpop.eup %10313 }
 0x69c   :  { %9538 = vmatprep.mubr.msk.bf16.mxu1 %vm71_vm0, %v4196_v22  ;;  %v4145_v8 = vmul.f32 %v10314_v0, %v16782_v28  ;;  %v10316_v42 = vpop.eup %10315  ;;  %v10644_v0 = vld [vmem:[%s16215_s0 + $0x10] sm:$0xff]  ;;  %v10645_v28 = vld [vmem:[%s16215_s0 + $0x8] sm:$0xff] }
 0x69d   :  { %v4022_v37 = vpop.xlane.xlu0 %4021  ;;  %v4151_v5 = vmul.f32 %v10316_v42, %v16785_v56 }
 0x69e   :  { %10325 = vrcp.f32 %v4022_v37  ;;  %v4197_v20 = vpack.c.bf16 %v4147_v23, %v4145_v8  ;;  %v10646_v23 = vld [vmem:[%s16215_s0 + $0x18] sm:$0xff] }
 0x69f   :  { %v10318_v54 = vpop.eup %10317  ;;  %10327 = vrcp.f32 %v4031_v34 }
 0x6a0   :  { %9539 = vmatmul.mubr.msk.bf16.gmra.mrb[144].mxu1 %vm71_vm0, %v4197_v20  ;;  %v4149_v31 = vmul.f32 %v10318_v54, %v16784_v35  ;;  %v10320_v36 = vpop.eup %10319 }
 0x6a1   :  { %v4028_v27 = vpop.xlane.xlu0 %4027  ;;  %v4155_v25 = vmul.f32 %v10320_v36, %v16787_v62 }
 0x6a2   :  { %10329 = vrcp.f32 %v4028_v27  ;;  %v4198_v1 = vpack.c.bf16 %v4151_v5, %v4149_v31 }
 0x6a3   :  { %v10322_v7 = vpop.eup %10321  ;;  %10331 = vrcp.f32 %v4037_v63 }
 0x6a4   :  { %9542 = vmatprep.mubr.msk.bf16.mxu1 %vm71_vm0, %v4198_v1  ;;  %v4153_v24 = vmul.f32 %v10322_v7, %v16786_v38  ;;  %v10324_v55 = vpop.eup %10323 }
 0x6a5   :  { %v4034_v33 = vpop.xlane.xlu0 %4033  ;;  %v4159_v58 = vmul.f32 %v10324_v55, %v16789_v15  ;;  %v16795_v55 = vld [vmem:[#allocation41_spill] sm:$0xff] }
 0x6a6   :  { %10333 = vrcp.f32 %v4034_v33  ;;  %v4199_v61 = vpack.c.bf16 %v4155_v25, %v4153_v24  ;;  %v16794_v33 = vld [vmem:[#allocation42_spill] sm:$0xff] }
 0x6a8   :  { %v10326_v44 = vpop.eup %10325  ;;  %9543 = vmatmul.mubr.msk.bf16.gmra.mrb[148].mxu1 %vm71_vm0, %v4199_v61 }
 0x6a9   :  { %v4157_v26 = vmul.f32 %v10326_v44, %v16788_v13  ;;  %v10328_v32 = vpop.eup %10327 }
 0x6aa   :  { %v4163_v9 = vmul.f32 %v10328_v32, %v16791_v3 }
 0x6ab   :  { %v4200_v14 = vpack.c.bf16 %v4159_v58, %v4157_v26 }
 0x6ac   :  { %v10330_v48 = vpop.eup %10329 }
 0x6ad   :  { %9546 = vmatprep.mubr.msk.bf16.mxu1 %vm71_vm0, %v4200_v14  ;;  %v4161_v17 = vmul.f32 %v10330_v48, %v16790_v19  ;;  %v10332_v30 = vpop.eup %10331 }
 0x6ae   :  { %v4167_v39 = vmul.f32 %v10332_v30, %v16793_v50 }
 0x6af   :  { %v4201_v16 = vpack.c.bf16 %v4163_v9, %v4161_v17 }
 0x6b0   :  { %v10334_v41 = vpop.eup %10333 }
 0x6b1   :  { %9547 = vmatmul.mubr.msk.bf16.gmra.mrb[152].mxu1 %vm71_vm0, %v4201_v16  ;;  %v4165_v45 = vmul.f32 %v10334_v41, %v16792_v4 }
 0x6b3   :  { %v4202_v29 = vpack.c.bf16 %v4167_v39, %v4165_v45 }
 0x6b5   :  { %9550 = vmatprep.mubr.msk.bf16.mxu1 %vm71_vm0, %v4202_v29 }
 0x6d9   :  { %v4043_v18 = vpop.xlane.xlu1 %4042 }
 0x6da   :  { %10335 = vrcp.f32 %v4043_v18 }
 0x6e3   :  { %v4040_v43 = vpop.xlane.xlu0 %4039 }
 0x6e4   :  { %10337 = vrcp.f32 %v4040_v43  ;;  %v10336_v52 = vpop.eup %10335 }
 0x6e5   :  { %v4171_v11 = vmul.f32 %v10336_v52, %v13952_v47  ;;  %v10643_v47 = vld [vmem:[%s16215_s0] sm:$0xff] }
 0x6ee   :  { %v10338_v51 = vpop.eup %10337 }
 0x6ef   :  { %v4169_v2 = vmul.f32 %v10338_v51, %v13963_v46 }
 0x6f1   :  { %v4203_v40 = vpack.c.bf16 %v4171_v11, %v4169_v2 }
 0x6f3   :  { %9551 = vmatmul.mubr.msk.bf16.gmra.mrb[156].mxu1 %vm71_vm0, %v4203_v40 }
 0x6fd   :  { %v9564_v57 = vpop.f32.mrb[144].mxu0 }
 0x6fe   :  { %v4893_v12 = vpop.f32.mrb[145].mxu0  ;;  %v4902_v60 = vadd.f32 %v9564_v57, %v14064_v10 }
 0x6ff   :  { %v4894_v21 = vadd.f32 %v14064_v10, %v4893_v12  ;;  %v9565_v6 = vpop.f32.mrb[146].mxu0 }
 0x700   :  { %v4896_v49 = vpop.f32.mrb[147].mxu0  ;;  %v4905_v34 = vadd.f32 %v9565_v6, %v14064_v10  ;;  %v14078_v37 = vadd.f32 %v10644_v0, %v4902_v60 }
 0x701   :  { %v14071_v46 = vadd.f32 %v10643_v47, %v4894_v21  ;;  %v4897_v22 = vadd.f32 %v14064_v10, %v4896_v49 }
 0x702   :  { %v14090_v42 = vadd.f32 %v10646_v23, %v4905_v34  ;;  %v4980_v54 = vsel %vm71_vm0, %v14078_v37, 0.0 }
 0x703   :  { %v14083_v8 = vadd.f32 %v10645_v28, %v4897_v22  ;;  %v4974_v59 = vsel %vm71_vm0, %v14071_v46, 0.0 }
 0x704   :  { %4975 = vadd.xlane.f32.xlu0 %v4974_v59  ;;  %v4983_v63 = vsel %vm71_vm0, %v14090_v42, 0.0 }
 0x705   :  { %v4977_v20 = vsel %vm71_vm0, %v14083_v8, 0.0 }
 0x706   :  { %4978 = vadd.xlane.f32.xlu1 %v4977_v20 }
 0x708   :  { %4981 = vadd.xlane.f32.xlu0 %v4980_v54 }
 0x70a   :  { %4984 = vadd.xlane.f32.xlu1 %v4983_v63 }
 0x70d   :  { %v9492_v27 = vpop.f32.mrb[96].mxu1 }
 0x70e   :  { %v4334_v35 = vpop.f32.mrb[97].mxu1  ;;  %v4591_v38 = vmul.f32 %v16794_v33, %v9492_v27 }
 0x70f   :  { %v9493_v31 = vpop.f32.mrb[98].mxu1  ;;  %v4589_v24 = vmul.f32 %v16794_v33, %v4334_v35  ;;  %v16796_v35 = vld [vmem:[#allocation44_spill] sm:$0xff] }
 0x710   :  { %v4337_v56 = vpop.f32.mrb[99].mxu1  ;;  %v4592_v25 = vmul.f32 %v16794_v33, %v9493_v31  ;;  %v4683_v58 = vsel %vm71_vm0, %v4591_v38, 0.0 }
 0x711   :  { %v4590_v13 = vmul.f32 %v16794_v33, %v4337_v56  ;;  %v4653_v19 = vsel %vm71_vm0, %v4589_v24, 0.0 }
 0x712   :  { %v4698_v30 = vsel %vm71_vm0, %v4592_v25, 0.0 }
 0x713   :  { %v4668_v4 = vsel %vm71_vm0, %v4590_v13, 0.0 }
 0x715   :  { %v9496_v5 = vpop.f32.mrb[100].mxu1 }
 0x716   :  { %v4350_v36 = vpop.f32.mrb[101].mxu1  ;;  %v4595_v39 = vmul.f32 %v16794_v33, %v9496_v5 }
 0x717   :  { %v9497_v1 = vpop.f32.mrb[102].mxu1  ;;  %v4593_v18 = vmul.f32 %v16794_v33, %v4350_v36 }
 0x718   :  { %v4353_v7 = vpop.f32.mrb[103].mxu1  ;;  %v4596_v52 = vmul.f32 %v16794_v33, %v9497_v1  ;;  %v4743_v12 = vsel %vm71_vm0, %v4595_v39, 0.0 }
 0x719   :  { %v4594_v11 = vmul.f32 %v16794_v33, %v4353_v7  ;;  %v4713_v49 = vsel %vm71_vm0, %v4593_v18, 0.0 }
 0x71a   :  { %v4758_v0 = vsel %vm71_vm0, %v4596_v52, 0.0 }
 0x71b   :  { %v4728_v23 = vsel %vm71_vm0, %v4594_v11, 0.0 }
 0x71d   :  { %v9500_v62 = vpop.f32.mrb[104].mxu1 }
 0x71e   :  { %v4599_v61 = vmul.f32 %v16795_v55, %v9500_v62  ;;  %v4366_v44 = vpop.f32.mrb[105].mxu1 }
 0x71f   :  { %v4597_v26 = vmul.f32 %v16795_v55, %v4366_v44  ;;  %v9501_v15 = vpop.f32.mrb[106].mxu1 }
 0x720   :  { %v4684_v32 = vsel %vm71_vm0, %v4599_v61, 0.0  ;;  %v4600_v14 = vmul.f32 %v16795_v55, %v9501_v15  ;;  %v4369_v48 = vpop.f32.mrb[107].mxu1 }
 0x721   :  { %v4685_v17 = vadd.f32 %v4684_v32, %v4683_v58  ;;  %v4654_v3 = vsel %vm71_vm0, %v4597_v26, 0.0  ;;  %v4598_v9 = vmul.f32 %v16795_v55, %v4369_v48 }
 0x722   :  { %v4655_v16 = vadd.f32 %v4654_v3, %v4653_v19  ;;  %v4699_v41 = vsel %vm71_vm0, %v4600_v14, 0.0 }
 0x723   :  { %v4700_v45 = vadd.f32 %v4699_v41, %v4698_v30  ;;  %v4669_v50 = vsel %vm71_vm0, %v4598_v9, 0.0 }
 0x724   :  { %v4670_v29 = vadd.f32 %v4669_v50, %v4668_v4 }
 0x725   :  { %v9504_v43 = vpop.f32.mrb[108].mxu1 }
 0x726   :  { %v4603_v51 = vmul.f32 %v16795_v55, %v9504_v43  ;;  %v4382_v2 = vpop.f32.mrb[109].mxu1 }
 0x727   :  { %v4601_v40 = vmul.f32 %v16795_v55, %v4382_v2  ;;  %v9505_v57 = vpop.f32.mrb[110].mxu1 }
 0x728   :  { %v4744_v60 = vsel %vm71_vm0, %v4603_v51, 0.0  ;;  %v4604_v21 = vmul.f32 %v16795_v55, %v9505_v57  ;;  %v4385_v6 = vpop.f32.mrb[111].mxu1 }
 0x729   :  { %v4745_v47 = vadd.f32 %v4744_v60, %v4743_v12  ;;  %v4714_v34 = vsel %vm71_vm0, %v4601_v40, 0.0  ;;  %v4602_v22 = vmul.f32 %v16795_v55, %v4385_v6 }
 0x72a   :  { %v4715_v28 = vadd.f32 %v4714_v34, %v4713_v49  ;;  %v4759_v59 = vsel %vm71_vm0, %v4604_v21, 0.0 }
 0x72b   :  { %v4760_v20 = vadd.f32 %v4759_v59, %v4758_v0  ;;  %v4729_v54 = vsel %vm71_vm0, %v4602_v22, 0.0 }
 0x72c   :  { %v4730_v63 = vadd.f32 %v4729_v54, %v4728_v23  ;;  %v10647_v54 = vld [vmem:[%s16215_s0 + $0x20] sm:$0xff] }
 0x730   :  { %v9508_v27 = vpop.f32.mrb[112].mxu1 }
 0x731   :  { %v4607_v31 = vmul.f32 %v16796_v35, %v9508_v27  ;;  %v4398_v56 = vpop.f32.mrb[113].mxu1 }
 0x732   :  { %v4605_v5 = vmul.f32 %v16796_v35, %v4398_v56  ;;  %v9509_v36 = vpop.f32.mrb[114].mxu1  ;;  %v10648_v56 = vld [vmem:[%s16215_s0 + $0x30] sm:$0xff] }
 0x733   :  { %v4686_v1 = vsel %vm71_vm0, %v4607_v31, 0.0  ;;  %v4608_v7 = vmul.f32 %v16796_v35, %v9509_v36  ;;  %v4401_v33 = vpop.f32.mrb[115].mxu1  ;;  %v10649_v36 = vld [vmem:[%s16215_s0 + $0x28] sm:$0xff] }
 0x734   :  { %v4687_v38 = vadd.f32 %v4686_v1, %v4685_v17  ;;  %v4656_v24 = vsel %vm71_vm0, %v4605_v5, 0.0  ;;  %v4606_v62 = vmul.f32 %v16796_v35, %v4401_v33 }
 0x735   :  { %v4657_v25 = vadd.f32 %v4656_v24, %v4655_v16  ;;  %v4701_v55 = vsel %vm71_vm0, %v4608_v7, 0.0 }
 0x736   :  { %v4702_v61 = vadd.f32 %v4701_v55, %v4700_v45  ;;  %v4671_v44 = vsel %vm71_vm0, %v4606_v62, 0.0 }
 0x737   :  { %v4672_v13 = vadd.f32 %v4671_v44, %v4670_v29  ;;  %v16797_v29 = vld [vmem:[#allocation43_spill] sm:$0xff] }
 0x738   :  { %v9512_v26 = vpop.f32.mrb[116].mxu1 }
 0x739   :  { %v4611_v15 = vmul.f32 %v16796_v35, %v9512_v26  ;;  %v4414_v58 = vpop.f32.mrb[117].mxu1 }
 0x73a   :  { %v4609_v32 = vmul.f32 %v16796_v35, %v4414_v58  ;;  %v9513_v14 = vpop.f32.mrb[118].mxu1 }
 0x73b   :  { %v4746_v48 = vsel %vm71_vm0, %v4611_v15, 0.0  ;;  %v4612_v19 = vmul.f32 %v16796_v35, %v9513_v14  ;;  %v4417_v17 = vpop.f32.mrb[119].mxu1 }
 0x73c   :  { %v4747_v3 = vadd.f32 %v4746_v48, %v4745_v47  ;;  %v4716_v9 = vsel %vm71_vm0, %v4609_v32, 0.0  ;;  %v4610_v30 = vmul.f32 %v16796_v35, %v4417_v17 }
 0x73d   :  { %v4717_v16 = vadd.f32 %v4716_v9, %v4715_v28  ;;  %v4761_v41 = vsel %vm71_vm0, %v4612_v19, 0.0 }
 0x73e   :  { %v4762_v4 = vadd.f32 %v4761_v41, %v4760_v20  ;;  %v4731_v45 = vsel %vm71_vm0, %v4610_v30, 0.0 }
 0x73f   :  { %v4732_v50 = vadd.f32 %v4731_v45, %v4730_v63  ;;  %v16798_v45 = vld [vmem:[#allocation51_spill] sm:$0xff] }
 0x740   :  { %v9516_v39 = vpop.f32.mrb[120].mxu1 }
 0x741   :  { %v4615_v18 = vmul.f32 %v16797_v29, %v9516_v39  ;;  %v4430_v43 = vpop.f32.mrb[121].mxu1 }
 0x742   :  { %v4613_v52 = vmul.f32 %v16797_v29, %v4430_v43  ;;  %v9517_v51 = vpop.f32.mrb[122].mxu1 }
 0x743   :  { %v4688_v2 = vsel %vm71_vm0, %v4615_v18, 0.0  ;;  %v4616_v11 = vmul.f32 %v16797_v29, %v9517_v51  ;;  %v4433_v40 = vpop.f32.mrb[123].mxu1  ;;  %v9568_v57 = vpop.f32.mrb[148].mxu0 }
 0x744   :  { %v4689_v12 = vadd.f32 %v4688_v2, %v4687_v38  ;;  %v4658_v60 = vsel %vm71_vm0, %v4613_v52, 0.0  ;;  %v4614_v21 = vmul.f32 %v16797_v29, %v4433_v40  ;;  %v4909_v6 = vpop.f32.mrb[149].mxu0  ;;  %v4918_v34 = vadd.f32 %v9568_v57, %v14064_v10 }
 0x745   :  { %v4659_v49 = vadd.f32 %v4658_v60, %v4657_v25  ;;  %v4703_v47 = vsel %vm71_vm0, %v4616_v11, 0.0  ;;  %v4910_v22 = vadd.f32 %v14064_v10, %v4909_v6  ;;  %v9569_v0 = vpop.f32.mrb[150].mxu0  ;;  %v10650_v25 = vld [vmem:[%s16215_s0 + $0x38] sm:$0xff] }
 0x746   :  { %v4704_v28 = vadd.f32 %v4703_v47, %v4702_v61  ;;  %v4673_v59 = vsel %vm71_vm0, %v4614_v21, 0.0  ;;  %v4912_v23 = vpop.f32.mrb[151].mxu0  ;;  %v4921_v27 = vadd.f32 %v9569_v0, %v14064_v10  ;;  %v14166_v5 = vadd.f32 %v10648_v56, %v4918_v34 }
 0x747   :  { %v4674_v20 = vadd.f32 %v4673_v59, %v4672_v13  ;;  %v14159_v63 = vadd.f32 %v10647_v54, %v4910_v22  ;;  %v4913_v35 = vadd.f32 %v14064_v10, %v4912_v23 }
 0x748   :  { %v9520_v31 = vpop.f32.mrb[124].mxu1  ;;  %v14180_v55 = vadd.f32 %v10650_v25, %v4921_v27  ;;  %v4992_v19 = vsel %vm71_vm0, %v14166_v5, 0.0 }
 0x749   :  { %v14171_v1 = vadd.f32 %v10649_v36, %v4913_v35  ;;  %v4619_v7 = vmul.f32 %v16797_v29, %v9520_v31  ;;  %v4446_v33 = vpop.f32.mrb[125].mxu1  ;;  %v4986_v38 = vsel %vm71_vm0, %v14159_v63, 0.0 }
 0x74a   :  { %v4617_v24 = vmul.f32 %v16797_v29, %v4446_v33  ;;  %4987 = vadd.xlane.f32.xlu0 %v4986_v38  ;;  %v9521_v62 = vpop.f32.mrb[126].mxu1  ;;  %v4995_v41 = vsel %vm71_vm0, %v14180_v55, 0.0 }
 0x74b   :  { %v4748_v61 = vsel %vm71_vm0, %v4619_v7, 0.0  ;;  %v4620_v44 = vmul.f32 %v16797_v29, %v9521_v62  ;;  %v4449_v13 = vpop.f32.mrb[127].mxu1  ;;  %v4989_v26 = vsel %vm71_vm0, %v14171_v1, 0.0  ;;  %v16799_v7 = vld [vmem:[#allocation60_spill] sm:$0xff] }
 0x74c   :  { %v4749_v15 = vadd.f32 %v4748_v61, %v4747_v3  ;;  %v4718_v58 = vsel %vm71_vm0, %v4617_v24, 0.0  ;;  %v4618_v32 = vmul.f32 %v16797_v29, %v4449_v13  ;;  %4990 = vadd.xlane.f32.xlu1 %v4989_v26 }
 0x74d   :  { %v4719_v14 = vadd.f32 %v4718_v58, %v4717_v16  ;;  %v4763_v48 = vsel %vm71_vm0, %v4620_v44, 0.0 }
 0x74e   :  { %v4764_v17 = vadd.f32 %v4763_v48, %v4762_v4  ;;  %v4733_v9 = vsel %vm71_vm0, %v4618_v32, 0.0  ;;  %4993 = vadd.xlane.f32.xlu0 %v4992_v19 }
 0x74f   :  { %v4734_v30 = vadd.f32 %v4733_v9, %v4732_v50 }
 0x750   :  { %4996 = vadd.xlane.f32.xlu1 %v4995_v41  ;;  %v9524_v3 = vpop.f32.mrb[128].mxu1 }
 0x751   :  { %v4623_v39 = vmul.f32 %v16798_v45, %v9524_v3  ;;  %v4462_v29 = vpop.f32.mrb[129].mxu1 }
 0x752   :  { %v4621_v16 = vmul.f32 %v16798_v45, %v4462_v29  ;;  %v9525_v18 = vpop.f32.mrb[130].mxu1 }
 0x753   :  { %v4690_v43 = vsel %vm71_vm0, %v4623_v39, 0.0  ;;  %v4624_v52 = vmul.f32 %v16798_v45, %v9525_v18  ;;  %v4465_v4 = vpop.f32.mrb[131].mxu1 }
 0x754   :  { %v4691_v51 = vadd.f32 %v4690_v43, %v4689_v12  ;;  %v4660_v2 = vsel %vm71_vm0, %v4621_v16, 0.0  ;;  %v4622_v50 = vmul.f32 %v16798_v45, %v4465_v4 }
 0x755   :  { %v4661_v11 = vadd.f32 %v4660_v2, %v4659_v49  ;;  %v4705_v40 = vsel %vm71_vm0, %v4624_v52, 0.0 }
 0x756   :  { %v4706_v57 = vadd.f32 %v4705_v40, %v4704_v28  ;;  %v4675_v60 = vsel %vm71_vm0, %v4622_v50, 0.0  ;;  %v16800_v40 = vld [vmem:[#allocation89_spill] sm:$0xff] }
 0x757   :  { %v4676_v21 = vadd.f32 %v4675_v60, %v4674_v20 }
 0x758   :  { %v9528_v6 = vpop.f32.mrb[132].mxu1 }
 0x759   :  { %v4627_v47 = vmul.f32 %v16798_v45, %v9528_v6  ;;  %v4478_v34 = vpop.f32.mrb[133].mxu1 }
 0x75a   :  { %v4625_v22 = vmul.f32 %v16798_v45, %v4478_v34  ;;  %v9529_v0 = vpop.f32.mrb[134].mxu1 }
 0x75b   :  { %v4750_v12 = vsel %vm71_vm0, %v4627_v47, 0.0  ;;  %v4628_v59 = vmul.f32 %v16798_v45, %v9529_v0  ;;  %v4481_v23 = vpop.f32.mrb[135].mxu1 }
 0x75c   :  { %v4751_v54 = vadd.f32 %v4750_v12, %v4749_v15  ;;  %v4720_v49 = vsel %vm71_vm0, %v4625_v22, 0.0  ;;  %v4626_v28 = vmul.f32 %v16798_v45, %v4481_v23 }
 0x75d   :  { %v4721_v27 = vadd.f32 %v4720_v49, %v4719_v14  ;;  %v4765_v20 = vsel %vm71_vm0, %v4628_v59, 0.0 }
 0x75e   :  { %v4766_v35 = vadd.f32 %v4765_v20, %v4764_v17  ;;  %v4735_v31 = vsel %vm71_vm0, %v4626_v28, 0.0 }
 0x75f   :  { %v4736_v56 = vadd.f32 %v4735_v31, %v4734_v30 }
 0x760   :  { %v9532_v36 = vpop.f32.mrb[136].mxu1 }
 0x761   :  { %v4631_v33 = vmul.f32 %v16799_v7, %v9532_v36  ;;  %v4494_v38 = vpop.f32.mrb[137].mxu1 }
 0x762   :  { %v4629_v24 = vmul.f32 %v16799_v7, %v4494_v38  ;;  %v9533_v62 = vpop.f32.mrb[138].mxu1 }
 0x763   :  { %v4692_v25 = vsel %vm71_vm0, %v4631_v33, 0.0  ;;  %v4632_v61 = vmul.f32 %v16799_v7, %v9533_v62  ;;  %v4497_v44 = vpop.f32.mrb[139].mxu1 }
 0x764   :  { %v4693_v13 = vadd.f32 %v4692_v25, %v4691_v51  ;;  %v4662_v26 = vsel %vm71_vm0, %v4629_v24, 0.0  ;;  %v4630_v15 = vmul.f32 %v16799_v7, %v4497_v44 }
 0x765   :  { %v4663_v58 = vadd.f32 %v4662_v26, %v4661_v11  ;;  %v4707_v32 = vsel %vm71_vm0, %v4632_v61, 0.0 }
 0x766   :  { %v4708_v14 = vadd.f32 %v4707_v32, %v4706_v57  ;;  %v4677_v48 = vsel %vm71_vm0, %v4630_v15, 0.0 }
 0x767   :  { %v4678_v19 = vadd.f32 %v4677_v48, %v4676_v21 }
 0x76b   :  { %v9536_v17 = vpop.f32.mrb[140].mxu1 }
 0x76c   :  { %v4635_v9 = vmul.f32 %v16799_v7, %v9536_v17  ;;  %v4510_v30 = vpop.f32.mrb[141].mxu1 }
 0x76d   :  { %v4633_v41 = vmul.f32 %v16799_v7, %v4510_v30  ;;  %v9537_v3 = vpop.f32.mrb[142].mxu1 }
 0x76e   :  { %v4752_v45 = vsel %vm71_vm0, %v4635_v9, 0.0  ;;  %v4636_v39 = vmul.f32 %v16799_v7, %v9537_v3  ;;  %v4513_v29 = vpop.f32.mrb[143].mxu1  ;;  %v16801_v3 = vld [vmem:[#allocation22_spill] sm:$0xff] }
 0x76f   :  { %v4753_v16 = vadd.f32 %v4752_v45, %v4751_v54  ;;  %v4722_v18 = vsel %vm71_vm0, %v4633_v41, 0.0  ;;  %v4634_v43 = vmul.f32 %v16799_v7, %v4513_v29  ;;  %v14257_v41 = vld [vmem:[%s16216_s1 + $0x3] ss:$0 sm:$0xff] }
 0x770   :  { %v4723_v52 = vadd.f32 %v4722_v18, %v4721_v27  ;;  %v4767_v4 = vsel %vm71_vm0, %v4636_v39, 0.0  ;;  %v994_v45 = vadd.f32 %v14257_v41, %v16801_v3  ;;  %v16802_v18 = vld [vmem:[#allocation26_spill] sm:$0xff]  ;;  %v9732_v3 = vld [vmem:[%s16220_s5 + $0x30] ss:$8 sps:$4 sm:$0xff]  }
 0x771   :  { %v4768_v51 = vadd.f32 %v4767_v4, %v4766_v35  ;;  %v4737_v2 = vsel %vm71_vm0, %v4634_v43, 0.0  ;;  %v992_v43 = vadd.f32 %v14257_v41, %v16802_v18 }
 0x772   :  { %v4738_v50 = vadd.f32 %v4737_v2, %v4736_v56  ;;  %v16803_v2 = vld [vmem:[#allocation35_spill] sm:$0xff] }
 0x773   :  { %v9540_v11 = vpop.f32.mrb[144].mxu1 }
 0x774   :  { %v4639_v57 = vmul.f32 %v16800_v40, %v9540_v11  ;;  %v4526_v60 = vpop.f32.mrb[145].mxu1 }
 0x775   :  { %v4637_v21 = vmul.f32 %v16800_v40, %v4526_v60  ;;  %v9541_v6 = vpop.f32.mrb[146].mxu1  ;;  %v16804_v60 = vld [vmem:[#allocation30_spill] sm:$0xff] }
 0x776   :  { %v4694_v47 = vsel %vm71_vm0, %v4639_v57, 0.0  ;;  %v4640_v34 = vmul.f32 %v16800_v40, %v9541_v6  ;;  %v4529_v22 = vpop.f32.mrb[147].mxu1 }
 0x777   :  { %v4695_v0 = vadd.f32 %v4694_v47, %v4693_v13  ;;  %v4664_v12 = vsel %vm71_vm0, %v4637_v21, 0.0  ;;  %v4638_v59 = vmul.f32 %v16800_v40, %v4529_v22  ;;  %v993_v21 = vadd.f32 %v14257_v41, %v16804_v60 }
 0x778   :  { %v4665_v23 = vadd.f32 %v4664_v12, %v4663_v58  ;;  %v4709_v54 = vsel %vm71_vm0, %v4640_v34, 0.0 }
 0x779   :  { %v4710_v49 = vadd.f32 %v4709_v54, %v4708_v14  ;;  %v4679_v28 = vsel %vm71_vm0, %v4638_v59, 0.0 }
 0x77a   :  { %v4680_v27 = vadd.f32 %v4679_v28, %v4678_v19 }
 0x77b   :  { %v9544_v20 = vpop.f32.mrb[148].mxu1 }
 0x77c   :  { %v4643_v35 = vmul.f32 %v16800_v40, %v9544_v20  ;;  %v4542_v31 = vpop.f32.mrb[149].mxu1 }
 0x77d   :  { %v4641_v56 = vmul.f32 %v16800_v40, %v4542_v31  ;;  %v9545_v36 = vpop.f32.mrb[150].mxu1 }
 0x77e   :  { %v4754_v7 = vsel %vm71_vm0, %v4643_v35, 0.0  ;;  %v4644_v33 = vmul.f32 %v16800_v40, %v9545_v36  ;;  %v4545_v38 = vpop.f32.mrb[151].mxu1 }
 0x77f   :  { %v14238_v24 = vadd.f32 %v4754_v7, %v4753_v16  ;;  %v4724_v62 = vsel %vm71_vm0, %v4641_v56, 0.0  ;;  %v4642_v25 = vmul.f32 %v16800_v40, %v4545_v38 }
 0x780   :  { %v14242_v61 = vadd.f32 %v4724_v62, %v4723_v52  ;;  %v4769_v44 = vsel %vm71_vm0, %v4644_v33, 0.0 }
 0x781   :  { %v14245_v13 = vadd.f32 %v4769_v44, %v4768_v51  ;;  %v4739_v26 = vsel %vm71_vm0, %v4642_v25, 0.0 }
 0x782   :  { %v14248_v15 = vadd.f32 %v4739_v26, %v4738_v50  ;;  %v995_v50 = vadd.f32 %v14257_v41, %v16803_v2 }
 0x784   :  { %v9548_v58 = vpop.f32.mrb[152].mxu1 }
 0x785   :  { %v4647_v32 = vmul.f32 %v13898_v53, %v9548_v58  ;;  %v4558_v14 = vpop.f32.mrb[153].mxu1 }
 0x786   :  { %v4645_v48 = vmul.f32 %v13898_v53, %v4558_v14  ;;  %v9549_v19 = vpop.f32.mrb[154].mxu1  ;;  %v9725_v14 = vld [vmem:[%s16220_s5 + $0x4] ss:$8 sps:$4 sm:$0xff]  }
 0x787   :  { %v4696_v17 = vsel %vm71_vm0, %v4647_v32, 0.0  ;;  %v4648_v9 = vmul.f32 %v13898_v53, %v9549_v19  ;;  %v4561_v30 = vpop.f32.mrb[155].mxu1  ;;  %v9723_v32 = vld [vmem:[%s16220_s5] ss:$8 sps:$4 sm:$0xff]   ;;  %5314 = vmatprep.subr.bf16.mxu0 %v9725_v14  ;;  %v9726_v19 = vld [vmem:[%s16220_s5 + $0x10] ss:$8 sps:$4 sm:$0xff]  }
 0x788   :  { %v4697_v39 = vadd.f32 %v4696_v17, %v4695_v0  ;;  %v4666_v29 = vsel %vm71_vm0, %v4645_v48, 0.0  ;;  %v4646_v16 = vmul.f32 %v13898_v53, %v4561_v30  ;;  %v9728_v48 = vld [vmem:[%s16220_s5 + $0x14] ss:$8 sps:$4 sm:$0xff]   ;;  %5315 = vmatpush1.bf16.msra.mxu0 %v9723_v32  ;;  %v9731_v17 = vld [vmem:[%s16220_s5 + $0x24] ss:$8 sps:$4 sm:$0xff]  }
 0x789   :  { %v4667_v52 = vadd.f32 %v4666_v29, %v4665_v23  ;;  %v4711_v4 = vsel %vm71_vm0, %v4648_v9, 0.0  ;;  %5316 = vmatprep.subr.bf16.mxu0 %v9728_v48  ;;  %v9729_v9 = vld [vmem:[%s16220_s5 + $0x20] ss:$8 sps:$4 sm:$0xff]   ;;  %v9734_v30 = vld [vmem:[%s16220_s5 + $0x34] ss:$8 sps:$4 sm:$0xff]  }
 0x78a   :  { %v4783_v51 = vadd.f32 %v4697_v39, %v994_v45  ;;  %v4712_v11 = vadd.f32 %v4711_v4, %v4710_v49  ;;  %v4681_v40 = vsel %vm71_vm0, %v4646_v16, 0.0 }
 0x78b   :  { %v4781_v57 = vadd.f32 %v4667_v52, %v992_v43  ;;  %v4682_v6 = vadd.f32 %v4681_v40, %v4680_v27 }
 0x78c   :  { %v4784_v47 = vadd.f32 %v4712_v11, %v995_v50  ;;  %5317 = vmatpush1.bf16.msra.mxu0 %v9726_v19 }
 0x78d   :  { %v4782_v34 = vadd.f32 %v4682_v6, %v993_v21  ;;  %5318 = vmatprep.subr.bf16.mxu0 %v9731_v17 }
 0x78e   :  { %v4794_v22 = vpack.c.bf16 %v4784_v47, %v4783_v51  ;;  %v16805_v51 = vld [vmem:[#allocation23_spill] sm:$0xff] }
 0x78f   :  { %v4793_v12 = vpack.c.bf16 %v4782_v34, %v4781_v57  ;;  %v998_v2 = vadd.f32 %v14257_v41, %v16805_v51  ;;  %v16806_v57 = vld [vmem:[#allocation28_spill] sm:$0xff]  ;;  %v16807_v34 = vld [vmem:[#allocation19_spill] sm:$0xff] }
 0x790   :  { %5319 = vmatpush1.bf16.msra.mxu0 %v9729_v9  ;;  %v996_v60 = vadd.f32 %v14257_v41, %v16806_v57  ;;  %v14371_v57 = vld [vmem:[%s16216_s1 + $0x5] ss:$0 sm:$0xff] }
 0x791   :  { %v4976_v0 = vpop.xlane.xlu0 %4975  ;;  %9570 = vmatprep.mubr.msk.bf16.mxu0 %vm71_vm0, %v4793_v12  ;;  %5320 = vmatprep.subr.bf16.mxu0 %v9734_v30 }
 0x792   :  { %v5022_v59 = vmul.f32 0.015625, %v4976_v0  ;;  %9571 = vmatmul.mubr.msk.bf16.gmra.mrb[152].mxu0 %vm71_vm0, %v4794_v22  ;;  %v999_v22 = vadd.f32 %v14257_v41, %v16807_v34 }
 0x793   :  { %v4979_v23 = vpop.xlane.xlu1 %4978 }
 0x794   :  { %v14273_v54 = vsub.f32 %v14071_v46, %v5022_v59  ;;  %v5023_v49 = vmul.f32 0.015625, %v4979_v23  ;;  %5321 = vmatpush1.bf16.msra.mxu0 %v9732_v3  ;;  %v16808_v59 = vld [vmem:[#allocation31_spill] sm:$0xff] }
 0x795   :  { %v4982_v28 = vpop.xlane.xlu0 %4981  ;;  %v997_v23 = vadd.f32 %v14257_v41, %v16808_v59 }
 0x796   :  { %v14277_v20 = vsub.f32 %v14083_v8, %v5023_v49  ;;  %v5024_v27 = vmul.f32 0.015625, %v4982_v28  ;;  %v5054_v35 = vmul.f32 %v14273_v54, %v14273_v54 }
 0x797   :  { %v4985_v31 = vpop.xlane.xlu1 %4984 }
 0x798   :  { %v14282_v56 = vsub.f32 %v14078_v37, %v5024_v27  ;;  %v5025_v36 = vmul.f32 0.015625, %v4985_v31  ;;  %v5070_v7 = vsel %vm71_vm0, %v5054_v35, 0.0  ;;  %v5055_v33 = vmul.f32 %v14277_v20, %v14277_v20 }
 0x799   :  { %5071 = vadd.xlane.f32.xlu0 %v5070_v7  ;;  %v16809_v35 = vmov 0  }
 0x79a   :  { %v14288_v38 = vsub.f32 %v14090_v42, %v5025_v36  ;;  %v5073_v62 = vsel %vm71_vm0, %v5055_v33, 0.0  ;;  %v5056_v25 = vmul.f32 %v14282_v56, %v14282_v56 }
 0x79b   :  { %5074 = vadd.xlane.f32.xlu1 %v5073_v62 }
 0x79c   :  { %v5076_v44 = vsel %vm71_vm0, %v5056_v25, 0.0  ;;  %v5057_v26 = vmul.f32 %v14288_v38, %v14288_v38 }
 0x79d   :  { %5077 = vadd.xlane.f32.xlu0 %v5076_v44 }
 0x79e   :  { %v5079_v58 = vsel %vm71_vm0, %v5057_v26, 0.0 }
 0x79f   :  { %5080 = vadd.xlane.f32.xlu1 %v5079_v58 }
 0x7c6   :  { %v9552_v45 = vpop.f32.mrb[156].mxu1 }
 0x7c7   :  { %v4651_v39 = vmul.f32 %v13898_v53, %v9552_v45  ;;  %v4574_v29 = vpop.f32.mrb[157].mxu1 }
 0x7c8   :  { %v4649_v16 = vmul.f32 %v13898_v53, %v4574_v29  ;;  %v9553_v18 = vpop.f32.mrb[158].mxu1 }
 0x7c9   :  { %v4756_v43 = vsel %vm71_vm0, %v4651_v39, 0.0  ;;  %v4652_v52 = vmul.f32 %v13898_v53, %v9553_v18  ;;  %v4577_v4 = vpop.f32.mrb[159].mxu1 }
 0x7ca   :  { %v4757_v50 = vadd.f32 %v4756_v43, %v14238_v24  ;;  %v4726_v11 = vsel %vm71_vm0, %v4649_v16, 0.0  ;;  %v4650_v40 = vmul.f32 %v13898_v53, %v4577_v4 }
 0x7cb   :  { %v4727_v21 = vadd.f32 %v4726_v11, %v14242_v61  ;;  %v4771_v6 = vsel %vm71_vm0, %v4652_v52, 0.0 }
 0x7cc   :  { %v4787_v47 = vadd.f32 %v4757_v50, %v998_v2  ;;  %v4772_v0 = vadd.f32 %v4771_v6, %v14245_v13  ;;  %v4741_v12 = vsel %vm71_vm0, %v4650_v40, 0.0 }
 0x7cd   :  { %v4785_v24 = vadd.f32 %v4727_v21, %v996_v60  ;;  %v4742_v53 = vadd.f32 %v4741_v12, %v14248_v15 }
 0x7ce   :  { %v4788_v49 = vadd.f32 %v4772_v0, %v999_v22  ;;  %v14379_v22 = vld [vmem:[%s16216_s1 + $0x6] ss:$0 sm:$0xff] }
 0x7cf   :  { %v4786_v28 = vadd.f32 %v4742_v53, %v997_v23 }
 0x7d0   :  { %v4796_v27 = vpack.c.bf16 %v4788_v49, %v4787_v47 }
 0x7d1   :  { %v4795_v61 = vpack.c.bf16 %v4786_v28, %v4785_v24 }
 0x7d3   :  { %9574 = vmatprep.mubr.msk.bf16.mxu0 %vm71_vm0, %v4795_v61 }
 0x7d4   :  { %9575 = vmatmul.mubr.msk.bf16.gmra.mrb[156].mxu0 %vm71_vm0, %v4796_v27 }
 0x7d5   :  { %5346 = vmatprep.mubr.bf16.mxu0 %v16809_v35 }
 0x7d7   :  { %v4988_v31 = vpop.xlane.xlu0 %4987 }
 0x7d8   :  { %v5026_v13 = vmul.f32 0.015625, %v4988_v31 }
 0x7d9   :  { %v4991_v36 = vpop.xlane.xlu1 %4990 }
 0x7da   :  { %v14345_v7 = vsub.f32 %v14159_v63, %v5026_v13  ;;  %v5027_v33 = vmul.f32 0.015625, %v4991_v36 }
 0x7db   :  { %v4994_v41 = vpop.xlane.xlu0 %4993 }
 0x7dc   :  { %v14348_v15 = vsub.f32 %v14171_v1, %v5027_v33  ;;  %v5028_v62 = vmul.f32 0.015625, %v4994_v41  ;;  %v5058_v25 = vmul.f32 %v14345_v7, %v14345_v7  ;;  %v10652_v41 = vld [vmem:[%s16215_s0 + $0x40] sm:$0xff] }
 0x7dd   :  { %v4997_v44 = vpop.xlane.xlu1 %4996 }
 0x7de   :  { %v14353_v26 = vsub.f32 %v14166_v5, %v5028_v62  ;;  %v5029_v58 = vmul.f32 0.015625, %v4997_v44  ;;  %v5082_v32 = vsel %vm71_vm0, %v5058_v25, 0.0  ;;  %v5059_v14 = vmul.f32 %v14348_v15, %v14348_v15 }
 0x7df   :  { %5083 = vadd.xlane.f32.xlu0 %v5082_v32 }
 0x7e0   :  { %v14359_v48 = vsub.f32 %v14180_v55, %v5029_v58  ;;  %v5085_v19 = vsel %vm71_vm0, %v5059_v14, 0.0  ;;  %v5060_v17 = vmul.f32 %v14353_v26, %v14353_v26  ;;  %v10653_v58 = vld [vmem:[%s16215_s0 + $0x50] sm:$0xff]  ;;  %v10654_v14 = vld [vmem:[%s16215_s0 + $0x48] sm:$0xff] }
 0x7e1   :  { %5086 = vadd.xlane.f32.xlu1 %v5085_v19 }
 0x7e2   :  { %v5088_v9 = vsel %vm71_vm0, %v5060_v17, 0.0  ;;  %v5061_v30 = vmul.f32 %v14359_v48, %v14359_v48 }
 0x7e3   :  { %5089 = vadd.xlane.f32.xlu0 %v5088_v9  ;;  %v10655_v9 = vld [vmem:[%s16215_s0 + $0x58] sm:$0xff] }
 0x7e4   :  { %v5091_v3 = vsel %vm71_vm0, %v5061_v30, 0.0 }
 0x7e5   :  { %5092 = vadd.xlane.f32.xlu1 %v5091_v3 }
 0x826   :  { %v5072_v45 = vpop.xlane.xlu0 %5071 }
 0x827   :  { %v5118_v39 = vmul.f32 0.015625, %v5072_v45 }
 0x828   :  { %v5075_v29 = vpop.xlane.xlu1 %5074 }
 0x829   :  { %v5134_v16 = vadd.f32 1e-05, %v5118_v39  ;;  %v5119_v18 = vmul.f32 0.015625, %v5075_v29 }
 0x82a   :  { %v5078_v43 = vpop.xlane.xlu0 %5077 }
 0x82b   :  { %10339 = vrsqrt.f32 %v5134_v16  ;;  %v5135_v52 = vadd.f32 1e-05, %v5119_v18  ;;  %v5120_v4 = vmul.f32 0.015625, %v5078_v43 }
 0x82c   :  { %v5081_v51 = vpop.xlane.xlu1 %5080 }
 0x82d   :  { %10341 = vrsqrt.f32 %v5135_v52  ;;  %v5136_v2 = vadd.f32 1e-05, %v5120_v4  ;;  %v5121_v50 = vmul.f32 0.015625, %v5081_v51 }
 0x82f   :  { %10343 = vrsqrt.f32 %v5136_v2  ;;  %v5137_v11 = vadd.f32 1e-05, %v5121_v50 }
 0x831   :  { %10345 = vrsqrt.f32 %v5137_v11 }
 0x835   :  { %v10340_v40 = vpop.eup %10339 }
 0x836   :  { %v5166_v60 = vmul.f32 %v10340_v40, %v14273_v54 }
 0x837   :  { %v10342_v21 = vpop.eup %10341 }
 0x838   :  { %v5186_v6 = vmul.f32 %v14371_v57, %v5166_v60  ;;  %v5167_v47 = vmul.f32 %v10342_v21, %v14277_v20 }
 0x839   :  { %v10344_v34 = vpop.eup %10343 }
 0x83a   :  { %v5187_v0 = vmul.f32 %v14371_v57, %v5167_v47  ;;  %v5206_v24 = vadd.f32 %v14379_v22, %v5186_v6  ;;  %v5168_v54 = vmul.f32 %v10344_v34, %v14282_v56 }
 0x83b   :  { %v10346_v12 = vpop.eup %10345 }
 0x83c   :  { %v5207_v59 = vadd.f32 %v14379_v22, %v5187_v0  ;;  %v5169_v23 = vmul.f32 %v10346_v12, %v14288_v38  ;;  %v5188_v49 = vmul.f32 %v14371_v57, %v5168_v54 }
 0x83e   :  { %v5222_v53 = vpack.c.bf16 %v5207_v59, %v5206_v24  ;;  %v5189_v20 = vmul.f32 %v14371_v57, %v5169_v23  ;;  %v5208_v27 = vadd.f32 %v14379_v22, %v5188_v49 }
 0x840   :  { %8737 = vmatmul.mubr.msk.bf16.vlgmr.msra.gmra.mrb[160].mxu0 %vm71_vm0, %v5222_v53  ;;  %v5209_v28 = vadd.f32 %v14379_v22, %v5189_v20 }
 0x841   :  { %5356 = vmatprep.mubr.bf16.mxu0 %v16809_v35 }
 0x842   :  { %v5223_v61 = vpack.c.bf16 %v5209_v28, %v5208_v27 }
 0x848   :  { %8738 = vmatmul.mubr.msk.bf16.gmra.mrb[164].mxu0 %vm71_vm0, %v5223_v61 }
 0x849   :  { %5366 = vmatprep.mubr.bf16.mxu0 %v16809_v35 }
 0x865   :  { %v9572_v56 = vpop.f32.mrb[152].mxu0 }
 0x866   :  { %v4925_v38 = vpop.f32.mrb[153].mxu0  ;;  %v4934_v31 = vadd.f32 %v9572_v56, %v14064_v10  ;;  %v9737_v56 = vld [vmem:[%s16221_s6 + $0x48] sm:$0xff]  }
 0x867   :  { %v4926_v13 = vadd.f32 %v14064_v10, %v4925_v38  ;;  %v9573_v36 = vpop.f32.mrb[154].mxu0  ;;  %v9738_v38 = vld [vmem:[%s16221_s6 + $0x8] sm:$0xff]  }
 0x868   :  { %v4928_v33 = vpop.f32.mrb[155].mxu0  ;;  %v4937_v25 = vadd.f32 %v9573_v36, %v14064_v10  ;;  %v14406_v32 = vadd.f32 %v10653_v58, %v4934_v31  ;;  %v9739_v31 = vld [vmem:[%s16221_s6 + $0x50] sm:$0xff]   ;;  %v9741_v36 = vld [vmem:[%s16221_s6 + $0x58] sm:$0xff]  }
 0x869   :  { %v14399_v62 = vadd.f32 %v10652_v41, %v4926_v13  ;;  %v4929_v44 = vadd.f32 %v14064_v10, %v4928_v33  ;;  %v9740_v13 = vld [vmem:[%s16221_s6 + $0x10] sm:$0xff]   ;;  %v9742_v33 = vld [vmem:[%s16221_s6 + $0x18] sm:$0xff]   ;;  %v9743_v41 = vld [vmem:[%s16221_s6 + $0x60] sm:$0xff]  }
 0x86a   :  { %v14418_v30 = vadd.f32 %v10655_v9, %v4937_v25  ;;  %v5004_v45 = vsel %vm71_vm0, %v14406_v32, 0.0 }
 0x86b   :  { %v14411_v19 = vadd.f32 %v10654_v14, %v4929_v44  ;;  %v4998_v17 = vsel %vm71_vm0, %v14399_v62, 0.0  ;;  %v9744_v44 = vld [vmem:[%s16221_s6 + $0x20] sm:$0xff]   ;;  %v9745_v14 = vld [vmem:[%s16221_s6 + $0x68] sm:$0xff]  }
 0x86c   :  { %4999 = vadd.xlane.f32.xlu0 %v4998_v17  ;;  %v5084_v39 = vpop.xlane.xlu0 %5083  ;;  %v5007_v16 = vsel %vm71_vm0, %v14418_v30, 0.0 }
 0x86d   :  { %v5001_v3 = vsel %vm71_vm0, %v14411_v19, 0.0  ;;  %v5122_v29 = vmul.f32 0.015625, %v5084_v39  ;;  %v10656_v39 = vld [vmem:[%s16215_s0 + $0x60] sm:$0xff] }
 0x86e   :  { %5002 = vadd.xlane.f32.xlu1 %v5001_v3  ;;  %v5087_v18 = vpop.xlane.xlu1 %5086 }
 0x86f   :  { %v5138_v43 = vadd.f32 1e-05, %v5122_v29  ;;  %v5123_v52 = vmul.f32 0.015625, %v5087_v18 }
 0x870   :  { %5005 = vadd.xlane.f32.xlu0 %v5004_v45  ;;  %v5090_v4 = vpop.xlane.xlu0 %5089 }
 0x871   :  { %10347 = vrsqrt.f32 %v5138_v43  ;;  %v5139_v51 = vadd.f32 1e-05, %v5123_v52  ;;  %v5124_v2 = vmul.f32 0.015625, %v5090_v4  ;;  %v9746_v43 = vld [vmem:[%s16221_s6 + $0x28] sm:$0xff]   ;;  %v9747_v52 = vld [vmem:[%s16221_s6 + $0x70] sm:$0xff]  }
 0x872   :  { %5008 = vadd.xlane.f32.xlu1 %v5007_v16  ;;  %v5093_v50 = vpop.xlane.xlu1 %5092  ;;  %v10657_v4 = vld [vmem:[%s16215_s0 + $0x70] sm:$0xff] }
 0x873   :  { %10349 = vrsqrt.f32 %v5139_v51  ;;  %v5140_v11 = vadd.f32 1e-05, %v5124_v2  ;;  %v5125_v40 = vmul.f32 0.015625, %v5093_v50 }
 0x875   :  { %10351 = vrsqrt.f32 %v5140_v11  ;;  %v5141_v60 = vadd.f32 1e-05, %v5125_v40  ;;  %v10659_v11 = vld [vmem:[%s16215_s0 + $0x78] sm:$0xff] }
 0x877   :  { %10353 = vrsqrt.f32 %v5141_v60 }
 0x87b   :  { %v10348_v21 = vpop.eup %10347 }
 0x87c   :  { %v5170_v6 = vmul.f32 %v10348_v21, %v14345_v7  ;;  %v9735_v7 = vld [vmem:[%s16221_s6 + $0x40] sm:$0xff]   ;;  %v9748_v21 = vld [vmem:[%s16221_s6 + $0x30] sm:$0xff]  }
 0x87d   :  { %v10350_v47 = vpop.eup %10349  ;;  %9070 = vmatprep.subr.bf16.mxu1 %v9735_v7 }
 0x87e   :  { %v5171_v34 = vmul.f32 %v10350_v47, %v14348_v15  ;;  %v5190_v0 = vmul.f32 %v14371_v57, %v5170_v6  ;;  %v9736_v15 = vld [vmem:[%s16221_s6] sm:$0xff]   ;;  %v9749_v6 = vld [vmem:[%s16221_s6 + $0x78] sm:$0xff]  }
 0x87f   :  { %v10352_v12 = vpop.eup %10351  ;;  %9071 = vmatpush3.bf16.msra.mxu1 %v9736_v15 }
 0x880   :  { %v5191_v24 = vmul.f32 %v14371_v57, %v5171_v34  ;;  %v5210_v54 = vadd.f32 %v14379_v22, %v5190_v0  ;;  %v5172_v53 = vmul.f32 %v10352_v12, %v14353_v26  ;;  %9072 = vmatprep.subr.bf16.mxu1 %v9737_v56  ;;  %v9750_v0 = vld [vmem:[%s16221_s6 + $0x38] sm:$0xff]  }
 0x881   :  { %v10354_v59 = vpop.eup %10353 }
 0x882   :  { %v5211_v23 = vadd.f32 %v14379_v22, %v5191_v24  ;;  %v5173_v20 = vmul.f32 %v10354_v59, %v14359_v48  ;;  %v5192_v27 = vmul.f32 %v14371_v57, %v5172_v53 }
 0x883   :  { %9073 = vmatpush3.bf16.msra.mxu1 %v9738_v38 }
 0x884   :  { %v5224_v49 = vpack.c.bf16 %v5211_v23, %v5210_v54  ;;  %v5193_v28 = vmul.f32 %v14371_v57, %v5173_v20  ;;  %v5212_v48 = vadd.f32 %v14379_v22, %v5192_v27  ;;  %9074 = vmatprep.subr.bf16.mxu1 %v9739_v31 }
 0x886   :  { %8739 = vmatmul.mubr.msk.bf16.gmra.mrb[168].mxu0 %vm71_vm0, %v5224_v49  ;;  %v5213_v26 = vadd.f32 %v14379_v22, %v5193_v28 }
 0x887   :  { %5376 = vmatprep.mubr.bf16.mxu0 %v16809_v35  ;;  %9075 = vmatpush3.bf16.msra.mxu1 %v9740_v13 }
 0x888   :  { %v5225_v61 = vpack.c.bf16 %v5213_v26, %v5212_v48  ;;  %9076 = vmatprep.subr.bf16.mxu1 %v9741_v36 }
 0x88b   :  { %9077 = vmatpush3.bf16.msra.mxu1 %v9742_v33  ;;  %v5238_v33 = vld [vmem:[%s16217_s2] ss:$2 sm:$0x3] }
 0x88c   :  { %9078 = vmatprep.subr.bf16.mxu1 %v9743_v41  ;;  %v16810_v41 = vld [vmem:[#allocation5_spill] sm:$0xff] }
 0x88e   :  { %8740 = vmatmul.mubr.msk.bf16.gmra.mrb[172].mxu0 %vm71_vm0, %v5225_v61 }
 0x88f   :  { %5386 = vmatprep.mubr.bf16.mxu0 %v16809_v35  ;;  %9079 = vmatpush3.bf16.msra.mxu1 %v9744_v44  ;;  %v16811_v44 = vld [vmem:[#allocation6_spill] sm:$0xff] }
 0x890   :  { %9080 = vmatprep.subr.bf16.mxu1 %v9745_v14 }
 0x893   :  { %9081 = vmatpush3.bf16.msra.mxu1 %v9746_v43 }
 0x894   :  { %9082 = vmatprep.subr.bf16.mxu1 %v9747_v52 }
 0x897   :  { %9083 = vmatpush3.bf16.msra.mxu1 %v9748_v21 }
 0x898   :  { %9084 = vmatprep.subr.bf16.mxu1 %v9749_v6 }
 0x89b   :  { %9085 = vmatpush3.bf16.msra.mxu1 %v9750_v0 }
 0x8a7   :  { %v9576_v25 = vpop.f32.mrb[156].mxu0 }
 0x8a8   :  { %v4941_v58 = vpop.f32.mrb[157].mxu0  ;;  %v4950_v17 = vadd.f32 %v9576_v25, %v14064_v10  ;;  %v16412_v25 = vsub.s32 1, %v16810_v41 }
 0x8a9   :  { %v4942_v9 = vadd.f32 %v14064_v10, %v4941_v58  ;;  %v9577_v3 = vpop.f32.mrb[158].mxu0  ;;  %v14551_v58 = vrot.slane %v5238_v33, %v16811_v44 }
 0x8aa   :  { %v4944_v45 = vpop.f32.mrb[159].mxu0  ;;  %v4953_v16 = vadd.f32 %v9577_v3, %v14064_v10  ;;  %v14493_v51 = vadd.f32 %v10657_v4, %v4950_v17  ;;  %v14555_v14 = vrot.slane %v5238_v33, %v16412_v25 }
 0x8ab   :  { %v14480_v29 = vadd.f32 %v10656_v39, %v4942_v9  ;;  %v4945_v18 = vadd.f32 %v14064_v10, %v4944_v45  ;;  %v10658_v10 = vld [vmem:[%s16215_s0 + $0x68] sm:$0xff] }
 0x8ac   :  { %v14505_v40 = vadd.f32 %v10659_v11, %v4953_v16  ;;  %v5016_v47 = vsel %vm71_vm0, %v14493_v51, 0.0 }
 0x8ad   :  { %v14498_v2 = vadd.f32 %v10658_v10, %v4945_v18  ;;  %v5010_v50 = vsel %vm71_vm0, %v14480_v29, 0.0 }
 0x8ae   :  { %5011 = vadd.xlane.f32.xlu0 %v5010_v50  ;;  %v5019_v34 = vsel %vm71_vm0, %v14505_v40, 0.0 }
 0x8af   :  { %v5013_v60 = vsel %vm71_vm0, %v14498_v2, 0.0 }
 0x8b0   :  { %5014 = vadd.xlane.f32.xlu1 %v5013_v60 }
 0x8b2   :  { %5017 = vadd.xlane.f32.xlu0 %v5016_v47 }
 0x8b4   :  { %5020 = vadd.xlane.f32.xlu1 %v5019_v34 }
 0x8f9   :  { %v5000_v12 = vpop.xlane.xlu0 %4999 }
 0x8fa   :  { %v5030_v24 = vmul.f32 0.015625, %v5000_v12 }
 0x8fb   :  { %v5003_v59 = vpop.xlane.xlu1 %5002 }
 0x8fc   :  { %v14523_v54 = vsub.f32 %v14399_v62, %v5030_v24  ;;  %v5031_v23 = vmul.f32 0.015625, %v5003_v59 }
 0x8fd   :  { %v5006_v53 = vpop.xlane.xlu0 %5005 }
 0x8fe   :  { %v14526_v20 = vsub.f32 %v14411_v19, %v5031_v23  ;;  %v5032_v7 = vmul.f32 0.015625, %v5006_v53  ;;  %v5062_v15 = vmul.f32 %v14523_v54, %v14523_v54 }
 0x8ff   :  { %v5009_v49 = vpop.xlane.xlu1 %5008 }
 0x900   :  { %v14531_v28 = vsub.f32 %v14406_v32, %v5032_v7  ;;  %v5033_v27 = vmul.f32 0.015625, %v5009_v49  ;;  %v5094_v26 = vsel %vm71_vm0, %v5062_v15, 0.0  ;;  %v5063_v48 = vmul.f32 %v14526_v20, %v14526_v20 }
 0x901   :  { %5095 = vadd.xlane.f32.xlu0 %v5094_v26 }
 0x902   :  { %v14537_v61 = vsub.f32 %v14418_v30, %v5033_v27  ;;  %v5097_v56 = vsel %vm71_vm0, %v5063_v48, 0.0  ;;  %v5064_v38 = vmul.f32 %v14531_v28, %v14531_v28 }
 0x903   :  { %5098 = vadd.xlane.f32.xlu1 %v5097_v56 }
 0x904   :  { %v5100_v31 = vsel %vm71_vm0, %v5064_v38, 0.0  ;;  %v5065_v13 = vmul.f32 %v14537_v61, %v14537_v61 }
 0x905   :  { %5101 = vadd.xlane.f32.xlu0 %v5100_v31 }
 0x906   :  { %v5103_v36 = vsel %vm71_vm0, %v5065_v13, 0.0 }
 0x907   :  { %5104 = vadd.xlane.f32.xlu1 %v5103_v36 }
 0x913   :  { %v5348_v17 = vpop.f32.mrb[160].mxu0 }
 0x914   :  { %v14558_v9 = vadd.f32 %v5348_v17, %v14551_v58  ;;  %v5350_v3 = vpop.f32.mrb[161].mxu0 }
 0x915   :  { %v14561_v45 = vadd.f32 %v5350_v3, %v14555_v14  ;;  %v5352_v39 = vpop.f32.mrb[162].mxu0 }
 0x916   :  { %v5459_v16 = vmul.f32 0.044715, %v14558_v9  ;;  %v14565_v18 = vadd.f32 %v5352_v39, %v14551_v58  ;;  %v5354_v43 = vpop.f32.mrb[163].mxu0 }
 0x917   :  { %v5460_v52 = vmul.f32 0.044715, %v14561_v45  ;;  %v14569_v4 = vadd.f32 %v5354_v43, %v14555_v14 }
 0x918   :  { %v5491_v10 = vmul.f32 %v5459_v16, %v14558_v9  ;;  %v5461_v50 = vmul.f32 0.044715, %v14565_v18 }
 0x919   :  { %v5492_v11 = vmul.f32 %v5460_v52, %v14561_v45  ;;  %v5462_v60 = vmul.f32 0.044715, %v14569_v4 }
 0x91a   :  { %v5523_v21 = vmul.f32 %v5491_v10, %v14558_v9  ;;  %v5493_v6 = vmul.f32 %v5461_v50, %v14565_v18 }
 0x91b   :  { %v5524_v47 = vmul.f32 %v5492_v11, %v14561_v45  ;;  %v5494_v34 = vmul.f32 %v5462_v60, %v14569_v4  ;;  %v5358_v0 = vpop.f32.mrb[164].mxu0 }
 0x91c   :  { %v5555_v12 = vadd.f32 %v5523_v21, %v14558_v9  ;;  %v5525_v24 = vmul.f32 %v5493_v6, %v14565_v18  ;;  %v14582_v59 = vadd.f32 %v5358_v0, %v14551_v58  ;;  %v5360_v23 = vpop.f32.mrb[165].mxu0 }
 0x91d   :  { %v5526_v53 = vmul.f32 %v5494_v34, %v14569_v4  ;;  %v14586_v7 = vadd.f32 %v5360_v23, %v14555_v14  ;;  %v5362_v15 = vpop.f32.mrb[166].mxu0  ;;  %v5556_v49 = vadd.f32 %v5524_v47, %v14561_v45 }
 0x91e   :  { %v5587_v27 = vmul.f32 0.7978846, %v5555_v12  ;;  %v5557_v26 = vadd.f32 %v5525_v24, %v14565_v18  ;;  %v5463_v48 = vmul.f32 0.044715, %v14582_v59  ;;  %v5363_v56 = vadd.f32 %v5362_v15, %v14551_v58  ;;  %v5364_v38 = vpop.f32.mrb[167].mxu0 }
 0x91f   :  { %v5464_v31 = vmul.f32 0.044715, %v14586_v7  ;;  %v5365_v13 = vadd.f32 %v5364_v38, %v14555_v14  ;;  %v5558_v36 = vadd.f32 %v5526_v53, %v14569_v4  ;;  %v5588_v33 = vmul.f32 0.7978846, %v5556_v49 }
 0x920   :  { %10355 = vtanh.f32 %v5587_v27  ;;  %v5589_v17 = vmul.f32 0.7978846, %v5557_v26  ;;  %v5495_v3 = vmul.f32 %v5463_v48, %v14582_v59  ;;  %v5465_v39 = vmul.f32 0.044715, %v5363_v56 }
 0x921   :  { %v5496_v16 = vmul.f32 %v5464_v31, %v14586_v7  ;;  %v5466_v43 = vmul.f32 0.044715, %v5365_v13  ;;  %v5590_v52 = vmul.f32 0.7978846, %v5558_v36  ;;  %10357 = vtanh.f32 %v5588_v33 }
 0x922   :  { %10359 = vtanh.f32 %v5589_v17  ;;  %v5527_v10 = vmul.f32 %v5495_v3, %v14582_v59  ;;  %v5497_v50 = vmul.f32 %v5465_v39, %v5363_v56  ;;  %v5427_v36 = vmul.f32 0.5, %v14558_v9 }
 0x923   :  { %v5528_v11 = vmul.f32 %v5496_v16, %v14586_v7  ;;  %v5498_v60 = vmul.f32 %v5466_v43, %v5365_v13  ;;  %10361 = vtanh.f32 %v5590_v52  ;;  %v5429_v33 = vmul.f32 0.5, %v14565_v18 }
 0x924   :  { %v5529_v21 = vmul.f32 %v5497_v50, %v5363_v56  ;;  %v5559_v6 = vadd.f32 %v5527_v10, %v14582_v59  ;;  %v5428_v3 = vmul.f32 0.5, %v14561_v45  ;;  %v5430_v39 = vmul.f32 0.5, %v14569_v4 }
 0x925   :  { %v5530_v47 = vmul.f32 %v5498_v60, %v5365_v13  ;;  %v5560_v34 = vadd.f32 %v5528_v11, %v14586_v7  ;;  %v5431_v18 = vmul.f32 0.5, %v14582_v59  ;;  %v5433_v45 = vmul.f32 0.5, %v5363_v56 }
 0x926   :  { %v5561_v0 = vadd.f32 %v5529_v21, %v5363_v56  ;;  %v5591_v12 = vmul.f32 0.7978846, %v5559_v6  ;;  %v5432_v4 = vmul.f32 0.5, %v14586_v7 }
 0x927   :  { %v5562_v24 = vadd.f32 %v5530_v47, %v5365_v13  ;;  %v5592_v23 = vmul.f32 0.7978846, %v5560_v34 }
 0x928   :  { %v5593_v53 = vmul.f32 0.7978846, %v5561_v0  ;;  %10363 = vtanh.f32 %v5591_v12 }
 0x929   :  { %v5594_v15 = vmul.f32 0.7978846, %v5562_v24  ;;  %10365 = vtanh.f32 %v5592_v23  ;;  %v5434_v24 = vmul.f32 0.5, %v5365_v13 }
 0x92a   :  { %v10356_v49 = vpop.eup %10355  ;;  %10367 = vtanh.f32 %v5593_v53 }
 0x92b   :  { %v10358_v27 = vpop.eup %10357  ;;  %v5651_v26 = vadd.f32 1.0, %v10356_v49  ;;  %10369 = vtanh.f32 %v5594_v15 }
 0x92c   :  { %v10360_v48 = vpop.eup %10359  ;;  %v5652_v38 = vadd.f32 1.0, %v10358_v27 }
 0x92d   :  { %v10362_v31 = vpop.eup %10361  ;;  %v5653_v17 = vadd.f32 1.0, %v10360_v48  ;;  %v5683_v43 = vmul.f32 %v5651_v26, %v5427_v36 }
 0x92e   :  { %v5654_v16 = vadd.f32 1.0, %v10362_v31  ;;  %v5684_v10 = vmul.f32 %v5652_v38, %v5428_v3 }
 0x92f   :  { %v5685_v52 = vmul.f32 %v5653_v17, %v5429_v33 }
 0x930   :  { %v5686_v50 = vmul.f32 %v5654_v16, %v5430_v39 }
 0x931   :  { %v5715_v11 = vpack.c.bf16 %v5685_v52, %v5683_v43 }
 0x932   :  { %v10364_v60 = vpop.eup %10363  ;;  %v5716_v21 = vpack.c.bf16 %v5686_v50, %v5684_v10 }
 0x933   :  { %v10366_v6 = vpop.eup %10365  ;;  %v5655_v47 = vadd.f32 1.0, %v10364_v60 }
 0x934   :  { %v10368_v34 = vpop.eup %10367  ;;  %5896 = vmatprep.mubr.bf16.mxu1 %v5716_v21  ;;  %v5656_v9 = vadd.f32 1.0, %v10366_v6 }
 0x935   :  { %v10370_v0 = vpop.eup %10369  ;;  %5897 = vmatmul.mubr.bf16.vlgmr.msra.gmra.mrb[160].mxu1 %v5715_v11  ;;  %v5657_v12 = vadd.f32 1.0, %v10368_v34  ;;  %v5687_v53 = vmul.f32 %v5655_v47, %v5431_v18 }
 0x936   :  { %v5658_v23 = vadd.f32 1.0, %v10370_v0  ;;  %v5688_v49 = vmul.f32 %v5656_v9, %v5432_v4 }
 0x937   :  { %v5689_v15 = vmul.f32 %v5657_v12, %v5433_v45 }
 0x938   :  { %v5690_v27 = vmul.f32 %v5658_v23, %v5434_v24 }
 0x939   :  { %v5717_v26 = vpack.c.bf16 %v5689_v15, %v5687_v53 }
 0x93a   :  { %v5718_v48 = vpack.c.bf16 %v5690_v27, %v5688_v49 }
 0x93b   :  { %v5012_v38 = vpop.xlane.xlu0 %5011 }
 0x93c   :  { %5904 = vmatprep.mubr.bf16.mxu1 %v5718_v48  ;;  %v5034_v31 = vmul.f32 0.015625, %v5012_v38 }
 0x93d   :  { %5905 = vmatmul.mubr.bf16.gmra.mrb[164].mxu1 %v5717_v26  ;;  %v5015_v36 = vpop.xlane.xlu1 %5014 }
 0x93e   :  { %v14608_v33 = vsub.f32 %v14480_v29, %v5034_v31  ;;  %v5035_v59 = vmul.f32 0.015625, %v5015_v36 }
 0x93f   :  { %v5018_v56 = vpop.xlane.xlu0 %5017 }
 0x940   :  { %v14611_v7 = vsub.f32 %v14498_v2, %v5035_v59  ;;  %v5036_v13 = vmul.f32 0.015625, %v5018_v56  ;;  %v5066_v17 = vmul.f32 %v14608_v33, %v14608_v33 }
 0x941   :  { %v5021_v3 = vpop.xlane.xlu1 %5020 }
 0x942   :  { %v14616_v39 = vsub.f32 %v14493_v51, %v5036_v13  ;;  %v5037_v16 = vmul.f32 0.015625, %v5021_v3  ;;  %v5106_v43 = vsel %vm71_vm0, %v5066_v17, 0.0  ;;  %v5067_v52 = vmul.f32 %v14611_v7, %v14611_v7 }
 0x943   :  { %5107 = vadd.xlane.f32.xlu0 %v5106_v43 }
 0x944   :  { %v14622_v10 = vsub.f32 %v14505_v40, %v5037_v16  ;;  %v5109_v50 = vsel %vm71_vm0, %v5067_v52, 0.0  ;;  %v5068_v11 = vmul.f32 %v14616_v39, %v14616_v39 }
 0x945   :  { %5110 = vadd.xlane.f32.xlu1 %v5109_v50 }
 0x946   :  { %v5112_v60 = vsel %vm71_vm0, %v5068_v11, 0.0  ;;  %v5069_v21 = vmul.f32 %v14622_v10, %v14622_v10 }
 0x947   :  { %5113 = vadd.xlane.f32.xlu0 %v5112_v60 }
 0x948   :  { %v5115_v6 = vsel %vm71_vm0, %v5069_v21, 0.0 }
 0x949   :  { %5116 = vadd.xlane.f32.xlu1 %v5115_v6 }
 0x959   :  { %v5368_v47 = vpop.f32.mrb[168].mxu0 }
 0x95a   :  { %v14632_v34 = vadd.f32 %v5368_v47, %v14551_v58  ;;  %v5370_v9 = vpop.f32.mrb[169].mxu0 }
 0x95b   :  { %v14635_v0 = vadd.f32 %v5370_v9, %v14555_v14  ;;  %v5372_v18 = vpop.f32.mrb[170].mxu0 }
 0x95c   :  { %v5467_v45 = vmul.f32 0.044715, %v14632_v34  ;;  %v14639_v12 = vadd.f32 %v5372_v18, %v14551_v58  ;;  %v5374_v4 = vpop.f32.mrb[171].mxu0 }
 0x95d   :  { %v5468_v24 = vmul.f32 0.044715, %v14635_v0  ;;  %v14643_v23 = vadd.f32 %v5374_v4, %v14555_v14 }
 0x95e   :  { %v5499_v53 = vmul.f32 %v5467_v45, %v14632_v34  ;;  %v5469_v15 = vmul.f32 0.044715, %v14639_v12 }
 0x95f   :  { %v5500_v49 = vmul.f32 %v5468_v24, %v14635_v0  ;;  %v5470_v27 = vmul.f32 0.044715, %v14643_v23 }
 0x960   :  { %v5531_v26 = vmul.f32 %v5499_v53, %v14632_v34  ;;  %v5501_v48 = vmul.f32 %v5469_v15, %v14639_v12 }
 0x961   :  { %v5532_v38 = vmul.f32 %v5500_v49, %v14635_v0  ;;  %v5502_v31 = vmul.f32 %v5470_v27, %v14643_v23  ;;  %v5378_v36 = vpop.f32.mrb[172].mxu0 }
 0x962   :  { %v5533_v59 = vmul.f32 %v5501_v48, %v14639_v12  ;;  %v14655_v56 = vadd.f32 %v5378_v36, %v14551_v58  ;;  %v5380_v13 = vpop.f32.mrb[173].mxu0  ;;  %v5563_v17 = vadd.f32 %v5531_v26, %v14632_v34 }
 0x963   :  { %v5534_v3 = vmul.f32 %v5502_v31, %v14643_v23  ;;  %v14660_v16 = vadd.f32 %v5380_v13, %v14555_v14  ;;  %v5382_v43 = vpop.f32.mrb[174].mxu0  ;;  %v5564_v52 = vadd.f32 %v5532_v38, %v14635_v0 }
 0x964   :  { %v5471_v50 = vmul.f32 0.044715, %v14655_v56  ;;  %v5383_v11 = vadd.f32 %v5382_v43, %v14551_v58  ;;  %v5384_v60 = vpop.f32.mrb[175].mxu0  ;;  %v5565_v21 = vadd.f32 %v5533_v59, %v14639_v12  ;;  %v5595_v6 = vmul.f32 0.7978846, %v5563_v17 }
 0x965   :  { %v5472_v47 = vmul.f32 0.044715, %v14660_v16  ;;  %v5385_v9 = vadd.f32 %v5384_v60, %v14555_v14  ;;  %v5566_v18 = vadd.f32 %v5534_v3, %v14643_v23  ;;  %v5596_v45 = vmul.f32 0.7978846, %v5564_v52 }
 0x966   :  { %v5503_v4 = vmul.f32 %v5471_v50, %v14655_v56  ;;  %v5473_v24 = vmul.f32 0.044715, %v5383_v11  ;;  %v5597_v53 = vmul.f32 0.7978846, %v5565_v21  ;;  %10371 = vtanh.f32 %v5595_v6 }
 0x967   :  { %v5504_v15 = vmul.f32 %v5472_v47, %v14660_v16  ;;  %v5474_v49 = vmul.f32 0.044715, %v5385_v9  ;;  %v5598_v27 = vmul.f32 0.7978846, %v5566_v18  ;;  %10373 = vtanh.f32 %v5596_v45 }
 0x968   :  { %v5535_v26 = vmul.f32 %v5503_v4, %v14655_v56  ;;  %v5505_v48 = vmul.f32 %v5473_v24, %v5383_v11  ;;  %10375 = vtanh.f32 %v5597_v53  ;;  %v5435_v53 = vmul.f32 0.5, %v14632_v34 }
 0x969   :  { %v5536_v38 = vmul.f32 %v5504_v15, %v14660_v16  ;;  %v5506_v31 = vmul.f32 %v5474_v49, %v5385_v9  ;;  %10377 = vtanh.f32 %v5598_v27  ;;  %v5437_v15 = vmul.f32 0.5, %v14639_v12 }
 0x96a   :  { %v5537_v36 = vmul.f32 %v5505_v48, %v5383_v11  ;;  %v5567_v59 = vadd.f32 %v5535_v26, %v14655_v56  ;;  %v5436_v27 = vmul.f32 0.5, %v14635_v0  ;;  %v5438_v26 = vmul.f32 0.5, %v14643_v23 }
 0x96b   :  { %v5538_v13 = vmul.f32 %v5506_v31, %v5385_v9  ;;  %v5568_v17 = vadd.f32 %v5536_v38, %v14660_v16  ;;  %v5439_v12 = vmul.f32 0.5, %v14655_v56  ;;  %v5441_v0 = vmul.f32 0.5, %v5383_v11 }
 0x96c   :  { %v5569_v3 = vadd.f32 %v5537_v36, %v5383_v11  ;;  %v5599_v43 = vmul.f32 0.7978846, %v5567_v59  ;;  %v5440_v23 = vmul.f32 0.5, %v14660_v16 }
 0x96d   :  { %v5570_v52 = vadd.f32 %v5538_v13, %v5385_v9  ;;  %v5600_v50 = vmul.f32 0.7978846, %v5568_v17 }
 0x96e   :  { %v5601_v60 = vmul.f32 0.7978846, %v5569_v3  ;;  %10379 = vtanh.f32 %v5599_v43 }
 0x96f   :  { %v5602_v21 = vmul.f32 0.7978846, %v5570_v52  ;;  %10381 = vtanh.f32 %v5600_v50 }
 0x970   :  { %v10372_v6 = vpop.eup %10371  ;;  %10383 = vtanh.f32 %v5601_v60 }
 0x971   :  { %v10374_v47 = vpop.eup %10373  ;;  %v5659_v18 = vadd.f32 1.0, %v10372_v6  ;;  %10385 = vtanh.f32 %v5602_v21  ;;  %v5442_v6 = vmul.f32 0.5, %v5385_v9 }
 0x972   :  { %v10376_v45 = vpop.eup %10375  ;;  %v5660_v4 = vadd.f32 1.0, %v10374_v47 }
 0x973   :  { %v10378_v24 = vpop.eup %10377  ;;  %v5661_v49 = vadd.f32 1.0, %v10376_v45  ;;  %v5691_v38 = vmul.f32 %v5659_v18, %v5435_v53 }
 0x974   :  { %v5662_v48 = vadd.f32 1.0, %v10378_v24  ;;  %v5692_v36 = vmul.f32 %v5660_v4, %v5436_v27 }
 0x975   :  { %v5693_v31 = vmul.f32 %v5661_v49, %v5437_v15 }
 0x976   :  { %v5694_v59 = vmul.f32 %v5662_v48, %v5438_v26 }
 0x977   :  { %v5719_v13 = vpack.c.bf16 %v5693_v31, %v5691_v38 }
 0x978   :  { %v10380_v17 = vpop.eup %10379  ;;  %v5720_v3 = vpack.c.bf16 %v5694_v59, %v5692_v36 }
 0x979   :  { %v10382_v43 = vpop.eup %10381  ;;  %v5663_v52 = vadd.f32 1.0, %v10380_v17 }
 0x97a   :  { %v10384_v50 = vpop.eup %10383  ;;  %5912 = vmatprep.mubr.bf16.mxu1 %v5720_v3  ;;  %v5664_v34 = vadd.f32 1.0, %v10382_v43 }
 0x97b   :  { %v10386_v60 = vpop.eup %10385  ;;  %5913 = vmatmul.mubr.bf16.gmra.mrb[168].mxu1 %v5719_v13  ;;  %v5665_v21 = vadd.f32 1.0, %v10384_v50  ;;  %v5695_v18 = vmul.f32 %v5663_v52, %v5439_v12 }
 0x97c   :  { %v5666_v47 = vadd.f32 1.0, %v10386_v60  ;;  %v5696_v4 = vmul.f32 %v5664_v34, %v5440_v23 }
 0x97d   :  { %v5697_v45 = vmul.f32 %v5665_v21, %v5441_v0 }
 0x97e   :  { %v5698_v24 = vmul.f32 %v5666_v47, %v5442_v6 }
 0x97f   :  { %v5721_v53 = vpack.c.bf16 %v5697_v45, %v5695_v18 }
 0x980   :  { %v5722_v15 = vpack.c.bf16 %v5698_v24, %v5696_v4 }
 0x982   :  { %5920 = vmatprep.mubr.bf16.mxu1 %v5722_v15 }
 0x983   :  { %5921 = vmatmul.mubr.bf16.gmra.mrb[172].mxu1 %v5721_v53 }
 0x98e   :  { %v5096_v49 = vpop.xlane.xlu0 %5095 }
 0x98f   :  { %v5126_v27 = vmul.f32 0.015625, %v5096_v49 }
 0x990   :  { %v5099_v26 = vpop.xlane.xlu1 %5098 }
 0x991   :  { %v5142_v48 = vadd.f32 1e-05, %v5126_v27  ;;  %v5127_v38 = vmul.f32 0.015625, %v5099_v26 }
 0x992   :  { %v5102_v56 = vpop.xlane.xlu0 %5101 }
 0x993   :  { %10387 = vrsqrt.f32 %v5142_v48  ;;  %v5143_v11 = vadd.f32 1e-05, %v5127_v38  ;;  %v5128_v31 = vmul.f32 0.015625, %v5102_v56 }
 0x994   :  { %v5105_v16 = vpop.xlane.xlu1 %5104 }
 0x995   :  { %10389 = vrsqrt.f32 %v5143_v11  ;;  %v5144_v9 = vadd.f32 1e-05, %v5128_v31  ;;  %v5129_v36 = vmul.f32 0.015625, %v5105_v16 }
 0x997   :  { %10391 = vrsqrt.f32 %v5144_v9  ;;  %v5145_v59 = vadd.f32 1e-05, %v5129_v36 }
 0x999   :  { %10393 = vrsqrt.f32 %v5145_v59 }
 0x99d   :  { %v10388_v13 = vpop.eup %10387 }
 0x99e   :  { %v5174_v17 = vmul.f32 %v10388_v13, %v14523_v54 }
 0x99f   :  { %v10390_v3 = vpop.eup %10389 }
 0x9a0   :  { %v5175_v43 = vmul.f32 %v10390_v3, %v14526_v20  ;;  %v5194_v52 = vmul.f32 %v14371_v57, %v5174_v17 }
 0x9a1   :  { %v10392_v50 = vpop.eup %10391 }
 0x9a2   :  { %v5195_v34 = vmul.f32 %v14371_v57, %v5175_v43  ;;  %v5214_v12 = vadd.f32 %v14379_v22, %v5194_v52  ;;  %v5176_v21 = vmul.f32 %v10392_v50, %v14531_v28 }
 0x9a3   :  { %v10394_v60 = vpop.eup %10393 }
 0x9a4   :  { %v5215_v0 = vadd.f32 %v14379_v22, %v5195_v34  ;;  %v5177_v23 = vmul.f32 %v10394_v60, %v14537_v61  ;;  %v5196_v20 = vmul.f32 %v14371_v57, %v5176_v21 }
 0x9a6   :  { %v5226_v6 = vpack.c.bf16 %v5215_v0, %v5214_v12  ;;  %v5197_v54 = vmul.f32 %v14371_v57, %v5177_v23  ;;  %v5216_v18 = vadd.f32 %v14379_v22, %v5196_v20 }
 0x9a8   :  { %8741 = vmatmul.mubr.msk.bf16.gmra.mrb[176].mxu0 %vm71_vm0, %v5226_v6  ;;  %v5217_v47 = vadd.f32 %v14379_v22, %v5197_v54 }
 0x9a9   :  { %5396 = vmatprep.mubr.bf16.mxu0 %v16809_v35 }
 0x9aa   :  { %v5227_v45 = vpack.c.bf16 %v5217_v47, %v5216_v18 }
 0x9b0   :  { %8742 = vmatmul.mubr.msk.bf16.gmra.mrb[180].mxu0 %vm71_vm0, %v5227_v45 }
 0x9b1   :  { %5406 = vmatprep.mubr.bf16.mxu0 %v16809_v35 }
 0x9d0   :  { %v5108_v28 = vpop.xlane.xlu0 %5107 }
 0x9d1   :  { %v5130_v61 = vmul.f32 0.015625, %v5108_v28 }
 0x9d2   :  { %v5111_v4 = vpop.xlane.xlu1 %5110 }
 0x9d3   :  { %v5146_v24 = vadd.f32 1e-05, %v5130_v61  ;;  %v5131_v53 = vmul.f32 0.015625, %v5111_v4 }
 0x9d4   :  { %v5114_v15 = vpop.xlane.xlu0 %5113 }
 0x9d5   :  { %10395 = vrsqrt.f32 %v5146_v24  ;;  %v5147_v49 = vadd.f32 1e-05, %v5131_v53  ;;  %v5132_v27 = vmul.f32 0.015625, %v5114_v15 }
 0x9d6   :  { %v5117_v26 = vpop.xlane.xlu1 %5116 }
 0x9d7   :  { %10397 = vrsqrt.f32 %v5147_v49  ;;  %v5148_v48 = vadd.f32 1e-05, %v5132_v27  ;;  %v5133_v38 = vmul.f32 0.015625, %v5117_v26 }
 0x9d9   :  { %10399 = vrsqrt.f32 %v5148_v48  ;;  %v5149_v56 = vadd.f32 1e-05, %v5133_v38 }
 0x9db   :  { %10401 = vrsqrt.f32 %v5149_v56 }
 0x9df   :  { %v10396_v11 = vpop.eup %10395 }
 0x9e0   :  { %v5178_v31 = vmul.f32 %v10396_v11, %v14608_v33 }
 0x9e1   :  { %v10398_v16 = vpop.eup %10397 }
 0x9e2   :  { %v5179_v9 = vmul.f32 %v10398_v16, %v14611_v7  ;;  %v5198_v36 = vmul.f32 %v14371_v57, %v5178_v31 }
 0x9e3   :  { %v10400_v59 = vpop.eup %10399 }
 0x9e4   :  { %v5199_v13 = vmul.f32 %v14371_v57, %v5179_v9  ;;  %v5218_v3 = vadd.f32 %v14379_v22, %v5198_v36  ;;  %v5180_v52 = vmul.f32 %v10400_v59, %v14616_v39 }
 0x9e5   :  { %v10402_v17 = vpop.eup %10401 }
 0x9e6   :  { %v5219_v43 = vadd.f32 %v14379_v22, %v5199_v13  ;;  %v5181_v50 = vmul.f32 %v10402_v17, %v14622_v10  ;;  %v5200_v7 = vmul.f32 %v14371_v57, %v5180_v52  ;;  %v14716_v10 = vld [vmem:[%s16216_s1 + $0x7] ss:$0 sm:$0xff] }
 0x9e8   :  { %v5228_v34 = vpack.c.bf16 %v5219_v43, %v5218_v3  ;;  %v5201_v33 = vmul.f32 %v14371_v57, %v5181_v50  ;;  %v5220_v12 = vadd.f32 %v14379_v22, %v5200_v7 }
 0x9ea   :  { %8743 = vmatmul.mubr.msk.bf16.gmra.mrb[184].mxu0 %vm71_vm0, %v5228_v34  ;;  %v5221_v60 = vadd.f32 %v14379_v22, %v5201_v33 }
 0x9eb   :  { %5416 = vmatprep.mubr.bf16.mxu0 %v16809_v35 }
 0x9ec   :  { %v5229_v0 = vpack.c.bf16 %v5221_v60, %v5220_v12 }
 0x9f2   :  { %8744 = vmatmul.mubr.msk.bf16.gmra.mrb[188].mxu0 %vm71_vm0, %v5229_v0 }
 0x9f3   :  { %6340 = vmatprep.mubr.bf16.mxu0 %v16809_v35 }
 0xa08   :  { %v9086_v39 = vpop.f32.mrb[160].mxu1 }
 0xa09   :  { %v9087_v21 = vpop.f32.mrb[161].mxu1 }
 0xa0a   :  { %v9088_v23 = vadd.f32 %v9087_v21, %v9086_v39  ;;  %v9089_v57 = vpop.f32.mrb[162].mxu1 }
 0xa0b   :  { %v9090_v6 = vpop.f32.mrb[163].mxu1 }
 0xa0c   :  { %v5899_v54 = vadd.f32 %v9088_v23, %v14716_v10  ;;  %v9091_v20 = vadd.f32 %v9090_v6, %v9089_v57 }
 0xa0e   :  { %v14720_v22 = vadd.f32 %v5899_v54, %v14071_v46  ;;  %v5902_v47 = vadd.f32 %v9091_v20, %v14716_v10 }
 0xa10   :  { %v14724_v18 = vadd.f32 %v5902_v47, %v14083_v8  ;;  %v9092_v45 = vpop.f32.mrb[164].mxu1  ;;  %v5979_v28 = vsel %vm71_vm0, %v14720_v22, 0.0 }
 0xa11   :  { %v9093_v61 = vpop.f32.mrb[165].mxu1  ;;  %5980 = vadd.xlane.f32.xlu0 %v5979_v28 }
 0xa12   :  { %v9094_v4 = vadd.f32 %v9093_v61, %v9092_v45  ;;  %v9095_v24 = vpop.f32.mrb[166].mxu1  ;;  %v5982_v53 = vsel %vm71_vm0, %v14724_v18, 0.0 }
 0xa13   :  { %5983 = vadd.xlane.f32.xlu1 %v5982_v53  ;;  %v9096_v15 = vpop.f32.mrb[167].mxu1 }
 0xa14   :  { %v5907_v46 = vadd.f32 %v9094_v4, %v14716_v10  ;;  %v9097_v49 = vadd.f32 %v9096_v15, %v9095_v24 }
 0xa16   :  { %v14732_v27 = vadd.f32 %v5907_v46, %v14078_v37  ;;  %v5910_v8 = vadd.f32 %v9097_v49, %v14716_v10 }
 0xa18   :  { %v14736_v26 = vadd.f32 %v5910_v8, %v14090_v42  ;;  %v5985_v48 = vsel %vm71_vm0, %v14732_v27, 0.0 }
 0xa19   :  { %5986 = vadd.xlane.f32.xlu0 %v5985_v48 }
 0xa1a   :  { %v5988_v38 = vsel %vm71_vm0, %v14736_v26, 0.0 }
 0xa1b   :  { %5989 = vadd.xlane.f32.xlu1 %v5988_v38 }
 0xa4e   :  { %v9098_v56 = vpop.f32.mrb[168].mxu1 }
 0xa4f   :  { %v9099_v11 = vpop.f32.mrb[169].mxu1 }
 0xa50   :  { %v9100_v31 = vadd.f32 %v9099_v11, %v9098_v56  ;;  %v9101_v16 = vpop.f32.mrb[170].mxu1 }
 0xa51   :  { %v9102_v9 = vpop.f32.mrb[171].mxu1 }
 0xa52   :  { %v5915_v37 = vadd.f32 %v9100_v31, %v14716_v10  ;;  %v9103_v36 = vadd.f32 %v9102_v9, %v9101_v16 }
 0xa54   :  { %v14744_v59 = vadd.f32 %v5915_v37, %v14159_v63  ;;  %v5918_v42 = vadd.f32 %v9103_v36, %v14716_v10 }
 0xa56   :  { %v14748_v13 = vadd.f32 %v5918_v42, %v14171_v1  ;;  %v9104_v17 = vpop.f32.mrb[172].mxu1  ;;  %v5991_v3 = vsel %vm71_vm0, %v14744_v59, 0.0 }
 0xa57   :  { %v9105_v43 = vpop.f32.mrb[173].mxu1  ;;  %5992 = vadd.xlane.f32.xlu0 %v5991_v3 }
 0xa58   :  { %v9106_v52 = vadd.f32 %v9105_v43, %v9104_v17  ;;  %v9107_v50 = vpop.f32.mrb[174].mxu1  ;;  %v5994_v34 = vsel %vm71_vm0, %v14748_v13, 0.0 }
 0xa59   :  { %5995 = vadd.xlane.f32.xlu1 %v5994_v34  ;;  %v9108_v33 = vpop.f32.mrb[175].mxu1 }
 0xa5a   :  { %v5923_v63 = vadd.f32 %v9106_v52, %v14716_v10  ;;  %v9109_v7 = vadd.f32 %v9108_v33, %v9107_v50 }
 0xa5c   :  { %v14756_v60 = vadd.f32 %v5923_v63, %v14166_v5  ;;  %v5926_v1 = vadd.f32 %v9109_v7, %v14716_v10 }
 0xa5e   :  { %v14760_v12 = vadd.f32 %v5926_v1, %v14180_v55  ;;  %v5997_v0 = vsel %vm71_vm0, %v14756_v60, 0.0 }
 0xa5f   :  { %5998 = vadd.xlane.f32.xlu0 %v5997_v0 }
 0xa60   :  { %v6000_v39 = vsel %vm71_vm0, %v14760_v12, 0.0 }
 0xa61   :  { %6001 = vadd.xlane.f32.xlu1 %v6000_v39 }
 0xa7b   :  { %v5388_v21 = vpop.f32.mrb[176].mxu0 }
 0xa7c   :  { %v14767_v23 = vadd.f32 %v5388_v21, %v14551_v58  ;;  %v5390_v57 = vpop.f32.mrb[177].mxu0 }
 0xa7d   :  { %v14770_v5 = vadd.f32 %v5390_v57, %v14555_v14  ;;  %v5392_v6 = vpop.f32.mrb[178].mxu0 }
 0xa7e   :  { %v5475_v55 = vmul.f32 0.044715, %v14767_v23  ;;  %v14774_v54 = vadd.f32 %v5392_v6, %v14551_v58  ;;  %v5394_v20 = vpop.f32.mrb[179].mxu0 }
 0xa7f   :  { %v5476_v47 = vmul.f32 0.044715, %v14770_v5  ;;  %v14778_v45 = vadd.f32 %v5394_v20, %v14555_v14 }
 0xa80   :  { %v5507_v28 = vmul.f32 %v5475_v55, %v14767_v23  ;;  %v5477_v61 = vmul.f32 0.044715, %v14774_v54 }
 0xa81   :  { %v5508_v4 = vmul.f32 %v5476_v47, %v14770_v5  ;;  %v5478_v24 = vmul.f32 0.044715, %v14778_v45 }
 0xa82   :  { %v5539_v53 = vmul.f32 %v5507_v28, %v14767_v23  ;;  %v5509_v15 = vmul.f32 %v5477_v61, %v14774_v54 }
 0xa83   :  { %v5540_v46 = vmul.f32 %v5508_v4, %v14770_v5  ;;  %v5510_v49 = vmul.f32 %v5478_v24, %v14778_v45  ;;  %v5398_v8 = vpop.f32.mrb[180].mxu0 }
 0xa84   :  { %v5541_v48 = vmul.f32 %v5509_v15, %v14774_v54  ;;  %v14790_v38 = vadd.f32 %v5398_v8, %v14551_v58  ;;  %v5400_v56 = vpop.f32.mrb[181].mxu0  ;;  %v5571_v11 = vadd.f32 %v5539_v53, %v14767_v23 }
 0xa85   :  { %v5542_v31 = vmul.f32 %v5510_v49, %v14778_v45  ;;  %v14795_v16 = vadd.f32 %v5400_v56, %v14555_v14  ;;  %v5402_v9 = vpop.f32.mrb[182].mxu0  ;;  %v5572_v37 = vadd.f32 %v5540_v46, %v14770_v5 }
 0xa86   :  { %v5479_v36 = vmul.f32 0.044715, %v14790_v38  ;;  %v14800_v42 = vadd.f32 %v5402_v9, %v14551_v58  ;;  %v5404_v17 = vpop.f32.mrb[183].mxu0  ;;  %v5573_v3 = vadd.f32 %v5541_v48, %v14774_v54  ;;  %v5603_v43 = vmul.f32 0.7978846, %v5571_v11 }
 0xa87   :  { %v5480_v52 = vmul.f32 0.044715, %v14795_v16  ;;  %v14805_v50 = vadd.f32 %v5404_v17, %v14555_v14  ;;  %v5574_v34 = vadd.f32 %v5542_v31, %v14778_v45  ;;  %v5604_v33 = vmul.f32 0.7978846, %v5572_v37 }
 0xa88   :  { %v5511_v63 = vmul.f32 %v5479_v36, %v14790_v38  ;;  %v5481_v7 = vmul.f32 0.044715, %v14800_v42  ;;  %v5605_v1 = vmul.f32 0.7978846, %v5573_v3  ;;  %10403 = vtanh.f32 %v5603_v43 }
 0xa89   :  { %v5512_v0 = vmul.f32 %v5480_v52, %v14795_v16  ;;  %v5482_v39 = vmul.f32 0.044715, %v14805_v50  ;;  %v5606_v21 = vmul.f32 0.7978846, %v5574_v34  ;;  %10405 = vtanh.f32 %v5604_v33 }
 0xa8a   :  { %v5543_v57 = vmul.f32 %v5511_v63, %v14790_v38  ;;  %v5513_v6 = vmul.f32 %v5481_v7, %v14800_v42  ;;  %10407 = vtanh.f32 %v5605_v1  ;;  %v5443_v36 = vmul.f32 0.5, %v14767_v23 }
 0xa8b   :  { %v5544_v55 = vmul.f32 %v5512_v0, %v14795_v16  ;;  %v5514_v20 = vmul.f32 %v5482_v39, %v14805_v50  ;;  %10409 = vtanh.f32 %v5606_v21  ;;  %v5445_v17 = vmul.f32 0.5, %v14774_v54 }
 0xa8c   :  { %v5545_v47 = vmul.f32 %v5513_v6, %v14800_v42  ;;  %v5575_v28 = vadd.f32 %v5543_v57, %v14790_v38  ;;  %v5444_v43 = vmul.f32 0.5, %v14770_v5  ;;  %v5446_v52 = vmul.f32 0.5, %v14778_v45 }
 0xa8d   :  { %v5546_v61 = vmul.f32 %v5514_v20, %v14805_v50  ;;  %v5576_v4 = vadd.f32 %v5544_v55, %v14795_v16  ;;  %v5447_v5 = vmul.f32 0.5, %v14790_v38  ;;  %v5449_v45 = vmul.f32 0.5, %v14800_v42 }
 0xa8e   :  { %v5577_v24 = vadd.f32 %v5545_v47, %v14800_v42  ;;  %v5607_v53 = vmul.f32 0.7978846, %v5575_v28 }
 0xa8f   :  { %v5578_v15 = vadd.f32 %v5546_v61, %v14805_v50  ;;  %v5608_v46 = vmul.f32 0.7978846, %v5576_v4  ;;  %v5448_v4 = vmul.f32 0.5, %v14795_v16 }
 0xa90   :  { %v5609_v49 = vmul.f32 0.7978846, %v5577_v24  ;;  %10411 = vtanh.f32 %v5607_v53  ;;  %v5450_v24 = vmul.f32 0.5, %v14805_v50 }
 0xa91   :  { %v5610_v8 = vmul.f32 0.7978846, %v5578_v15  ;;  %10413 = vtanh.f32 %v5608_v46 }
 0xa92   :  { %v10404_v48 = vpop.eup %10403  ;;  %10415 = vtanh.f32 %v5609_v49 }
 0xa93   :  { %v10406_v56 = vpop.eup %10405  ;;  %v5667_v11 = vadd.f32 1.0, %v10404_v48  ;;  %10417 = vtanh.f32 %v5610_v8 }
 0xa94   :  { %v10408_v31 = vpop.eup %10407  ;;  %v5668_v9 = vadd.f32 1.0, %v10406_v56 }
 0xa95   :  { %v10410_v37 = vpop.eup %10409  ;;  %v5669_v3 = vadd.f32 1.0, %v10408_v31  ;;  %v5699_v33 = vmul.f32 %v5667_v11, %v5443_v36 }
 0xa96   :  { %v5670_v34 = vadd.f32 1.0, %v10410_v37  ;;  %v5700_v7 = vmul.f32 %v5668_v9, %v5444_v43 }
 0xa97   :  { %v5701_v63 = vmul.f32 %v5669_v3, %v5445_v17 }
 0xa98   :  { %v5702_v1 = vmul.f32 %v5670_v34, %v5446_v52 }
 0xa99   :  { %v5723_v0 = vpack.c.bf16 %v5701_v63, %v5699_v33 }
 0xa9a   :  { %v10412_v39 = vpop.eup %10411  ;;  %v5724_v21 = vpack.c.bf16 %v5702_v1, %v5700_v7 }
 0xa9b   :  { %v10414_v57 = vpop.eup %10413  ;;  %v5671_v6 = vadd.f32 1.0, %v10412_v39 }
 0xa9c   :  { %v10416_v55 = vpop.eup %10415  ;;  %5928 = vmatprep.mubr.bf16.mxu1 %v5724_v21  ;;  %v5672_v20 = vadd.f32 1.0, %v10414_v57 }
 0xa9d   :  { %v10418_v54 = vpop.eup %10417  ;;  %5929 = vmatmul.mubr.bf16.gmra.mrb[176].mxu1 %v5723_v0  ;;  %v5673_v28 = vadd.f32 1.0, %v10416_v55  ;;  %v5703_v49 = vmul.f32 %v5671_v6, %v5447_v5 }
 0xa9e   :  { %v5981_v23 = vpop.xlane.xlu0 %5980  ;;  %v5674_v53 = vadd.f32 1.0, %v10418_v54  ;;  %v5704_v48 = vmul.f32 %v5672_v20, %v5448_v4 }
 0xa9f   :  { %v6027_v47 = vmul.f32 0.015625, %v5981_v23  ;;  %v5705_v8 = vmul.f32 %v5673_v28, %v5449_v45 }
 0xaa0   :  { %v5984_v61 = vpop.xlane.xlu1 %5983  ;;  %v5706_v56 = vmul.f32 %v5674_v53, %v5450_v24  ;;  %v9753_v53 = vld [vmem:[%s16219_s4 + $0x44] ss:$8 sps:$4 sm:$0xff]  }
 0xaa1   :  { %v14831_v15 = vsub.f32 %v14720_v22, %v6027_v47  ;;  %v6028_v46 = vmul.f32 0.015625, %v5984_v61  ;;  %v5725_v42 = vpack.c.bf16 %v5705_v8, %v5703_v49  ;;  %v9751_v61 = vld [vmem:[%s16219_s4 + $0x40] ss:$8 sps:$4 sm:$0xff]   ;;  %6308 = vmatprep.subr.bf16.mxu0 %v9753_v53 }
 0xaa2   :  { %v5726_v31 = vpack.c.bf16 %v5706_v56, %v5704_v48  ;;  %6309 = vmatpush1.bf16.msra.mxu0 %v9751_v61 }
 0xaa3   :  { %v14834_v11 = vsub.f32 %v14724_v18, %v6028_v46  ;;  %v6059_v38 = vmul.f32 %v14831_v15, %v14831_v15  ;;  %v9756_v46 = vld [vmem:[%s16219_s4 + $0x54] ss:$8 sps:$4 sm:$0xff]  }
 0xaa4   :  { %5936 = vmatprep.mubr.bf16.mxu1 %v5726_v31  ;;  %6310 = vmatprep.subr.bf16.mxu0 %v9756_v46 }
 0xaa5   :  { %v6075_v16 = vsel %vm71_vm0, %v6059_v38, 0.0  ;;  %v6060_v50 = vmul.f32 %v14834_v11, %v14834_v11  ;;  %5937 = vmatmul.mubr.bf16.gmra.mrb[180].mxu1 %v5725_v42 }
 0xaa6   :  { %6076 = vadd.xlane.f32.xlu0 %v6075_v16  ;;  %v5987_v9 = vpop.xlane.xlu0 %5986 }
 0xaa7   :  { %v6029_v37 = vmul.f32 0.015625, %v5987_v9  ;;  %v6078_v36 = vsel %vm71_vm0, %v6060_v50, 0.0 }
 0xaa8   :  { %v5990_v17 = vpop.xlane.xlu1 %5989  ;;  %6079 = vadd.xlane.f32.xlu1 %v6078_v36  ;;  %v9754_v36 = vld [vmem:[%s16219_s4 + $0x50] ss:$8 sps:$4 sm:$0xff]  }
 0xaa9   :  { %v14843_v3 = vsub.f32 %v14732_v27, %v6029_v37  ;;  %v6030_v43 = vmul.f32 0.015625, %v5990_v17  ;;  %v9759_v17 = vld [vmem:[%s16219_s4 + $0x64] ss:$8 sps:$4 sm:$0xff]   ;;  %6311 = vmatpush1.bf16.msra.mxu0 %v9754_v36 }
 0xaaa   :  { %6312 = vmatprep.subr.bf16.mxu0 %v9759_v17 }
 0xaab   :  { %v14846_v52 = vsub.f32 %v14736_v26, %v6030_v43  ;;  %v6061_v34 = vmul.f32 %v14843_v3, %v14843_v3 }
 0xaad   :  { %v6081_v33 = vsel %vm71_vm0, %v6061_v34, 0.0  ;;  %v6062_v63 = vmul.f32 %v14846_v52, %v14846_v52 }
 0xaae   :  { %6082 = vadd.xlane.f32.xlu0 %v6081_v33 }
 0xaaf   :  { %v6084_v7 = vsel %vm71_vm0, %v6062_v63, 0.0 }
 0xab0   :  { %6085 = vadd.xlane.f32.xlu1 %v6084_v7 }
 0xabd   :  { %v5408_v1 = vpop.f32.mrb[184].mxu0 }
 0xabe   :  { %v14855_v0 = vadd.f32 %v5408_v1, %v14551_v58  ;;  %v5410_v39 = vpop.f32.mrb[185].mxu0 }
 0xabf   :  { %v14858_v21 = vadd.f32 %v5410_v39, %v14555_v14  ;;  %v5412_v57 = vpop.f32.mrb[186].mxu0 }
 0xac0   :  { %v5483_v6 = vmul.f32 0.044715, %v14855_v0  ;;  %v14862_v55 = vadd.f32 %v5412_v57, %v14551_v58  ;;  %v5414_v23 = vpop.f32.mrb[187].mxu0 }
 0xac1   :  { %v5484_v20 = vmul.f32 0.044715, %v14858_v21  ;;  %v14866_v54 = vadd.f32 %v5414_v23, %v14555_v14 }
 0xac2   :  { %v5515_v47 = vmul.f32 %v5483_v6, %v14855_v0  ;;  %v5485_v5 = vmul.f32 0.044715, %v14862_v55 }
 0xac3   :  { %v5516_v45 = vmul.f32 %v5484_v20, %v14858_v21  ;;  %v5486_v28 = vmul.f32 0.044715, %v14866_v54 }
 0xac4   :  { %v5547_v4 = vmul.f32 %v5515_v47, %v14855_v0  ;;  %v5517_v24 = vmul.f32 %v5485_v5, %v14862_v55 }
 0xac5   :  { %v5548_v49 = vmul.f32 %v5516_v45, %v14858_v21  ;;  %v5518_v8 = vmul.f32 %v5486_v28, %v14866_v54  ;;  %v5418_v48 = vpop.f32.mrb[188].mxu0 }
 0xac6   :  { %v5549_v56 = vmul.f32 %v5517_v24, %v14862_v55  ;;  %v14887_v38 = vadd.f32 %v5418_v48, %v14551_v58  ;;  %v5420_v42 = vpop.f32.mrb[189].mxu0  ;;  %v5579_v31 = vadd.f32 %v5547_v4, %v14855_v0  ;;  %v9762_v4 = vld [vmem:[%s16219_s4 + $0x74] ss:$8 sps:$4 sm:$0xff]  }
 0xac7   :  { %v5550_v16 = vmul.f32 %v5518_v8, %v14866_v54  ;;  %v14892_v50 = vadd.f32 %v5420_v42, %v14555_v14  ;;  %v5422_v9 = vpop.f32.mrb[190].mxu0  ;;  %v5580_v37 = vadd.f32 %v5548_v49, %v14858_v21 }
 0xac8   :  { %v5487_v43 = vmul.f32 0.044715, %v14887_v38  ;;  %v14903_v34 = vadd.f32 %v5422_v9, %v14551_v58  ;;  %v5424_v33 = vpop.f32.mrb[191].mxu0  ;;  %v5581_v63 = vadd.f32 %v5549_v56, %v14862_v55  ;;  %v5611_v7 = vmul.f32 0.7978846, %v5579_v31 }
 0xac9   :  { %v5488_v1 = vmul.f32 0.044715, %v14892_v50  ;;  %v14908_v39 = vadd.f32 %v5424_v33, %v14555_v14  ;;  %v5582_v57 = vadd.f32 %v5550_v16, %v14866_v54  ;;  %v5612_v6 = vmul.f32 0.7978846, %v5580_v37  ;;  %v9757_v14 = vld [vmem:[%s16219_s4 + $0x60] ss:$8 sps:$4 sm:$0xff]  }
 0xaca   :  { %v5519_v23 = vmul.f32 %v5487_v43, %v14887_v38  ;;  %v5489_v20 = vmul.f32 0.044715, %v14903_v34  ;;  %v5613_v47 = vmul.f32 0.7978846, %v5581_v63  ;;  %10419 = vtanh.f32 %v5611_v7  ;;  %6313 = vmatpush1.bf16.msra.mxu0 %v9757_v14  ;;  %v9760_v56 = vld [vmem:[%s16219_s4 + $0x70] ss:$8 sps:$4 sm:$0xff]  }
 0xacb   :  { %v5520_v58 = vmul.f32 %v5488_v1, %v14892_v50  ;;  %v5490_v5 = vmul.f32 0.044715, %v14908_v39  ;;  %v5614_v45 = vmul.f32 0.7978846, %v5582_v57  ;;  %10421 = vtanh.f32 %v5612_v6  ;;  %6314 = vmatprep.subr.bf16.mxu0 %v9762_v4 }
 0xacc   :  { %v5551_v28 = vmul.f32 %v5519_v23, %v14887_v38  ;;  %v5521_v61 = vmul.f32 %v5489_v20, %v14903_v34  ;;  %10423 = vtanh.f32 %v5613_v47  ;;  %v5451_v57 = vmul.f32 0.5, %v14855_v0 }
 0xacd   :  { %v5552_v24 = vmul.f32 %v5520_v58, %v14892_v50  ;;  %v5522_v53 = vmul.f32 %v5490_v5, %v14908_v39  ;;  %10425 = vtanh.f32 %v5614_v45  ;;  %v5453_v6 = vmul.f32 0.5, %v14862_v55 }
 0xace   :  { %v5553_v46 = vmul.f32 %v5521_v61, %v14903_v34  ;;  %v5583_v49 = vadd.f32 %v5551_v28, %v14887_v38  ;;  %6315 = vmatpush1.bf16.msra.mxu0 %v9760_v56  ;;  %v5452_v20 = vmul.f32 0.5, %v14858_v21  ;;  %v5454_v47 = vmul.f32 0.5, %v14866_v54 }
 0xacf   :  { %v5554_v8 = vmul.f32 %v5522_v53, %v14908_v39  ;;  %v5584_v48 = vadd.f32 %v5552_v24, %v14892_v50  ;;  %v5455_v55 = vmul.f32 0.5, %v14887_v38  ;;  %v5457_v21 = vmul.f32 0.5, %v14903_v34 }
 0xad0   :  { %v5585_v42 = vadd.f32 %v5553_v46, %v14903_v34  ;;  %v5615_v31 = vmul.f32 0.7978846, %v5583_v49  ;;  %v5458_v56 = vmul.f32 0.5, %v14908_v39 }
 0xad1   :  { %v5586_v16 = vadd.f32 %v5554_v8, %v14908_v39  ;;  %v5616_v9 = vmul.f32 0.7978846, %v5584_v48  ;;  %v5456_v48 = vmul.f32 0.5, %v14892_v50 }
 0xad2   :  { %v5617_v37 = vmul.f32 0.7978846, %v5585_v42  ;;  %10427 = vtanh.f32 %v5615_v31 }
 0xad3   :  { %v5618_v36 = vmul.f32 0.7978846, %v5586_v16  ;;  %10429 = vtanh.f32 %v5616_v9 }
 0xad4   :  { %v10420_v17 = vpop.eup %10419  ;;  %10431 = vtanh.f32 %v5617_v37 }
 0xad5   :  { %v10422_v43 = vpop.eup %10421  ;;  %v5675_v33 = vadd.f32 1.0, %v10420_v17  ;;  %10433 = vtanh.f32 %v5618_v36 }
 0xad6   :  { %v10424_v63 = vpop.eup %10423  ;;  %v5676_v7 = vadd.f32 1.0, %v10422_v43 }
 0xad7   :  { %v10426_v1 = vpop.eup %10425  ;;  %v5677_v23 = vadd.f32 1.0, %v10424_v63  ;;  %v5707_v5 = vmul.f32 %v5675_v33, %v5451_v57 }
 0xad8   :  { %v5678_v58 = vadd.f32 1.0, %v10426_v1  ;;  %v5708_v14 = vmul.f32 %v5676_v7, %v5452_v20 }
 0xad9   :  { %v5709_v45 = vmul.f32 %v5677_v23, %v5453_v6 }
 0xada   :  { %v5710_v28 = vmul.f32 %v5678_v58, %v5454_v47 }
 0xadb   :  { %v5727_v61 = vpack.c.bf16 %v5709_v45, %v5707_v5 }
 0xadc   :  { %v10428_v4 = vpop.eup %10427  ;;  %v5728_v24 = vpack.c.bf16 %v5710_v28, %v5708_v14 }
 0xadd   :  { %v10430_v53 = vpop.eup %10429  ;;  %v5679_v46 = vadd.f32 1.0, %v10428_v4 }
 0xade   :  { %v10432_v49 = vpop.eup %10431  ;;  %5944 = vmatprep.mubr.bf16.mxu1 %v5728_v24  ;;  %v5680_v0 = vadd.f32 1.0, %v10430_v53 }
 0xadf   :  { %v10434_v8 = vpop.eup %10433  ;;  %5945 = vmatmul.mubr.bf16.gmra.mrb[184].mxu1 %v5727_v61  ;;  %v5681_v54 = vadd.f32 1.0, %v10432_v49  ;;  %v5711_v31 = vmul.f32 %v5679_v46, %v5455_v55 }
 0xae0   :  { %v5682_v42 = vadd.f32 1.0, %v10434_v8  ;;  %v5712_v9 = vmul.f32 %v5680_v0, %v5456_v48 }
 0xae1   :  { %v5713_v16 = vmul.f32 %v5681_v54, %v5457_v21 }
 0xae2   :  { %v5714_v37 = vmul.f32 %v5682_v42, %v5458_v56 }
 0xae3   :  { %v5729_v36 = vpack.c.bf16 %v5713_v16, %v5711_v31  ;;  %v14969_v31 = vld [vmem:[%s16216_s1 + $0x8] ss:$0 sm:$0xff] }
 0xae4   :  { %v5993_v17 = vpop.xlane.xlu0 %5992  ;;  %v5730_v43 = vpack.c.bf16 %v5714_v37, %v5712_v9 }
 0xae5   :  { %v6031_v33 = vmul.f32 0.015625, %v5993_v17  ;;  %v14977_v17 = vld [vmem:[%s16216_s1 + $0x9] ss:$0 sm:$0xff] }
 0xae6   :  { %v5996_v63 = vpop.xlane.xlu1 %5995  ;;  %5952 = vmatprep.mubr.bf16.mxu1 %v5730_v43 }
 0xae7   :  { %v14943_v38 = vsub.f32 %v14744_v59, %v6031_v33  ;;  %v6032_v34 = vmul.f32 0.015625, %v5996_v63  ;;  %5953 = vmatmul.mubr.bf16.gmra.mrb[188].mxu1 %v5729_v36 }
 0xae9   :  { %v14946_v50 = vsub.f32 %v14748_v13, %v6032_v34  ;;  %v6063_v39 = vmul.f32 %v14943_v38, %v14943_v38 }
 0xaeb   :  { %v6087_v7 = vsel %vm71_vm0, %v6063_v39, 0.0  ;;  %v6064_v1 = vmul.f32 %v14946_v50, %v14946_v50 }
 0xaec   :  { %6088 = vadd.xlane.f32.xlu0 %v6087_v7  ;;  %v5999_v57 = vpop.xlane.xlu0 %5998 }
 0xaed   :  { %v6033_v6 = vmul.f32 0.015625, %v5999_v57  ;;  %v6090_v23 = vsel %vm71_vm0, %v6064_v1, 0.0 }
 0xaee   :  { %6091 = vadd.xlane.f32.xlu1 %v6090_v23  ;;  %v6002_v20 = vpop.xlane.xlu1 %6001 }
 0xaef   :  { %v14955_v47 = vsub.f32 %v14756_v60, %v6033_v6  ;;  %v6034_v58 = vmul.f32 0.015625, %v6002_v20 }
 0xaf1   :  { %v14958_v5 = vsub.f32 %v14760_v12, %v6034_v58  ;;  %v6065_v45 = vmul.f32 %v14955_v47, %v14955_v47 }
 0xaf3   :  { %v6093_v14 = vsel %vm71_vm0, %v6065_v45, 0.0  ;;  %v6066_v28 = vmul.f32 %v14958_v5, %v14958_v5 }
 0xaf4   :  { %6094 = vadd.xlane.f32.xlu0 %v6093_v14 }
 0xaf5   :  { %v6096_v61 = vsel %vm71_vm0, %v6066_v28, 0.0 }
 0xaf6   :  { %6097 = vadd.xlane.f32.xlu1 %v6096_v61 }
 0xb33   :  { %v6077_v4 = vpop.xlane.xlu0 %6076 }
 0xb34   :  { %v6123_v24 = vmul.f32 0.015625, %v6077_v4 }
 0xb35   :  { %v6080_v53 = vpop.xlane.xlu1 %6079 }
 0xb36   :  { %v6139_v46 = vadd.f32 1e-05, %v6123_v24  ;;  %v6124_v49 = vmul.f32 0.015625, %v6080_v53 }
 0xb38   :  { %10435 = vrsqrt.f32 %v6139_v46  ;;  %v6140_v0 = vadd.f32 1e-05, %v6124_v49 }
 0xb3a   :  { %10437 = vrsqrt.f32 %v6140_v0 }
 0xb3b   :  { %v6083_v8 = vpop.xlane.xlu0 %6082 }
 0xb3c   :  { %v6125_v55 = vmul.f32 0.015625, %v6083_v8 }
 0xb3d   :  { %v6086_v21 = vpop.xlane.xlu1 %6085 }
 0xb3e   :  { %v6141_v54 = vadd.f32 1e-05, %v6125_v55  ;;  %v6126_v48 = vmul.f32 0.015625, %v6086_v21 }
 0xb40   :  { %10439 = vrsqrt.f32 %v6141_v54  ;;  %v6142_v56 = vadd.f32 1e-05, %v6126_v48 }
 0xb42   :  { %v10436_v42 = vpop.eup %10435  ;;  %10441 = vrsqrt.f32 %v6142_v56 }
 0xb43   :  { %v6171_v16 = vmul.f32 %v10436_v42, %v14831_v15 }
 0xb44   :  { %v10438_v9 = vpop.eup %10437 }
 0xb45   :  { %v6191_v37 = vmul.f32 %v14969_v31, %v6171_v16  ;;  %v6172_v36 = vmul.f32 %v10438_v9, %v14834_v11 }
 0xb47   :  { %v6192_v43 = vmul.f32 %v14969_v31, %v6172_v36  ;;  %v6211_v33 = vadd.f32 %v14977_v17, %v6191_v37 }
 0xb49   :  { %v6212_v63 = vadd.f32 %v14977_v17, %v6192_v43 }
 0xb4a   :  { %v10440_v34 = vpop.eup %10439 }
 0xb4b   :  { %v6227_v39 = vpack.c.bf16 %v6212_v63, %v6211_v33  ;;  %v6173_v15 = vmul.f32 %v10440_v34, %v14843_v3 }
 0xb4c   :  { %v10442_v7 = vpop.eup %10441 }
 0xb4d   :  { %8780 = vmatmul.mubr.msk.bf16.vlgmr.msra.gmra.mrb[192].mxu0 %vm71_vm0, %v6227_v39  ;;  %v6174_v11 = vmul.f32 %v10442_v7, %v14846_v52  ;;  %v6193_v1 = vmul.f32 %v14969_v31, %v6173_v15 }
 0xb4e   :  { %6350 = vmatprep.mubr.bf16.mxu0 %v16809_v35 }
 0xb4f   :  { %v6194_v57 = vmul.f32 %v14969_v31, %v6174_v11  ;;  %v6213_v6 = vadd.f32 %v14977_v17, %v6193_v1 }
 0xb51   :  { %v6214_v23 = vadd.f32 %v14977_v17, %v6194_v57 }
 0xb53   :  { %v6228_v20 = vpack.c.bf16 %v6214_v23, %v6213_v6 }
 0xb55   :  { %8781 = vmatmul.mubr.msk.bf16.gmra.mrb[196].mxu0 %vm71_vm0, %v6228_v20 }
 0xb56   :  { %6360 = vmatprep.mubr.bf16.mxu0 %v16809_v35 }
 0xb70   :  { %v9110_v3 = vpop.f32.mrb[176].mxu1 }
 0xb71   :  { %v9111_v58 = vpop.f32.mrb[177].mxu1 }
 0xb72   :  { %v9112_v45 = vadd.f32 %v9111_v58, %v9110_v3  ;;  %v9113_v14 = vpop.f32.mrb[178].mxu1 }
 0xb73   :  { %v9114_v52 = vpop.f32.mrb[179].mxu1 }
 0xb74   :  { %v5931_v28 = vadd.f32 %v9112_v45, %v14716_v10  ;;  %v9115_v61 = vadd.f32 %v9114_v52, %v9113_v14 }
 0xb76   :  { %v14994_v4 = vadd.f32 %v5931_v28, %v14399_v62  ;;  %v5934_v24 = vadd.f32 %v9115_v61, %v14716_v10 }
 0xb78   :  { %16812 = vst [vmem:[#allocation62_spill] sm:$0xff] %v14994_v4  ;;  %v14998_v53 = vadd.f32 %v5934_v24, %v14411_v19  ;;  %v9116_v46 = vpop.f32.mrb[180].mxu1  ;;  %v6003_v49 = vsel %vm71_vm0, %v14994_v4, 0.0 }
 0xb79   :  { %v9117_v0 = vpop.f32.mrb[181].mxu1  ;;  %6004 = vadd.xlane.f32.xlu0 %v6003_v49  ;;  %v6089_v56 = vpop.xlane.xlu0 %6088 }
 0xb7a   :  { %16813 = vst [vmem:[#allocation92_spill] sm:$0xff] %v14998_v53  ;;  %v9118_v8 = vadd.f32 %v9117_v0, %v9116_v46  ;;  %v9119_v55 = vpop.f32.mrb[182].mxu1  ;;  %v6006_v21 = vsel %vm71_vm0, %v14998_v53, 0.0  ;;  %v6127_v16 = vmul.f32 0.015625, %v6089_v56 }
 0xb7b   :  { %6007 = vadd.xlane.f32.xlu1 %v6006_v21  ;;  %v9120_v54 = vpop.f32.mrb[183].mxu1  ;;  %v6092_v9 = vpop.xlane.xlu1 %6091 }
 0xb7c   :  { %v5939_v62 = vadd.f32 %v9118_v8, %v14716_v10  ;;  %v9121_v48 = vadd.f32 %v9120_v54, %v9119_v55  ;;  %v6143_v36 = vadd.f32 1e-05, %v6127_v16  ;;  %v6128_v43 = vmul.f32 0.015625, %v6092_v9 }
 0xb7e   :  { %v15006_v19 = vadd.f32 %v5939_v62, %v14406_v32  ;;  %v5942_v42 = vadd.f32 %v9121_v48, %v14716_v10  ;;  %10443 = vrsqrt.f32 %v6143_v36  ;;  %v6144_v63 = vadd.f32 1e-05, %v6128_v43 }
 0xb80   :  { %16814 = vst [vmem:[#allocation20_spill] sm:$0xff] %v15006_v19  ;;  %v15010_v37 = vadd.f32 %v5942_v42, %v14418_v30  ;;  %v6009_v33 = vsel %vm71_vm0, %v15006_v19, 0.0  ;;  %10445 = vrsqrt.f32 %v6144_v63 }
 0xb81   :  { %6010 = vadd.xlane.f32.xlu1 %v6009_v33  ;;  %v6095_v34 = vpop.xlane.xlu0 %6094 }
 0xb82   :  { %16815 = vst [vmem:[#allocation67_spill] sm:$0xff] %v15010_v37  ;;  %v6012_v32 = vsel %vm71_vm0, %v15010_v37, 0.0  ;;  %v6129_v39 = vmul.f32 0.015625, %v6095_v34 }
 0xb83   :  { %v6098_v15 = vpop.xlane.xlu1 %6097 }
 0xb84   :  { %v6145_v7 = vadd.f32 1e-05, %v6129_v39  ;;  %v6130_v11 = vmul.f32 0.015625, %v6098_v15 }
 0xb85   :  { %6013 = vadd.xlane.f32.xlu1 %v6012_v32 }
 0xb86   :  { %10447 = vrsqrt.f32 %v6145_v7  ;;  %v6146_v30 = vadd.f32 1e-05, %v6130_v11 }
 0xb88   :  { %v10444_v1 = vpop.eup %10443  ;;  %10449 = vrsqrt.f32 %v6146_v30 }
 0xb89   :  { %v6175_v57 = vmul.f32 %v10444_v1, %v14943_v38 }
 0xb8a   :  { %v10446_v6 = vpop.eup %10445 }
 0xb8b   :  { %v6176_v23 = vmul.f32 %v10446_v6, %v14946_v50  ;;  %v6195_v20 = vmul.f32 %v14969_v31, %v6175_v57 }
 0xb8d   :  { %v6196_v3 = vmul.f32 %v14969_v31, %v6176_v23  ;;  %v6215_v58 = vadd.f32 %v14977_v17, %v6195_v20 }
 0xb8f   :  { %v6216_v45 = vadd.f32 %v14977_v17, %v6196_v3 }
 0xb90   :  { %v10448_v14 = vpop.eup %10447 }
 0xb91   :  { %v6177_v52 = vmul.f32 %v10448_v14, %v14955_v47  ;;  %v6229_v28 = vpack.c.bf16 %v6216_v45, %v6215_v58 }
 0xb92   :  { %v10450_v61 = vpop.eup %10449 }
 0xb93   :  { %v6178_v24 = vmul.f32 %v10450_v61, %v14958_v5  ;;  %8782 = vmatmul.mubr.msk.bf16.gmra.mrb[200].mxu0 %vm71_vm0, %v6229_v28  ;;  %v6197_v38 = vmul.f32 %v14969_v31, %v6177_v52 }
 0xb94   :  { %6370 = vmatprep.mubr.bf16.mxu0 %v16809_v35 }
 0xb95   :  { %v6198_v50 = vmul.f32 %v14969_v31, %v6178_v24  ;;  %v6217_v46 = vadd.f32 %v14977_v17, %v6197_v38 }
 0xb97   :  { %v6218_v49 = vadd.f32 %v14977_v17, %v6198_v50 }
 0xb99   :  { %v6230_v0 = vpack.c.bf16 %v6218_v49, %v6217_v46 }
 0xb9b   :  { %8783 = vmatmul.mubr.msk.bf16.gmra.mrb[204].mxu0 %vm71_vm0, %v6230_v0 }
 0xb9c   :  { %6380 = vmatprep.mubr.bf16.mxu0 %v16809_v35 }
 0xbb2   :  { %v9122_v47 = vpop.f32.mrb[184].mxu1 }
 0xbb3   :  { %v9123_v8 = vpop.f32.mrb[185].mxu1 }
 0xbb4   :  { %v9124_v5 = vadd.f32 %v9123_v8, %v9122_v47  ;;  %v9125_v55 = vpop.f32.mrb[186].mxu1 }
 0xbb5   :  { %v9126_v21 = vpop.f32.mrb[187].mxu1 }
 0xbb6   :  { %v5947_v54 = vadd.f32 %v9124_v5, %v14716_v10  ;;  %v15033_v62 = vadd.f32 %v9126_v21, %v9125_v55 }
 0xbb8   :  { %v15036_v48 = vadd.f32 %v5947_v54, %v14480_v29 }
 0xbba   :  { %16816 = vst [vmem:[#allocation61_spill] sm:$0xff] %v15036_v48  ;;  %v9128_v56 = vpop.f32.mrb[188].mxu1  ;;  %v6015_v42 = vsel %vm71_vm0, %v15036_v48, 0.0 }
 0xbbb   :  { %6016 = vadd.xlane.f32.xlu1 %v6015_v42  ;;  %v9129_v16 = vpop.f32.mrb[189].mxu1 }
 0xbbc   :  { %v15040_v9 = vadd.f32 %v9129_v16, %v9128_v56  ;;  %v9131_v36 = vpop.f32.mrb[190].mxu1 }
 0xbbd   :  { %v9132_v43 = vpop.f32.mrb[191].mxu1 }
 0xbbe   :  { %v15042_v33 = vadd.f32 %v9132_v43, %v9131_v36 }
 0xc20   :  { %v15044_v63 = vpop.f32.mrb[192].mxu0 }
 0xc21   :  { %v6430_v10 = vmul.f32 %v15044_v63, %v15044_v63  ;;  %v15048_v32 = vpop.f32.mrb[193].mxu0 }
 0xc22   :  { %v15050_v29 = vpop.f32.mrb[194].mxu0 }
 0xc23   :  { %v6431_v34 = vmul.f32 %v15050_v29, %v15050_v29  ;;  %v15054_v39 = vpop.f32.mrb[195].mxu0  ;;  %v6438_v7 = vsel %vm71_vm0, %v6430_v10, 0.0  ;;  %v6470_v11 = vsel %vm6469_vm3, %v6430_v10, 0.0 }
 0xc24   :  { %v6718_v15 = vpack.c.bf16 %v15054_v39, %v15048_v32 }
 0xc25   :  { %v6439_v30 = vsel %vm71_vm0, %v6431_v34, 0.0  ;;  %v6471_v1 = vsel %vm6469_vm3, %v6431_v34, 0.0 }
 0xc26   :  { %v6440_v57 = vadd.f32 %v6439_v30, %v6438_v7  ;;  %v6472_v6 = vadd.f32 %v6471_v1, %v6470_v11 }
 0xc28   :  { %v15062_v23 = vpop.f32.mrb[196].mxu0 }
 0xc29   :  { %v6432_v20 = vmul.f32 %v15062_v23, %v15062_v23  ;;  %v15066_v3 = vpop.f32.mrb[197].mxu0 }
 0xc2a   :  { %v15068_v58 = vpop.f32.mrb[198].mxu0 }
 0xc2b   :  { %v6441_v45 = vsel %vm71_vm0, %v6432_v20, 0.0  ;;  %v6473_v14 = vsel %vm6469_vm3, %v6432_v20, 0.0  ;;  %v6433_v52 = vmul.f32 %v15068_v58, %v15068_v58  ;;  %v15074_v28 = vpop.f32.mrb[199].mxu0 }
 0xc2c   :  { %v6442_v61 = vadd.f32 %v6441_v45, %v6440_v57  ;;  %v6474_v24 = vadd.f32 %v6473_v14, %v6472_v6 }
 0xc2d   :  { %v6443_v50 = vsel %vm71_vm0, %v6433_v52, 0.0  ;;  %v6475_v46 = vsel %vm6469_vm3, %v6433_v52, 0.0 }
 0xc2e   :  { %v6444_v49 = vadd.f32 %v6443_v50, %v6442_v61  ;;  %v6476_v0 = vadd.f32 %v6475_v46, %v6474_v24 }
 0xc66   :  { %v15080_v47 = vpop.f32.mrb[200].mxu0 }
 0xc67   :  { %v6434_v8 = vmul.f32 %v15080_v47, %v15080_v47  ;;  %v15084_v5 = vpop.f32.mrb[201].mxu0 }
 0xc68   :  { %v15086_v55 = vpop.f32.mrb[202].mxu0 }
 0xc69   :  { %v6445_v21 = vsel %vm71_vm0, %v6434_v8, 0.0  ;;  %v6477_v54 = vsel %vm6469_vm3, %v6434_v8, 0.0  ;;  %v6435_v56 = vmul.f32 %v15086_v55, %v15086_v55  ;;  %v15092_v42 = vpop.f32.mrb[203].mxu0 }
 0xc6a   :  { %v6446_v16 = vadd.f32 %v6445_v21, %v6444_v49  ;;  %v6478_v36 = vadd.f32 %v6477_v54, %v6476_v0 }
 0xc6b   :  { %v6447_v10 = vsel %vm71_vm0, %v6435_v56, 0.0  ;;  %v6479_v34 = vsel %vm6469_vm3, %v6435_v56, 0.0 }
 0xc6c   :  { %v6448_v7 = vadd.f32 %v6447_v10, %v6446_v16  ;;  %v6480_v11 = vadd.f32 %v6479_v34, %v6478_v36 }
 0xc6e   :  { %v6372_v30 = vpop.f32.mrb[204].mxu0 }
 0xc6f   :  { %v6436_v1 = vmul.f32 %v6372_v30, %v6372_v30  ;;  %v15098_v57 = vpop.f32.mrb[205].mxu0 }
 0xc70   :  { %v6376_v6 = vpop.f32.mrb[206].mxu0 }
 0xc71   :  { %v6449_v20 = vsel %vm71_vm0, %v6436_v1, 0.0  ;;  %v6481_v45 = vsel %vm6469_vm3, %v6436_v1, 0.0  ;;  %v6437_v14 = vmul.f32 %v6376_v6, %v6376_v6  ;;  %v15102_v52 = vpop.f32.mrb[207].mxu0 }
 0xc72   :  { %v6450_v61 = vadd.f32 %v6449_v20, %v6448_v7  ;;  %v6482_v24 = vadd.f32 %v6481_v45, %v6480_v11 }
 0xc73   :  { %v6451_v46 = vsel %vm71_vm0, %v6437_v14, 0.0  ;;  %v6483_v49 = vsel %vm6469_vm3, %v6437_v14, 0.0  ;;  %v15111_v14 = vld [vmem:[%s16216_s1 + $0xa] ss:$0 sm:$0xff] }
 0xc74   :  { %v6452_v0 = vadd.f32 %v6451_v46, %v6450_v61  ;;  %v6484_v8 = vadd.f32 %v6483_v49, %v6482_v24 }
 0xc76   :  { %v6453_v21 = vrot.slane %v6452_v0, 4  ;;  %v6485_v54 = vrot.slane %v6484_v8, 4 }
 0xc78   :  { %v6454_v56 = vadd.f32 %v6453_v21, %v6452_v0  ;;  %v6486_v16 = vadd.f32 %v6485_v54, %v6484_v8 }
 0xc7a   :  { %v6455_v36 = vrot.slane %v6454_v56, 2  ;;  %v6487_v10 = vrot.slane %v6486_v16, 2 }
 0xc7c   :  { %v6456_v34 = vadd.f32 %v6455_v36, %v6454_v56  ;;  %v6488_v1 = vadd.f32 %v6487_v10, %v6486_v16 }
 0xc7e   :  { %v6457_v25 = vrot.slane %v6456_v34, 1  ;;  %v6489_v7 = vrot.slane %v6488_v1, 1 }
 0xc80   :  { %v6458_v11 = vadd.f32 %v6457_v25, %v6456_v34  ;;  %v6490_v20 = vadd.f32 %v6489_v7, %v6488_v1 }
 0xc82   :  { %v6459_v45 = vmax.f32 %v6458_v11, 1e-24  ;;  %v6491_v50 = vmax.f32 %v6490_v20, 1e-24 }
 0xc84   :  { %10451 = vrsqrt.f32 %v6459_v45 }
 0xc85   :  { %10453 = vrsqrt.f32 %v6491_v50 }
 0xc8e   :  { %v10452_v43 = vpop.eup %10451 }
 0xc8f   :  { %v10454_v61 = vpop.eup %10453  ;;  %v6468_v24 = vmul.f32 %v10452_v43, %v6376_v6  ;;  %v6461_v46 = vmul.f32 %v10452_v43, %v15044_v63  ;;  %v6462_v49 = vmul.f32 %v10452_v43, %v15050_v29  ;;  %v6463_v0 = vmul.f32 %v10452_v43, %v15062_v23 }
 0xc90   :  { %v6499_v25 = vmul.f32 %v10454_v61, %v6372_v30  ;;  %v6500_v8 = vmul.f32 %v10454_v61, %v6376_v6  ;;  %v6495_v21 = vmul.f32 %v10454_v61, %v15062_v23  ;;  %v6496_v50 = vmul.f32 %v10454_v61, %v15068_v58 }
 0xc91   :  { %v15119_v54 = vmul.f32 %v15111_v14, %v6468_v24  ;;  %v6493_v56 = vmul.f32 %v10454_v61, %v15044_v63  ;;  %v6494_v16 = vmul.f32 %v10454_v61, %v15050_v29  ;;  %v6497_v36 = vmul.f32 %v10454_v61, %v15080_v47 }
 0xc92   :  { %v6520_v10 = vpack.c.bf16 %v6500_v8, %v6499_v25  ;;  %v6518_v34 = vpack.c.bf16 %v6496_v50, %v6495_v21  ;;  %v6498_v1 = vmul.f32 %v10454_v61, %v15086_v55  ;;  %v6505_v7 = vmul.f32 %v15111_v14, %v6461_v46 }
 0xc93   :  { %v6517_v6 = vpack.c.bf16 %v6494_v16, %v6493_v56  ;;  %v6506_v23 = vmul.f32 %v15111_v14, %v6462_v49  ;;  %v6464_v11 = vmul.f32 %v10452_v43, %v15068_v58  ;;  %v6507_v20 = vmul.f32 %v15111_v14, %v6463_v0 }
 0xc94   :  { %6543 = vrot.lane.b32.xlu1 %v6518_v34, %s10694_s17  ;;  %v6519_v63 = vpack.c.bf16 %v6498_v1, %v6497_v36  ;;  %v6465_v29 = vmul.f32 %v10452_v43, %v15080_v47  ;;  %v6466_v45 = vmul.f32 %v10452_v43, %v15086_v55  ;;  %v6467_v24 = vmul.f32 %v10452_v43, %v6372_v30  ;;  %v10660_v47 = vld [vmem:[%s16216_s1 + $0x7] ss:$0 sm:$0xff] }
 0xc95   :  { %6541 = vrot.lane.b32.xlu0 %v6517_v6, %s10694_s17  ;;  %v6513_v61 = vpack.c.bf16 %v6506_v23, %v6505_v7  ;;  %v6508_v46 = vmul.f32 %v15111_v14, %v6464_v11  ;;  %v5950_v55 = vadd.f32 %v10660_v47, %v15033_v62  ;;  %v5955_v30 = vadd.f32 %v10660_v47, %v15040_v9  ;;  %v6008_v9 = vpop.xlane.xlu1 %6007 }
 0xc96   :  { %v6509_v25 = vmul.f32 %v15111_v14, %v6465_v29  ;;  %v6510_v49 = vmul.f32 %v15111_v14, %v6466_v45  ;;  %v6511_v58 = vmul.f32 %v15111_v14, %v6467_v24  ;;  %v5958_v56 = vadd.f32 %v10660_v47, %v15042_v33 }
 0xc97   :  { %v6514_v0 = vpack.c.bf16 %v6508_v46, %v6507_v20  ;;  %v15143_v43 = vadd.f32 %v5950_v55, %v14498_v2  ;;  %v15147_v50 = vadd.f32 %v5955_v30, %v14493_v51  ;;  %v6005_v51 = vpop.xlane.xlu0 %6004 }
 0xc98   :  { %v6515_v8 = vpack.c.bf16 %v6510_v49, %v6509_v25  ;;  %v6516_v21 = vpack.c.bf16 %v15119_v54, %v6511_v58  ;;  %v15153_v54 = vadd.f32 %v5958_v56, %v14505_v40  ;;  %v6035_v33 = vmul.f32 0.015625, %v6005_v51 }
 0xc99   :  { %16817 = vst [vmem:[#allocation73_spill] sm:$0xff] %v15143_v43  ;;  %16818 = vst [vmem:[#allocation66_spill] sm:$0xff] %v15147_v50  ;;  %v6018_v16 = vsel %vm71_vm0, %v15143_v43, 0.0  ;;  %v6021_v62 = vsel %vm71_vm0, %v15147_v50, 0.0  ;;  %v6011_v36 = vpop.xlane.xlu1 %6010  ;;  %v6036_v40 = vmul.f32 0.015625, %v6008_v9 }
 0xc9a   :  { %16819 = vst [vmem:[#allocation72_spill] sm:$0xff] %v15153_v54  ;;  %v6024_v2 = vsel %vm71_vm0, %v15153_v54, 0.0  ;;  %v15162_v34 = vsub.f32 %v14994_v4, %v6035_v33  ;;  %v6037_v7 = vmul.f32 0.015625, %v6011_v36 }
 0xc9b   :  { %v15165_v1 = vsub.f32 %v14998_v53, %v6036_v40 }
 0xc9c   :  { %v6067_v6 = vmul.f32 %v15162_v34, %v15162_v34  ;;  %v15170_v11 = vsub.f32 %v15006_v19, %v6037_v7 }
 0xc9d   :  { %v6014_v23 = vpop.xlane.xlu1 %6013 }
 0xc9e   :  { %v6099_v20 = vsel %vm71_vm0, %v6067_v6, 0.0 }
 0xca1   :  { %v6017_v29 = vpop.xlane.xlu1 %6016 }
 0xca2   :  { %v6039_v24 = vmul.f32 0.015625, %v6017_v29 }
 0xca4   :  { %v15182_v25 = vsub.f32 %v15036_v48, %v6039_v24 }
 0xca6   :  { %v6071_v47 = vmul.f32 %v15182_v25, %v15182_v25 }
 0xca8   :  { %v6111_v55 = vsel %vm71_vm0, %v6071_v47, 0.0 }
 0xcb4   :  { %6019 = vadd.xlane.f32.xlu0 %v6018_v16 }
 0xcb8   :  { %6022 = vadd.xlane.f32.xlu1 %v6021_v62 }
 0xcbc   :  { %6025 = vadd.xlane.f32.xlu1 %v6024_v2 }
 0xcca   :  { %6545 = vrot.lane.b32.xlu0 %v6519_v63, %s10694_s17  ;;  %v6068_v63 = vmul.f32 %v15165_v1, %v15165_v1 }
 0xccc   :  { %v6102_v46 = vsel %vm71_vm0, %v6068_v63, 0.0 }
 0xcce   :  { %6547 = vrot.lane.b32.xlu0 %v6520_v10, %s10694_s17  ;;  %v6038_v10 = vmul.f32 0.015625, %v6014_v23 }
 0xcd0   :  { %v15176_v45 = vsub.f32 %v15010_v37, %v6038_v10 }
 0xcd2   :  { %v6070_v58 = vmul.f32 %v15176_v45, %v15176_v45 }
 0xce9   :  { %6521 = vxpose.xlu1.c.b16.start [1/4] (short) (narrow) %v6513_v61, 64  ;;  %v6069_v61 = vmul.f32 %v15170_v11, %v15170_v11 }
 0xceb   :  { %v6105_v49 = vsel %vm71_vm0, %v6069_v61, 0.0 }
 0xced   :  { %6100 = vadd.xlane.f32.xlu0 %v6099_v20  ;;  %6522 = vxpose.xlu1.c.b16.cont [2/4] (short) (narrow) %v6514_v0, 64  ;;  %v6108_v0 = vsel %vm71_vm0, %v6070_v58, 0.0 }
 0xcf1   :  { %6103 = vadd.xlane.f32.xlu0 %v6102_v46  ;;  %6523 = vxpose.xlu1.c.b16.cont [3/4] (short) (narrow) %v6515_v8, 64 }
 0xcf5   :  { %6106 = vadd.xlane.f32.xlu0 %v6105_v49  ;;  %6524 = vxpose.xlu1.c.b16.end [4/4] (short) (narrow) %v6516_v21, 64 }
 0xcf9   :  { %6109 = vadd.xlane.f32.xlu0 %v6108_v0 }
 0xcfd   :  { %6112 = vadd.xlane.f32.xlu0 %v6111_v55 }
 0xd06   :  { %v6544_v30 = vpop.permute.xlu1 %6543 }
 0xd07   :  { %v6542_v8 = vpop.permute.xlu0 %6541 }
 0xd08   :  { %9578 = vmatprep.subr.bf16.mxu1 %v6542_v8 }
 0xd09   :  { %9579 = vmatpush3.bf16.msra.mxu1 %v6542_v8 }
 0xd0a   :  { %9580 = vmatprep.subr.bf16.mxu1 %v6544_v30 }
 0xd0d   :  { %9581 = vmatpush3.bf16.msra.mxu1 %v6544_v30 }
 0xd41   :  { %v6020_v56 = vpop.xlane.xlu0 %6019 }
 0xd42   :  { %v6040_v16 = vmul.f32 0.015625, %v6020_v56 }
 0xd44   :  { %v15192_v62 = vsub.f32 %v15143_v43, %v6040_v16 }
 0xd45   :  { %v6546_v21 = vpop.permute.xlu0 %6545  ;;  %v6023_v2 = vpop.xlane.xlu1 %6022 }
 0xd46   :  { %v6041_v51 = vmul.f32 0.015625, %v6023_v2  ;;  %9582 = vmatprep.subr.bf16.mxu1 %v6546_v21  ;;  %v6072_v9 = vmul.f32 %v15192_v62, %v15192_v62 }
 0xd47   :  { %9583 = vmatpush3.bf16.msra.mxu1 %v6546_v21 }
 0xd48   :  { %v15197_v33 = vsub.f32 %v15147_v50, %v6041_v51  ;;  %v6114_v36 = vsel %vm71_vm0, %v6072_v9, 0.0 }
 0xd49   :  { %6115 = vadd.xlane.f32.xlu0 %v6114_v36  ;;  %v6548_v40 = vpop.permute.xlu0 %6547  ;;  %v6026_v7 = vpop.xlane.xlu1 %6025 }
 0xd4a   :  { %v6042_v6 = vmul.f32 0.015625, %v6026_v7  ;;  %9584 = vmatprep.subr.bf16.mxu1 %v6548_v40  ;;  %v6073_v23 = vmul.f32 %v15197_v33, %v15197_v33 }
 0xd4b   :  { %9585 = vmatpush3.bf16.msra.mxu1 %v6548_v40 }
 0xd4c   :  { %v15203_v10 = vsub.f32 %v15153_v54, %v6042_v6  ;;  %v6117_v20 = vsel %vm71_vm0, %v6073_v23, 0.0 }
 0xd4d   :  { %6118 = vadd.xlane.f32.xlu1 %v6117_v20 }
 0xd4e   :  { %v6074_v63 = vmul.f32 %v15203_v10, %v15203_v10 }
 0xd4f   :  { %v6529_v29 = vpop.trf.xlu1 }
 0xd50   :  { %9586 = vmatprep.mubr.msk.bf16.mxu1 %vm71_vm0, %v6529_v29  ;;  %v6120_v24 = vsel %vm71_vm0, %v6074_v63, 0.0 }
 0xd51   :  { %6121 = vadd.xlane.f32.xlu0 %v6120_v24 }
 0xd53   :  { %v6530_v46 = vpop.trf.xlu1 }
 0xd54   :  { %9587 = vmatmul.mubr.msk.bf16.vlgmr.msra.gmra.mrb[192].mxu1 %vm71_vm0, %v6530_v46 }
 0xd57   :  { %v6531_v61 = vpop.trf.xlu1 }
 0xd58   :  { %9590 = vmatprep.mubr.msk.bf16.mxu1 %vm71_vm0, %v6531_v61 }
 0xd5b   :  { %v6532_v49 = vpop.trf.xlu1 }
 0xd5c   :  { %9591 = vmatmul.mubr.msk.bf16.gmra.mrb[196].mxu1 %vm71_vm0, %v6532_v49 }
 0xd5d   :  { %9602 = vmatprep.mubr.msk.bf16.mxu1 %vm71_vm0, %v6718_v15 }
 0xd7a   :  { %v6101_v58 = vpop.xlane.xlu0 %6100 }
 0xd7b   :  { %v6131_v0 = vmul.f32 0.015625, %v6101_v58 }
 0xd7d   :  { %v6147_v47 = vadd.f32 1e-05, %v6131_v0 }
 0xd7e   :  { %v6104_v55 = vpop.xlane.xlu0 %6103 }
 0xd7f   :  { %10455 = vrsqrt.f32 %v6147_v47  ;;  %v6132_v8 = vmul.f32 0.015625, %v6104_v55 }
 0xd81   :  { %v6148_v30 = vadd.f32 1e-05, %v6132_v8 }
 0xd82   :  { %v6107_v56 = vpop.xlane.xlu0 %6106 }
 0xd83   :  { %10457 = vrsqrt.f32 %v6148_v30  ;;  %v6133_v16 = vmul.f32 0.015625, %v6107_v56 }
 0xd85   :  { %v6149_v21 = vadd.f32 1e-05, %v6133_v16 }
 0xd86   :  { %v6110_v2 = vpop.xlane.xlu0 %6109 }
 0xd87   :  { %10459 = vrsqrt.f32 %v6149_v21  ;;  %v6134_v51 = vmul.f32 0.015625, %v6110_v2 }
 0xd89   :  { %v10456_v9 = vpop.eup %10455  ;;  %v6150_v36 = vadd.f32 1e-05, %v6134_v51 }
 0xd8a   :  { %v6179_v32 = vmul.f32 %v10456_v9, %v15162_v34  ;;  %v6113_v58 = vpop.xlane.xlu0 %6112 }
 0xd8b   :  { %10461 = vrsqrt.f32 %v6150_v36  ;;  %v6135_v0 = vmul.f32 0.015625, %v6113_v58 }
 0xd8c   :  { %v6199_v40 = vmul.f32 %v14969_v31, %v6179_v32 }
 0xd8d   :  { %v10458_v39 = vpop.eup %10457 }
 0xd8e   :  { %v6180_v15 = vmul.f32 %v10458_v39, %v15165_v1  ;;  %v6219_v20 = vadd.f32 %v14977_v17, %v6199_v40 }
 0xd90   :  { %v6200_v7 = vmul.f32 %v14969_v31, %v6180_v15 }
 0xd91   :  { %v10460_v6 = vpop.eup %10459 }
 0xd92   :  { %v6181_v23 = vmul.f32 %v10460_v6, %v15170_v11  ;;  %v6220_v63 = vadd.f32 %v14977_v17, %v6200_v7 }
 0xd94   :  { %v6231_v29 = vpack.c.bf16 %v6220_v63, %v6219_v20  ;;  %v6201_v34 = vmul.f32 %v14969_v31, %v6181_v23 }
 0xd95   :  { %v10462_v24 = vpop.eup %10461 }
 0xd96   :  { %v6182_v46 = vmul.f32 %v10462_v24, %v15176_v45  ;;  %8784 = vmatmul.mubr.msk.bf16.gmra.mrb[208].mxu0 %vm71_vm0, %v6231_v29  ;;  %v6221_v61 = vadd.f32 %v14977_v17, %v6201_v34  ;;  %v6151_v45 = vadd.f32 1e-05, %v6135_v0 }
 0xd97   :  { %6390 = vmatprep.mubr.bf16.mxu0 %v16809_v35 }
 0xd98   :  { %v6202_v1 = vmul.f32 %v14969_v31, %v6182_v46  ;;  %10463 = vrsqrt.f32 %v6151_v45 }
 0xd9a   :  { %v6222_v11 = vadd.f32 %v14977_v17, %v6202_v1  ;;  %v15251_v1 = vld [vmem:[%s16224_s9 + $0x10] sm:$0xff] }
 0xd9c   :  { %v6232_v49 = vpack.c.bf16 %v6222_v11, %v6221_v61 }
 0xd9e   :  { %8785 = vmatmul.mubr.msk.bf16.gmra.mrb[212].mxu0 %vm71_vm0, %v6232_v49 }
 0xd9f   :  { %6400 = vmatprep.mubr.bf16.mxu0 %v16809_v35 }
 0xda2   :  { %v10464_v2 = vpop.eup %10463 }
 0xda3   :  { %v6183_v36 = vmul.f32 %v10464_v2, %v15182_v25 }
 0xda5   :  { %v6203_v15 = vmul.f32 %v14969_v31, %v6183_v36 }
 0xda7   :  { %v6223_v23 = vadd.f32 %v14977_v17, %v6203_v15  ;;  %v15310_v15 = vld [vmem:[%s16224_s9 + $0x38] sm:$0xff] }
 0xdd6   :  { %v6116_v47 = vpop.xlane.xlu0 %6115 }
 0xdd7   :  { %v6136_v55 = vmul.f32 0.015625, %v6116_v47 }
 0xdd9   :  { %v6152_v8 = vadd.f32 1e-05, %v6136_v55 }
 0xdda   :  { %v6119_v30 = vpop.xlane.xlu1 %6118 }
 0xddb   :  { %10465 = vrsqrt.f32 %v6152_v8  ;;  %v6137_v56 = vmul.f32 0.015625, %v6119_v30  ;;  %v15279_v8 = vld [vmem:[%s16224_s9 + $0x18] sm:$0xff]  ;;  %v15284_v30 = vld [vmem:[%s16224_s9 + $0x30] sm:$0xff] }
 0xddd   :  { %v6153_v16 = vadd.f32 1e-05, %v6137_v56  ;;  %v15289_v56 = vld [vmem:[%s16224_s9 + $0x20] sm:$0xff] }
 0xdde   :  { %v6122_v21 = vpop.xlane.xlu0 %6121 }
 0xddf   :  { %10467 = vrsqrt.f32 %v6153_v16  ;;  %v6138_v51 = vmul.f32 0.015625, %v6122_v21 }
 0xde1   :  { %v6154_v9 = vadd.f32 1e-05, %v6138_v51 }
 0xde3   :  { %10469 = vrsqrt.f32 %v6154_v9  ;;  %v15299_v9 = vld [vmem:[%s16224_s9 + $0x28] sm:$0xff] }
 0xde5   :  { %v10466_v32 = vpop.eup %10465 }
 0xde6   :  { %v6184_v39 = vmul.f32 %v10466_v32, %v15192_v62 }
 0xde8   :  { %v6204_v40 = vmul.f32 %v14969_v31, %v6184_v39 }
 0xde9   :  { %v10468_v7 = vpop.eup %10467 }
 0xdea   :  { %v6185_v6 = vmul.f32 %v10468_v7, %v15197_v33  ;;  %v6224_v20 = vadd.f32 %v14977_v17, %v6204_v40 }
 0xdec   :  { %v6233_v63 = vpack.c.bf16 %v6224_v20, %v6223_v23  ;;  %v6205_v25 = vmul.f32 %v14969_v31, %v6185_v6 }
 0xded   :  { %v10470_v29 = vpop.eup %10469 }
 0xdee   :  { %v6186_v24 = vmul.f32 %v10470_v29, %v15203_v10  ;;  %8786 = vmatmul.mubr.msk.bf16.gmra.mrb[216].mxu0 %vm71_vm0, %v6233_v63  ;;  %v6225_v46 = vadd.f32 %v14977_v17, %v6205_v25  ;;  %v15256_v10 = vld [vmem:[%s16224_s9] sm:$0xff] }
 0xdef   :  { %6410 = vmatprep.mubr.bf16.mxu0 %v16809_v35 }
 0xdf0   :  { %v6206_v62 = vmul.f32 %v14969_v31, %v6186_v24 }
 0xdf2   :  { %v6226_v33 = vadd.f32 %v14977_v17, %v6206_v62  ;;  %v15264_v17 = vld [vmem:[%s16224_s9 + $0x8] sm:$0xff] }
 0xdf4   :  { %v6234_v34 = vpack.c.bf16 %v6226_v33, %v6225_v46 }
 0xdf6   :  { %8787 = vmatmul.mubr.msk.bf16.gmra.mrb[220].mxu0 %vm71_vm0, %v6234_v34 }
 0xe27   :  { %v9588_v61 = vpop.f32.mrb[192].mxu1 }
 0xe28   :  { %v15259_v31 = vadd.f32 %v9588_v61, %v15251_v1  ;;  %v6599_v11 = vpop.f32.mrb[193].mxu1 }
 0xe29   :  { %v15267_v49 = vadd.f32 %v6599_v11, %v15256_v10  ;;  %v9589_v58 = vpop.f32.mrb[194].mxu1 }
 0xe2a   :  { %v6602_v0 = vpop.f32.mrb[195].mxu1  ;;  %v6636_v45 = vsel %vm71_vm0, %v15259_v31, -inf  ;;  %v15292_v16 = vadd.f32 %v9589_v58, %v15279_v8 }
 0xe2b   :  { %v15272_v47 = vadd.f32 %v6602_v0, %v15264_v17  ;;  %6637 = vmax.xlane.f32.xlu1 %v6636_v45  ;;  %v6630_v55 = vsel %vm71_vm0, %v15267_v49, -inf }
 0xe2c   :  { %6631 = vmax.xlane.f32.xlu0 %v6630_v55  ;;  %v6639_v23 = vsel %vm71_vm0, %v15292_v16, -inf }
 0xe2d   :  { %v6633_v2 = vsel %vm71_vm0, %v15272_v47, -inf }
 0xe2f   :  { %v9592_v21 = vpop.f32.mrb[196].mxu1 }
 0xe30   :  { %v6615_v51 = vpop.f32.mrb[197].mxu1  ;;  %6634 = vmax.xlane.f32.xlu0 %v6633_v2  ;;  %v15302_v36 = vadd.f32 %v9592_v21, %v15284_v30 }
 0xe31   :  { %v15305_v32 = vadd.f32 %v6615_v51, %v15289_v56  ;;  %v9593_v39 = vpop.f32.mrb[198].mxu1 }
 0xe32   :  { %v6618_v40 = vpop.f32.mrb[199].mxu1  ;;  %v15320_v20 = vadd.f32 %v9593_v39, %v15310_v15  ;;  %v6648_v63 = vsel %vm71_vm0, %v15302_v36, -inf }
 0xe33   :  { %v15313_v7 = vadd.f32 %v6618_v40, %v15299_v9  ;;  %v6642_v6 = vsel %vm71_vm0, %v15305_v32, -inf }
 0xe34   :  { %6643 = vmax.xlane.f32.xlu1 %v6642_v6  ;;  %6640 = vmax.xlane.f32.xlu0 %v6639_v23  ;;  %v6651_v24 = vsel %vm71_vm0, %v15320_v20, -inf }
 0xe35   :  { %v6645_v29 = vsel %vm71_vm0, %v15313_v7, -inf }
 0xe38   :  { %6649 = vmax.xlane.f32.xlu1 %v6648_v63  ;;  %6646 = vmax.xlane.f32.xlu0 %v6645_v29 }
 0xe3c   :  { %6652 = vmax.xlane.f32.xlu0 %v6651_v24 }
 0xe69   :  { %v15328_v25 = vpop.f32.mrb[208].mxu0 }
 0xe6a   :  { %v6815_v62 = vmul.f32 %v15328_v25, %v15328_v25  ;;  %v6384_v46 = vpop.f32.mrb[209].mxu0 }
 0xe6b   :  { %v15332_v33 = vpop.f32.mrb[210].mxu0 }
 0xe6c   :  { %v6816_v34 = vmul.f32 %v15332_v33, %v15332_v33  ;;  %v6388_v61 = vpop.f32.mrb[211].mxu0  ;;  %v6823_v58 = vsel %vm71_vm0, %v6815_v62, 0.0  ;;  %v6854_v0 = vsel %vm6469_vm3, %v6815_v62, 0.0 }
 0xe6d   :  { %v7098_v11 = vpack.c.bf16 %v6388_v61, %v6384_v46 }
 0xe6e   :  { %v6824_v45 = vsel %vm71_vm0, %v6816_v34, 0.0  ;;  %v6855_v55 = vsel %vm6469_vm3, %v6816_v34, 0.0 }
 0xe6f   :  { %v6825_v21 = vadd.f32 %v6824_v45, %v6823_v58  ;;  %v6856_v2 = vadd.f32 %v6855_v55, %v6854_v0  ;;  %9634 = vmatprep.mubr.msk.bf16.mxu0 %vm71_vm0, %v7098_v11 }
 0xe71   :  { %v15341_v51 = vpop.f32.mrb[212].mxu0 }
 0xe72   :  { %v6817_v39 = vmul.f32 %v15341_v51, %v15341_v51  ;;  %v15345_v40 = vpop.f32.mrb[213].mxu0 }
 0xe73   :  { %v15347_v6 = vpop.f32.mrb[214].mxu0 }
 0xe74   :  { %v6826_v23 = vsel %vm71_vm0, %v6817_v39, 0.0  ;;  %v6857_v63 = vsel %vm6469_vm3, %v6817_v39, 0.0  ;;  %v6818_v29 = vmul.f32 %v15347_v6, %v15347_v6  ;;  %v15353_v24 = vpop.f32.mrb[215].mxu0 }
 0xe75   :  { %v6827_v62 = vadd.f32 %v6826_v23, %v6825_v21  ;;  %v6858_v46 = vadd.f32 %v6857_v63, %v6856_v2 }
 0xe76   :  { %v6828_v61 = vsel %vm71_vm0, %v6818_v29, 0.0  ;;  %v6859_v11 = vsel %vm6469_vm3, %v6818_v29, 0.0 }
 0xe77   :  { %v6829_v58 = vadd.f32 %v6828_v61, %v6827_v62  ;;  %v6860_v0 = vadd.f32 %v6859_v11, %v6858_v46 }
 0xeb8   :  { %v6638_v45 = vpop.xlane.xlu1 %6637 }
 0xeb9   :  { %v6656_v55 = vsub.f32 %v15259_v31, %v6638_v45  ;;  %v6632_v39 = vpop.xlane.xlu0 %6631 }
 0xeba   :  { %v6654_v38 = vsub.f32 %v15267_v49, %v6632_v39 }
 0xebb   :  { %v6666_v41 = vmul.f32 1.442695, %v6656_v55 }
 0xebc   :  { %v6662_v44 = vmul.f32 1.442695, %v6654_v38 }
 0xebd   :  { %v6635_v54 = vpop.xlane.xlu0 %6634 }
 0xebe   :  { %10471 = vpow2.f32 %v6662_v44  ;;  %v6655_v21 = vsub.f32 %v15272_v47, %v6635_v54 }
 0xebf   :  { %10473 = vpow2.f32 %v6666_v41 }
 0xec0   :  { %v6664_v2 = vmul.f32 1.442695, %v6655_v21 }
 0xec1   :  { %v15362_v23 = vpop.f32.mrb[216].mxu0  ;;  %v6644_v63 = vpop.xlane.xlu1 %6643 }
 0xec2   :  { %10475 = vpow2.f32 %v6664_v2  ;;  %v6819_v29 = vmul.f32 %v15362_v23, %v15362_v23  ;;  %v6658_v31 = vsub.f32 %v15305_v32, %v6644_v63  ;;  %v15367_v62 = vpop.f32.mrb[217].mxu0  ;;  %v6641_v49 = vpop.xlane.xlu0 %6640 }
 0xec3   :  { %v6657_v38 = vsub.f32 %v15292_v16, %v6641_v49  ;;  %v15370_v46 = vpop.f32.mrb[218].mxu0 }
 0xec4   :  { %v6830_v44 = vsel %vm71_vm0, %v6819_v29, 0.0  ;;  %v6861_v41 = vsel %vm6469_vm3, %v6819_v29, 0.0  ;;  %v6670_v54 = vmul.f32 1.442695, %v6658_v31  ;;  %v6820_v47 = vmul.f32 %v15370_v46, %v15370_v46  ;;  %v15376_v61 = vpop.f32.mrb[219].mxu0 }
 0xec5   :  { %v6831_v11 = vadd.f32 %v6830_v44, %v6829_v58  ;;  %v6862_v45 = vadd.f32 %v6861_v41, %v6860_v0  ;;  %v6668_v32 = vmul.f32 1.442695, %v6657_v38  ;;  %v6650_v39 = vpop.xlane.xlu1 %6649 }
 0xec6   :  { %10477 = vpow2.f32 %v6670_v54  ;;  %v6832_v16 = vsel %vm71_vm0, %v6820_v47, 0.0  ;;  %v6863_v21 = vsel %vm6469_vm3, %v6820_v47, 0.0  ;;  %v6660_v2 = vsub.f32 %v15302_v36, %v6650_v39  ;;  %v6647_v63 = vpop.xlane.xlu0 %6646 }
 0xec7   :  { %10479 = vpow2.f32 %v6668_v32  ;;  %v6833_v29 = vadd.f32 %v6832_v16, %v6831_v11  ;;  %v6864_v31 = vadd.f32 %v6863_v21, %v6862_v45  ;;  %v6659_v49 = vsub.f32 %v15313_v7, %v6647_v63 }
 0xec8   :  { %v15384_v58 = vpop.eup %10471  ;;  %v6674_v0 = vmul.f32 1.442695, %v6660_v2 }
 0xec9   :  { %v15386_v38 = vpop.eup %10473  ;;  %v6672_v44 = vmul.f32 1.442695, %v6659_v49  ;;  %v15388_v41 = vpop.f32.mrb[220].mxu0  ;;  %v6678_v54 = vsel %vm71_vm0, %v15384_v58, 0.0 }
 0xeca   :  { %10481 = vpow2.f32 %v6674_v0  ;;  %v6821_v36 = vmul.f32 %v15388_v41, %v15388_v41  ;;  %v6653_v47 = vpop.xlane.xlu0 %6652  ;;  %v15394_v11 = vpop.f32.mrb[221].mxu0  ;;  %6679 = vadd.xlane.f32.xlu1 %v6678_v54  ;;  %v6684_v63 = vsel %vm71_vm0, %v15386_v38, 0.0 }
 0xecb   :  { %16820 = vst [vmem:[#allocation65_spill] sm:$0xff] %v15394_v11  ;;  %10483 = vpow2.f32 %v6672_v44  ;;  %v6661_v7 = vsub.f32 %v15320_v20, %v6653_v47  ;;  %v6416_v45 = vpop.f32.mrb[222].mxu0 }
 0xecc   :  { %v15397_v32 = vpop.eup %10475  ;;  %v6834_v39 = vsel %vm71_vm0, %v6821_v36, 0.0  ;;  %v6865_v16 = vsel %vm6469_vm3, %v6821_v36, 0.0  ;;  %v6822_v21 = vmul.f32 %v6416_v45, %v6416_v45  ;;  %v15401_v2 = vpop.f32.mrb[223].mxu0 }
 0xecd   :  { %v6835_v49 = vadd.f32 %v6834_v39, %v6833_v29  ;;  %v6866_v0 = vadd.f32 %v6865_v16, %v6864_v31  ;;  %v6676_v55 = vmul.f32 1.442695, %v6661_v7  ;;  %v6681_v36 = vsel %vm71_vm0, %v15397_v32, 0.0 }
 0xece   :  { %v6836_v20 = vsel %vm71_vm0, %v6822_v21, 0.0  ;;  %v6867_v54 = vsel %vm6469_vm3, %v6822_v21, 0.0  ;;  %6685 = vadd.xlane.f32.xlu1 %v6684_v63  ;;  %6682 = vadd.xlane.f32.xlu0 %v6681_v36 }
 0xecf   :  { %10485 = vpow2.f32 %v6676_v55  ;;  %v6837_v47 = vadd.f32 %v6836_v20, %v6835_v49  ;;  %v6868_v34 = vadd.f32 %v6867_v54, %v6866_v0 }
 0xed0   :  { %v15411_v43 = vpop.eup %10477 }
 0xed1   :  { %v15413_v29 = vpop.eup %10479  ;;  %v6838_v31 = vrot.slane %v6837_v47, 4  ;;  %v6869_v7 = vrot.slane %v6868_v34, 4  ;;  %v6690_v39 = vsel %vm71_vm0, %v15411_v43, 0.0 }
 0xed2   :  { %6691 = vadd.xlane.f32.xlu1 %v6690_v39  ;;  %v6687_v16 = vsel %vm71_vm0, %v15413_v29, 0.0 }
 0xed3   :  { %v6839_v21 = vadd.f32 %v6838_v31, %v6837_v47  ;;  %v6870_v63 = vadd.f32 %v6869_v7, %v6868_v34  ;;  %6688 = vadd.xlane.f32.xlu0 %v6687_v16 }
 0xed4   :  { %v15419_v55 = vpop.eup %10481 }
 0xed5   :  { %v15421_v49 = vpop.eup %10483  ;;  %v6840_v0 = vrot.slane %v6839_v21, 2  ;;  %v6871_v20 = vrot.slane %v6870_v63, 2  ;;  %v6696_v54 = vsel %vm71_vm0, %v15419_v55, 0.0 }
 0xed6   :  { %6697 = vadd.xlane.f32.xlu1 %v6696_v54  ;;  %v6693_v36 = vsel %vm71_vm0, %v15421_v49, 0.0 }
 0xed7   :  { %v6841_v39 = vadd.f32 %v6840_v0, %v6839_v21  ;;  %v6872_v44 = vadd.f32 %v6871_v20, %v6870_v63  ;;  %6694 = vadd.xlane.f32.xlu0 %v6693_v36 }
 0xed9   :  { %v15427_v50 = vpop.eup %10485  ;;  %v6842_v34 = vrot.slane %v6841_v39, 1  ;;  %v6873_v47 = vrot.slane %v6872_v44, 1 }
 0xeda   :  { %v6699_v31 = vsel %vm71_vm0, %v15427_v50, 0.0 }
 0xedb   :  { %v6843_v7 = vadd.f32 %v6842_v34, %v6841_v39  ;;  %v6874_v16 = vadd.f32 %v6873_v47, %v6872_v44  ;;  %6700 = vadd.xlane.f32.xlu0 %v6699_v31 }
 0xedd   :  { %v6844_v48 = vmax.f32 %v6843_v7, 1e-24  ;;  %v6875_v37 = vmax.f32 %v6874_v16, 1e-24 }
 0xedf   :  { %10487 = vrsqrt.f32 %v6844_v48 }
 0xee0   :  { %10489 = vrsqrt.f32 %v6875_v37 }
 0xee9   :  { %v10488_v54 = vpop.eup %10487 }
 0xeea   :  { %v10490_v53 = vpop.eup %10489  ;;  %v6853_v19 = vmul.f32 %v10488_v54, %v6416_v45  ;;  %v6846_v21 = vmul.f32 %v10488_v54, %v15328_v25  ;;  %v6847_v63 = vmul.f32 %v10488_v54, %v15332_v33  ;;  %v6848_v0 = vmul.f32 %v10488_v54, %v15341_v51 }
 0xeeb   :  { %v6883_v20 = vmul.f32 %v10490_v53, %v15388_v41  ;;  %v6884_v36 = vmul.f32 %v10490_v53, %v6416_v45  ;;  %v6877_v39 = vmul.f32 %v10490_v53, %v15328_v25  ;;  %v6878_v44 = vmul.f32 %v10490_v53, %v15332_v33 }
 0xeec   :  { %v6892_v34 = vmul.f32 %v15111_v14, %v6853_v19  ;;  %v6879_v37 = vmul.f32 %v10490_v53, %v15341_v51  ;;  %v6880_v48 = vmul.f32 %v10490_v53, %v15347_v6  ;;  %v6881_v47 = vmul.f32 %v10490_v53, %v15362_v23 }
 0xeed   :  { %v6900_v31 = vpack.c.bf16 %v6884_v36, %v6883_v20  ;;  %v6897_v7 = vpack.c.bf16 %v6878_v44, %v6877_v39  ;;  %v6882_v16 = vmul.f32 %v10490_v53, %v15370_v46  ;;  %v6885_v4 = vmul.f32 %v15111_v14, %v6846_v21 }
 0xeee   :  { %v6898_v35 = vpack.c.bf16 %v6880_v48, %v6879_v37  ;;  %v6886_v45 = vmul.f32 %v15111_v14, %v6847_v63  ;;  %v6849_v25 = vmul.f32 %v10488_v54, %v15347_v6  ;;  %v6887_v33 = vmul.f32 %v15111_v14, %v6848_v0 }
 0xeef   :  { %6921 = vrot.lane.b32.xlu1 %v6897_v7, %s10694_s17  ;;  %v6899_v19 = vpack.c.bf16 %v6882_v16, %v6881_v47  ;;  %v6850_v51 = vmul.f32 %v10488_v54, %v15362_v23  ;;  %v6851_v11 = vmul.f32 %v10488_v54, %v15370_v46  ;;  %v6852_v20 = vmul.f32 %v10488_v54, %v15388_v41 }
 0xef0   :  { %v6893_v36 = vpack.c.bf16 %v6886_v45, %v6885_v4  ;;  %v6888_v53 = vmul.f32 %v15111_v14, %v6849_v25 }
 0xef1   :  { %6923 = vrot.lane.b32.xlu0 %v6898_v35, %s10694_s17  ;;  %v6889_v21 = vmul.f32 %v15111_v14, %v6850_v51  ;;  %v6890_v6 = vmul.f32 %v15111_v14, %v6851_v11  ;;  %v6891_v63 = vmul.f32 %v15111_v14, %v6852_v20 }
 0xef2   :  { %v6894_v0 = vpack.c.bf16 %v6888_v53, %v6887_v33 }
 0xef3   :  { %6925 = vrot.lane.b32.xlu1 %v6899_v19, %s10694_s17  ;;  %v6895_v39 = vpack.c.bf16 %v6890_v6, %v6889_v21  ;;  %v6896_v23 = vpack.c.bf16 %v6892_v34, %v6891_v63 }
 0xef7   :  { %6927 = vrot.lane.b32.xlu1 %v6900_v31, %s10694_s17 }
 0xf0f   :  { %6901 = vxpose.xlu0.c.b16.start [1/4] (short) (narrow) %v6893_v36, 64 }
 0xf13   :  { %6902 = vxpose.xlu0.c.b16.cont [2/4] (short) (narrow) %v6894_v0, 64 }
 0xf17   :  { %6903 = vxpose.xlu0.c.b16.cont [3/4] (short) (narrow) %v6895_v39, 64 }
 0xf1b   :  { %6904 = vxpose.xlu0.c.b16.end [4/4] (short) (narrow) %v6896_v23, 64  ;;  %v16821_v23 = vpack.c.bf16 %v15074_v28, %v15066_v3  ;;  %v9763_v28 = vld [vmem:[%s16218_s3 + $0x40] sm:$0xff]  }
 0xf57   :  { %v6680_v4 = vpop.xlane.xlu1 %6679 }
 0xf58   :  { %10491 = vrcp.f32 %v6680_v4 }
 0xf5b   :  { %v6686_v35 = vpop.xlane.xlu1 %6685  ;;  %v6683_v46 = vpop.xlane.xlu0 %6682 }
 0xf5c   :  { %10493 = vrcp.f32 %v6683_v46 }
 0xf5d   :  { %10495 = vrcp.f32 %v6686_v35  ;;  %v16823_v35 = vpack.c.bf16 %v15102_v52, %v15098_v57  ;;  %v9765_v57 = vld [vmem:[%s16218_s3 + $0x50] sm:$0xff]  }
 0xf5f   :  { %v6692_v11 = vpop.xlane.xlu1 %6691 }
 0xf60   :  { %v6689_v41 = vpop.xlane.xlu0 %6688 }
 0xf61   :  { %10497 = vrcp.f32 %v6689_v41  ;;  %v9766_v41 = vld [vmem:[%s16218_s3 + $0x58] sm:$0xff]  }
 0xf62   :  { %10499 = vrcp.f32 %v6692_v11  ;;  %v10492_v54 = vpop.eup %10491 }
 0xf63   :  { %v6703_v37 = vmul.f32 %v10492_v54, %v15384_v58  ;;  %v6698_v31 = vpop.xlane.xlu1 %6697 }
 0xf64   :  { %v6695_v14 = vpop.xlane.xlu0 %6694 }
 0xf65   :  { %10501 = vrcp.f32 %v6695_v14 }
 0xf66   :  { %v10494_v44 = vpop.eup %10493 }
 0xf67   :  { %v6705_v48 = vmul.f32 %v10494_v44, %v15397_v32  ;;  %v10496_v47 = vpop.eup %10495 }
 0xf68   :  { %v6701_v34 = vpop.xlane.xlu0 %6700  ;;  %v6707_v25 = vmul.f32 %v10496_v47, %v15386_v38 }
 0xf69   :  { %v6722_v7 = vpack.c.bf16 %v6705_v48, %v6703_v37  ;;  %10503 = vrcp.f32 %v6701_v34 }
 0xf6a   :  { %10505 = vrcp.f32 %v6698_v31 }
 0xf6b   :  { %v10498_v16 = vpop.eup %10497  ;;  %9690 = vmatprep.subr.msk.bf16.mxu1 %vm71_vm0, %v6722_v7  ;;  %v6739_v45 = vsel %vm71_vm0, %v6722_v7, 0 }
 0xf6c   :  { %v6709_v33 = vmul.f32 %v10498_v16, %v15413_v29  ;;  %9595 = vmatpush3.bf16.xpose.msra.mxu1 %v6739_v45  ;;  %v10500_v19 = vpop.eup %10499  ;;  %v6924_v39 = vpop.permute.xlu0 %6923 }
 0xf6d   :  { %v6711_v20 = vmul.f32 %v10500_v19, %v15411_v43 }
 0xf6e   :  { %v6723_v51 = vpack.c.bf16 %v6709_v33, %v6707_v25 }
 0xf6f   :  { %v10502_v58 = vpop.eup %10501 }
 0xf70   :  { %9691 = vmatprep.subr.msk.bf16.mxu1 %vm71_vm0, %v6723_v51  ;;  %v6713_v32 = vmul.f32 %v10502_v58, %v15421_v49  ;;  %v6742_v36 = vsel %vm71_vm0, %v6723_v51, 0  ;;  %v6922_v49 = vpop.permute.xlu1 %6921 }
 0xf72   :  { %v6724_v53 = vpack.c.bf16 %v6713_v32, %v6711_v20 }
 0xf73   :  { %v10504_v21 = vpop.eup %10503 }
 0xf74   :  { %9597 = vmatpush3.bf16.xpose.msra.mxu1 %v6742_v36  ;;  %v10506_v38 = vpop.eup %10505  ;;  %v6717_v29 = vmul.f32 %v10504_v21, %v15427_v50  ;;  %v6745_v63 = vsel %vm71_vm0, %v6724_v53, 0  ;;  %v16822_v50 = vpack.c.bf16 %v15092_v42, %v15084_v5  ;;  %v9764_v5 = vld [vmem:[%s16218_s3 + $0x48] sm:$0xff]  }
 0xf75   :  { %9692 = vmatprep.subr.msk.bf16.mxu1 %vm71_vm0, %v6724_v53  ;;  %v6715_v6 = vmul.f32 %v10506_v38, %v15419_v55  ;;  %v6926_v55 = vpop.permute.xlu1 %6925  ;;  %v6909_v4 = vpop.trf.xlu0 }
 0xf77   :  { %v6725_v0 = vpack.c.bf16 %v6717_v29, %v6715_v6 }
 0xf79   :  { %v6748_v43 = vsel %vm71_vm0, %v6725_v0, 0  ;;  %v6928_v46 = vpop.permute.xlu1 %6927  ;;  %v6910_v3 = vpop.trf.xlu0 }
 0xf7c   :  { %9599 = vmatpush3.bf16.xpose.msra.mxu1 %v6745_v63 }
 0xf7d   :  { %9693 = vmatprep.subr.msk.bf16.mxu1 %vm71_vm0, %v6725_v0  ;;  %v6911_v42 = vpop.trf.xlu0 }
 0xf81   :  { %v6912_v52 = vpop.trf.xlu0 }
 0xf84   :  { %9601 = vmatpush3.bf16.xpose.msra.mxu1 %v6748_v43 }
 0xf85   :  { %9610 = vmatprep.subr.bf16.mxu1 %v6922_v49 }
 0xf8b   :  { %9603 = vmatmul.mubr.msk.bf16.vlgmr.msra.gmra.mrb[200].mxu1 %vm71_vm0, %v16821_v23 }
 0xf8c   :  { %9606 = vmatprep.mubr.msk.bf16.mxu1 %vm71_vm0, %v16822_v50  ;;  %9611 = vmatpush3.bf16.msra.mxu1 %v6922_v49 }
 0xf8d   :  { %9612 = vmatprep.subr.bf16.mxu1 %v6924_v39 }
 0xf90   :  { %9613 = vmatpush3.bf16.msra.mxu1 %v6924_v39 }
 0xf91   :  { %9614 = vmatprep.subr.bf16.mxu1 %v6926_v55 }
 0xf93   :  { %9607 = vmatmul.mubr.msk.bf16.gmra.mrb[204].mxu1 %vm71_vm0, %v16823_v35 }
 0xf94   :  { %9615 = vmatpush3.bf16.msra.mxu1 %v6926_v55  ;;  %9618 = vmatprep.mubr.msk.bf16.mxu1 %vm71_vm0, %v6909_v4 }
 0xf95   :  { %9616 = vmatprep.subr.bf16.mxu1 %v6928_v46 }
 0xf98   :  { %9617 = vmatpush3.bf16.msra.mxu1 %v6928_v46 }
 0xf99   :  { %9642 = vmatprep.subr.bf16.mxu1 %v9763_v28 }
 0xf9b   :  { %9619 = vmatmul.mubr.msk.bf16.vlgmr.msra.gmra.mrb[208].mxu1 %vm71_vm0, %v6910_v3 }
 0xf9c   :  { %9622 = vmatprep.mubr.msk.bf16.mxu1 %vm71_vm0, %v6911_v42  ;;  %9643 = vmatpush3.bf16.msra.mxu1 %v9763_v28 }
 0xf9d   :  { %9644 = vmatprep.subr.bf16.mxu1 %v9764_v5 }
 0xfa0   :  { %9645 = vmatpush3.bf16.msra.mxu1 %v9764_v5 }
 0xfa1   :  { %9646 = vmatprep.subr.bf16.mxu1 %v9765_v57 }
 0xfa3   :  { %9623 = vmatmul.mubr.msk.bf16.gmra.mrb[212].mxu1 %vm71_vm0, %v6912_v52 }
 0xfa4   :  { %9647 = vmatpush3.bf16.msra.mxu1 %v9765_v57 }
 0xfa5   :  { %9648 = vmatprep.subr.bf16.mxu1 %v9766_v41 }
 0xfa8   :  { %9649 = vmatpush3.bf16.msra.mxu1 %v9766_v41 }
0x105e   :  { %v9604_v11 = vpop.f32.mrb[200].mxu1 }
0x105f   :  { %v6784_v14 = vpop.f32.mrb[201].mxu1 }
0x1060   :  { %v9605_v54 = vpop.f32.mrb[202].mxu1 }
0x1061   :  { %v7196_v44 = vpack.c.bf16 %v9605_v54, %v9604_v11  ;;  %v6787_v34 = vpop.f32.mrb[203].mxu1 }
0x1062   :  { %v7195_v37 = vpack.c.bf16 %v6787_v34, %v6784_v14 }
0x1064   :  { %9650 = vmatprep.mubr.msk.bf16.mxu1 %vm71_vm0, %v7195_v37 }
0x1065   :  { %9651 = vmatmul.mubr.msk.bf16.vlgmr.msra.gmra.mrb[216].mxu1 %vm71_vm0, %v7196_v44 }
0x1066   :  { %v9608_v48 = vpop.f32.mrb[204].mxu1 }
0x1067   :  { %v6800_v47 = vpop.f32.mrb[205].mxu1 }
0x1068   :  { %v9609_v31 = vpop.f32.mrb[206].mxu1 }
0x1069   :  { %v7198_v7 = vpack.c.bf16 %v9609_v31, %v9608_v48  ;;  %v6803_v16 = vpop.f32.mrb[207].mxu1 }
0x106a   :  { %v7197_v45 = vpack.c.bf16 %v6803_v16, %v6800_v47 }
0x106c   :  { %9654 = vmatprep.mubr.msk.bf16.mxu1 %vm71_vm0, %v7197_v45 }
0x106d   :  { %9655 = vmatmul.mubr.msk.bf16.gmra.mrb[220].mxu1 %vm71_vm0, %v7198_v7 }
0x106e   :  { %v9620_v25 = vpop.f32.mrb[208].mxu1 }
0x106f   :  { %v6979_v33 = vpop.f32.mrb[209].mxu1  ;;  %v6988_v21 = vadd.f32 %v9620_v25, %v15251_v1 }
0x1070   :  { %v6980_v19 = vadd.f32 %v6979_v33, %v15256_v10  ;;  %v9621_v51 = vpop.f32.mrb[210].mxu1 }
0x1071   :  { %v6991_v58 = vadd.f32 %v9621_v51, %v15279_v8  ;;  %v6982_v32 = vpop.f32.mrb[211].mxu1 }
0x1072   :  { %v6983_v20 = vadd.f32 %v6982_v32, %v15264_v17  ;;  %v7010_v36 = vsel %vm71_vm0, %v6980_v19, -inf  ;;  %v7016_v17 = vsel %vm71_vm0, %v6988_v21, -inf }
0x1073   :  { %7011 = vmax.xlane.f32.xlu1 %v7010_v36  ;;  %v7019_v53 = vsel %vm71_vm0, %v6991_v58, -inf }
0x1074   :  { %7020 = vmax.xlane.f32.xlu0 %v7019_v53  ;;  %v7013_v29 = vsel %vm71_vm0, %v6983_v20, -inf }
0x1076   :  { %v9624_v38 = vpop.f32.mrb[212].mxu1 }
0x1077   :  { %7014 = vmax.xlane.f32.xlu1 %v7013_v29  ;;  %v6995_v6 = vpop.f32.mrb[213].mxu1  ;;  %v7004_v23 = vadd.f32 %v9624_v38, %v15284_v30 }
0x1078   :  { %v6996_v10 = vadd.f32 %v6995_v6, %v15289_v56  ;;  %v9625_v63 = vpop.f32.mrb[214].mxu1 }
0x1079   :  { %v7007_v8 = vadd.f32 %v9625_v63, %v15310_v15  ;;  %v6998_v0 = vpop.f32.mrb[215].mxu1  ;;  %v7028_v56 = vsel %vm71_vm0, %v7004_v23, -inf }
0x107a   :  { %v6999_v49 = vadd.f32 %v6998_v0, %v15299_v9  ;;  %v7022_v1 = vsel %vm71_vm0, %v6996_v10, -inf }
0x107b   :  { %7017 = vmax.xlane.f32.xlu1 %v7016_v17  ;;  %v7031_v43 = vsel %vm71_vm0, %v7007_v8, -inf }
0x107c   :  { %7032 = vmax.xlane.f32.xlu0 %v7031_v43  ;;  %v7025_v39 = vsel %vm71_vm0, %v6999_v49, -inf }
0x107f   :  { %7023 = vmax.xlane.f32.xlu1 %v7022_v1 }
0x1083   :  { %7026 = vmax.xlane.f32.xlu1 %v7025_v39 }
0x1087   :  { %7029 = vmax.xlane.f32.xlu1 %v7028_v56 }
0x1100   :  { %v7012_v15 = vpop.xlane.xlu1 %7011 }
0x1101   :  { %v7034_v50 = vsub.f32 %v6980_v19, %v7012_v15  ;;  %v7021_v55 = vpop.xlane.xlu0 %7020 }
0x1102   :  { %v7037_v35 = vsub.f32 %v6991_v58, %v7021_v55 }
0x1103   :  { %v7042_v4 = vmul.f32 1.442695, %v7034_v50 }
0x1104   :  { %v7015_v46 = vpop.xlane.xlu1 %7014  ;;  %v7048_v9 = vmul.f32 1.442695, %v7037_v35 }
0x1105   :  { %10507 = vpow2.f32 %v7042_v4  ;;  %v7035_v3 = vsub.f32 %v6983_v20, %v7015_v46 }
0x1107   :  { %v7044_v28 = vmul.f32 1.442695, %v7035_v3 }
0x1108   :  { %v7018_v5 = vpop.xlane.xlu1 %7017 }
0x1109   :  { %10509 = vpow2.f32 %v7044_v28  ;;  %v7036_v42 = vsub.f32 %v6988_v21, %v7018_v5  ;;  %v7033_v30 = vpop.xlane.xlu0 %7032 }
0x110a   :  { %10511 = vpow2.f32 %v7048_v9  ;;  %v7041_v14 = vsub.f32 %v7007_v8, %v7033_v30 }
0x110b   :  { %v7046_v57 = vmul.f32 1.442695, %v7036_v42 }
0x110c   :  { %v7024_v52 = vpop.xlane.xlu1 %7023  ;;  %v7056_v47 = vmul.f32 1.442695, %v7041_v14 }
0x110d   :  { %10513 = vpow2.f32 %v7046_v57  ;;  %v7038_v41 = vsub.f32 %v6996_v10, %v7024_v52  ;;  %v15556_v10 = vld [vmem:[%s16216_s1 + $0xb] ss:$0 sm:$0xff] }
0x110f   :  { %v15521_v11 = vpop.eup %10507  ;;  %v7050_v54 = vmul.f32 1.442695, %v7038_v41 }
0x1110   :  { %v7027_v44 = vpop.xlane.xlu1 %7026  ;;  %v7058_v34 = vsel %vm71_vm0, %v15521_v11, 0.0 }
0x1111   :  { %10515 = vpow2.f32 %v7050_v54  ;;  %v7039_v37 = vsub.f32 %v6999_v49, %v7027_v44  ;;  %7059 = vadd.xlane.f32.xlu1 %v7058_v34 }
0x1113   :  { %v15525_v48 = vpop.eup %10509  ;;  %v7052_v31 = vmul.f32 1.442695, %v7039_v37 }
0x1114   :  { %v7030_v7 = vpop.xlane.xlu1 %7029  ;;  %v7061_v16 = vsel %vm71_vm0, %v15525_v48, 0.0  ;;  %v15529_v45 = vpop.eup %10511 }
0x1115   :  { %10517 = vpow2.f32 %v7052_v31  ;;  %v7040_v25 = vsub.f32 %v7004_v23, %v7030_v7  ;;  %7062 = vadd.xlane.f32.xlu0 %v7061_v16  ;;  %v7067_v58 = vsel %vm71_vm0, %v15529_v45, 0.0 }
0x1116   :  { %10519 = vpow2.f32 %v7056_v47 }
0x1117   :  { %v15531_v33 = vpop.eup %10513  ;;  %v7054_v19 = vmul.f32 1.442695, %v7040_v25 }
0x1118   :  { %v7064_v51 = vsel %vm71_vm0, %v15531_v33, 0.0 }
0x1119   :  { %10521 = vpow2.f32 %v7054_v19  ;;  %7065 = vadd.xlane.f32.xlu1 %v7064_v51  ;;  %7068 = vadd.xlane.f32.xlu0 %v7067_v58 }
0x111b   :  { %v15537_v32 = vpop.eup %10515 }
0x111c   :  { %v7070_v20 = vsel %vm71_vm0, %v15537_v32, 0.0 }
0x111d   :  { %7071 = vadd.xlane.f32.xlu1 %v7070_v20 }
0x111f   :  { %v15541_v36 = vpop.eup %10517 }
0x1120   :  { %v7073_v53 = vsel %vm71_vm0, %v15541_v36, 0.0  ;;  %v15545_v21 = vpop.eup %10519 }
0x1121   :  { %7074 = vadd.xlane.f32.xlu0 %v7073_v53  ;;  %v7079_v6 = vsel %vm71_vm0, %v15545_v21, 0.0 }
0x1123   :  { %v15547_v38 = vpop.eup %10521 }
0x1124   :  { %v7076_v29 = vsel %vm71_vm0, %v15547_v38, 0.0 }
0x1125   :  { %7077 = vadd.xlane.f32.xlu1 %v7076_v29  ;;  %7080 = vadd.xlane.f32.xlu0 %v7079_v6 }
0x1138   :  { %v9652_v63 = vpop.f32.mrb[216].mxu1 }
0x1139   :  { %v7299_v8 = vpop.f32.mrb[217].mxu1  ;;  %v7308_v0 = vadd.f32 %v9652_v63, %v15556_v10 }
0x113a   :  { %v7300_v17 = vadd.f32 %v15556_v10, %v7299_v8  ;;  %v9653_v43 = vpop.f32.mrb[218].mxu1 }
0x113b   :  { %v7302_v49 = vpop.f32.mrb[219].mxu1  ;;  %v7311_v39 = vadd.f32 %v9653_v43, %v15556_v10  ;;  %v15566_v56 = vadd.f32 %v7308_v0, %v14732_v27 }
0x113c   :  { %v15561_v1 = vadd.f32 %v7300_v17, %v14720_v22  ;;  %v7303_v23 = vadd.f32 %v15556_v10, %v7302_v49 }
0x113d   :  { %v15574_v55 = vadd.f32 %v7311_v39, %v14736_v26 }
0x113e   :  { %v15569_v15 = vadd.f32 %v7303_v23, %v14724_v18  ;;  %v7380_v50 = vsel %vm71_vm0, %v15561_v1, 0.0  ;;  %v7386_v18 = vsel %vm71_vm0, %v15566_v56, 0.0 }
0x113f   :  { %7381 = vadd.xlane.f32.xlu1 %v7380_v50  ;;  %v7389_v42 = vsel %vm71_vm0, %v15574_v55, 0.0 }
0x1140   :  { %v9656_v4 = vpop.f32.mrb[220].mxu1  ;;  %v7383_v22 = vsel %vm71_vm0, %v15569_v15, 0.0 }
0x1141   :  { %v7315_v35 = vpop.f32.mrb[221].mxu1  ;;  %7384 = vadd.xlane.f32.xlu0 %v7383_v22  ;;  %v7324_v46 = vadd.f32 %v9656_v4, %v15556_v10  ;;  %v16825_v4 = vpack.c.bf16 %v15376_v61, %v15367_v62  ;;  %v16828_v22 = vmov 0  }
0x1142   :  { %v7316_v27 = vadd.f32 %v15556_v10, %v7315_v35  ;;  %v9657_v3 = vpop.f32.mrb[222].mxu1 }
0x1143   :  { %v7318_v9 = vpop.f32.mrb[223].mxu1  ;;  %7387 = vadd.xlane.f32.xlu1 %v7386_v18  ;;  %v7327_v26 = vadd.f32 %v9657_v3, %v15556_v10  ;;  %v15590_v57 = vadd.f32 %v7324_v46, %v14756_v60 }
0x1144   :  { %v15583_v28 = vadd.f32 %v7316_v27, %v14744_v59  ;;  %v7319_v5 = vadd.f32 %v15556_v10, %v7318_v9 }
0x1145   :  { %7390 = vadd.xlane.f32.xlu0 %v7389_v42  ;;  %v15598_v59 = vadd.f32 %v7327_v26, %v14760_v12  ;;  %v7398_v14 = vsel %vm71_vm0, %v15590_v57, 0.0 }
0x1146   :  { %v15593_v30 = vadd.f32 %v7319_v5, %v14748_v13  ;;  %v7392_v52 = vsel %vm71_vm0, %v15583_v28, 0.0 }
0x1147   :  { %7393 = vadd.xlane.f32.xlu1 %v7392_v52  ;;  %v7401_v60 = vsel %vm71_vm0, %v15598_v59, 0.0 }
0x1148   :  { %v7395_v41 = vsel %vm71_vm0, %v15593_v30, 0.0 }
0x1149   :  { %7396 = vadd.xlane.f32.xlu0 %v7395_v41 }
0x114b   :  { %7399 = vadd.xlane.f32.xlu1 %v7398_v14 }
0x114d   :  { %7402 = vadd.xlane.f32.xlu0 %v7401_v60 }
0x119e   :  { %v7060_v13 = vpop.xlane.xlu1 %7059 }
0x119f   :  { %10523 = vrcp.f32 %v7060_v13 }
0x11a2   :  { %v7063_v54 = vpop.xlane.xlu0 %7062 }
0x11a3   :  { %10525 = vrcp.f32 %v7063_v54 }
0x11a6   :  { %v7066_v44 = vpop.xlane.xlu1 %7065  ;;  %v7069_v34 = vpop.xlane.xlu0 %7068 }
0x11a7   :  { %10527 = vrcp.f32 %v7066_v44  ;;  %v16829_v44 = vld [vmem:[#allocation62_spill] sm:$0xff] }
0x11a8   :  { %10529 = vrcp.f32 %v7069_v34 }
0x11a9   :  { %v10524_v37 = vpop.eup %10523 }
0x11aa   :  { %v7072_v12 = vpop.xlane.xlu1 %7071  ;;  %v7083_v7 = vmul.f32 %v10524_v37, %v15521_v11 }
0x11ab   :  { %10531 = vrcp.f32 %v7072_v12 }
0x11ad   :  { %v10526_v47 = vpop.eup %10525 }
0x11ae   :  { %v7075_v31 = vpop.xlane.xlu0 %7074  ;;  %v7085_v16 = vmul.f32 %v10526_v47, %v15525_v48  ;;  %v16830_v47 = vld [vmem:[#allocation20_spill] sm:$0xff] }
0x11af   :  { %10533 = vrcp.f32 %v7075_v31 }
0x11b0   :  { %v7102_v25 = vpack.c.bf16 %v7085_v16, %v7083_v7  ;;  %v16831_v7 = vld [vmem:[#allocation92_spill] sm:$0xff] }
0x11b1   :  { %v10528_v19 = vpop.eup %10527 }
0x11b2   :  { %v10530_v51 = vpop.eup %10529  ;;  %v7078_v58 = vpop.xlane.xlu1 %7077  ;;  %9694 = vmatprep.subr.msk.bf16.mxu0 %vm71_vm0, %v7102_v25  ;;  %v7119_v53 = vsel %vm71_vm0, %v7102_v25, 0  ;;  %v7087_v29 = vmul.f32 %v10528_v19, %v15531_v33 }
0x11b3   :  { %v7081_v20 = vpop.xlane.xlu0 %7080  ;;  %10535 = vrcp.f32 %v7078_v58  ;;  %9627 = vmatpush3.bf16.xpose.msra.mxu0 %v7119_v53  ;;  %v7089_v6 = vmul.f32 %v10530_v51, %v15529_v45  ;;  %v16832_v51 = vld [vmem:[#allocation67_spill] sm:$0xff] }
0x11b4   :  { %10537 = vrcp.f32 %v7081_v20 }
0x11b5   :  { %v7103_v11 = vpack.c.bf16 %v7089_v6, %v7087_v29  ;;  %v10532_v63 = vpop.eup %10531 }
0x11b6   :  { %v7091_v0 = vmul.f32 %v10532_v63, %v15537_v32 }
0x11b7   :  { %9695 = vmatprep.subr.msk.bf16.mxu0 %vm71_vm0, %v7103_v11  ;;  %v7122_v8 = vsel %vm71_vm0, %v7103_v11, 0 }
0x11b9   :  { %v10534_v48 = vpop.eup %10533 }
0x11ba   :  { %v7093_v17 = vmul.f32 %v10534_v48, %v15541_v36  ;;  %v16824_v36 = vpack.c.bf16 %v15353_v24, %v15345_v40 }
0x11bb   :  { %9629 = vmatpush3.bf16.xpose.msra.mxu0 %v7122_v8 }
0x11bc   :  { %v7104_v43 = vpack.c.bf16 %v7093_v17, %v7091_v0 }
0x11bd   :  { %v10536_v49 = vpop.eup %10535 }
0x11be   :  { %v10538_v33 = vpop.eup %10537  ;;  %9696 = vmatprep.subr.msk.bf16.mxu0 %vm71_vm0, %v7104_v43  ;;  %v7095_v45 = vmul.f32 %v10536_v49, %v15547_v38  ;;  %v7125_v23 = vsel %vm71_vm0, %v7104_v43, 0  ;;  %v16833_v49 = vld [vmem:[#allocation61_spill] sm:$0xff] }
0x11bf   :  { %v7097_v39 = vmul.f32 %v10538_v33, %v15545_v21  ;;  %v16826_v21 = vld [vmem:[#allocation65_spill] sm:$0xff] }
0x11c0   :  { %v16827_v38 = vpack.c.bf16 %v15401_v2, %v16826_v21 }
0x11c1   :  { %v7105_v50 = vpack.c.bf16 %v7097_v39, %v7095_v45 }
0x11c3   :  { %9631 = vmatpush3.bf16.xpose.msra.mxu0 %v7125_v23  ;;  %v7128_v32 = vsel %vm71_vm0, %v7105_v50, 0 }
0x11c4   :  { %9697 = vmatprep.subr.msk.bf16.mxu0 %vm71_vm0, %v7105_v50 }
0x11cb   :  { %9633 = vmatpush3.bf16.xpose.msra.mxu0 %v7128_v32 }
0x11cc   :  { %v7382_v42 = vpop.xlane.xlu1 %7381 }
0x11cd   :  { %v7428_v29 = vmul.f32 0.015625, %v7382_v42 }
0x11ce   :  { %v7385_v13 = vpop.xlane.xlu0 %7384 }
0x11cf   :  { %v7429_v17 = vmul.f32 0.015625, %v7385_v13  ;;  %v15671_v50 = vsub.f32 %v15561_v1, %v7428_v29 }
0x11d0   :  { %v7388_v19 = vpop.xlane.xlu1 %7387 }
0x11d2   :  { %9635 = vmatmul.mubr.msk.bf16.vlgmr.msra.gmra.mrb[224].mxu0 %vm71_vm0, %v16824_v36  ;;  %v7391_v6 = vpop.xlane.xlu0 %7390  ;;  %v7430_v36 = vmul.f32 0.015625, %v7388_v19 }
0x11d3   :  { %9638 = vmatprep.mubr.msk.bf16.mxu0 %vm71_vm0, %v16825_v4  ;;  %v16834_v4 = vld [vmem:[#allocation66_spill] sm:$0xff] }
0x11d4   :  { %v7394_v32 = vpop.xlane.xlu1 %7393 }
0x11da   :  { %9639 = vmatmul.mubr.msk.bf16.gmra.mrb[228].mxu0 %vm71_vm0, %v16827_v38  ;;  %v16835_v38 = vld [vmem:[#allocation73_spill] sm:$0xff] }
0x11db   :  { %7754 = vmatprep.mubr.bf16.mxu0 %v16828_v22 }
0x12a5   :  { %v9636_v35 = vpop.f32.mrb[224].mxu0 }
0x12a6   :  { %v7164_v46 = vpop.f32.mrb[225].mxu0 }
0x12a7   :  { %v9637_v27 = vpop.f32.mrb[226].mxu0 }
0x12a8   :  { %v7200_v3 = vpack.c.bf16 %v9637_v27, %v9636_v35  ;;  %v7167_v18 = vpop.f32.mrb[227].mxu0  ;;  %v7397_v27 = vpop.xlane.xlu0 %7396 }
0x12a9   :  { %v7199_v40 = vpack.c.bf16 %v7167_v18, %v7164_v46  ;;  %v16836_v18 = vld [vmem:[#allocation72_spill] sm:$0xff]  ;;  %v7433_v42 = vmul.f32 0.015625, %v7397_v27 }
0x12ab   :  { %9658 = vmatprep.mubr.msk.bf16.mxu1 %vm71_vm0, %v7199_v40 }
0x12ac   :  { %9659 = vmatmul.mubr.msk.bf16.gmra.mrb[224].mxu1 %vm71_vm0, %v7200_v3  ;;  %v7431_v3 = vmul.f32 0.015625, %v7391_v6 }
0x12ad   :  { %v9640_v24 = vpop.f32.mrb[228].mxu0 }
0x12ae   :  { %v7180_v62 = vpop.f32.mrb[229].mxu0 }
0x12af   :  { %v9641_v61 = vpop.f32.mrb[230].mxu0 }
0x12b0   :  { %v7202_v9 = vpack.c.bf16 %v9641_v61, %v9640_v24  ;;  %v7183_v26 = vpop.f32.mrb[231].mxu0  ;;  %v7432_v61 = vmul.f32 0.015625, %v7394_v32  ;;  %v9778_v32 = vld [vmem:[%s16220_s5 + $0x74] ss:$8 sps:$4 sm:$0xff]  }
0x12b1   :  { %v7201_v2 = vpack.c.bf16 %v7183_v26, %v7180_v62  ;;  %v15690_v62 = vsub.f32 %v15566_v56, %v7430_v36  ;;  %v7460_v26 = vmul.f32 %v15671_v50, %v15671_v50  ;;  %v9776_v36 = vld [vmem:[%s16220_s5 + $0x70] ss:$8 sps:$4 sm:$0xff]  }
0x12b3   :  { %9662 = vmatprep.mubr.msk.bf16.mxu1 %vm71_vm0, %v7201_v2  ;;  %v7400_v2 = vpop.xlane.xlu1 %7399 }
0x12b4   :  { %9663 = vmatmul.mubr.msk.bf16.gmra.mrb[228].mxu1 %vm71_vm0, %v7202_v9  ;;  %v7434_v13 = vmul.f32 0.015625, %v7400_v2 }
0x137f   :  { %v9660_v5 = vpop.f32.mrb[224].mxu1 }
0x1380   :  { %v7331_v52 = vpop.f32.mrb[225].mxu1  ;;  %v7340_v41 = vadd.f32 %v9660_v5, %v15556_v10  ;;  %v15697_v5 = vsub.f32 %v15574_v55, %v7431_v3 }
0x1381   :  { %v7332_v14 = vadd.f32 %v15556_v10, %v7331_v52  ;;  %v9661_v60 = vpop.f32.mrb[226].mxu1 }
0x1382   :  { %v7334_v54 = vpop.f32.mrb[227].mxu1  ;;  %v7343_v12 = vadd.f32 %v9661_v60, %v15556_v10  ;;  %v15647_v31 = vadd.f32 %v7340_v41, %v16830_v47  ;;  %v15704_v60 = vsub.f32 %v15583_v28, %v7432_v61 }
0x1383   :  { %v15642_v34 = vadd.f32 %v7332_v14, %v16829_v44  ;;  %v7335_v37 = vadd.f32 %v15556_v10, %v7334_v54  ;;  %v7403_v14 = vpop.xlane.xlu0 %7402  ;;  %v7476_v54 = vsel %vm71_vm0, %v7460_v26, 0.0  ;;  %v7462_v44 = vmul.f32 %v15690_v62, %v15690_v62 }
0x1384   :  { %v15655_v58 = vadd.f32 %v7343_v12, %v16832_v51  ;;  %v7410_v0 = vsel %vm71_vm0, %v15647_v31, 0.0  ;;  %v15710_v12 = vsub.f32 %v15593_v30, %v7433_v42  ;;  %v7464_v51 = vmul.f32 %v15704_v60, %v15704_v60 }
0x1385   :  { %v15650_v16 = vadd.f32 %v7335_v37, %v16831_v7  ;;  %v7404_v25 = vsel %vm71_vm0, %v15642_v34, 0.0  ;;  %v7435_v37 = vmul.f32 0.015625, %v7403_v14  ;;  %v7463_v7 = vmul.f32 %v15697_v5, %v15697_v5 }
0x1386   :  { %7405 = vadd.xlane.f32.xlu1 %v7404_v25  ;;  %v7413_v23 = vsel %vm71_vm0, %v15655_v58, 0.0  ;;  %v15716_v25 = vsub.f32 %v15590_v57, %v7434_v13  ;;  %v7482_v19 = vsel %vm71_vm0, %v7462_v44, 0.0  ;;  %v7465_v29 = vmul.f32 %v15710_v12, %v15710_v12 }
0x1387   :  { %v9664_v20 = vpop.f32.mrb[228].mxu1  ;;  %v7407_v53 = vsel %vm71_vm0, %v15650_v16, 0.0  ;;  %v7488_v6 = vsel %vm71_vm0, %v7464_v51, 0.0 }
0x1388   :  { %7408 = vadd.xlane.f32.xlu0 %v7407_v53  ;;  %v7347_v11 = vpop.f32.mrb[229].mxu1  ;;  %v7356_v63 = vadd.f32 %v9664_v20, %v15556_v10  ;;  %v15722_v20 = vsub.f32 %v15598_v59, %v7435_v37  ;;  %v7485_v53 = vsel %vm71_vm0, %v7463_v7, 0.0 }
0x1389   :  { %v7348_v48 = vadd.f32 %v15556_v10, %v7347_v11  ;;  %v9665_v8 = vpop.f32.mrb[230].mxu1  ;;  %v7466_v11 = vmul.f32 %v15716_v25, %v15716_v25 }
0x138a   :  { %7411 = vadd.xlane.f32.xlu1 %v7410_v0  ;;  %v7350_v43 = vpop.f32.mrb[231].mxu1  ;;  %v7359_v45 = vadd.f32 %v9665_v8, %v15556_v10  ;;  %v15674_v21 = vadd.f32 %v7356_v63, %v16834_v4  ;;  %v7491_v63 = vsel %vm71_vm0, %v7465_v29, 0.0 }
0x138b   :  { %v15664_v33 = vadd.f32 %v7348_v48, %v16833_v49  ;;  %v7351_v39 = vadd.f32 %v15556_v10, %v7350_v43  ;;  %v15682_v10 = vsub.f32 %v15569_v15, %v7429_v17  ;;  %v7467_v48 = vmul.f32 %v15722_v20, %v15722_v20  ;;  %v9767_v17 = vld [vmem:[%s16220_s5 + $0x40] ss:$8 sps:$4 sm:$0xff]   ;;  %v9769_v43 = vld [vmem:[%s16220_s5 + $0x44] ss:$8 sps:$4 sm:$0xff]   ;;  %v9770_v49 = vld [vmem:[%s16220_s5 + $0x50] ss:$8 sps:$4 sm:$0xff]  }
0x138c   :  { %7414 = vadd.xlane.f32.xlu0 %v7413_v23  ;;  %v15685_v40 = vadd.f32 %v7359_v45, %v16836_v18  ;;  %v7422_v9 = vsel %vm71_vm0, %v15674_v21, 0.0  ;;  %v7494_v8 = vsel %vm71_vm0, %v7466_v11, 0.0  ;;  %7722 = vmatprep.subr.bf16.mxu0 %v9769_v43  ;;  %v9772_v45 = vld [vmem:[%s16220_s5 + $0x54] ss:$8 sps:$4 sm:$0xff]   ;;  %v9773_v23 = vld [vmem:[%s16220_s5 + $0x60] ss:$8 sps:$4 sm:$0xff]  }
0x138d   :  { %v15677_v35 = vadd.f32 %v7351_v39, %v16835_v38  ;;  %v7416_v46 = vsel %vm71_vm0, %v15664_v33, 0.0  ;;  %v7461_v41 = vmul.f32 %v15682_v10, %v15682_v10  ;;  %v7497_v0 = vsel %vm71_vm0, %v7467_v48, 0.0  ;;  %7723 = vmatpush1.bf16.msra.mxu0 %v9767_v17  ;;  %v9775_v39 = vld [vmem:[%s16220_s5 + $0x64] ss:$8 sps:$4 sm:$0xff]  }
0x138e   :  { %7417 = vadd.xlane.f32.xlu1 %v7416_v46  ;;  %v7425_v52 = vsel %vm71_vm0, %v15685_v40, 0.0  ;;  %7724 = vmatprep.subr.bf16.mxu0 %v9772_v45 }
0x138f   :  { %v7419_v24 = vsel %vm71_vm0, %v15677_v35, 0.0  ;;  %v7479_v47 = vsel %vm71_vm0, %v7461_v41, 0.0 }
0x1390   :  { %7420 = vadd.xlane.f32.xlu0 %v7419_v24 }
0x1391   :  { %7725 = vmatpush1.bf16.msra.mxu0 %v9770_v49 }
0x1392   :  { %7423 = vadd.xlane.f32.xlu1 %v7422_v9  ;;  %7726 = vmatprep.subr.bf16.mxu0 %v9775_v39 }
0x1394   :  { %7426 = vadd.xlane.f32.xlu0 %v7425_v52 }
0x1395   :  { %7727 = vmatpush1.bf16.msra.mxu0 %v9773_v23 }
0x1396   :  { %7477 = vadd.xlane.f32.xlu1 %v7476_v54  ;;  %7728 = vmatprep.subr.bf16.mxu0 %v9778_v32 }
0x1398   :  { %7480 = vadd.xlane.f32.xlu0 %v7479_v47 }
0x1399   :  { %7729 = vmatpush1.bf16.msra.mxu0 %v9776_v36 }
0x139a   :  { %7483 = vadd.xlane.f32.xlu1 %v7482_v19 }
0x139c   :  { %7486 = vadd.xlane.f32.xlu0 %v7485_v53 }
0x139e   :  { %7489 = vadd.xlane.f32.xlu1 %v7488_v6 }
0x13a0   :  { %7492 = vadd.xlane.f32.xlu0 %v7491_v63 }
0x13a2   :  { %7495 = vadd.xlane.f32.xlu1 %v7494_v8 }
0x13a4   :  { %7498 = vadd.xlane.f32.xlu0 %v7497_v0 }
0x1413   :  { %v7406_v4 = vpop.xlane.xlu1 %7405 }
0x1414   :  { %v7436_v38 = vmul.f32 0.015625, %v7406_v4 }
0x1415   :  { %v7409_v46 = vpop.xlane.xlu0 %7408 }
0x1416   :  { %v15760_v27 = vsub.f32 %v15642_v34, %v7436_v38  ;;  %v7437_v3 = vmul.f32 0.015625, %v7409_v46 }
0x1417   :  { %v7412_v18 = vpop.xlane.xlu1 %7411 }
0x1418   :  { %v15763_v24 = vsub.f32 %v15650_v16, %v7437_v3  ;;  %v7438_v61 = vmul.f32 0.015625, %v7412_v18  ;;  %v7468_v9 = vmul.f32 %v15760_v27, %v15760_v27 }
0x1419   :  { %v7415_v26 = vpop.xlane.xlu0 %7414 }
0x141a   :  { %v15768_v2 = vsub.f32 %v15647_v31, %v7438_v61  ;;  %v7439_v42 = vmul.f32 0.015625, %v7415_v26  ;;  %v7500_v52 = vsel %vm71_vm0, %v7468_v9, 0.0  ;;  %v7469_v41 = vmul.f32 %v15763_v24, %v15763_v24 }
0x141b   :  { %7501 = vadd.xlane.f32.xlu1 %v7500_v52  ;;  %v7418_v14 = vpop.xlane.xlu1 %7417 }
0x141c   :  { %v15774_v13 = vsub.f32 %v15655_v58, %v7439_v42  ;;  %v7440_v54 = vmul.f32 0.015625, %v7418_v14  ;;  %v7503_v44 = vsel %vm71_vm0, %v7469_v41, 0.0  ;;  %v7470_v37 = vmul.f32 %v15768_v2, %v15768_v2 }
0x141d   :  { %7504 = vadd.xlane.f32.xlu0 %v7503_v44  ;;  %v7421_v47 = vpop.xlane.xlu0 %7420 }
0x141e   :  { %v15780_v7 = vsub.f32 %v15664_v33, %v7440_v54  ;;  %v7441_v19 = vmul.f32 0.015625, %v7421_v47  ;;  %v7506_v51 = vsel %vm71_vm0, %v7470_v37, 0.0  ;;  %v7471_v53 = vmul.f32 %v15774_v13, %v15774_v13 }
0x141f   :  { %7507 = vadd.xlane.f32.xlu1 %v7506_v51  ;;  %v7424_v29 = vpop.xlane.xlu1 %7423 }
0x1420   :  { %v15786_v6 = vsub.f32 %v15677_v35, %v7441_v19  ;;  %v7442_v11 = vmul.f32 0.015625, %v7424_v29  ;;  %v7509_v63 = vsel %vm71_vm0, %v7471_v53, 0.0  ;;  %v7472_v48 = vmul.f32 %v15780_v7, %v15780_v7 }
0x1421   :  { %7510 = vadd.xlane.f32.xlu0 %v7509_v63  ;;  %v7427_v8 = vpop.xlane.xlu0 %7426 }
0x1422   :  { %v15792_v0 = vsub.f32 %v15674_v21, %v7442_v11  ;;  %v7443_v17 = vmul.f32 0.015625, %v7427_v8  ;;  %v7512_v43 = vsel %vm71_vm0, %v7472_v48, 0.0  ;;  %v7473_v49 = vmul.f32 %v15786_v6, %v15786_v6  ;;  %v15810_v48 = vld [vmem:[%s16216_s1 + $0xc] ss:$0 sm:$0xff] }
0x1423   :  { %7513 = vadd.xlane.f32.xlu1 %v7512_v43  ;;  %v7478_v45 = vpop.xlane.xlu1 %7477 }
0x1424   :  { %v15798_v39 = vsub.f32 %v15685_v40, %v7443_v17  ;;  %v7524_v23 = vmul.f32 0.015625, %v7478_v45  ;;  %v7515_v32 = vsel %vm71_vm0, %v7473_v49, 0.0  ;;  %v7474_v36 = vmul.f32 %v15792_v0, %v15792_v0 }
0x1425   :  { %7516 = vadd.xlane.f32.xlu0 %v7515_v32  ;;  %v7481_v4 = vpop.xlane.xlu0 %7480 }
0x1426   :  { %v7540_v38 = vadd.f32 1e-05, %v7524_v23  ;;  %v7525_v46 = vmul.f32 0.015625, %v7481_v4  ;;  %v7518_v3 = vsel %vm71_vm0, %v7474_v36, 0.0  ;;  %v7475_v18 = vmul.f32 %v15798_v39, %v15798_v39  ;;  %v15818_v36 = vld [vmem:[%s16216_s1 + $0xd] ss:$0 sm:$0xff] }
0x1427   :  { %7519 = vadd.xlane.f32.xlu1 %v7518_v3  ;;  %v7484_v61 = vpop.xlane.xlu1 %7483 }
0x1428   :  { %10539 = vrsqrt.f32 %v7540_v38  ;;  %v7541_v9 = vadd.f32 1e-05, %v7525_v46  ;;  %v7526_v26 = vmul.f32 0.015625, %v7484_v61  ;;  %v7521_v42 = vsel %vm71_vm0, %v7475_v18, 0.0 }
0x1429   :  { %7522 = vadd.xlane.f32.xlu0 %v7521_v42  ;;  %v7487_v52 = vpop.xlane.xlu0 %7486 }
0x142a   :  { %10541 = vrsqrt.f32 %v7541_v9  ;;  %v7542_v41 = vadd.f32 1e-05, %v7526_v26  ;;  %v7527_v14 = vmul.f32 0.015625, %v7487_v52 }
0x142b   :  { %v7490_v54 = vpop.xlane.xlu1 %7489 }
0x142c   :  { %10543 = vrsqrt.f32 %v7542_v41  ;;  %v7543_v44 = vadd.f32 1e-05, %v7527_v14  ;;  %v7528_v37 = vmul.f32 0.015625, %v7490_v54 }
0x142d   :  { %v7493_v47 = vpop.xlane.xlu0 %7492 }
0x142e   :  { %10545 = vrsqrt.f32 %v7543_v44  ;;  %v7529_v19 = vmul.f32 0.015625, %v7493_v47  ;;  %v7544_v51 = vadd.f32 1e-05, %v7528_v37 }
0x142f   :  { %v7496_v29 = vpop.xlane.xlu1 %7495 }
0x1430   :  { %v7545_v53 = vadd.f32 1e-05, %v7529_v19  ;;  %v7530_v49 = vmul.f32 0.015625, %v7496_v29 }
0x1431   :  { %v7499_v11 = vpop.xlane.xlu0 %7498 }
0x1432   :  { %v10540_v63 = vpop.eup %10539  ;;  %10547 = vrsqrt.f32 %v7545_v53  ;;  %v7531_v8 = vmul.f32 0.015625, %v7499_v11  ;;  %v7546_v3 = vadd.f32 1e-05, %v7530_v49 }
0x1433   :  { %v7572_v17 = vmul.f32 %v10540_v63, %v15671_v50  ;;  %10549 = vrsqrt.f32 %v7544_v51 }
0x1434   :  { %v10542_v43 = vpop.eup %10541  ;;  %v7547_v4 = vadd.f32 1e-05, %v7531_v8 }
0x1435   :  { %v7592_v45 = vmul.f32 %v15810_v48, %v7572_v17  ;;  %v7573_v23 = vmul.f32 %v10542_v43, %v15682_v10 }
0x1436   :  { %v10544_v32 = vpop.eup %10543  ;;  %10551 = vrsqrt.f32 %v7547_v4 }
0x1437   :  { %v7593_v38 = vmul.f32 %v15810_v48, %v7573_v23  ;;  %v7612_v50 = vadd.f32 %v15818_v36, %v7592_v45  ;;  %v7574_v61 = vmul.f32 %v10544_v32, %v15690_v62  ;;  %10553 = vrsqrt.f32 %v7546_v3 }
0x1438   :  { %v10546_v46 = vpop.eup %10545 }
0x1439   :  { %v7613_v18 = vadd.f32 %v15818_v36, %v7593_v38  ;;  %v7575_v9 = vmul.f32 %v10546_v46, %v15697_v5  ;;  %v7594_v52 = vmul.f32 %v15810_v48, %v7574_v61  ;;  %v9781_v61 = vld [vmem:[%s16221_s6 + $0xc8] sm:$0xff]  }
0x143b   :  { %v7628_v10 = vpack.c.bf16 %v7613_v18, %v7612_v50  ;;  %v7595_v26 = vmul.f32 %v15810_v48, %v7575_v9  ;;  %v7614_v5 = vadd.f32 %v15818_v36, %v7594_v52  ;;  %v9779_v50 = vld [vmem:[%s16221_s6 + $0xc0] sm:$0xff]  }
0x143c   :  { %v10548_v42 = vpop.eup %10547  ;;  %v9780_v18 = vld [vmem:[%s16221_s6 + $0x80] sm:$0xff]   ;;  %9178 = vmatprep.subr.bf16.mxu0 %v9779_v50  ;;  %9666 = vmatprep.subr.bf16.mxu1 %v9779_v50 }
0x143d   :  { %8845 = vmatmul.mubr.msk.bf16.vlgmr.msra.gmra.mrb[232].mxu0 %vm71_vm0, %v7628_v10  ;;  %v10550_v41 = vpop.eup %10549  ;;  %v7577_v14 = vmul.f32 %v10548_v42, %v15710_v12  ;;  %v7615_v54 = vadd.f32 %v15818_v36, %v7595_v26  ;;  %9674 = vmatpush3.bf16.msra.mxu1 %v9780_v18 }
0x143e   :  { %7764 = vmatprep.mubr.bf16.mxu0 %v16828_v22  ;;  %v7576_v62 = vmul.f32 %v10550_v41, %v15704_v60  ;;  %9179 = vmatpush3.bf16.msra.mxu0 %v9780_v18  ;;  %v9782_v41 = vld [vmem:[%s16221_s6 + $0x88] sm:$0xff]  }
0x143f   :  { %v7629_v44 = vpack.c.bf16 %v7615_v54, %v7614_v5  ;;  %v7597_v37 = vmul.f32 %v15810_v48, %v7577_v14  ;;  %9180 = vmatprep.subr.bf16.mxu0 %v9781_v61  ;;  %v9783_v54 = vld [vmem:[%s16221_s6 + $0xd0] sm:$0xff]   ;;  %9667 = vmatprep.subr.bf16.mxu1 %v9781_v61 }
0x1440   :  { %v10552_v47 = vpop.eup %10551  ;;  %v7596_v19 = vmul.f32 %v15810_v48, %v7576_v62  ;;  %v9791_v61 = vld [vmem:[%s16221_s6 + $0xf0] sm:$0xff]  }
0x1441   :  { %v10554_v51 = vpop.eup %10553  ;;  %v7579_v53 = vmul.f32 %v10552_v47, %v15722_v20  ;;  %v7617_v12 = vadd.f32 %v15818_v36, %v7597_v37  ;;  %v9784_v37 = vld [vmem:[%s16221_s6 + $0x90] sm:$0xff]   ;;  %9675 = vmatpush3.bf16.msra.mxu1 %v9782_v41 }
0x1442   :  { %v7578_v29 = vmul.f32 %v10554_v51, %v15716_v25  ;;  %v7616_v60 = vadd.f32 %v15818_v36, %v7596_v19  ;;  %9181 = vmatpush3.bf16.msra.mxu0 %v9782_v41  ;;  %v9785_v51 = vld [vmem:[%s16221_s6 + $0xd8] sm:$0xff]   ;;  %9668 = vmatprep.subr.bf16.mxu1 %v9783_v54 }
0x1443   :  { %v7599_v63 = vmul.f32 %v15810_v48, %v7579_v53  ;;  %9182 = vmatprep.subr.bf16.mxu0 %v9783_v54 }
0x1444   :  { %v7630_v11 = vpack.c.bf16 %v7617_v12, %v7616_v60  ;;  %v7598_v8 = vmul.f32 %v15810_v48, %v7578_v29 }
0x1445   :  { %8846 = vmatmul.mubr.msk.bf16.gmra.mrb[236].mxu0 %vm71_vm0, %v7629_v44  ;;  %v7619_v17 = vadd.f32 %v15818_v36, %v7599_v63  ;;  %v9786_v63 = vld [vmem:[%s16221_s6 + $0x98] sm:$0xff]   ;;  %9676 = vmatpush3.bf16.msra.mxu1 %v9784_v37 }
0x1446   :  { %7774 = vmatprep.mubr.bf16.mxu0 %v16828_v22  ;;  %v7618_v43 = vadd.f32 %v15818_v36, %v7598_v8  ;;  %9183 = vmatpush3.bf16.msra.mxu0 %v9784_v37 }
0x1447   :  { %9184 = vmatprep.subr.bf16.mxu0 %v9785_v51  ;;  %9669 = vmatprep.subr.bf16.mxu1 %v9785_v51 }
0x1448   :  { %v7631_v20 = vpack.c.bf16 %v7619_v17, %v7618_v43  ;;  %v9787_v43 = vld [vmem:[%s16221_s6 + $0xe0] sm:$0xff]  }
0x1449   :  { %9677 = vmatpush3.bf16.msra.mxu1 %v9786_v63 }
0x144a   :  { %9185 = vmatpush3.bf16.msra.mxu0 %v9786_v63  ;;  %9670 = vmatprep.subr.bf16.mxu1 %v9787_v43  ;;  %v16837_v63 = vld [vmem:[#allocation6_spill] sm:$0xff] }
0x144b   :  { %9186 = vmatprep.subr.bf16.mxu0 %v9787_v43 }
0x144d   :  { %8847 = vmatmul.mubr.msk.bf16.gmra.mrb[240].mxu0 %vm71_vm0, %v7630_v11 }
0x144e   :  { %7784 = vmatprep.mubr.bf16.mxu0 %v16828_v22 }
0x1455   :  { %8848 = vmatmul.mubr.msk.bf16.gmra.mrb[244].mxu0 %vm71_vm0, %v7631_v20 }
0x1456   :  { %7794 = vmatprep.mubr.bf16.mxu0 %v16828_v22 }
0x14a8   :  { %v7502_v25 = vpop.xlane.xlu1 %7501 }
0x14a9   :  { %v7532_v49 = vmul.f32 0.015625, %v7502_v25 }
0x14aa   :  { %v7505_v45 = vpop.xlane.xlu0 %7504 }
0x14ab   :  { %v7548_v23 = vadd.f32 1e-05, %v7532_v49  ;;  %v7533_v32 = vmul.f32 0.015625, %v7505_v45 }
0x14ac   :  { %v7508_v4 = vpop.xlane.xlu1 %7507 }
0x14ad   :  { %10555 = vrsqrt.f32 %v7548_v23  ;;  %v7549_v38 = vadd.f32 1e-05, %v7533_v32  ;;  %v7534_v46 = vmul.f32 0.015625, %v7508_v4 }
0x14ae   :  { %v7511_v3 = vpop.xlane.xlu0 %7510 }
0x14af   :  { %10557 = vrsqrt.f32 %v7549_v38  ;;  %v7550_v9 = vadd.f32 1e-05, %v7534_v46  ;;  %v7535_v10 = vmul.f32 0.015625, %v7511_v3  ;;  %v9789_v46 = vld [vmem:[%s16221_s6 + $0xe8] sm:$0xff]  }
0x14b0   :  { %v7514_v26 = vpop.xlane.xlu1 %7513 }
0x14b1   :  { %10559 = vrsqrt.f32 %v7550_v9  ;;  %v7551_v42 = vadd.f32 1e-05, %v7535_v10  ;;  %v7536_v52 = vmul.f32 0.015625, %v7514_v26 }
0x14b2   :  { %v7517_v14 = vpop.xlane.xlu0 %7516 }
0x14b3   :  { %10561 = vrsqrt.f32 %v7551_v42  ;;  %v7537_v62 = vmul.f32 0.015625, %v7517_v14  ;;  %v7552_v5 = vadd.f32 1e-05, %v7536_v52  ;;  %v9792_v42 = vld [vmem:[%s16221_s6 + $0xb0] sm:$0xff]   ;;  %v9793_v14 = vld [vmem:[%s16221_s6 + $0xf8] sm:$0xff]  }
0x14b4   :  { %v7520_v47 = vpop.xlane.xlu1 %7519 }
0x14b5   :  { %v7553_v44 = vadd.f32 1e-05, %v7537_v62  ;;  %v7538_v11 = vmul.f32 0.015625, %v7520_v47 }
0x14b6   :  { %v7523_v19 = vpop.xlane.xlu0 %7522 }
0x14b7   :  { %v10556_v53 = vpop.eup %10555  ;;  %10563 = vrsqrt.f32 %v7553_v44  ;;  %v7539_v12 = vmul.f32 0.015625, %v7523_v19  ;;  %v7554_v23 = vadd.f32 1e-05, %v7538_v11 }
0x14b8   :  { %v7580_v29 = vmul.f32 %v10556_v53, %v15760_v27  ;;  %10565 = vrsqrt.f32 %v7552_v5  ;;  %v9794_v5 = vld [vmem:[%s16221_s6 + $0xb8] sm:$0xff]  }
0x14b9   :  { %v10558_v60 = vpop.eup %10557  ;;  %v7555_v20 = vadd.f32 1e-05, %v7539_v12 }
0x14ba   :  { %v7581_v8 = vmul.f32 %v10558_v60, %v15763_v24  ;;  %v7600_v17 = vmul.f32 %v15810_v48, %v7580_v29  ;;  %v9788_v24 = vld [vmem:[%s16221_s6 + $0xa0] sm:$0xff]  }
0x14bb   :  { %v10560_v27 = vpop.eup %10559  ;;  %10567 = vrsqrt.f32 %v7555_v20  ;;  %9187 = vmatpush3.bf16.msra.mxu0 %v9788_v24  ;;  %9678 = vmatpush3.bf16.msra.mxu1 %v9788_v24 }
0x14bc   :  { %v7601_v25 = vmul.f32 %v15810_v48, %v7581_v8  ;;  %v7582_v45 = vmul.f32 %v10560_v27, %v15768_v2  ;;  %v7620_v4 = vadd.f32 %v15818_v36, %v7600_v17  ;;  %10569 = vrsqrt.f32 %v7554_v23  ;;  %9188 = vmatprep.subr.bf16.mxu0 %v9789_v46  ;;  %9671 = vmatprep.subr.bf16.mxu1 %v9789_v46  ;;  %v16838_v17 = vld [vmem:[#allocation5_spill] sm:$0xff] }
0x14bd   :  { %v10562_v49 = vpop.eup %10561 }
0x14be   :  { %v7583_v32 = vmul.f32 %v10562_v49, %v15774_v13  ;;  %v7621_v38 = vadd.f32 %v15818_v36, %v7601_v25  ;;  %v9790_v13 = vld [vmem:[%s16221_s6 + $0xa8] sm:$0xff]   ;;  %v7602_v18 = vmul.f32 %v15810_v48, %v7582_v45 }
0x14bf   :  { %9189 = vmatpush3.bf16.msra.mxu0 %v9790_v13  ;;  %9679 = vmatpush3.bf16.msra.mxu1 %v9790_v13 }
0x14c0   :  { %v7632_v2 = vpack.c.bf16 %v7621_v38, %v7620_v4  ;;  %v7603_v3 = vmul.f32 %v15810_v48, %v7583_v32  ;;  %v7622_v41 = vadd.f32 %v15818_v36, %v7602_v18  ;;  %9190 = vmatprep.subr.bf16.mxu0 %v9791_v61  ;;  %9672 = vmatprep.subr.bf16.mxu1 %v9791_v61 }
0x14c1   :  { %v10564_v50 = vpop.eup %10563 }
0x14c2   :  { %8849 = vmatmul.mubr.msk.bf16.gmra.mrb[248].mxu0 %vm71_vm0, %v7632_v2  ;;  %v10566_v9 = vpop.eup %10565  ;;  %v7585_v10 = vmul.f32 %v10564_v50, %v15786_v6  ;;  %v7623_v26 = vadd.f32 %v15818_v36, %v7603_v3 }
0x14c3   :  { %7804 = vmatprep.mubr.bf16.mxu0 %v16828_v22  ;;  %v7584_v52 = vmul.f32 %v10566_v9, %v15780_v7  ;;  %9191 = vmatpush3.bf16.msra.mxu0 %v9792_v42 }
0x14c4   :  { %v7605_v6 = vmul.f32 %v15810_v48, %v7585_v10  ;;  %v7633_v54 = vpack.c.bf16 %v7623_v26, %v7622_v41  ;;  %9680 = vmatpush3.bf16.msra.mxu1 %v9792_v42  ;;  %9192 = vmatprep.subr.bf16.mxu0 %v9793_v14 }
0x14c5   :  { %v10568_v62 = vpop.eup %10567  ;;  %v7604_v7 = vmul.f32 %v15810_v48, %v7584_v52  ;;  %9673 = vmatprep.subr.bf16.mxu1 %v9793_v14 }
0x14c6   :  { %v10570_v44 = vpop.eup %10569  ;;  %v7625_v37 = vadd.f32 %v15818_v36, %v7605_v6  ;;  %v7587_v47 = vmul.f32 %v10568_v62, %v15798_v39 }
0x14c7   :  { %9193 = vmatpush3.bf16.msra.mxu0 %v9794_v5  ;;  %v7624_v19 = vadd.f32 %v15818_v36, %v7604_v7  ;;  %v7586_v51 = vmul.f32 %v10570_v44, %v15792_v0  ;;  %v8836_v0 = vld [vmem:[%s16217_s2 + $0x1] ss:$2 sm:$0x3] }
0x14c8   :  { %9681 = vmatpush3.bf16.msra.mxu1 %v9794_v5  ;;  %v7607_v12 = vmul.f32 %v15810_v48, %v7587_v47  ;;  %v15932_v8 = vrot.slane %v8836_v0, %v16837_v63 }
0x14c9   :  { %v7634_v53 = vpack.c.bf16 %v7625_v37, %v7624_v19  ;;  %v7606_v29 = vmul.f32 %v15810_v48, %v7586_v51  ;;  %v16839_v48 = vsub.s32 1, %v16838_v17 }
0x14ca   :  { %8850 = vmatmul.mubr.msk.bf16.gmra.mrb[252].mxu0 %vm71_vm0, %v7633_v54  ;;  %v7627_v60 = vadd.f32 %v15818_v36, %v7607_v12 }
0x14cb   :  { %7814 = vmatprep.mubr.bf16.mxu0 %v16828_v22  ;;  %v7626_v11 = vadd.f32 %v15818_v36, %v7606_v29  ;;  %v15936_v43 = vrot.slane %v8836_v0, %v16839_v48 }
0x14cd   :  { %v7635_v39 = vpack.c.bf16 %v7627_v60, %v7626_v11 }
0x14d2   :  { %8851 = vmatmul.mubr.msk.bf16.gmra.mrb[0].mxu0 %vm71_vm0, %v7634_v53 }
0x14d3   :  { %7824 = vmatprep.mubr.bf16.mxu0 %v16828_v22 }
0x14da   :  { %8852 = vmatmul.mubr.msk.bf16.gmra.mrb[4].mxu0 %vm71_vm0, %v7635_v39 }
0x1510   :  { %v7756_v27 = vpop.f32.mrb[232].mxu0 }
0x1511   :  { %v7757_v22 = vadd.f32 %v7756_v27, %v15932_v8  ;;  %v7758_v20 = vpop.f32.mrb[233].mxu0 }
0x1512   :  { %v7759_v36 = vadd.f32 %v7758_v20, %v15936_v43  ;;  %v7760_v25 = vpop.f32.mrb[234].mxu0 }
0x1513   :  { %v7867_v49 = vmul.f32 0.044715, %v7757_v22  ;;  %v15941_v45 = vadd.f32 %v7760_v25, %v15932_v8  ;;  %v7762_v23 = vpop.f32.mrb[235].mxu0  ;;  %v7835_v20 = vmul.f32 0.5, %v7757_v22 }
0x1514   :  { %v7868_v24 = vmul.f32 0.044715, %v7759_v36  ;;  %v15944_v32 = vadd.f32 %v7762_v23, %v15936_v43 }
0x1515   :  { %v7899_v4 = vmul.f32 %v7867_v49, %v7757_v22  ;;  %v7869_v38 = vmul.f32 0.044715, %v15941_v45 }
0x1516   :  { %v7900_v46 = vmul.f32 %v7868_v24, %v7759_v36  ;;  %v7870_v2 = vmul.f32 0.044715, %v15944_v32 }
0x1517   :  { %v7931_v3 = vmul.f32 %v7899_v4, %v7757_v22  ;;  %v7901_v50 = vmul.f32 %v7869_v38, %v15941_v45 }
0x1518   :  { %v7932_v13 = vmul.f32 %v7900_v46, %v7759_v36  ;;  %v7902_v18 = vmul.f32 %v7870_v2, %v15944_v32  ;;  %v7766_v61 = vpop.f32.mrb[236].mxu0 }
0x1519   :  { %v7963_v9 = vadd.f32 %v7931_v3, %v7757_v22  ;;  %v7933_v10 = vmul.f32 %v7901_v50, %v15941_v45  ;;  %v7767_v26 = vadd.f32 %v7766_v61, %v15932_v8  ;;  %v7768_v42 = vpop.f32.mrb[237].mxu0 }
0x151a   :  { %v7934_v52 = vmul.f32 %v7902_v18, %v15944_v32  ;;  %v15954_v41 = vadd.f32 %v7768_v42, %v15936_v43  ;;  %v7770_v14 = vpop.f32.mrb[238].mxu0  ;;  %v7964_v6 = vadd.f32 %v7932_v13, %v7759_v36  ;;  %v7836_v18 = vmul.f32 0.5, %v7759_v36 }
0x151b   :  { %v7995_v54 = vmul.f32 0.7978846, %v7963_v9  ;;  %v7965_v62 = vadd.f32 %v7933_v10, %v15941_v45  ;;  %v7871_v5 = vmul.f32 0.044715, %v7767_v26  ;;  %v7772_v7 = vpop.f32.mrb[239].mxu0  ;;  %v15959_v37 = vadd.f32 %v7770_v14, %v15932_v8 }
0x151c   :  { %v7872_v44 = vmul.f32 0.044715, %v15954_v41  ;;  %v15962_v47 = vadd.f32 %v7772_v7, %v15936_v43  ;;  %v7966_v19 = vadd.f32 %v7934_v52, %v15944_v32  ;;  %v7996_v12 = vmul.f32 0.7978846, %v7964_v6 }
0x151d   :  { %10571 = vtanh.f32 %v7995_v54  ;;  %v7997_v51 = vmul.f32 0.7978846, %v7965_v62  ;;  %v7903_v53 = vmul.f32 %v7871_v5, %v7767_v26  ;;  %v7873_v60 = vmul.f32 0.044715, %v15959_v37 }
0x151e   :  { %v7904_v29 = vmul.f32 %v7872_v44, %v15954_v41  ;;  %v7874_v11 = vmul.f32 0.044715, %v15962_v47  ;;  %v7998_v0 = vmul.f32 0.7978846, %v7966_v19  ;;  %v7837_v44 = vmul.f32 0.5, %v15941_v45 }
0x151f   :  { %10573 = vtanh.f32 %v7997_v51  ;;  %v7935_v39 = vmul.f32 %v7903_v53, %v7767_v26  ;;  %v7905_v17 = vmul.f32 %v7873_v60, %v15959_v37  ;;  %v15995_v19 = vmul.f32 0.5, %v7767_v26 }
0x1520   :  { %v7936_v63 = vmul.f32 %v7904_v29, %v15954_v41  ;;  %v7906_v48 = vmul.f32 %v7874_v11, %v15962_v47  ;;  %v7776_v27 = vpop.f32.mrb[240].mxu0  ;;  %10575 = vtanh.f32 %v7996_v12  ;;  %v7838_v51 = vmul.f32 0.5, %v15944_v32 }
0x1521   :  { %v7967_v25 = vadd.f32 %v7935_v39, %v7767_v26  ;;  %v15972_v49 = vadd.f32 %v7776_v27, %v15932_v8  ;;  %v7778_v23 = vpop.f32.mrb[241].mxu0  ;;  %10577 = vtanh.f32 %v7998_v0  ;;  %v7937_v24 = vmul.f32 %v7905_v17, %v15959_v37 }
0x1522   :  { %v7938_v4 = vmul.f32 %v7906_v48, %v15962_v47  ;;  %v15977_v38 = vadd.f32 %v7778_v23, %v15936_v43  ;;  %v7780_v46 = vpop.f32.mrb[242].mxu0  ;;  %v7968_v2 = vadd.f32 %v7936_v63, %v15954_v41 }
0x1523   :  { %v7999_v3 = vmul.f32 0.7978846, %v7967_v25  ;;  %v7875_v50 = vmul.f32 0.044715, %v15972_v49  ;;  %v15982_v22 = vadd.f32 %v7780_v46, %v15932_v8  ;;  %v7782_v13 = vpop.f32.mrb[243].mxu0  ;;  %v7969_v61 = vadd.f32 %v7937_v24, %v15959_v37 }
0x1524   :  { %v7876_v9 = vmul.f32 0.044715, %v15977_v38  ;;  %v15987_v10 = vadd.f32 %v7782_v13, %v15936_v43  ;;  %v7970_v42 = vadd.f32 %v7938_v4, %v15962_v47  ;;  %v8000_v6 = vmul.f32 0.7978846, %v7968_v2 }
0x1525   :  { %10579 = vtanh.f32 %v7999_v3  ;;  %v7907_v52 = vmul.f32 %v7875_v50, %v15972_v49  ;;  %v7877_v14 = vmul.f32 0.044715, %v15982_v22  ;;  %v8001_v54 = vmul.f32 0.7978846, %v7969_v61 }
0x1526   :  { %v7908_v62 = vmul.f32 %v7876_v9, %v15977_v38  ;;  %v7878_v36 = vmul.f32 0.044715, %v15987_v10  ;;  %v8002_v5 = vmul.f32 0.7978846, %v7970_v42  ;;  %10581 = vtanh.f32 %v8000_v6 }
0x1527   :  { %v10572_v7 = vpop.eup %10571  ;;  %10583 = vtanh.f32 %v8001_v54  ;;  %v7939_v39 = vmul.f32 %v7907_v52, %v15972_v49  ;;  %v7909_v0 = vmul.f32 %v7877_v14, %v15982_v22 }
0x1528   :  { %v8059_v53 = vadd.f32 1.0, %v10572_v7  ;;  %v7940_v12 = vmul.f32 %v7908_v62, %v15977_v38  ;;  %v7910_v29 = vmul.f32 %v7878_v36, %v15987_v10  ;;  %v7786_v60 = vpop.f32.mrb[244].mxu0  ;;  %10585 = vtanh.f32 %v8002_v5 }
0x1529   :  { %v10574_v11 = vpop.eup %10573  ;;  %v16003_v63 = vadd.f32 %v7786_v60, %v15932_v8  ;;  %v7788_v45 = vpop.f32.mrb[245].mxu0  ;;  %v7941_v9 = vmul.f32 %v7909_v0, %v15982_v22 }
0x152a   :  { %v10576_v26 = vpop.eup %10575  ;;  %v8091_v32 = vmul.f32 %v8059_v53, %v7835_v20  ;;  %v8061_v17 = vadd.f32 1.0, %v10574_v11  ;;  %v7942_v48 = vmul.f32 %v7910_v29, %v15987_v10  ;;  %v16007_v27 = vadd.f32 %v7788_v45, %v15936_v43  ;;  %v7790_v25 = vpop.f32.mrb[246].mxu0 }
0x152b   :  { %v10578_v23 = vpop.eup %10577  ;;  %v7879_v24 = vmul.f32 0.044715, %v16003_v63  ;;  %v16011_v4 = vadd.f32 %v7790_v25, %v15932_v8  ;;  %v7792_v46 = vpop.f32.mrb[247].mxu0  ;;  %v8060_v2 = vadd.f32 1.0, %v10576_v26  ;;  %v7972_v3 = vadd.f32 %v7940_v12, %v15977_v38 }
0x152c   :  { %v8093_v50 = vmul.f32 %v8061_v17, %v7837_v44  ;;  %v7880_v20 = vmul.f32 0.044715, %v16007_v27  ;;  %v16016_v13 = vadd.f32 %v7792_v46, %v15936_v43  ;;  %v8062_v61 = vadd.f32 1.0, %v10578_v23 }
0x152d   :  { %v7881_v42 = vmul.f32 0.044715, %v16011_v4  ;;  %v8092_v52 = vmul.f32 %v8060_v2, %v7836_v18  ;;  %v7974_v14 = vadd.f32 %v7942_v48, %v15987_v10  ;;  %v7911_v7 = vmul.f32 %v7879_v24, %v16003_v63 }
0x152e   :  { %v8123_v6 = vpack.c.bf16 %v8093_v50, %v8091_v32  ;;  %v7912_v54 = vmul.f32 %v7880_v20, %v16007_v27  ;;  %v7882_v62 = vmul.f32 0.044715, %v16016_v13  ;;  %v8094_v36 = vmul.f32 %v8062_v61, %v7838_v51 }
0x152f   :  { %v10580_v5 = vpop.eup %10579  ;;  %v7913_v44 = vmul.f32 %v7881_v42, %v16011_v4  ;;  %v8004_v53 = vmul.f32 0.7978846, %v7972_v3  ;;  %v8006_v12 = vmul.f32 0.7978846, %v7974_v14  ;;  %v7841_v45 = vmul.f32 0.5, %v15959_v37 }
0x1530   :  { %v7944_v29 = vmul.f32 %v7912_v54, %v16007_v27  ;;  %v7914_v60 = vmul.f32 %v7882_v62, %v16016_v13  ;;  %v8124_v18 = vpack.c.bf16 %v8094_v36, %v8092_v52  ;;  %v8063_v11 = vadd.f32 1.0, %v10580_v5  ;;  %v10582_v0 = vpop.eup %10581 }
0x1531   :  { %v7840_v26 = vmul.f32 0.5, %v15954_v41  ;;  %10587 = vtanh.f32 %v8004_v53  ;;  %v7971_v51 = vadd.f32 %v7939_v39, %v15972_v49  ;;  %v10584_v32 = vpop.eup %10583  ;;  %v7842_v48 = vmul.f32 0.5, %v15962_v47 }
0x1532   :  { %v7946_v17 = vmul.f32 %v7914_v60, %v16016_v13  ;;  %8305 = vmatprep.mubr.bf16.mxu0 %v8124_v18  ;;  %v8064_v25 = vadd.f32 1.0, %v10582_v0  ;;  %10589 = vtanh.f32 %v8006_v12  ;;  %v10586_v23 = vpop.eup %10585  ;;  %v7943_v24 = vmul.f32 %v7911_v7, %v16003_v63 }
0x1533   :  { %8306 = vmatmul.mubr.bf16.vlgmr.msra.gmra.mrb[8].mxu0 %v8123_v6  ;;  %v8065_v46 = vadd.f32 1.0, %v10584_v32  ;;  %v7973_v37 = vadd.f32 %v7941_v9, %v15982_v22  ;;  %v8003_v2 = vmul.f32 0.7978846, %v7971_v51  ;;  %v7945_v41 = vmul.f32 %v7913_v44, %v16011_v4 }
0x1534   :  { %v8066_v3 = vadd.f32 1.0, %v10586_v23  ;;  %v8095_v39 = vmul.f32 %v8063_v11, %v15995_v19  ;;  %v7976_v50 = vadd.f32 %v7944_v29, %v16007_v27  ;;  %v7978_v47 = vadd.f32 %v7946_v17, %v16016_v13 }
0x1535   :  { %v8097_v20 = vmul.f32 %v8065_v46, %v7841_v45  ;;  %v8005_v61 = vmul.f32 0.7978846, %v7973_v37  ;;  %10591 = vtanh.f32 %v8003_v2  ;;  %v8096_v42 = vmul.f32 %v8064_v25, %v7840_v26 }
0x1536   :  { %v8098_v52 = vmul.f32 %v8066_v3, %v7842_v48  ;;  %v8008_v14 = vmul.f32 0.7978846, %v7976_v50  ;;  %v8010_v54 = vmul.f32 0.7978846, %v7978_v47  ;;  %v7975_v9 = vadd.f32 %v7943_v24, %v16003_v63 }
0x1537   :  { %v8125_v6 = vpack.c.bf16 %v8097_v20, %v8095_v39  ;;  %10593 = vtanh.f32 %v8005_v61  ;;  %v7977_v36 = vadd.f32 %v7945_v41, %v16011_v4  ;;  %v7844_v12 = vmul.f32 0.5, %v15977_v38 }
0x1538   :  { %v8126_v62 = vpack.c.bf16 %v8098_v52, %v8096_v42  ;;  %10595 = vtanh.f32 %v8008_v14  ;;  %v8007_v19 = vmul.f32 0.7978846, %v7975_v9  ;;  %v7846_v29 = vmul.f32 0.5, %v15987_v10 }
0x1539   :  { %10597 = vtanh.f32 %v8010_v54  ;;  %v8009_v5 = vmul.f32 0.7978846, %v7977_v36  ;;  %v7843_v17 = vmul.f32 0.5, %v15972_v49  ;;  %v7845_v48 = vmul.f32 0.5, %v15982_v22 }
0x153a   :  { %8313 = vmatprep.mubr.bf16.mxu1 %v8126_v62  ;;  %10599 = vtanh.f32 %v8007_v19  ;;  %v7848_v24 = vmul.f32 0.5, %v16007_v27  ;;  %v7850_v37 = vmul.f32 0.5, %v16016_v13  ;;  %v7847_v49 = vmul.f32 0.5, %v16003_v63 }
0x153b   :  { %v10588_v7 = vpop.eup %10587  ;;  %8314 = vmatmul.mubr.bf16.vlgmr.msra.gmra.mrb[232].mxu1 %v8125_v6  ;;  %10601 = vtanh.f32 %v8009_v5  ;;  %v7849_v22 = vmul.f32 0.5, %v16011_v4 }
0x153c   :  { %v10590_v44 = vpop.eup %10589  ;;  %v8068_v53 = vadd.f32 1.0, %v10588_v7 }
0x153d   :  { %v8070_v60 = vadd.f32 1.0, %v10590_v44 }
0x153e   :  { %v8100_v11 = vmul.f32 %v8068_v53, %v7844_v12 }
0x153f   :  { %v10592_v18 = vpop.eup %10591  ;;  %v8102_v0 = vmul.f32 %v8070_v60, %v7846_v29 }
0x1540   :  { %v8067_v45 = vadd.f32 1.0, %v10592_v18 }
0x1541   :  { %v10594_v26 = vpop.eup %10593  ;;  %v8128_v51 = vpack.c.bf16 %v8102_v0, %v8100_v11 }
0x1542   :  { %v10596_v32 = vpop.eup %10595  ;;  %v8069_v25 = vadd.f32 1.0, %v10594_v26  ;;  %v8099_v46 = vmul.f32 %v8067_v45, %v7843_v17 }
0x1543   :  { %v10598_v23 = vpop.eup %10597  ;;  %8321 = vmatprep.mubr.bf16.mxu1 %v8128_v51  ;;  %v8072_v38 = vadd.f32 1.0, %v10596_v32 }
0x1544   :  { %v8101_v10 = vmul.f32 %v8069_v25, %v7845_v48  ;;  %v8074_v2 = vadd.f32 1.0, %v10598_v23  ;;  %v10600_v41 = vpop.eup %10599 }
0x1545   :  { %v10602_v3 = vpop.eup %10601  ;;  %v8104_v50 = vmul.f32 %v8072_v38, %v7848_v24  ;;  %v8071_v61 = vadd.f32 1.0, %v10600_v41 }
0x1546   :  { %v8127_v39 = vpack.c.bf16 %v8101_v10, %v8099_v46  ;;  %v8106_v20 = vmul.f32 %v8074_v2, %v7850_v37  ;;  %v8073_v47 = vadd.f32 1.0, %v10602_v3 }
0x1547   :  { %v8103_v27 = vmul.f32 %v8071_v61, %v7847_v49 }
0x1548   :  { %8322 = vmatmul.mubr.bf16.gmra.mrb[236].mxu1 %v8127_v39  ;;  %v8130_v42 = vpack.c.bf16 %v8106_v20, %v8104_v50  ;;  %v8105_v52 = vmul.f32 %v8073_v47, %v7849_v22 }
0x154a   :  { %8329 = vmatprep.mubr.bf16.mxu1 %v8130_v42  ;;  %v8129_v14 = vpack.c.bf16 %v8105_v52, %v8103_v27 }
0x1550   :  { %8330 = vmatmul.mubr.bf16.gmra.mrb[240].mxu1 %v8129_v14 }
0x1595   :  { %v7796_v13 = vpop.f32.mrb[248].mxu0 }
0x1596   :  { %v7797_v6 = vadd.f32 %v7796_v13, %v15932_v8  ;;  %v7798_v54 = vpop.f32.mrb[249].mxu0 }
0x1597   :  { %v7799_v9 = vadd.f32 %v7798_v54, %v15936_v43  ;;  %v7800_v62 = vpop.f32.mrb[250].mxu0 }
0x1598   :  { %v7883_v36 = vmul.f32 0.044715, %v7797_v6  ;;  %v7801_v63 = vadd.f32 %v7800_v62, %v15932_v8  ;;  %v7802_v19 = vpop.f32.mrb[251].mxu0 }
0x1599   :  { %v7884_v4 = vmul.f32 0.044715, %v7799_v9  ;;  %v16052_v5 = vadd.f32 %v7802_v19, %v15936_v43  ;;  %v7852_v19 = vmul.f32 0.5, %v7799_v9 }
0x159a   :  { %v7915_v7 = vmul.f32 %v7883_v36, %v7797_v6  ;;  %v7885_v44 = vmul.f32 0.044715, %v7801_v63 }
0x159b   :  { %v7916_v53 = vmul.f32 %v7884_v4, %v7799_v9  ;;  %v7886_v12 = vmul.f32 0.044715, %v16052_v5  ;;  %v7851_v4 = vmul.f32 0.5, %v7797_v6 }
0x159c   :  { %v7947_v29 = vmul.f32 %v7915_v7, %v7797_v6  ;;  %v7917_v60 = vmul.f32 %v7885_v44, %v7801_v63 }
0x159d   :  { %v7948_v18 = vmul.f32 %v7916_v53, %v7799_v9  ;;  %v7918_v11 = vmul.f32 %v7886_v12, %v16052_v5  ;;  %v7806_v0 = vpop.f32.mrb[252].mxu0 }
0x159e   :  { %v7949_v45 = vmul.f32 %v7917_v60, %v7801_v63  ;;  %v16057_v26 = vadd.f32 %v7806_v0, %v15932_v8  ;;  %v7808_v51 = vpop.f32.mrb[253].mxu0  ;;  %v7979_v32 = vadd.f32 %v7947_v29, %v7797_v6  ;;  %v7853_v0 = vmul.f32 0.5, %v7801_v63 }
0x159f   :  { %v7950_v17 = vmul.f32 %v7918_v11, %v16052_v5  ;;  %v7809_v48 = vadd.f32 %v7808_v51, %v15936_v43  ;;  %v7810_v25 = vpop.f32.mrb[254].mxu0  ;;  %v7980_v23 = vadd.f32 %v7948_v18, %v7799_v9 }
0x15a0   :  { %v7887_v24 = vmul.f32 0.044715, %v16057_v26  ;;  %v16063_v38 = vadd.f32 %v7810_v25, %v15932_v8  ;;  %v7812_v46 = vpop.f32.mrb[255].mxu0  ;;  %v7981_v10 = vadd.f32 %v7949_v45, %v7801_v63  ;;  %v8011_v37 = vmul.f32 0.7978846, %v7979_v32 }
0x15a1   :  { %v7888_v2 = vmul.f32 0.044715, %v7809_v48  ;;  %v7813_v41 = vadd.f32 %v7812_v46, %v15936_v43  ;;  %v7982_v3 = vadd.f32 %v7950_v17, %v16052_v5  ;;  %v8012_v39 = vmul.f32 0.7978846, %v7980_v23 }
0x15a2   :  { %v7919_v50 = vmul.f32 %v7887_v24, %v16057_v26  ;;  %v7889_v20 = vmul.f32 0.044715, %v16063_v38  ;;  %v8013_v61 = vmul.f32 0.7978846, %v7981_v10  ;;  %10603 = vtanh.f32 %v8011_v37 }
0x15a3   :  { %v7920_v49 = vmul.f32 %v7888_v2, %v7809_v48  ;;  %v7890_v22 = vmul.f32 0.044715, %v7813_v41  ;;  %v8014_v47 = vmul.f32 0.7978846, %v7982_v3  ;;  %10605 = vtanh.f32 %v8012_v39 }
0x15a4   :  { %v7951_v42 = vmul.f32 %v7919_v50, %v16057_v26  ;;  %v7921_v27 = vmul.f32 %v7889_v20, %v16063_v38  ;;  %10607 = vtanh.f32 %v8013_v61  ;;  %v7854_v37 = vmul.f32 0.5, %v16052_v5 }
0x15a5   :  { %v7952_v52 = vmul.f32 %v7920_v49, %v7809_v48  ;;  %v7922_v14 = vmul.f32 %v7890_v22, %v7813_v41  ;;  %v7816_v13 = vpop.f32.mrb[0].mxu0  ;;  %10609 = vtanh.f32 %v8014_v47  ;;  %v16092_v2 = vmul.f32 0.5, %v7809_v48 }
0x15a6   :  { %v7953_v54 = vmul.f32 %v7921_v27, %v16063_v38  ;;  %v16073_v62 = vadd.f32 %v7816_v13, %v15932_v8  ;;  %v7818_v36 = vpop.f32.mrb[1].mxu0  ;;  %v7983_v29 = vadd.f32 %v7951_v42, %v16057_v26  ;;  %v16094_v3 = vmul.f32 0.5, %v7813_v41 }
0x15a7   :  { %v7954_v7 = vmul.f32 %v7922_v14, %v7813_v41  ;;  %v16076_v44 = vadd.f32 %v7818_v36, %v15936_v43  ;;  %v7820_v53 = vpop.f32.mrb[2].mxu0  ;;  %v7984_v12 = vadd.f32 %v7952_v52, %v7809_v48  ;;  %v16098_v49 = vmul.f32 0.5, %v16057_v26 }
0x15a8   :  { %v7891_v60 = vmul.f32 0.044715, %v16073_v62  ;;  %v16081_v18 = vadd.f32 %v7820_v53, %v15932_v8  ;;  %v7822_v11 = vpop.f32.mrb[3].mxu0  ;;  %v7985_v45 = vadd.f32 %v7953_v54, %v16063_v38  ;;  %v8015_v25 = vmul.f32 0.7978846, %v7983_v29 }
0x15a9   :  { %v7892_v9 = vmul.f32 0.044715, %v16076_v44  ;;  %v16086_v6 = vadd.f32 %v7822_v11, %v15936_v43  ;;  %v7986_v51 = vadd.f32 %v7954_v7, %v7813_v41  ;;  %v8016_v32 = vmul.f32 0.7978846, %v7984_v12 }
0x15aa   :  { %v7893_v17 = vmul.f32 0.044715, %v16081_v18  ;;  %v8017_v23 = vmul.f32 0.7978846, %v7985_v45  ;;  %v7923_v47 = vmul.f32 %v7891_v60, %v16073_v62 }
0x15ab   :  { %v7924_v24 = vmul.f32 %v7892_v9, %v16076_v44  ;;  %v7894_v46 = vmul.f32 0.044715, %v16086_v6  ;;  %v8018_v10 = vmul.f32 0.7978846, %v7986_v51  ;;  %10611 = vtanh.f32 %v8016_v32 }
0x15ac   :  { %v10604_v63 = vpop.eup %10603  ;;  %10613 = vtanh.f32 %v8015_v25  ;;  %v7925_v52 = vmul.f32 %v7893_v17, %v16081_v18  ;;  %v7955_v25 = vmul.f32 %v7923_v47, %v16073_v62 }
0x15ad   :  { %v10606_v39 = vpop.eup %10605  ;;  %v7926_v50 = vmul.f32 %v7894_v46, %v16086_v6  ;;  %v7826_v20 = vpop.f32.mrb[4].mxu0  ;;  %v8075_v61 = vadd.f32 1.0, %v10604_v63  ;;  %10615 = vtanh.f32 %v8018_v10  ;;  %v7956_v27 = vmul.f32 %v7924_v24, %v16076_v44 }
0x15ae   :  { %v10608_v22 = vpop.eup %10607  ;;  %v16102_v42 = vadd.f32 %v7826_v20, %v15932_v8  ;;  %v7828_v5 = vpop.f32.mrb[5].mxu0  ;;  %v8076_v48 = vadd.f32 1.0, %v10606_v39  ;;  %10617 = vtanh.f32 %v8017_v23  ;;  %v7957_v63 = vmul.f32 %v7925_v52, %v16081_v18 }
0x15af   :  { %v10610_v41 = vpop.eup %10609  ;;  %v16107_v14 = vadd.f32 %v7828_v5, %v15936_v43  ;;  %v7830_v13 = vpop.f32.mrb[6].mxu0  ;;  %v8077_v26 = vadd.f32 1.0, %v10608_v22  ;;  %v7958_v54 = vmul.f32 %v7926_v50, %v16086_v6  ;;  %v8107_v11 = vmul.f32 %v8075_v61, %v7851_v4 }
0x15b0   :  { %v7895_v36 = vmul.f32 0.044715, %v16102_v42  ;;  %v16112_v7 = vadd.f32 %v7830_v13, %v15932_v8  ;;  %v7832_v53 = vpop.f32.mrb[7].mxu0  ;;  %v8078_v12 = vadd.f32 1.0, %v10610_v41  ;;  %v8108_v32 = vmul.f32 %v8076_v48, %v7852_v19 }
0x15b1   :  { %v7896_v29 = vmul.f32 0.044715, %v16107_v14  ;;  %v16116_v60 = vadd.f32 %v7832_v53, %v15936_v43  ;;  %v8109_v45 = vmul.f32 %v8077_v26, %v7853_v0  ;;  %v7988_v4 = vadd.f32 %v7956_v27, %v16076_v44 }
0x15b2   :  { %v7927_v9 = vmul.f32 %v7895_v36, %v16102_v42  ;;  %v7897_v51 = vmul.f32 0.044715, %v16112_v7  ;;  %v8110_v17 = vmul.f32 %v8078_v12, %v7854_v37  ;;  %v7857_v37 = vmul.f32 0.5, %v16063_v38 }
0x15b3   :  { %v7928_v8 = vmul.f32 %v7896_v29, %v16107_v14  ;;  %v7898_v23 = vmul.f32 0.044715, %v16116_v60  ;;  %v8131_v24 = vpack.c.bf16 %v8109_v45, %v8107_v11  ;;  %v7990_v39 = vadd.f32 %v7958_v54, %v16086_v6 }
0x15b4   :  { %v7959_v46 = vmul.f32 %v7927_v9, %v16102_v42  ;;  %v7929_v43 = vmul.f32 %v7897_v51, %v16112_v7  ;;  %v8132_v10 = vpack.c.bf16 %v8110_v17, %v8108_v32  ;;  %v8020_v47 = vmul.f32 0.7978846, %v7988_v4 }
0x15b5   :  { %v10612_v0 = vpop.eup %10611  ;;  %v7930_v19 = vmul.f32 %v7898_v23, %v16116_v60  ;;  %v7960_v48 = vmul.f32 %v7928_v8, %v16107_v14  ;;  %v8022_v27 = vmul.f32 0.7978846, %v7990_v39  ;;  %v7987_v52 = vadd.f32 %v7955_v25, %v16073_v62 }
0x15b6   :  { %v10614_v50 = vpop.eup %10613  ;;  %v7991_v20 = vadd.f32 %v7959_v46, %v16102_v42  ;;  %v7961_v61 = vmul.f32 %v7929_v43, %v16112_v7  ;;  %8337 = vmatprep.mubr.bf16.mxu1 %v8132_v10  ;;  %v8080_v22 = vadd.f32 1.0, %v10612_v0  ;;  %10619 = vtanh.f32 %v8020_v47 }
0x15b7   :  { %v10616_v5 = vpop.eup %10615  ;;  %8338 = vmatmul.mubr.bf16.gmra.mrb[244].mxu1 %v8131_v24  ;;  %v8079_v41 = vadd.f32 1.0, %v10614_v50  ;;  %v7962_v54 = vmul.f32 %v7930_v19, %v16116_v60  ;;  %v7989_v29 = vadd.f32 %v7957_v63, %v16081_v18  ;;  %v8019_v9 = vmul.f32 0.7978846, %v7987_v52 }
0x15b8   :  { %v10618_v13 = vpop.eup %10617  ;;  %v8023_v38 = vmul.f32 0.7978846, %v7991_v20  ;;  %v7993_v26 = vadd.f32 %v7961_v61, %v16112_v7  ;;  %v8082_v36 = vadd.f32 1.0, %v10616_v5  ;;  %v8112_v53 = vmul.f32 %v8080_v22, %v16092_v2 }
0x15b9   :  { %v8081_v12 = vadd.f32 1.0, %v10618_v13  ;;  %v8111_v51 = vmul.f32 %v8079_v41, %v16098_v49  ;;  %v8021_v17 = vmul.f32 0.7978846, %v7989_v29  ;;  %v7992_v8 = vadd.f32 %v7960_v48, %v16107_v14 }
0x15ba   :  { %10621 = vtanh.f32 %v8023_v38  ;;  %v8025_v11 = vmul.f32 0.7978846, %v7993_v26  ;;  %v8114_v45 = vmul.f32 %v8082_v36, %v16094_v3  ;;  %v7994_v2 = vadd.f32 %v7962_v54, %v16116_v60 }
0x15bb   :  { %v8113_v32 = vmul.f32 %v8081_v12, %v7857_v37  ;;  %10623 = vtanh.f32 %v8022_v27  ;;  %v8024_v24 = vmul.f32 0.7978846, %v7992_v8  ;;  %v7860_v63 = vmul.f32 0.5, %v16076_v44 }
0x15bc   :  { %10625 = vtanh.f32 %v8025_v11  ;;  %v8134_v25 = vpack.c.bf16 %v8114_v45, %v8112_v53  ;;  %v8026_v46 = vmul.f32 0.7978846, %v7994_v2  ;;  %v7862_v19 = vmul.f32 0.5, %v16086_v6 }
0x15bd   :  { %v8133_v23 = vpack.c.bf16 %v8113_v32, %v8111_v51  ;;  %10627 = vtanh.f32 %v8019_v9  ;;  %v7863_v50 = vmul.f32 0.5, %v16102_v42  ;;  %v7865_v20 = vmul.f32 0.5, %v16112_v7  ;;  %v16153_v51 = vld [vmem:[%s16216_s1 + $0xe] ss:$0 sm:$0xff]  ;;  %s10695_s1 = smov [#allocation2]  }
0x15be   :  { %8345 = vmatprep.mubr.bf16.mxu1 %v8134_v25  ;;  %10629 = vtanh.f32 %v8021_v17  ;;  %v7859_v48 = vmul.f32 0.5, %v16073_v62  ;;  %v7861_v13 = vmul.f32 0.5, %v16081_v18  ;;  %v7864_v7 = vmul.f32 0.5, %v16107_v14  ;;  %s8407_s28 = sshll.u32 %s10695_s1, 4  ;;  %s8408_s28 = int_to_ptr.vmem [resolvable:$true] %s8407_s28 }
0x15bf   :  { %8346 = vmatmul.mubr.bf16.gmra.mrb[248].mxu1 %v8133_v23  ;;  %10631 = vtanh.f32 %v8024_v24  ;;  %v7866_v12 = vmul.f32 0.5, %v16116_v60  ;;  %s10669_s29 = scalar_lea.vmem %s8408_s28, 2048  ;;  %p10674_p1 = scmp.lt.s32.totalorder %s8408_s28, %s8408_s28 }
0x15c0   :  { %10633 = vtanh.f32 %v8026_v46  ;;  %v10620_v3 = vpop.eup %10619  ;;  %p10670_p0 = scmp.ne.s32.totalorder %s8408_s28, %s10669_s29  ;;  %p10675_p2 = scmp.lt.s32.totalorder %s10669_s29, %s10669_s29 }
0x15c1   :  { %v8084_v43 = vadd.f32 1.0, %v10620_v3 }
0x15c2   :  { %p10676_p3 = por %p10675_p2, %p10674_p1 }
0x15c3   :  { %v8116_v47 = vmul.f32 %v8084_v43, %v7860_v63 }
0x15c4   :  { %v10622_v49 = vpop.eup %10621  ;;  %p10677_p4 = pnand %p10676_p3, %p10670_p0 }
0x15c5   :  { %v10624_v10 = vpop.eup %10623  ;;  %v8087_v4 = vadd.f32 1.0, %v10622_v49 }
0x15c6   :  { %v10626_v0 = vpop.eup %10625  ;;  %v8086_v37 = vadd.f32 1.0, %v10624_v10 }
0x15c7   :  { %v10628_v39 = vpop.eup %10627  ;;  %v8089_v61 = vadd.f32 1.0, %v10626_v0  ;;  %v8119_v27 = vmul.f32 %v8087_v4, %v7863_v50 }
0x15c8   :  { %v10630_v22 = vpop.eup %10629  ;;  %v8118_v5 = vmul.f32 %v8086_v37, %v7862_v19  ;;  %v8083_v41 = vadd.f32 1.0, %v10628_v39 }
0x15c9   :  { %v8121_v52 = vmul.f32 %v8089_v61, %v7865_v20  ;;  %v8085_v44 = vadd.f32 1.0, %v10630_v22  ;;  %v10632_v38 = vpop.eup %10631 }
0x15ca   :  { %v8136_v6 = vpack.c.bf16 %v8118_v5, %v8116_v47  ;;  %v10634_v26 = vpop.eup %10633  ;;  %v8115_v36 = vmul.f32 %v8083_v41, %v7859_v48  ;;  %v8088_v53 = vadd.f32 1.0, %v10632_v38 }
0x15cb   :  { %v8137_v54 = vpack.c.bf16 %v8121_v52, %v8119_v27  ;;  %v8117_v42 = vmul.f32 %v8085_v44, %v7861_v13  ;;  %v8090_v29 = vadd.f32 1.0, %v10634_v26 }
0x15cc   :  { %8353 = vmatprep.mubr.bf16.mxu1 %v8136_v6  ;;  %v8120_v11 = vmul.f32 %v8088_v53, %v7864_v7 }
0x15cd   :  { %v8135_v62 = vpack.c.bf16 %v8117_v42, %v8115_v36  ;;  %v8122_v45 = vmul.f32 %v8090_v29, %v7866_v12 }
0x15cf   :  { %8354 = vmatmul.mubr.bf16.gmra.mrb[252].mxu1 %v8135_v62  ;;  %v8138_v9 = vpack.c.bf16 %v8122_v45, %v8120_v11 }
0x15d1   :  { %8361 = vmatprep.mubr.bf16.mxu1 %v8138_v9 }
0x15d7   :  { %8362 = vmatmul.mubr.bf16.gmra.mrb[0].mxu1 %v8137_v54 }
0x1606   :  { %v9194_v18 = vpop.f32.mrb[8].mxu0 }
0x1607   :  { %v9195_v32 = vpop.f32.mrb[9].mxu0 }
0x1608   :  { %v9196_v17 = vadd.f32 %v9195_v32, %v9194_v18  ;;  %v9197_v25 = vpop.f32.mrb[10].mxu0 }
0x1609   :  { %v9198_v14 = vpop.f32.mrb[11].mxu0 }
0x160a   :  { %v8308_v60 = vadd.f32 %v9196_v17, %v16153_v51  ;;  %v9199_v8 = vadd.f32 %v9198_v14, %v9197_v25 }
0x160c   :  { %v8370_v23 = vadd.f32 %v8308_v60, %v15561_v1  ;;  %v8311_v2 = vadd.f32 %v9199_v8, %v16153_v51 }
0x160e   :  { %8386 = vst.msk [vmem:[#allocation2] sm:$0xff] %vm71_vm0, %v8370_v23  ;;  %v8371_v24 = vadd.f32 %v8311_v2, %v15569_v15  ;;  %v9200_v46 = vpop.f32.mrb[232].mxu1 }
0x160f   :  { %v9201_v3 = vpop.f32.mrb[233].mxu1 }
0x1610   :  { %8387 = vst.msk [vmem:[#allocation2 + $0x8] sm:$0xff] %vm71_vm0, %v8371_v24  ;;  %v9202_v49 = vadd.f32 %v9201_v3, %v9200_v46  ;;  %v9203_v43 = vpop.f32.mrb[234].mxu1 }
0x1611   :  { %v9204_v10 = vpop.f32.mrb[235].mxu1 }
0x1612   :  { %v8316_v4 = vadd.f32 %v9202_v49, %v16153_v51  ;;  %v9205_v0 = vadd.f32 %v9204_v10, %v9203_v43 }
0x1614   :  { %v8372_v63 = vadd.f32 %v8316_v4, %v15566_v56  ;;  %v8319_v1 = vadd.f32 %v9205_v0, %v16153_v51 }
0x1616   :  { %8388 = vst.msk [vmem:[#allocation2 + $0x10] sm:$0xff] %vm71_vm0, %v8372_v63  ;;  %v8373_v19 = vadd.f32 %v8319_v1, %v15574_v55 }
0x1618   :  { %8389 = vst.msk [vmem:[#allocation2 + $0x18] sm:$0xff] %vm71_vm0, %v8373_v19 }
0x161b   :  { %v9206_v15 = vpop.f32.mrb[236].mxu1 }
0x161c   :  { %v9207_v37 = vpop.f32.mrb[237].mxu1 }
0x161d   :  { %v9208_v39 = vadd.f32 %v9207_v37, %v9206_v15  ;;  %v9209_v50 = vpop.f32.mrb[238].mxu1 }
0x161e   :  { %v9210_v20 = vpop.f32.mrb[239].mxu1 }
0x161f   :  { %v8324_v61 = vadd.f32 %v9208_v39, %v16153_v51  ;;  %v9211_v22 = vadd.f32 %v9210_v20, %v9209_v50 }
0x1621   :  { %v8374_v47 = vadd.f32 %v8324_v61, %v15583_v28  ;;  %v8327_v56 = vadd.f32 %v9211_v22, %v16153_v51 }
0x1623   :  { %8390 = vst.msk [vmem:[#allocation2 + $0x20] sm:$0xff] %vm71_vm0, %v8374_v47  ;;  %v8375_v5 = vadd.f32 %v8327_v56, %v15593_v30  ;;  %v9212_v48 = vpop.f32.mrb[240].mxu1 }
0x1624   :  { %v9213_v55 = vpop.f32.mrb[241].mxu1 }
0x1625   :  { %8391 = vst.msk [vmem:[#allocation2 + $0x28] sm:$0xff] %vm71_vm0, %v8375_v5  ;;  %v9214_v41 = vadd.f32 %v9213_v55, %v9212_v48  ;;  %v9215_v27 = vpop.f32.mrb[242].mxu1 }
0x1626   :  { %v9216_v52 = vpop.f32.mrb[243].mxu1 }
0x1627   :  { %v8332_v13 = vadd.f32 %v9214_v41, %v16153_v51  ;;  %v9217_v44 = vadd.f32 %v9216_v52, %v9215_v27 }
0x1629   :  { %v8376_v38 = vadd.f32 %v8332_v13, %v15590_v57  ;;  %v8335_v28 = vadd.f32 %v9217_v44, %v16153_v51 }
0x162b   :  { %8392 = vst.msk [vmem:[#allocation2 + $0x30] sm:$0xff] %vm71_vm0, %v8376_v38  ;;  %v8377_v6 = vadd.f32 %v8335_v28, %v15598_v59 }
0x162d   :  { %8393 = vst.msk [vmem:[#allocation2 + $0x38] sm:$0xff] %vm71_vm0, %v8377_v6 }
0x168a   :  { %v9218_v30 = vpop.f32.mrb[244].mxu1 }
0x168b   :  { %v9219_v26 = vpop.f32.mrb[245].mxu1 }
0x168c   :  { %v9220_v54 = vadd.f32 %v9219_v26, %v9218_v30  ;;  %v9221_v36 = vpop.f32.mrb[246].mxu1 }
0x168d   :  { %v9222_v42 = vpop.f32.mrb[247].mxu1 }
0x168e   :  { %v8340_v53 = vadd.f32 %v9220_v54, %v16153_v51  ;;  %v9223_v7 = vadd.f32 %v9222_v42, %v9221_v36 }
0x1690   :  { %v8378_v12 = vadd.f32 %v8340_v53, %v15642_v34  ;;  %v8343_v57 = vadd.f32 %v9223_v7, %v16153_v51 }
0x1692   :  { %8394 = vst.msk [vmem:[#allocation2 + $0x40] sm:$0xff] %vm71_vm0, %v8378_v12  ;;  %v8379_v29 = vadd.f32 %v8343_v57, %v15650_v16  ;;  %v9224_v62 = vpop.f32.mrb[248].mxu1 }
0x1693   :  { %v9225_v59 = vpop.f32.mrb[249].mxu1 }
0x1694   :  { %8395 = vst.msk [vmem:[#allocation2 + $0x48] sm:$0xff] %vm71_vm0, %v8379_v29  ;;  %v9226_v11 = vadd.f32 %v9225_v59, %v9224_v62  ;;  %v9227_v45 = vpop.f32.mrb[250].mxu1 }
0x1695   :  { %v9228_v9 = vpop.f32.mrb[251].mxu1 }
0x1696   :  { %v8348_v18 = vadd.f32 %v9226_v11, %v16153_v51  ;;  %v9229_v32 = vadd.f32 %v9228_v9, %v9227_v45 }
0x1698   :  { %v8380_v17 = vadd.f32 %v8348_v18, %v15647_v31  ;;  %v8351_v34 = vadd.f32 %v9229_v32, %v16153_v51 }
0x169a   :  { %8396 = vst.msk [vmem:[#allocation2 + $0x50] sm:$0xff] %vm71_vm0, %v8380_v17  ;;  %v8381_v25 = vadd.f32 %v8351_v34, %v15655_v58 }
0x169c   :  { %8397 = vst.msk [vmem:[#allocation2 + $0x58] sm:$0xff] %vm71_vm0, %v8381_v25 }
0x16a2   :  { %v9230_v16 = vpop.f32.mrb[252].mxu1 }
0x16a3   :  { %v9231_v14 = vpop.f32.mrb[253].mxu1 }
0x16a4   :  { %v9232_v60 = vadd.f32 %v9231_v14, %v9230_v16  ;;  %v9233_v8 = vpop.f32.mrb[254].mxu1 }
0x16a5   :  { %v9234_v23 = vpop.f32.mrb[255].mxu1 }
0x16a6   :  { %v8356_v2 = vadd.f32 %v9232_v60, %v16153_v51  ;;  %v9235_v24 = vadd.f32 %v9234_v23, %v9233_v8 }
0x16a8   :  { %v8382_v46 = vadd.f32 %v8356_v2, %v15664_v33  ;;  %v8359_v31 = vadd.f32 %v9235_v24, %v16153_v51 }
0x16aa   :  { %8398 = vst.msk [vmem:[#allocation2 + $0x60] sm:$0xff] %vm71_vm0, %v8382_v46  ;;  %v8383_v3 = vadd.f32 %v8359_v31, %v15677_v35  ;;  %v9236_v49 = vpop.f32.mrb[0].mxu1 }
0x16ab   :  { %v9237_v58 = vpop.f32.mrb[1].mxu1 }
0x16ac   :  { %8399 = vst.msk [vmem:[#allocation2 + $0x68] sm:$0xff] %vm71_vm0, %v8383_v3  ;;  %v9238_v43 = vadd.f32 %v9237_v58, %v9236_v49  ;;  %v9239_v10 = vpop.f32.mrb[2].mxu1 }
0x16ad   :  { %v9240_v4 = vpop.f32.mrb[3].mxu1 }
0x16ae   :  { %v8364_v0 = vadd.f32 %v9238_v43, %v16153_v51  ;;  %v9241_v63 = vadd.f32 %v9240_v4, %v9239_v10 }
0x16b0   :  { %v8384_v33 = vadd.f32 %v8364_v0, %v15674_v21  ;;  %v8367_v1 = vadd.f32 %v9241_v63, %v16153_v51 }
0x16b2   :  { %8400 = vst.msk [vmem:[#allocation2 + $0x70] sm:$0xff] %vm71_vm0, %v8384_v33  ;;  %v8385_v35 = vadd.f32 %v8367_v1, %v15685_v40 }
0x16b4   :  { %8401 = vst.msk [vmem:[#allocation2 + $0x78] sm:$0xff] %vm71_vm0, %v8385_v35 }
0x16b5   :  { %10680 = shalt.err (!%p10677_p4)
}
0x16b6   :  { %s10681_s12 = scalar_lea.hbm %s16225_s10, 2048 }
0x16b7   :  { %p10682_p5 = scmp.ne.s32.totalorder %s16225_s10, %s10681_s12  ;;  %p10685_p6 = scmp.lt.u32.totalorder %s10681_s12, %s16225_s10 }
0x16b9   :  { %p10687_p7 = pnand %p10685_p6, %p10682_p5 }
0x16bb   :  { %10690 = shalt.err (!%p10687_p7)
}
0x16bc   :  { %s10696_s16 = smov 128   ;;  %s10697_s18 = smov 8  }
0x16bd   :  { %8413 = dma.vmem_to_hbm [thread:$0]  %s8408_s28, 2048, %s16225_s10, [#allocation3], %s10696_s16, %s10696_s16, %s10697_s18  }
0x16be   :  { %10691 = dma.done.wait [#allocation3], 2048  }
0x16bf   :  { %10692 = vsyncadd [#allocation3], 4294965248 }
0x16c0   :  { %8417 = vsyncpa [#allocation3], 1 }

</bundles_post_ra>
